<compile_context>
chip_gen: v6e
topology: v6e:2x2x1
jax: 0.10.0
libtpu: 0.0.40
codegen_flags: <defaults>
</compile_context>

<pallas_src>
import functools

import numpy as np
import jax
import jax.numpy as jnp
from jax.experimental import pallas as pl
from jax.experimental.pallas import tpu as pltpu


# ---------------------------------------------------------------------------
# Parameters
# ---------------------------------------------------------------------------
def init_raw_params(key, in_size, out_size, dtype=jnp.float32):
    """Deterministic PyTorch-style init, U(-1/sqrt(fan_in), 1/sqrt(fan_in)).
    (Exact torch kaiming details are not reproduced; only forward semantics matter.)"""
    ks = jax.random.split(key, 10)

    def u(k, shape, fan_in):
        bound = 1.0 / np.sqrt(fan_in)
        return jax.random.uniform(k, shape, dtype, -bound, bound)

    return {
        # nn.Linear(in_size, 100): weight [100, in_size], bias [100]
        "fc_w": u(ks[0], (100, in_size), in_size),
        "fc_b": u(ks[1], (100,), in_size),
        # nn.ConvTranspose1d(4, 8, k=2, s=2): torch weight layout [C_in, C_out, K]
        "tc2_w": u(ks[2], (4, 8, 2), 8 * 2),
        "tc2_b": u(ks[3], (8,), 8 * 2),
        # nn.ConvTranspose1d(8, 16, k=2, s=2)
        "tc3_w": u(ks[4], (8, 16, 2), 16 * 2),
        "tc3_b": u(ks[5], (16,), 16 * 2),
        # nn.ConvTranspose1d(16, 1, k=3, s=1, p=1)
        "tc4_w": u(ks[6], (16, 1, 3), 1 * 3),
        "tc4_b": u(ks[7], (1,), 1 * 3),
        # nn.Linear(100, out_size)
        "fc2_w": u(ks[8], (out_size, 100), 100),
        "fc2_b": u(ks[9], (out_size,), 100),
    }


def convtranspose1d_as_dense(w, b, l_in, stride, padding):
    """Expand a ConvTranspose1d (torch weight layout [C_in, C_out, K]) into an exactly
    equivalent dense matrix M [C_out*L_out, C_in*L_in] and flat bias [C_out*L_out],
    acting on channel-major flattened features (flat index = channel * L + position).

    ConvTranspose1d definition: out[co, j] = b[co] + sum_{ci,k} in[ci, i] * w[ci, co, k]
    with j = i*stride - padding + k.  Each (ci, co, i, k) tuple maps to a distinct
    (row, col) entry, so a scatter-set (no accumulation) is exact.
    """
    c_in, c_out, k = w.shape
    l_out = (l_in - 1) * stride - 2 * padding + k
    ci, co, li, t = np.meshgrid(np.arange(c_in), np.arange(c_out),
                                np.arange(l_in), np.arange(k), indexing="ij")
    lo = li * stride - padding + t
    valid = (lo >= 0) & (lo < l_out)
    rows = (co * l_out + lo)[valid]
    cols = (ci * l_in + li)[valid]
    vals = w[ci[valid], co[valid], t[valid]]
    m = jnp.zeros((c_out * l_out, c_in * l_in), jnp.float32).at[rows, cols].set(vals)
    beta = jnp.repeat(b.astype(jnp.float32), l_out)
    return m, beta


_PARAM_ORDER = ("w1", "b1", "m2", "b2", "m3", "b3", "m4", "b4", "w5", "b5")


def prepare_params(raw, compute_dtype=jnp.bfloat16):
    """Kernel-side parameters: [out_feat, in_feat] matrices (convs expanded to dense
    equivalents) in `compute_dtype`; biases kept in f32 as [F, 1] column vectors."""
    m2, b2 = convtranspose1d_as_dense(raw["tc2_w"], raw["tc2_b"], 25, 2, 0)    # [400, 100]
    m3, b3 = convtranspose1d_as_dense(raw["tc3_w"], raw["tc3_b"], 50, 2, 0)    # [1600, 400]
    m4, b4 = convtranspose1d_as_dense(raw["tc4_w"], raw["tc4_b"], 100, 1, 1)   # [100, 1600]
    col = lambda v: jnp.asarray(v, jnp.float32).reshape(-1, 1)
    cd = compute_dtype
    return {
        "w1": raw["fc_w"].astype(cd), "b1": col(raw["fc_b"]),
        "m2": m2.astype(cd), "b2": col(b2),
        "m3": m3.astype(cd), "b3": col(b3),
        "m4": m4.astype(cd), "b4": col(b4),
        "w5": raw["fc2_w"].astype(cd), "b5": col(raw["fc2_b"]),
    }


# ---------------------------------------------------------------------------
# Fused Pallas kernel
# ---------------------------------------------------------------------------
def conv_decoder_kernel(x_ref, w1_ref, b1_ref, m2_ref, b2_ref, m3_ref, b3_ref,
                        m4_ref, b4_ref, w5_ref, b5_ref, o_ref):
    """One [in_size, tile_b] batch tile, batch on the lane axis.

    Each layer is  h <- act(W @ h + b):  W streamed in bf16, f32 MXU accumulation,
    f32 bias add and f32 tanh (v5e-safe); activations are recast to bf16 only to feed
    the next MXU matmul.
    """
    cd = x_ref.dtype  # bf16 streaming dtype

    def layer(w_ref, b_ref, h, activate):
        z = jnp.dot(w_ref[...], h, preferred_element_type=jnp.float32) + b_ref[...]
        return jnp.tanh(z) if activate else z

    h = x_ref[...]                                        # [in_size, Bt]
    h = layer(w1_ref, b1_ref, h, True).astype(cd)         # fc             -> [100,  Bt]
    h = layer(m2_ref, b2_ref, h, True).astype(cd)         # TransposeConv2 -> [400,  Bt]
    h = layer(m3_ref, b3_ref, h, True).astype(cd)         # TransposeConv3 -> [1600, Bt]
    h = layer(m4_ref, b4_ref, h, True).astype(cd)         # TransposeConv4 -> [100,  Bt]
    out = layer(w5_ref, b5_ref, h, False)                 # fc2            -> [out_size, Bt]
    o_ref[...] = out.astype(o_ref.dtype)


@functools.partial(jax.jit, static_argnames=("tile_b",))
def conv_decoder_forward(x, params, *, tile_b=256):
    """x: [..., in_size]  ->  [B, out_size] f32 (B = prod of leading dims)."""
    in_size = x.shape[-1]
    out_size = params["w5"].shape[0]
    xb = x.reshape(-1, in_size)
    bsz = xb.shape[0]

    # Lane-dense batch tile: a multiple of 128, capped at `tile_b`, and never larger
    # than the 128-rounded batch (avoids padding a tiny batch up to a huge tile).
    bsz_128 = ((bsz + 127) // 128) * 128
    tile = max(128, (min(tile_b, bsz_128) // 128) * 128)

    n_tiles = pl.cdiv(bsz, tile)           # any batch size: pad to a tile multiple
    bsz_pad = n_tiles * tile

    # Feature-major: batch on the 128-lane axis -> lane-dense loads/stores in-kernel.
    # (Wrapper-side transpose/pad are layout plumbing, fused by XLA.)
    xt = xb.T.astype(params["w1"].dtype)   # [in_size, B], bf16 stream
    if bsz_pad != bsz:
        xt = jnp.pad(xt, ((0, 0), (0, bsz_pad - bsz)))

    # Weights/biases are fully replicated (constant block index -> DMA'd once,
    # kept resident across all batch tiles).
    replicated = [pl.BlockSpec(params[k].shape, lambda i: (0, 0)) for k in _PARAM_ORDER]

    out_t = pl.pallas_call(
        conv_decoder_kernel,
        out_shape=jax.ShapeDtypeStruct((out_size, bsz_pad), jnp.float32),
        grid_spec=pltpu.PrefetchScalarGridSpec(
            num_scalar_prefetch=0,
            grid=(n_tiles,),
            in_specs=[pl.BlockSpec((in_size, tile), lambda i: (0, i))] + replicated,
            out_specs=pl.BlockSpec((out_size, tile), lambda i: (0, i)),
        ),
        compiler_params=pltpu.CompilerParams(
            # Batch tiles are independent -> shards across both v7x TensorCores.
            dimension_semantics=("parallel",),
        ),
    )(xt, *(params[k] for k in _PARAM_ORDER))

    return out_t[:, :bsz].T                # [B, out_size], f32


# ---------------------------------------------------------------------------
# Pure-JAX definitional reference (for validation only)
# ---------------------------------------------------------------------------
def _conv_transpose1d_ref(x, w, b, stride, padding):
    # x: [B, C_in, L_in]; w: [C_in, C_out, K] (torch ConvTranspose1d layout).
    _, _, l_in = x.shape
    _, c_out, k = w.shape
    l_full = (l_in - 1) * stride + k
    y = jnp.zeros((x.shape[0], c_out, l_full), jnp.float32)
    for t in range(k):
        contrib = jnp.einsum("bci,co->boi", x, w[:, :, t])
        y = y.at[:, :, t : t + stride * (l_in - 1) + 1 : stride].add(contrib)
    y = y[:, :, padding : padding + (l_full - 2 * padding)]
    return y + b[None, :, None]


def conv_decoder_reference(x, raw):
    h = jnp.tanh(x @ raw["fc_w"].T + raw["fc_b"])
    h = h.reshape(-1, 4, 25)
    h = jnp.tanh(_conv_transpose1d_ref(h, raw["tc2_w"], raw["tc2_b"], 2, 0))
    h = jnp.tanh(_conv_transpose1d_ref(h, raw["tc3_w"], raw["tc3_b"], 2, 0))
    h = jnp.tanh(_conv_transpose1d_ref(h, raw["tc4_w"], raw["tc4_b"], 1, 1))
    return h.reshape(-1, 100) @ raw["fc2_w"].T + raw["fc2_b"]


# ---------------------------------------------------------------------------
if __name__ == "__main__":
    in_size, out_size = 32, 8
    batch = 130          # deliberately NOT a multiple of tile_b: exercises cdiv + padding
    tile_b = 128         # lane-dense batch tile; 130 -> 2 parallel grid steps

    key = jax.random.PRNGKey(0)
    kx, kp = jax.random.split(key)
    x = jax.random.normal(kx, (batch, in_size), jnp.float32)

    raw = init_raw_params(kp, in_size, out_size)
    params = prepare_params(raw, compute_dtype=jnp.bfloat16)

    out = conv_decoder_forward(x, params, tile_b=tile_b)
    out = jax.block_until_ready(out)
    assert out.shape == (batch, out_size)

    # Validate against the definitional reference evaluated in f32 on the same
    # bf16-rounded weights/input (isolates kernel/index correctness from the
    # intentional bf16 streaming; remaining delta is in-kernel activation rounding).
    raw_q = {k: (v.astype(jnp.bfloat16).astype(jnp.float32) if k.endswith("_w") else v)
             for k, v in raw.items()}
    x_q = x.astype(jnp.bfloat16).astype(jnp.float32)
    ref = conv_decoder_reference(x_q, raw_q)
    max_err = float(jnp.max(jnp.abs(out - ref)))
    assert max_err < 5e-2, f"mismatch vs JAX reference: max abs err = {max_err}"

    print("KERNEL_OK")
</pallas_src>

<mosaic_0001>
module attributes {stable_mosaic.version = 11 : i64} {
  func.func @conv_decoder_kernel(%arg0: i32, %arg1: memref<32x128xbf16, #tpu.memory_space<vmem>>, %arg2: memref<100x32xbf16, #tpu.memory_space<vmem>>, %arg3: memref<100x1xf32, #tpu.memory_space<vmem>>, %arg4: memref<400x100xbf16, #tpu.memory_space<vmem>>, %arg5: memref<400x1xf32, #tpu.memory_space<vmem>>, %arg6: memref<1600x400xbf16, #tpu.memory_space<vmem>>, %arg7: memref<1600x1xf32, #tpu.memory_space<vmem>>, %arg8: memref<100x1600xbf16, #tpu.memory_space<vmem>>, %arg9: memref<100x1xf32, #tpu.memory_space<vmem>>, %arg10: memref<8x100xbf16, #tpu.memory_space<vmem>>, %arg11: memref<8x1xf32, #tpu.memory_space<vmem>>, %arg12: memref<8x128xf32, #tpu.memory_space<vmem>>) attributes {dimension_semantics = [#tpu.dimension_semantics<parallel>], iteration_bounds = array<i64: 2>, scalar_prefetch = 0 : i64, scratch_operands = 0 : i64, tpu.core_type = #tpu.core_type<tc>, window_params = [{transform_indices = @transform_0, window_bounds = array<i64: 32, 128>}, {pipeline_mode = #tpu.pipeline_mode<synchronous>, transform_indices = @transform_1, window_bounds = array<i64: 100, 32>}, {pipeline_mode = #tpu.pipeline_mode<synchronous>, transform_indices = @transform_2, window_bounds = array<i64: 100, 1>}, {pipeline_mode = #tpu.pipeline_mode<synchronous>, transform_indices = @transform_3, window_bounds = array<i64: 400, 100>}, {pipeline_mode = #tpu.pipeline_mode<synchronous>, transform_indices = @transform_4, window_bounds = array<i64: 400, 1>}, {pipeline_mode = #tpu.pipeline_mode<synchronous>, transform_indices = @transform_5, window_bounds = array<i64: 1600, 400>}, {pipeline_mode = #tpu.pipeline_mode<synchronous>, transform_indices = @transform_6, window_bounds = array<i64: 1600, 1>}, {pipeline_mode = #tpu.pipeline_mode<synchronous>, transform_indices = @transform_7, window_bounds = array<i64: 100, 1600>}, {pipeline_mode = #tpu.pipeline_mode<synchronous>, transform_indices = @transform_8, window_bounds = array<i64: 100, 1>}, {pipeline_mode = #tpu.pipeline_mode<synchronous>, transform_indices = @transform_9, window_bounds = array<i64: 8, 100>}, {pipeline_mode = #tpu.pipeline_mode<synchronous>, transform_indices = @transform_10, window_bounds = array<i64: 8, 1>}, {transform_indices = @transform_11, window_bounds = array<i64: 8, 128>}]} {
    %c0 = arith.constant 0 : index
    %c0_0 = arith.constant 0 : index
    %0 = vector.load %arg1[%c0, %c0_0] : memref<32x128xbf16, #tpu.memory_space<vmem>>, vector<32x128xbf16>
    %c0_1 = arith.constant 0 : index
    %c0_2 = arith.constant 0 : index
    %1 = vector.load %arg2[%c0_1, %c0_2] : memref<100x32xbf16, #tpu.memory_space<vmem>>, vector<100x32xbf16>
    %cst = arith.constant dense<0.000000e+00> : vector<100x128xf32>
    %2 = tpu.matmul %1, %0, %cst {dimension_numbers = #tpu.dot_dimension_numbers<[1], [0], [0], [1], [0, 0, 1, 1], [], []>} : vector<100x32xbf16>, vector<32x128xbf16>, vector<100x128xf32> -> vector<100x128xf32>
    %c0_3 = arith.constant 0 : index
    %c0_4 = arith.constant 0 : index
    %3 = vector.load %arg3[%c0_3, %c0_4] : memref<100x1xf32, #tpu.memory_space<vmem>>, vector<100x1xf32>
    %4 = vector.broadcast %3 : vector<100x1xf32> to vector<100x128xf32>
    %5 = arith.addf %2, %4 : vector<100x128xf32>
    %6 = math.tanh %5 : vector<100x128xf32>
    %7 = arith.truncf %6 : vector<100x128xf32> to vector<100x128xbf16>
    %c0_5 = arith.constant 0 : index
    %c0_6 = arith.constant 0 : index
    %8 = vector.load %arg4[%c0_5, %c0_6] : memref<400x100xbf16, #tpu.memory_space<vmem>>, vector<400x100xbf16>
    %cst_7 = arith.constant dense<0.000000e+00> : vector<400x128xf32>
    %9 = tpu.matmul %8, %7, %cst_7 {dimension_numbers = #tpu.dot_dimension_numbers<[1], [0], [0], [1], [0, 0, 1, 1], [], []>} : vector<400x100xbf16>, vector<100x128xbf16>, vector<400x128xf32> -> vector<400x128xf32>
    %c0_8 = arith.constant 0 : index
    %c0_9 = arith.constant 0 : index
    %10 = vector.load %arg5[%c0_8, %c0_9] : memref<400x1xf32, #tpu.memory_space<vmem>>, vector<400x1xf32>
    %11 = vector.broadcast %10 : vector<400x1xf32> to vector<400x128xf32>
    %12 = arith.addf %9, %11 : vector<400x128xf32>
    %13 = math.tanh %12 : vector<400x128xf32>
    %14 = arith.truncf %13 : vector<400x128xf32> to vector<400x128xbf16>
    %c0_10 = arith.constant 0 : index
    %c0_11 = arith.constant 0 : index
    %15 = vector.load %arg6[%c0_10, %c0_11] : memref<1600x400xbf16, #tpu.memory_space<vmem>>, vector<1600x400xbf16>
    %cst_12 = arith.constant dense<0.000000e+00> : vector<1600x128xf32>
    %16 = tpu.matmul %15, %14, %cst_12 {dimension_numbers = #tpu.dot_dimension_numbers<[1], [0], [0], [1], [0, 0, 1, 1], [], []>} : vector<1600x400xbf16>, vector<400x128xbf16>, vector<1600x128xf32> -> vector<1600x128xf32>
    %c0_13 = arith.constant 0 : index
    %c0_14 = arith.constant 0 : index
    %17 = vector.load %arg7[%c0_13, %c0_14] : memref<1600x1xf32, #tpu.memory_space<vmem>>, vector<1600x1xf32>
    %18 = vector.broadcast %17 : vector<1600x1xf32> to vector<1600x128xf32>
    %19 = arith.addf %16, %18 : vector<1600x128xf32>
    %20 = math.tanh %19 : vector<1600x128xf32>
    %21 = arith.truncf %20 : vector<1600x128xf32> to vector<1600x128xbf16>
    %c0_15 = arith.constant 0 : index
    %c0_16 = arith.constant 0 : index
    %22 = vector.load %arg8[%c0_15, %c0_16] : memref<100x1600xbf16, #tpu.memory_space<vmem>>, vector<100x1600xbf16>
    %cst_17 = arith.constant dense<0.000000e+00> : vector<100x128xf32>
    %23 = tpu.matmul %22, %21, %cst_17 {dimension_numbers = #tpu.dot_dimension_numbers<[1], [0], [0], [1], [0, 0, 1, 1], [], []>} : vector<100x1600xbf16>, vector<1600x128xbf16>, vector<100x128xf32> -> vector<100x128xf32>
    %c0_18 = arith.constant 0 : index
    %c0_19 = arith.constant 0 : index
    %24 = vector.load %arg9[%c0_18, %c0_19] : memref<100x1xf32, #tpu.memory_space<vmem>>, vector<100x1xf32>
    %25 = vector.broadcast %24 : vector<100x1xf32> to vector<100x128xf32>
    %26 = arith.addf %23, %25 : vector<100x128xf32>
    %27 = math.tanh %26 : vector<100x128xf32>
    %28 = arith.truncf %27 : vector<100x128xf32> to vector<100x128xbf16>
    %c0_20 = arith.constant 0 : index
    %c0_21 = arith.constant 0 : index
    %29 = vector.load %arg10[%c0_20, %c0_21] : memref<8x100xbf16, #tpu.memory_space<vmem>>, vector<8x100xbf16>
    %cst_22 = arith.constant dense<0.000000e+00> : vector<8x128xf32>
    %30 = tpu.matmul %29, %28, %cst_22 {dimension_numbers = #tpu.dot_dimension_numbers<[1], [0], [0], [1], [0, 0, 1, 1], [], []>} : vector<8x100xbf16>, vector<100x128xbf16>, vector<8x128xf32> -> vector<8x128xf32>
    %c0_23 = arith.constant 0 : index
    %c0_24 = arith.constant 0 : index
    %31 = vector.load %arg11[%c0_23, %c0_24] : memref<8x1xf32, #tpu.memory_space<vmem>>, vector<8x1xf32>
    %32 = vector.broadcast %31 : vector<8x1xf32> to vector<8x128xf32>
    %33 = arith.addf %30, %32 : vector<8x128xf32>
    %c0_25 = arith.constant 0 : index
    %c0_26 = arith.constant 0 : index
    %34 = vector.load %arg12[%c0_25, %c0_26] : memref<8x128xf32, #tpu.memory_space<vmem>>, vector<8x128xf32>
    tpu.vector_store %arg12[%c0_25, %c0_26], %33 {strides = array<i32>} : memref<8x128xf32, #tpu.memory_space<vmem>>, vector<8x128xf32>,
    return
  }
  func.func @transform_0(%arg0: i32) -> (i32, i32) {
    %c0_i32 = arith.constant 0 : i32
    %c0_i32_0 = arith.constant 0 : i32
    return %c0_i32, %arg0 : i32, i32
  }
  func.func @transform_1(%arg0: i32) -> (i32, i32) {
    %c0_i32 = arith.constant 0 : i32
    %c0_i32_0 = arith.constant 0 : i32
    %c0_i32_1 = arith.constant 0 : i32
    return %c0_i32, %c0_i32_0 : i32, i32
  }
  func.func @transform_2(%arg0: i32) -> (i32, i32) {
    %c0_i32 = arith.constant 0 : i32
    %c0_i32_0 = arith.constant 0 : i32
    %c0_i32_1 = arith.constant 0 : i32
    return %c0_i32, %c0_i32_0 : i32, i32
  }
  func.func @transform_3(%arg0: i32) -> (i32, i32) {
    %c0_i32 = arith.constant 0 : i32
    %c0_i32_0 = arith.constant 0 : i32
    %c0_i32_1 = arith.constant 0 : i32
    return %c0_i32, %c0_i32_0 : i32, i32
  }
  func.func @transform_4(%arg0: i32) -> (i32, i32) {
    %c0_i32 = arith.constant 0 : i32
    %c0_i32_0 = arith.constant 0 : i32
    %c0_i32_1 = arith.constant 0 : i32
    return %c0_i32, %c0_i32_0 : i32, i32
  }
  func.func @transform_5(%arg0: i32) -> (i32, i32) {
    %c0_i32 = arith.constant 0 : i32
    %c0_i32_0 = arith.constant 0 : i32
    %c0_i32_1 = arith.constant 0 : i32
    return %c0_i32, %c0_i32_0 : i32, i32
  }
  func.func @transform_6(%arg0: i32) -> (i32, i32) {
    %c0_i32 = arith.constant 0 : i32
    %c0_i32_0 = arith.constant 0 : i32
    %c0_i32_1 = arith.constant 0 : i32
    return %c0_i32, %c0_i32_0 : i32, i32
  }
  func.func @transform_7(%arg0: i32) -> (i32, i32) {
    %c0_i32 = arith.constant 0 : i32
    %c0_i32_0 = arith.constant 0 : i32
    %c0_i32_1 = arith.constant 0 : i32
    return %c0_i32, %c0_i32_0 : i32, i32
  }
  func.func @transform_8(%arg0: i32) -> (i32, i32) {
    %c0_i32 = arith.constant 0 : i32
    %c0_i32_0 = arith.constant 0 : i32
    %c0_i32_1 = arith.constant 0 : i32
    return %c0_i32, %c0_i32_0 : i32, i32
  }
  func.func @transform_9(%arg0: i32) -> (i32, i32) {
    %c0_i32 = arith.constant 0 : i32
    %c0_i32_0 = arith.constant 0 : i32
    %c0_i32_1 = arith.constant 0 : i32
    return %c0_i32, %c0_i32_0 : i32, i32
  }
  func.func @transform_10(%arg0: i32) -> (i32, i32) {
    %c0_i32 = arith.constant 0 : i32
    %c0_i32_0 = arith.constant 0 : i32
    %c0_i32_1 = arith.constant 0 : i32
    return %c0_i32, %c0_i32_0 : i32, i32
  }
  func.func @transform_11(%arg0: i32) -> (i32, i32) {
    %c0_i32 = arith.constant 0 : i32
    %c0_i32_0 = arith.constant 0 : i32
    return %c0_i32, %arg0 : i32, i32
  }
}

</mosaic_0001>

<bundles_post_ra>
// kernel: conv_decoder_forward.1
= control target key start
LH: loop header
LB: loop body
LE: loop exit
PB: predicated region body
PF: predicated region fallthrough
CT: control target
= control target key end

     0   :  { %s11429_s17 = smov 0   ;;  %s11431_s18 = smov 0   ;;  %s16648_s0 = inlined_call_operand.vmem [shape: bf16[32,256], index: 0, kind: input, shape index: {}]   ;;  %s16649_s1 = inlined_call_operand.vmem [shape: bf16[100,32], index: 1, kind: input, shape index: {}]   ;;  %s16650_s2 = inlined_call_operand.vmem [shape: f32[100,1], index: 2, kind: input, shape index: {}]   ;;  %s16651_s3 = inlined_call_operand.vmem [shape: bf16[400,100], index: 3, kind: input, shape index: {}]   ;;  %s16652_s4 = inlined_call_operand.vmem [shape: f32[400,1], index: 4, kind: input, shape index: {}]   ;;  %s16653_s5 = inlined_call_operand.vmem [shape: bf16[1600,400], index: 5, kind: input, shape index: {}]   ;;  %s16654_s6 = inlined_call_operand.vmem [shape: f32[1600,1], index: 6, kind: input, shape index: {}]   ;;  %s16655_s7 = inlined_call_operand.vmem [shape: bf16[100,1600], index: 7, kind: input, shape index: {}]   ;;  %s16656_s8 = inlined_call_operand.vmem [shape: f32[100,1], index: 8, kind: input, shape index: {}]   ;;  %s16657_s9 = inlined_call_operand.vmem [shape: bf16[8,100], index: 9, kind: input, shape index: {}]   ;;  %s16658_s10 = inlined_call_operand.vmem [shape: f32[8,1], index: 10, kind: input, shape index: {}]   ;;  %s16659_s11 = inlined_call_operand.vmem [shape: f32[8,256], index: 11, kind: output, shape index: {}]  }
   0x1   :  { %s11433_s19 = smov 0  }
   0x2 LB: > { %s8716_s20 = sadd.s32 4294967295, %s11364_s19   ;;  %s11446_s21 = sadd.s32 1, %s11364_s19   ;;  %s11364_s19 = sphi %s11433_s19, %s17324_s19   ;;  %s11360_s18 = sphi %s11431_s18, %s17323_s18   ;;  %s11356_s17 = sphi %s11429_s17, %s17322_s17  }
   0x3   : > { %s25_s22 = ssub.s32 %s11364_s19, %s11446_s21  ;;  %s28_s23 = sadd.s32 1, %s11360_s18 }
   0x4   : > { %p26_p0 = scmp.eq.s32.totalorder %s25_s22, 0  ;;  %p35_p1 = scmp.ne.s32.totalorder %s11360_s18, %s11356_s17 }
   0x5   : > { %p36_p2 = scmp.eq.s32.totalorder %s11364_s19, 0  ;;  %p8719_p4 = scmp.ge.s32.totalorder %s11364_s19, 2 }
   0x6   : > { %s11455_s24 = scalar_select %p26_p0, %s11360_s18, %s28_s23  }
   0x7   : > { %p37_p3 = por %p36_p2, %p35_p1  ;;  %327 = sbr.rel (%p8719_p4) target bundleno = 18 (0x12), region = 56 }
   0xc   : > { %330 = sbr.rel (!%p37_p3) target bundleno = 18 (0x12), region = 60  ;;  %s332_s25 = sand.u32 (%p37_p3), 1, %s11360_s18  }
   0xd   : > { %s8721_s26 = sshll.u32 (%p37_p3), %s11364_s19, 2  ;;  %s8720_s27 = sshll.u32 (%p37_p3), %s332_s25, 4 }
   0xe   : > { %s336_s30 = scalar_lea.vmem (%p37_p3), %s16648_s0, %s8721_s26  ;;  %s334_s12 = scalar_lea.vmem (%p37_p3), [#allocation2], %s8720_s27 }
   0xf   : > { %v353_v0 = vld [vmem:[%s336_s30] sm:$0xf] (%p37_p3)  ;;  %v355_v1 = vld [vmem:[%s336_s30 + $0x8] sm:$0xf] (%p37_p3)  ;;  %v357_v2 = vld [vmem:[%s336_s30 + $0x10] sm:$0xf] (%p37_p3) }
  0x10   : > { %354 = vst [vmem:[%s334_s12] sm:$0xf] (%p37_p3), %v353_v0  ;;  %356 = vst [vmem:[%s334_s12 + $0x4] sm:$0xf] (%p37_p3), %v355_v1  ;;  %v359_v3 = vld [vmem:[%s336_s30 + $0x18] sm:$0xf] (%p37_p3) }
  0x11   : > { %358 = vst [vmem:[%s334_s12 + $0x8] sm:$0xf] %v357_v2  ;;  %360 = vst [vmem:[%s334_s12 + $0xc] sm:$0xf] %v359_v3 }
  0x12 PF: > { %p8722_p5 = scmp.ge.s32.totalorder %s11364_s19, 1  ;;  %p391_p6 = scmp.lt.s32.totalorder %s11364_s19, 3 }
  0x14   : > { %p392_p7 = pnand %p8722_p5, %p391_p6 }
  0x16   : > { %395 = sbr.rel (%p392_p7) target bundleno = 2269 (0x8dd), region = 101 }
  0x1b   : > { %v470_v4 = vld [vmem:[%s16650_s2 + $0x60] sm:$0xf]  ;;  %v469_v5 = vld [vmem:[%s16650_s2 + $0x58] sm:$0xff]  ;;  %v16660_v6 = vmov 0   ;;  %s398_s22 = sand.u32 1, %s11356_s17   ;;  %v16662_v7 = vmov 0.0  }
  0x1c   : > { %10028 = vset.pattern.permute.xlu1 %v16660_v6  ;;  %10027 = vset.pattern.permute.xlu0 %v16660_v6  ;;  %s8723_s23 = sshll.u32 %s398_s22, 4  ;;  %v468_v8 = vld [vmem:[%s16650_s2 + $0x50] sm:$0xff]  ;;  %v466_v9 = vld [vmem:[%s16650_s2 + $0x40] sm:$0xff]  ;;  %vm11368_vm0 = vmmov 0   ;;  %v467_v11 = vld [vmem:[%s16650_s2 + $0x48] sm:$0xff]  ;;  %vm581_vm1 = vcmask 261120  }
  0x1d   : > { %533 = vperm.xlu0 %10027, %v470_v4   ;;  %528 = vperm.xlu1 %10028, %v469_v5   ;;  %s400_s29 = scalar_lea.vmem [#allocation2], %s8723_s23  ;;  %v464_v12 = vld [vmem:[%s16650_s2 + $0x30] sm:$0xff]  ;;  %v10031_v14 = vld [vmem:[%s16649_s1] sm:$0xff]   ;;  %v465_v15 = vld [vmem:[%s16650_s2 + $0x38] sm:$0xff]  ;;  %vm1262_vm2 = vcmask 1041408   ;;  %vm1186_vm3 = vcmask 818176  }
  0x1e   : > { %9800 = vmatprep.subr.bf16.mxu0 %v16662_v7  ;;  %9804 = vmatprep.mubr.msk.bf16.mxu0 %vm11368_vm0, %v16662_v7  ;;  %v10029_v10 = vld [vmem:[%s400_s29 + $0x8] sm:$0xff]   ;;  %v10030_v13 = vld [vmem:[%s400_s29] sm:$0xff]   ;;  %vm5074_vm4 = vcmask 130048   ;;  %vm7945_vm5 = vcmask 523264   ;;  %p436_p8 = scmp.lt.s32.totalorder %s8716_s20, 1 }
  0x1f   : > { %9832 = vmatprep.subr.bf16.mxu1 %v16662_v7  ;;  %9846 = vmatprep.mubr.msk.bf16.mxu1 %vm11368_vm0, %v16662_v7  ;;  %v462_v16 = vld [vmem:[%s16650_s2 + $0x20] sm:$0xff]  ;;  %v463_v17 = vld [vmem:[%s16650_s2 + $0x28] sm:$0xff]  ;;  %v460_v18 = vld [vmem:[%s16650_s2 + $0x10] sm:$0xff] }
  0x20   : > { %9801 = vmatpush3.bf16.msra.mxu0 %v10029_v10  ;;  %v10032_v19 = vld [vmem:[%s16649_s1 + $0x8] sm:$0xff]   ;;  %v461_v20 = vld [vmem:[%s16650_s2 + $0x18] sm:$0xff]  ;;  %v458_v21 = vld [vmem:[%s16650_s2] sm:$0xff]  ;;  %s17326_s20 = smov (!%p436_p8, %s8716_s20), 1 }
  0x21   : > { %523 = vperm.xlu0 %10027, %v468_v8   ;;  %513 = vperm.xlu1 %10028, %v466_v9   ;;  %v459_v22 = vld [vmem:[%s16650_s2 + $0x8] sm:$0xff]  ;;  %v775_v23 = vld [vmem:[%s16652_s4 + $0x70] sm:$0xff]  ;;  %v776_v25 = vld [vmem:[%s16652_s4 + $0x78] sm:$0xff]  ;;  %s8724_s17 = sshll.u32 %s17326_s20, 3 }
  0x22   : > { %9802 = vmatprep.subr.bf16.mxu0 %v16662_v7  ;;  %v10033_v24 = vld [vmem:[%s16649_s1 + $0x10] sm:$0xff]   ;;  %v773_v26 = vld [vmem:[%s16652_s4 + $0x60] sm:$0xff]  ;;  %v774_v27 = vld [vmem:[%s16652_s4 + $0x68] sm:$0xff]  ;;  %s439_s13 = scalar_lea.vmem %s16659_s11, %s8724_s17 }
  0x23   : > { %v771_v28 = vld [vmem:[%s16652_s4 + $0x50] sm:$0xff]  ;;  %v10034_v29 = vld [vmem:[%s16649_s1 + $0x18] sm:$0xff]   ;;  %v769_v31 = vld [vmem:[%s16652_s4 + $0x40] sm:$0xff] }
  0x24   : > { %9803 = vmatpush3.bf16.msra.mxu0 %v10030_v13  ;;  %v772_v30 = vld [vmem:[%s16652_s4 + $0x58] sm:$0xff]  ;;  %v770_v32 = vld [vmem:[%s16652_s4 + $0x48] sm:$0xff]  ;;  %v767_v33 = vld [vmem:[%s16652_s4 + $0x30] sm:$0xff] }
  0x25   : > { %518 = vperm.xlu0 %10027, %v467_v11   ;;  %503 = vperm.xlu1 %10028, %v464_v12   ;;  %v10035_v34 = vld [vmem:[%s16649_s1 + $0x20] sm:$0xff]   ;;  %v768_v35 = vld [vmem:[%s16652_s4 + $0x38] sm:$0xff]  ;;  %v766_v37 = vld [vmem:[%s16652_s4 + $0x28] sm:$0xff] }
  0x26   : > { %5375 = vmatprep.subr.bf16.mxu0 %v16660_v6  ;;  %v765_v36 = vld [vmem:[%s16652_s4 + $0x20] sm:$0xff]  ;;  %v763_v38 = vld [vmem:[%s16652_s4 + $0x10] sm:$0xff]  ;;  %v10036_v39 = vld [vmem:[%s16649_s1 + $0x28] sm:$0xff]  }
  0x27   : > { %9805 = vmatmul.mubr.msk.bf16.vlgmr.msra.gmra.mxu0 %vm581_vm1, %v10031_v14  ;;  %v764_v40 = vld [vmem:[%s16652_s4 + $0x18] sm:$0xff]  ;;  %v761_v41 = vld [vmem:[%s16652_s4] sm:$0xff]  ;;  %v762_v42 = vld [vmem:[%s16652_s4 + $0x8] sm:$0xff] }
  0x28   : > { %9808 = vmatprep.mubr.msk.bf16.mxu0 %vm11368_vm0, %v16662_v7  ;;  %v807_v43 = vld [vmem:[%s16652_s4 + $0x170] sm:$0xff]  ;;  %v808_v45 = vld [vmem:[%s16652_s4 + $0x178] sm:$0xff]  ;;  %v805_v48 = vld [vmem:[%s16652_s4 + $0x160] sm:$0xff] }
  0x29   : > { %508 = vperm.xlu0 %10027, %v465_v15   ;;  %493 = vperm.xlu1 %10028, %v462_v16   ;;  %v10037_v44 = vld [vmem:[%s16649_s1 + $0x30] ss:$0 sps:$4 sm:$0x33]   ;;  %v792_v47 = vld [vmem:[%s16652_s4 + $0xf8] sm:$0xff]  ;;  %v806_v49 = vld [vmem:[%s16652_s4 + $0x168] sm:$0xff] }
  0x2a   : > { %v791_v46 = vld [vmem:[%s16652_s4 + $0xf0] sm:$0xff]  ;;  %v789_v50 = vld [vmem:[%s16652_s4 + $0xe0] sm:$0xff]  ;;  %v790_v51 = vld [vmem:[%s16652_s4 + $0xe8] sm:$0xff] }
  0x2b   : > { %v803_v52 = vld [vmem:[%s16652_s4 + $0x150] sm:$0xff]  ;;  %v804_v53 = vld [vmem:[%s16652_s4 + $0x158] sm:$0xff]  ;;  %v801_v56 = vld [vmem:[%s16652_s4 + $0x140] sm:$0xff] }
  0x2c   : > { %v787_v54 = vld [vmem:[%s16652_s4 + $0xd0] sm:$0xff]  ;;  %v788_v55 = vld [vmem:[%s16652_s4 + $0xd8] sm:$0xff]  ;;  %v802_v57 = vld [vmem:[%s16652_s4 + $0x148] sm:$0xff] }
  0x2d   : > { %498 = vperm.xlu0 %10027, %v463_v17   ;;  %483 = vperm.xlu1 %10028, %v460_v18   ;;  %v785_v58 = vld [vmem:[%s16652_s4 + $0xc0] sm:$0xff]  ;;  %v786_v59 = vld [vmem:[%s16652_s4 + $0xc8] sm:$0xff]  ;;  %v799_v60 = vld [vmem:[%s16652_s4 + $0x130] sm:$0xff] }
  0x2e   : > { %v800_v61 = vld [vmem:[%s16652_s4 + $0x138] sm:$0xff]  ;;  %v783_v62 = vld [vmem:[%s16652_s4 + $0xb0] sm:$0xff]  ;;  %v797_v0 = vld [vmem:[%s16652_s4 + $0x120] sm:$0xff] }
  0x2f   : > { %9809 = vmatmul.mubr.msk.bf16.gmra.mxu0 %vm581_vm1, %v10032_v19  ;;  %v784_v63 = vld [vmem:[%s16652_s4 + $0xb8] sm:$0xff]  ;;  %v798_v1 = vld [vmem:[%s16652_s4 + $0x128] sm:$0xff]  ;;  %v781_v2 = vld [vmem:[%s16652_s4 + $0xa0] sm:$0xff] }
  0x30   : > { %9812 = vmatprep.mubr.msk.bf16.mxu0 %vm11368_vm0, %v16662_v7  ;;  %v782_v3 = vld [vmem:[%s16652_s4 + $0xa8] sm:$0xff]  ;;  %v795_v4 = vld [vmem:[%s16652_s4 + $0x110] sm:$0xff]  ;;  %v796_v5 = vld [vmem:[%s16652_s4 + $0x118] sm:$0xff] }
  0x31   : > { %488 = vperm.xlu0 %10027, %v461_v20   ;;  %473 = vperm.xlu1 %10028, %v458_v21   ;;  %v779_v8 = vld [vmem:[%s16652_s4 + $0x90] sm:$0xff]  ;;  %v780_v9 = vld [vmem:[%s16652_s4 + $0x98] sm:$0xff]  ;;  %v793_v10 = vld [vmem:[%s16652_s4 + $0x100] sm:$0xff] }
  0x32   : > { %v794_v11 = vld [vmem:[%s16652_s4 + $0x108] sm:$0xff]  ;;  %v777_v12 = vld [vmem:[%s16652_s4 + $0x80] sm:$0xff]  ;;  %v1976_v20 = vld [vmem:[%s16654_s6 + $0x10] sm:$0xff] }
  0x33   : > { %v778_v13 = vld [vmem:[%s16652_s4 + $0x88] sm:$0xff]  ;;  %v809_v14 = vld [vmem:[%s16652_s4 + $0x180] sm:$0xff] }
  0x34   : > { %v810_v15 = vld [vmem:[%s16652_s4 + $0x188] sm:$0xff]  ;;  %v1974_v16 = vld [vmem:[%s16654_s6] sm:$0xff] }
  0x35   : > { %478 = vperm.xlu0 %10027, %v459_v22   ;;  %883 = vperm.xlu1 %10028, %v775_v23   ;;  %v1975_v19 = vld [vmem:[%s16654_s6 + $0x8] sm:$0xff]  ;;  %v1977_v23 = vld [vmem:[%s16654_s6 + $0x18] sm:$0xff] }
  0x37   : > { %9813 = vmatmul.mubr.msk.bf16.gmra.mxu0 %vm581_vm1, %v10033_v24  ;;  %v1978_v24 = vld [vmem:[%s16654_s6 + $0x20] sm:$0xff] }
  0x38   : > { %9816 = vmatprep.mubr.msk.bf16.mxu0 %vm11368_vm0, %v16662_v7 }
  0x39   : > { %888 = vperm.xlu0 %10027, %v776_v25   ;;  %873 = vperm.xlu1 %10028, %v773_v26  }
  0x3d   : > { %878 = vperm.xlu0 %10027, %v774_v27   ;;  %863 = vperm.xlu1 %10028, %v771_v28   ;;  %v1979_v27 = vld [vmem:[%s16654_s6 + $0x28] sm:$0xff]  ;;  %v1980_v28 = vld [vmem:[%s16654_s6 + $0x30] sm:$0xff] }
  0x3f   : > { %9817 = vmatmul.mubr.msk.bf16.gmra.mxu0 %vm581_vm1, %v10034_v29 }
  0x40   : > { %9820 = vmatprep.mubr.msk.bf16.mxu0 %vm11368_vm0, %v16662_v7 }
  0x41   : > { %868 = vperm.xlu0 %10027, %v772_v30   ;;  %853 = vperm.xlu1 %10028, %v769_v31   ;;  %v1981_v31 = vld [vmem:[%s16654_s6 + $0x38] sm:$0xff] }
  0x45   : > { %858 = vperm.xlu0 %10027, %v770_v32   ;;  %843 = vperm.xlu1 %10028, %v767_v33   ;;  %v2004_v32 = vld [vmem:[%s16654_s6 + $0xf0] sm:$0xff] }
  0x47   : > { %9821 = vmatmul.mubr.msk.bf16.gmra.mxu0 %vm581_vm1, %v10035_v34 }
  0x48   : > { %9824 = vmatprep.mubr.msk.bf16.mxu0 %vm11368_vm0, %v16662_v7 }
  0x49   : > { %848 = vperm.xlu0 %10027, %v768_v35   ;;  %833 = vperm.xlu1 %10028, %v765_v36   ;;  %v2005_v35 = vld [vmem:[%s16654_s6 + $0xf8] sm:$0xff]  ;;  %v1988_v36 = vld [vmem:[%s16654_s6 + $0x70] sm:$0xff] }
  0x4d   : > { %838 = vperm.xlu0 %10027, %v766_v37   ;;  %823 = vperm.xlu1 %10028, %v763_v38  }
  0x4f   : > { %9825 = vmatmul.mubr.msk.bf16.gmra.mxu0 %vm581_vm1, %v10036_v39  ;;  %v1989_v39 = vld [vmem:[%s16654_s6 + $0x78] sm:$0xff] }
  0x50   : > { %9828 = vmatprep.mubr.msk.bf16.mxu0 %vm11368_vm0, %v16662_v7 }
  0x51   : > { %828 = vperm.xlu0 %10027, %v764_v40   ;;  %813 = vperm.xlu1 %10028, %v761_v41   ;;  %v2002_v40 = vld [vmem:[%s16654_s6 + $0xe0] sm:$0xff] }
  0x55   : > { %818 = vperm.xlu0 %10027, %v762_v42   ;;  %1043 = vperm.xlu1 %10028, %v807_v43   ;;  %v2003_v43 = vld [vmem:[%s16654_s6 + $0xe8] sm:$0xff] }
  0x57   : > { %9829 = vmatmul.mubr.msk.bf16.gmra.mxu0 %vm581_vm1, %v10037_v44  ;;  %v1986_v44 = vld [vmem:[%s16654_s6 + $0x60] sm:$0xff] }
  0x59   : > { %1048 = vperm.xlu0 %10027, %v808_v45   ;;  %963 = vperm.xlu1 %10028, %v791_v46  }
  0x5d   : > { %968 = vperm.xlu0 %10027, %v792_v47   ;;  %1033 = vperm.xlu1 %10028, %v805_v48   ;;  %v1987_v47 = vld [vmem:[%s16654_s6 + $0x68] sm:$0xff]  ;;  %v2000_v48 = vld [vmem:[%s16654_s6 + $0xd0] sm:$0xff] }
  0x61   : > { %1038 = vperm.xlu0 %10027, %v806_v49   ;;  %953 = vperm.xlu1 %10028, %v789_v50  }
  0x65   : > { %958 = vperm.xlu0 %10027, %v790_v51   ;;  %1023 = vperm.xlu1 %10028, %v803_v52   ;;  %v2001_v51 = vld [vmem:[%s16654_s6 + $0xd8] sm:$0xff]  ;;  %v1984_v52 = vld [vmem:[%s16654_s6 + $0x50] sm:$0xff] }
  0x69   : > { %1028 = vperm.xlu0 %10027, %v804_v53   ;;  %943 = vperm.xlu1 %10028, %v787_v54  }
  0x6d   : > { %948 = vperm.xlu0 %10027, %v788_v55   ;;  %1013 = vperm.xlu1 %10028, %v801_v56   ;;  %v1985_v55 = vld [vmem:[%s16654_s6 + $0x58] sm:$0xff]  ;;  %v1998_v56 = vld [vmem:[%s16654_s6 + $0xc0] sm:$0xff] }
  0x71   : > { %1018 = vperm.xlu0 %10027, %v802_v57   ;;  %933 = vperm.xlu1 %10028, %v785_v58  }
  0x75   : > { %938 = vperm.xlu0 %10027, %v786_v59   ;;  %1003 = vperm.xlu1 %10028, %v799_v60   ;;  %v1999_v59 = vld [vmem:[%s16654_s6 + $0xc8] sm:$0xff]  ;;  %v1982_v60 = vld [vmem:[%s16654_s6 + $0x40] sm:$0xff] }
  0x79   : > { %1008 = vperm.xlu0 %10027, %v800_v61   ;;  %923 = vperm.xlu1 %10028, %v783_v62  }
  0x7d   : > { %928 = vperm.xlu0 %10027, %v784_v63   ;;  %993 = vperm.xlu1 %10028, %v797_v0   ;;  %v1983_v63 = vld [vmem:[%s16654_s6 + $0x48] sm:$0xff]  ;;  %v1996_v0 = vld [vmem:[%s16654_s6 + $0xb0] sm:$0xff] }
  0x81   : > { %998 = vperm.xlu0 %10027, %v798_v1   ;;  %913 = vperm.xlu1 %10028, %v781_v2  }
  0x85   : > { %918 = vperm.xlu0 %10027, %v782_v3   ;;  %983 = vperm.xlu1 %10028, %v795_v4   ;;  %v1997_v3 = vld [vmem:[%s16654_s6 + $0xb8] sm:$0xff]  ;;  %v1994_v4 = vld [vmem:[%s16654_s6 + $0xa0] sm:$0xff] }
  0x89   : > { %988 = vperm.xlu0 %10027, %v796_v5   ;;  %903 = vperm.xlu1 %10028, %v779_v8  }
  0x8d   : > { %908 = vperm.xlu0 %10027, %v780_v9   ;;  %973 = vperm.xlu1 %10028, %v793_v10   ;;  %v1995_v9 = vld [vmem:[%s16654_s6 + $0xa8] sm:$0xff]  ;;  %v1992_v10 = vld [vmem:[%s16654_s6 + $0x90] sm:$0xff] }
  0x91   : > { %978 = vperm.xlu0 %10027, %v794_v11   ;;  %893 = vperm.xlu1 %10028, %v777_v12  }
  0x95   : > { %898 = vperm.xlu0 %10027, %v778_v13   ;;  %1053 = vperm.xlu1 %10028, %v809_v14   ;;  %v1993_v13 = vld [vmem:[%s16654_s6 + $0x98] sm:$0xff]  ;;  %v1990_v14 = vld [vmem:[%s16654_s6 + $0x80] sm:$0xff] }
  0x98   : > { %v11708_v17 = vpop.permute.xlu0 %533  ;;  %v11710_v18 = vpop.permute.xlu1 %528 }
  0x99   : > { %1058 = vperm.xlu0 %10027, %v810_v15   ;;  %2176 = vperm.xlu1 %10028, %v1974_v16  }
  0x9c   : > { %v11718_v21 = vpop.permute.xlu0 %523  ;;  %v11720_v22 = vpop.permute.xlu1 %513 }
  0x9d   : > { %2181 = vperm.xlu0 %10027, %v1975_v19   ;;  %2186 = vperm.xlu1 %10028, %v1976_v20   ;;  %v1991_v19 = vld [vmem:[%s16654_s6 + $0x88] sm:$0xff]  ;;  %v2036_v20 = vld [vmem:[%s16654_s6 + $0x1f0] sm:$0xff] }
  0xa0   : > { %v11728_v25 = vpop.permute.xlu0 %518  ;;  %v11730_v26 = vpop.permute.xlu1 %503 }
  0xa1   : > { %2191 = vperm.xlu0 %10027, %v1977_v23   ;;  %2196 = vperm.xlu1 %10028, %v1978_v24  }
  0xa4   : > { %v11738_v29 = vpop.permute.xlu0 %508  ;;  %v11740_v30 = vpop.permute.xlu1 %493 }
  0xa5   : > { %2201 = vperm.xlu0 %10027, %v1979_v27   ;;  %2206 = vperm.xlu1 %10028, %v1980_v28   ;;  %v2037_v27 = vld [vmem:[%s16654_s6 + $0x1f8] sm:$0xff]  ;;  %v2020_v28 = vld [vmem:[%s16654_s6 + $0x170] sm:$0xff] }
  0xa8   : > { %v11748_v33 = vpop.permute.xlu0 %498  ;;  %v11750_v34 = vpop.permute.xlu1 %483 }
  0xa9   : > { %2211 = vperm.xlu0 %10027, %v1981_v31   ;;  %2326 = vperm.xlu1 %10028, %v2004_v32  }
  0xac   : > { %v11758_v37 = vpop.permute.xlu0 %488  ;;  %v11760_v38 = vpop.permute.xlu1 %473 }
  0xad   : > { %2331 = vperm.xlu0 %10027, %v2005_v35   ;;  %2246 = vperm.xlu1 %10028, %v1988_v36   ;;  %v2021_v35 = vld [vmem:[%s16654_s6 + $0x178] sm:$0xff]  ;;  %v2034_v36 = vld [vmem:[%s16654_s6 + $0x1e0] sm:$0xff] }
  0xb0   : > { %v11768_v41 = vpop.permute.xlu0 %478  ;;  %v11770_v42 = vpop.permute.xlu1 %883 }
  0xb1   : > { %2251 = vperm.xlu0 %10027, %v1989_v39   ;;  %2316 = vperm.xlu1 %10028, %v2002_v40  }
  0xb4   : > { %v11778_v45 = vpop.permute.xlu0 %888  ;;  %v11780_v46 = vpop.permute.xlu1 %873 }
  0xb5   : > { %2321 = vperm.xlu0 %10027, %v2003_v43   ;;  %2236 = vperm.xlu1 %10028, %v1986_v44   ;;  %v2035_v43 = vld [vmem:[%s16654_s6 + $0x1e8] sm:$0xff]  ;;  %v2018_v44 = vld [vmem:[%s16654_s6 + $0x160] sm:$0xff] }
  0xb8   : > { %v11788_v49 = vpop.permute.xlu0 %878  ;;  %v11790_v50 = vpop.permute.xlu1 %863 }
  0xb9   : > { %2241 = vperm.xlu0 %10027, %v1987_v47   ;;  %2306 = vperm.xlu1 %10028, %v2000_v48  }
  0xbc   : > { %v11798_v53 = vpop.permute.xlu0 %868  ;;  %v11800_v54 = vpop.permute.xlu1 %853 }
  0xbd   : > { %2311 = vperm.xlu0 %10027, %v2001_v51   ;;  %2226 = vperm.xlu1 %10028, %v1984_v52   ;;  %v2019_v51 = vld [vmem:[%s16654_s6 + $0x168] sm:$0xff]  ;;  %v2032_v52 = vld [vmem:[%s16654_s6 + $0x1d0] sm:$0xff] }
  0xc0   : > { %v11808_v57 = vpop.permute.xlu0 %858  ;;  %v11810_v58 = vpop.permute.xlu1 %843 }
  0xc1   : > { %2231 = vperm.xlu0 %10027, %v1985_v55   ;;  %2296 = vperm.xlu1 %10028, %v1998_v56  }
  0xc4   : > { %v11818_v61 = vpop.permute.xlu0 %848  ;;  %v11820_v62 = vpop.permute.xlu1 %833 }
  0xc5   : > { %2301 = vperm.xlu0 %10027, %v1999_v59   ;;  %2216 = vperm.xlu1 %10028, %v1982_v60   ;;  %v2033_v60 = vld [vmem:[%s16654_s6 + $0x1d8] sm:$0xff] }
  0xc8   : > { %v11828_v1 = vpop.permute.xlu0 %838  ;;  %v11830_v2 = vpop.permute.xlu1 %823 }
  0xc9   : > { %2221 = vperm.xlu0 %10027, %v1983_v63   ;;  %2286 = vperm.xlu1 %10028, %v1996_v0   ;;  %v2016_v63 = vld [vmem:[%s16654_s6 + $0x150] sm:$0xff] }
  0xcc   : > { %v11838_v5 = vpop.permute.xlu0 %828  ;;  %v11840_v8 = vpop.permute.xlu1 %813 }
  0xcd   : > { %2291 = vperm.xlu0 %10027, %v1997_v3   ;;  %2276 = vperm.xlu1 %10028, %v1994_v4  }
  0xd0   : > { %v11848_v11 = vpop.permute.xlu0 %818  ;;  %v11850_v12 = vpop.permute.xlu1 %1043 }
  0xd1   : > { %16727 = vst [vmem:[#allocation3_spill] sm:$0xff] %v11850_v12  ;;  %2281 = vperm.xlu0 %10027, %v1995_v9   ;;  %2266 = vperm.xlu1 %10028, %v1992_v10  }
  0xd4   : > { %v11858_v15 = vpop.permute.xlu0 %1048  ;;  %v11860_v16 = vpop.permute.xlu1 %963 }
  0xd5   : > { %16728 = vst [vmem:[#allocation4_spill] sm:$0xff] %v11858_v15  ;;  %2271 = vperm.xlu0 %10027, %v1993_v13   ;;  %2256 = vperm.xlu1 %10028, %v1990_v14   ;;  %v2017_v13 = vld [vmem:[%s16654_s6 + $0x158] sm:$0xff]  ;;  %v2022_v15 = vld [vmem:[%s16654_s6 + $0x180] sm:$0xff] }
  0xd8   : > { %v11868_v23 = vpop.permute.xlu0 %968  ;;  %v11870_v24 = vpop.permute.xlu1 %1033 }
  0xd9   : > { %16729 = vst [vmem:[#allocation5_spill] sm:$0xff] %v11870_v24  ;;  %2261 = vperm.xlu0 %10027, %v1991_v19   ;;  %2486 = vperm.xlu1 %10028, %v2036_v20   ;;  %v2030_v19 = vld [vmem:[%s16654_s6 + $0x1c0] sm:$0xff] }
  0xdc   : > { %v11878_v31 = vpop.permute.xlu0 %1038  ;;  %v11880_v32 = vpop.permute.xlu1 %953 }
  0xdd   : > { %16730 = vst [vmem:[#allocation6_spill] sm:$0xff] %v11878_v31  ;;  %2491 = vperm.xlu0 %10027, %v2037_v27   ;;  %2406 = vperm.xlu1 %10028, %v2020_v28  }
  0xe0   : > { %v11888_v39 = vpop.permute.xlu0 %958  ;;  %v11890_v40 = vpop.permute.xlu1 %1023 }
  0xe1   : > { %16731 = vst [vmem:[#allocation7_spill] sm:$0xff] %v11890_v40  ;;  %2411 = vperm.xlu0 %10027, %v2021_v35   ;;  %2476 = vperm.xlu1 %10028, %v2034_v36   ;;  %v2031_v35 = vld [vmem:[%s16654_s6 + $0x1c8] sm:$0xff]  ;;  %v2008_v40 = vld [vmem:[%s16654_s6 + $0x110] sm:$0xff] }
  0xe4   : > { %v11898_v47 = vpop.permute.xlu0 %1028  ;;  %v11900_v48 = vpop.permute.xlu1 %943 }
  0xe5   : > { %16732 = vst [vmem:[#allocation8_spill] sm:$0xff] %v11898_v47  ;;  %2481 = vperm.xlu0 %10027, %v2035_v43   ;;  %2396 = vperm.xlu1 %10028, %v2018_v44  }
  0xe7   : > { %v637_v59 = vpop.f32.mrf.mxu0 }
  0xe8   : > { %v11908_v55 = vpop.permute.xlu0 %948  ;;  %v11910_v56 = vpop.permute.xlu1 %1013  ;;  %v638_v0 = vadd.f32 %v637_v59, %v11760_v38  ;;  %v2028_v59 = vld [vmem:[%s16654_s6 + $0x1b0] sm:$0xff] }
  0xe9   : > { %16733 = vst [vmem:[#allocation9_spill] sm:$0xff] %v11910_v56  ;;  %2401 = vperm.xlu0 %10027, %v2019_v51   ;;  %2466 = vperm.xlu1 %10028, %v2032_v52   ;;  %v9806_v3 = vpop.f32.mrf.mxu0  ;;  %v2015_v52 = vld [vmem:[%s16654_s6 + $0x148] sm:$0xff] }
  0xea   : > { %10790 = vtanh.f32 %v638_v0 }
  0xeb   : > { %v640_v10 = vpop.f32.mrf.mxu0 }
  0xec   : > { %v11919_v4 = vpop.permute.xlu0 %1018  ;;  %v11921_v9 = vpop.permute.xlu1 %933  ;;  %v641_v14 = vadd.f32 %v640_v10, %v11768_v41  ;;  %v2014_v41 = vld [vmem:[%s16654_s6 + $0x140] sm:$0xff]  ;;  %v2029_v10 = vld [vmem:[%s16654_s6 + $0x1b8] sm:$0xff] }
  0xed   : > { %16734 = vst [vmem:[#allocation10_spill] sm:$0xff] %v11919_v4  ;;  %2471 = vperm.xlu0 %10027, %v2033_v60   ;;  %2386 = vperm.xlu1 %10028, %v2016_v63   ;;  %v9807_v38 = vpop.f32.mrf.mxu0 }
  0xee   : > { %10792 = vtanh.f32 %v641_v14 }
  0xef   : > { %v11934_v28 = vpop.f32.mrf.mxu0 }
  0xf0   : > { %v11930_v20 = vpop.permute.xlu0 %938  ;;  %v11932_v27 = vpop.permute.xlu1 %1003 }
  0xf1   : > { %16735 = vst [vmem:[#allocation11_spill] sm:$0xff] %v11932_v27  ;;  %2391 = vperm.xlu0 %10027, %v2017_v13   ;;  %2456 = vperm.xlu1 %10028, %v2030_v19   ;;  %v9810_v36 = vpop.f32.mrf.mxu0  ;;  %v2012_v13 = vld [vmem:[%s16654_s6 + $0x130] sm:$0xff] }
  0xf3   : > { %v11946_v51 = vpop.f32.mrf.mxu0 }
  0xf4   : > { %v11942_v43 = vpop.permute.xlu0 %1008  ;;  %v11944_v44 = vpop.permute.xlu1 %923 }
  0xf5   : > { %16736 = vst [vmem:[#allocation12_spill] sm:$0xff] %v11942_v43  ;;  %2461 = vperm.xlu0 %10027, %v2031_v35   ;;  %2376 = vperm.xlu1 %10028, %v2014_v41   ;;  %v9811_v60 = vpop.f32.mrf.mxu0  ;;  %v2024_v43 = vld [vmem:[%s16654_s6 + $0x190] sm:$0xff] }
  0xf7   : > { %v11958_v3 = vpop.f32.mrf.mxu0  ;;  %v11966_v19 = vpop.eup %10790 }
  0xf8   : > { %v11954_v63 = vpop.permute.xlu0 %928  ;;  %v11956_v0 = vpop.permute.xlu1 %993 }
  0xf9   : > { %16737 = vst [vmem:[#allocation13_spill] sm:$0xff] %v11954_v63  ;;  %16738 = vst [vmem:[#allocation14_spill] sm:$0xff] %v11956_v0  ;;  %2381 = vperm.xlu0 %10027, %v2015_v52   ;;  %2446 = vperm.xlu1 %10028, %v2028_v59   ;;  %v9814_v14 = vpop.f32.mrf.mxu0  ;;  %v2013_v52 = vld [vmem:[%s16654_s6 + $0x138] sm:$0xff]  ;;  %v2026_v59 = vld [vmem:[%s16654_s6 + $0x1a0] sm:$0xff] }
  0xfb   : > { %v11970_v35 = vpop.eup %10792  ;;  %v11974_v36 = vpop.f32.mrf.mxu0 }
  0xfc   : > { %v11968_v38 = vpop.permute.xlu0 %998  ;;  %v11972_v41 = vpop.permute.xlu1 %913 }
  0xfd   : > { %16739 = vst [vmem:[#allocation15_spill] sm:$0xff] %v11968_v38  ;;  %16740 = vst [vmem:[#allocation16_spill] sm:$0xff] %v11972_v41  ;;  %2451 = vperm.xlu0 %10027, %v2029_v10   ;;  %2366 = vperm.xlu1 %10028, %v2012_v13   ;;  %v9815_v14 = vpop.f32.mrf.mxu0  ;;  %v2027_v10 = vld [vmem:[%s16654_s6 + $0x1a8] sm:$0xff]  ;;  %v2010_v13 = vld [vmem:[%s16654_s6 + $0x120] sm:$0xff] }
  0xfe   : > { %v2006_v41 = vld [vmem:[%s16654_s6 + $0x100] sm:$0xff] }
  0xff   : > { %v11988_v0 = vpop.f32.mrf.mxu0 }
 0x100   : > { %v11984_v6 = vpop.permute.xlu0 %918  ;;  %v11986_v7 = vpop.permute.xlu1 %983 }
 0x101   : > { %16741 = vst [vmem:[#allocation17_spill] sm:$0xff] %v11984_v6  ;;  %16742 = vst [vmem:[#allocation18_spill] sm:$0xff] %v11986_v7  ;;  %2371 = vperm.xlu0 %10027, %v2013_v52   ;;  %2436 = vperm.xlu1 %10028, %v2026_v59   ;;  %v9818_v38 = vpop.f32.mrf.mxu0  ;;  %v2011_v52 = vld [vmem:[%s16654_s6 + $0x128] sm:$0xff] }
 0x103   : > { %v12000_v60 = vpop.f32.mrf.mxu0 }
 0x104   : > { %v11996_v27 = vpop.permute.xlu0 %988  ;;  %v11998_v14 = vpop.permute.xlu1 %903 }
 0x105   : > { %16743 = vst [vmem:[#allocation19_spill] sm:$0xff] %v11996_v27  ;;  %2441 = vperm.xlu0 %10027, %v2027_v10   ;;  %2356 = vperm.xlu1 %10028, %v2010_v13   ;;  %v9819_v56 = vpop.f32.mrf.mxu0  ;;  %v2025_v10 = vld [vmem:[%s16654_s6 + $0x198] sm:$0xff] }
 0x107   : > { %v669_v59 = vpop.f32.mrf.mxu0 }
 0x108   : > { %v12008_v4 = vpop.permute.xlu0 %908  ;;  %v12010_v38 = vpop.permute.xlu1 %973 }
 0x109   : > { %2361 = vperm.xlu0 %10027, %v2011_v52   ;;  %2426 = vperm.xlu1 %10028, %v2024_v43   ;;  %v9822_v13 = vpop.f32.mrf.mxu0  ;;  %v2009_v52 = vld [vmem:[%s16654_s6 + $0x118] sm:$0xff] }
 0x10b   : > { %v672_v56 = vpop.f32.mrf.mxu0 }
 0x10c   : > { %v12018_v47 = vpop.permute.xlu0 %978  ;;  %v12020_v24 = vpop.permute.xlu1 %893 }
 0x10d   : > { %2431 = vperm.xlu0 %10027, %v2025_v10   ;;  %2346 = vperm.xlu1 %10028, %v2008_v40   ;;  %v9823_v31 = vpop.f32.mrf.mxu0  ;;  %v2023_v10 = vld [vmem:[%s16654_s6 + $0x188] sm:$0xff] }
 0x10f   : > { %v677_v13 = vpop.f32.mrf.mxu0 }
 0x110   : > { %v12028_v12 = vpop.permute.xlu0 %898  ;;  %v12030_v43 = vpop.permute.xlu1 %1053 }
 0x111   : > { %16744 = vst [vmem:[#allocation20_spill] sm:$0xff] %v12030_v43  ;;  %2351 = vperm.xlu0 %10027, %v2009_v52   ;;  %2416 = vperm.xlu1 %10028, %v2022_v15   ;;  %v9826_v40 = vpop.f32.mrf.mxu0  ;;  %v2007_v52 = vld [vmem:[%s16654_s6 + $0x108] sm:$0xff]  ;;  %v2068_v43 = vld [vmem:[%s16654_s6 + $0x2f0] sm:$0xff] }
 0x113   : > { %v680_v31 = vpop.f32.mrf.mxu0 }
 0x114   : > { %v12038_v27 = vpop.permute.xlu0 %1058  ;;  %v12040_v6 = vpop.permute.xlu1 %2176 }
 0x115   : > { %16745 = vst [vmem:[#allocation21_spill] sm:$0xff] %v12038_v27  ;;  %16746 = vst [vmem:[#allocation22_spill] sm:$0xff] %v12040_v6  ;;  %2421 = vperm.xlu0 %10027, %v2023_v10   ;;  %2336 = vperm.xlu1 %10028, %v2006_v41   ;;  %v9827_v7 = vpop.f32.mrf.mxu0  ;;  %v2069_v10 = vld [vmem:[%s16654_s6 + $0x2f8] sm:$0xff]  ;;  %v681_v41 = vadd.f32 %v680_v31, %v11710_v18  ;;  %v673_v18 = vadd.f32 %v672_v56, %v11728_v25  ;;  %v2050_v56 = vld [vmem:[%s16654_s6 + $0x260] sm:$0xff] }
 0x116   : > { %v2052_v7 = vld [vmem:[%s16654_s6 + $0x270] sm:$0xff]  ;;  %v665_v25 = vadd.f32 %v12000_v60, %v11738_v29  ;;  %v657_v29 = vadd.f32 %v11974_v36, %v11748_v33  ;;  %v2065_v33 = vld [vmem:[%s16654_s6 + $0x2d8] sm:$0xff]  ;;  %v649_v36 = vadd.f32 %v11946_v51, %v11758_v37  ;;  %v16754_v37 = vmov 0.0  }
 0x117   : > { %v685_v40 = vpop.f32.mrf.mxu0  ;;  %v2064_v60 = vld [vmem:[%s16654_s6 + $0x2d0] sm:$0xff]  ;;  %v2049_v51 = vld [vmem:[%s16654_s6 + $0x258] sm:$0xff] }
 0x118   : > { %v12048_v63 = vpop.permute.xlu0 %2181  ;;  %v12050_v15 = vpop.permute.xlu1 %2186  ;;  %v686_v6 = vadd.f32 %v685_v40, %v11708_v17  ;;  %v2067_v40 = vld [vmem:[%s16654_s6 + $0x2e8] sm:$0xff] }
 0x119   : > { %16747 = vst [vmem:[#allocation23_spill] sm:$0xff] %v12048_v63  ;;  %16748 = vst [vmem:[#allocation24_spill] sm:$0xff] %v12050_v15  ;;  %2341 = vperm.xlu0 %10027, %v2007_v52   ;;  %2646 = vperm.xlu1 %10028, %v2068_v43   ;;  %v9830_v27 = vpop.f32.mrf.mxu0  ;;  %v678_v15 = vadd.f32 %v677_v13, %v11718_v21  ;;  %v2053_v43 = vld [vmem:[%s16654_s6 + $0x278] sm:$0xff]  ;;  %v670_v21 = vadd.f32 %v669_v59, %v11720_v22 }
 0x11a   : > { %10794 = vtanh.f32 %v686_v6  ;;  %v2066_v6 = vld [vmem:[%s16654_s6 + $0x2e0] sm:$0xff]  ;;  %v662_v22 = vadd.f32 %v11988_v0, %v11730_v26  ;;  %v654_v0 = vadd.f32 %v11958_v3, %v11740_v30 }
 0x11b   : > { %v688_v17 = vpop.f32.mrf.mxu0  ;;  %10796 = vtanh.f32 %v681_v41 }
 0x11c   : > { %v12060_v63 = vpop.permute.xlu0 %2191  ;;  %v12063_v52 = vpop.permute.xlu1 %2196  ;;  %10798 = vtanh.f32 %v678_v15  ;;  %v2051_v15 = vld [vmem:[%s16654_s6 + $0x268] sm:$0xff] }
 0x11d   : > { %2651 = vperm.xlu0 %10027, %v2069_v10   ;;  %2566 = vperm.xlu1 %10028, %v2052_v7   ;;  %v9831_v27 = vpop.f32.mrf.mxu0  ;;  %10800 = vtanh.f32 %v673_v18 }
 0x11e   : > { %10802 = vtanh.f32 %v670_v21  ;;  %v646_v27 = vadd.f32 %v11934_v28, %v11750_v34 }
 0x11f   : > { %10804 = vtanh.f32 %v665_v25  ;;  %v2062_v25 = vld [vmem:[%s16654_s6 + $0x2c0] sm:$0xff] }
 0x120   : > { %v12072_v31 = vpop.permute.xlu0 %2201  ;;  %v12075_v13 = vpop.permute.xlu1 %2206  ;;  %10806 = vtanh.f32 %v662_v22 }
 0x121   : > { %2571 = vperm.xlu0 %10027, %v2053_v43   ;;  %2636 = vperm.xlu1 %10028, %v2066_v6   ;;  %10808 = vtanh.f32 %v657_v29  ;;  %v2048_v43 = vld [vmem:[%s16654_s6 + $0x250] sm:$0xff] }
 0x122   : > { %10810 = vtanh.f32 %v654_v0 }
 0x123   : > { %10812 = vtanh.f32 %v649_v36  ;;  %v2047_v36 = vld [vmem:[%s16654_s6 + $0x248] sm:$0xff] }
 0x124   : > { %v12085_v10 = vpop.permute.xlu0 %2211  ;;  %v12089_v59 = vpop.permute.xlu1 %2326  ;;  %10814 = vtanh.f32 %v646_v27 }
 0x125   : > { %16749 = vst [vmem:[#allocation25_spill] sm:$0xff] %v12089_v59  ;;  %2641 = vperm.xlu0 %10027, %v2067_v40   ;;  %2556 = vperm.xlu1 %10028, %v2050_v56  }
 0x127   : > { %v10795_v26 = vpop.eup %10794 }
 0x128   : > { %v12099_v41 = vpop.permute.xlu0 %2331  ;;  %v12103_v7 = vpop.permute.xlu1 %2246  ;;  %v710_v17 = vpack.c.bf16 %v10795_v26, %v10795_v26 }
 0x129   : > { %16750 = vst [vmem:[#allocation26_spill] sm:$0xff] %v12099_v41  ;;  %16751 = vst [vmem:[#allocation27_spill] sm:$0xff] %v12103_v7  ;;  %2561 = vperm.xlu0 %10027, %v2051_v15   ;;  %2626 = vperm.xlu1 %10028, %v2064_v60   ;;  %v10797_v30 = vpop.eup %10796  ;;  %v2063_v15 = vld [vmem:[%s16654_s6 + $0x2c8] sm:$0xff]  ;;  %v2046_v60 = vld [vmem:[%s16654_s6 + $0x240] sm:$0xff] }
 0x12a   : > { %v1264_v18 = vsel %vm1262_vm2, %v710_v17, 0  ;;  %v10799_v21 = vpop.eup %10798 }
 0x12b   : > { %9833 = vmatpush3.bf16.msra.mxu1 %v1264_v18  ;;  %v709_v40 = vpack.c.bf16 %v10797_v30, %v10799_v21  ;;  %v10801_v34 = vpop.eup %10800  ;;  %v2060_v30 = vld [vmem:[%s16654_s6 + $0x2b0] sm:$0xff] }
 0x12c   : > { %v12113_v3 = vpop.permute.xlu0 %2251  ;;  %v12118_v6 = vpop.permute.xlu1 %2316  ;;  %9834 = vmatprep.subr.bf16.mxu1 %v16754_v37 }
 0x12d   : > { %16752 = vst [vmem:[#allocation28_spill] sm:$0xff] %v12113_v3  ;;  %16753 = vst [vmem:[#allocation29_spill] sm:$0xff] %v12118_v6  ;;  %2631 = vperm.xlu0 %10027, %v2065_v33   ;;  %2546 = vperm.xlu1 %10028, %v2048_v43   ;;  %v10803_v22 = vpop.eup %10802 }
 0x12e   : > { %v708_v29 = vpack.c.bf16 %v10801_v34, %v10803_v22  ;;  %v10805_v26 = vpop.eup %10804  ;;  %v2044_v34 = vld [vmem:[%s16654_s6 + $0x230] sm:$0xff] }
 0x12f   : > { %9835 = vmatpush3.bf16.msra.mxu1 %v709_v40  ;;  %v10807_v33 = vpop.eup %10806  ;;  %v2061_v40 = vld [vmem:[%s16654_s6 + $0x2b8] sm:$0xff] }
 0x130   : > { %v12127_v28 = vpop.permute.xlu0 %2321  ;;  %v12129_v56 = vpop.permute.xlu1 %2236  ;;  %9836 = vmatprep.subr.bf16.mxu1 %v16754_v37  ;;  %v707_v43 = vpack.c.bf16 %v10805_v26, %v10807_v33  ;;  %v2045_v26 = vld [vmem:[%s16654_s6 + $0x238] sm:$0xff] }
 0x131   : > { %16755 = vst [vmem:[#allocation30_spill] sm:$0xff] %v12127_v28  ;;  %2551 = vperm.xlu0 %10027, %v2049_v51   ;;  %2616 = vperm.xlu1 %10028, %v2062_v25   ;;  %v10809_v18 = vpop.eup %10808 }
 0x132   : > { %v10811_v51 = vpop.eup %10810 }
 0x133   : > { %9837 = vmatpush3.bf16.msra.mxu1 %v708_v29  ;;  %v706_v25 = vpack.c.bf16 %v10809_v18, %v10811_v51  ;;  %v10813_v22 = vpop.eup %10812  ;;  %v2059_v18 = vld [vmem:[%s16654_s6 + $0x2a8] sm:$0xff]  ;;  %v2042_v51 = vld [vmem:[%s16654_s6 + $0x220] sm:$0xff] }
 0x134   : > { %v12138_v0 = vpop.permute.xlu0 %2241  ;;  %v12140_v17 = vpop.permute.xlu1 %2306  ;;  %9838 = vmatprep.subr.bf16.mxu1 %v16754_v37 }
 0x135   : > { %16756 = vst [vmem:[#allocation31_spill] sm:$0xff] %v12138_v0  ;;  %16757 = vst [vmem:[#allocation32_spill] sm:$0xff] %v12140_v17  ;;  %2621 = vperm.xlu0 %10027, %v2063_v15   ;;  %2536 = vperm.xlu1 %10028, %v2046_v60   ;;  %v10815_v60 = vpop.eup %10814 }
 0x136   : > { %v705_v33 = vpack.c.bf16 %v10813_v22, %v10815_v60  ;;  %v16762_v22 = vpack.c.bf16 %v11970_v35, %v11966_v19  ;;  %v2043_v60 = vld [vmem:[%s16654_s6 + $0x228] sm:$0xff]  ;;  %v2057_v19 = vld [vmem:[%s16654_s6 + $0x298] sm:$0xff]  ;;  %v2040_v35 = vld [vmem:[%s16654_s6 + $0x210] sm:$0xff] }
 0x137   : > { %9839 = vmatpush3.bf16.msra.mxu1 %v707_v43 }
 0x138   : > { %v12149_v27 = vpop.permute.xlu0 %2311  ;;  %v12151_v21 = vpop.permute.xlu1 %2226  ;;  %9840 = vmatprep.subr.bf16.mxu1 %v16754_v37 }
 0x139   : > { %16758 = vst [vmem:[#allocation33_spill] sm:$0xff] %v12149_v27  ;;  %2541 = vperm.xlu0 %10027, %v2047_v36   ;;  %2606 = vperm.xlu1 %10028, %v2060_v30   ;;  %v2058_v36 = vld [vmem:[%s16654_s6 + $0x2a0] sm:$0xff] }
 0x13b   : > { %9841 = vmatpush3.bf16.msra.mxu1 %v706_v25  ;;  %v10038_v25 = vld [vmem:[%s16651_s3] sm:$0xff]  }
 0x13c   : > { %v12160_v15 = vpop.permute.xlu0 %2231  ;;  %v12162_v29 = vpop.permute.xlu1 %2296  ;;  %9842 = vmatprep.subr.bf16.mxu1 %v16754_v37 }
 0x13d   : > { %16759 = vst [vmem:[#allocation34_spill] sm:$0xff] %v12162_v29  ;;  %2611 = vperm.xlu0 %10027, %v2061_v40   ;;  %2526 = vperm.xlu1 %10028, %v2044_v34  }
 0x13f   : > { %9843 = vmatpush3.bf16.msra.mxu1 %v705_v33  ;;  %v2056_v33 = vld [vmem:[%s16654_s6 + $0x290] sm:$0xff] }
 0x140   : > { %v12171_v43 = vpop.permute.xlu0 %2301  ;;  %v12173_v30 = vpop.permute.xlu1 %2216  ;;  %9844 = vmatprep.subr.bf16.mxu1 %v16754_v37 }
 0x141   : > { %16760 = vst [vmem:[#allocation35_spill] sm:$0xff] %v12171_v43  ;;  %2531 = vperm.xlu0 %10027, %v2045_v26   ;;  %2596 = vperm.xlu1 %10028, %v2058_v36   ;;  %v16763_v26 = vmov 0  }
 0x143   : > { %9845 = vmatpush3.bf16.msra.mxu1 %v16762_v22  ;;  %v2041_v22 = vld [vmem:[%s16654_s6 + $0x218] sm:$0xff] }
 0x144   : > { %v12182_v40 = vpop.permute.xlu0 %2221  ;;  %v12187_v34 = vpop.permute.xlu1 %2286  ;;  %6208 = vmatprep.subr.bf16.mxu1 %v16763_v26 }
 0x145   : > { %16761 = vst [vmem:[#allocation36_spill] sm:$0xff] %v12187_v34  ;;  %2601 = vperm.xlu0 %10027, %v2059_v18   ;;  %2516 = vperm.xlu1 %10028, %v2042_v51   ;;  %v10039_v51 = vld [vmem:[%s16651_s3 + $0x8] sm:$0xff]  }
 0x146   : > { %9847 = vmatmul.mubr.msk.bf16.vlgmr.msra.gmra.mxu1 %vm1186_vm3, %v10038_v25 }
 0x147   : > { %9850 = vmatprep.mubr.msk.bf16.mxu1 %vm11368_vm0, %v16754_v37 }
 0x148   : > { %v12200_v36 = vpop.permute.xlu0 %2291  ;;  %v12202_v41 = vpop.permute.xlu1 %2276 }
 0x149   : > { %16764 = vst [vmem:[#allocation37_spill] sm:$0xff] %v12200_v36  ;;  %16765 = vst [vmem:[#allocation38_spill] sm:$0xff] %v12202_v41  ;;  %2521 = vperm.xlu0 %10027, %v2043_v60   ;;  %2586 = vperm.xlu1 %10028, %v2056_v33   ;;  %v2054_v60 = vld [vmem:[%s16654_s6 + $0x280] sm:$0xff] }
 0x14a   : > { %v7444_v36 = vld [vmem:[%s16656_s8 + $0x60] sm:$0xf] }
 0x14c   : > { %v12212_v18 = vpop.permute.xlu0 %2281  ;;  %v12217_v25 = vpop.permute.xlu1 %2266 }
 0x14d   : > { %16766 = vst [vmem:[#allocation39_spill] sm:$0xff] %v12212_v18  ;;  %16767 = vst [vmem:[#allocation40_spill] sm:$0xff] %v12217_v25  ;;  %2591 = vperm.xlu0 %10027, %v2057_v19   ;;  %2506 = vperm.xlu1 %10028, %v2040_v35   ;;  %v2055_v19 = vld [vmem:[%s16654_s6 + $0x288] sm:$0xff]  ;;  %v2038_v35 = vld [vmem:[%s16654_s6 + $0x200] sm:$0xff] }
 0x14e   : > { %9851 = vmatmul.mubr.msk.bf16.gmra.mxu1 %vm1186_vm3, %v10039_v51  ;;  %v10040_v51 = vld [vmem:[%s16651_s3 + $0x10] sm:$0xff]  }
 0x14f   : > { %9854 = vmatprep.mubr.msk.bf16.mxu1 %vm11368_vm0, %v16754_v37 }
 0x150   : > { %v12226_v33 = vpop.permute.xlu0 %2271  ;;  %v12228_v59 = vpop.permute.xlu1 %2256 }
 0x151   : > { %16768 = vst [vmem:[#allocation41_spill] sm:$0xff] %v12226_v33  ;;  %16769 = vst [vmem:[#allocation42_spill] sm:$0xff] %v12228_v59  ;;  %2511 = vperm.xlu0 %10027, %v2041_v22   ;;  %2576 = vperm.xlu1 %10028, %v2054_v60   ;;  %v2039_v22 = vld [vmem:[%s16654_s6 + $0x208] sm:$0xff]  ;;  %v2100_v60 = vld [vmem:[%s16654_s6 + $0x3f0] sm:$0xff] }
 0x154   : > { %v12238_v28 = vpop.permute.xlu0 %2261  ;;  %v12243_v6 = vpop.permute.xlu1 %2486 }
 0x155   : > { %16770 = vst [vmem:[#allocation43_spill] sm:$0xff] %v12238_v28  ;;  %16771 = vst [vmem:[#allocation44_spill] sm:$0xff] %v12243_v6  ;;  %2581 = vperm.xlu0 %10027, %v2055_v19   ;;  %2496 = vperm.xlu1 %10028, %v2038_v35   ;;  %v2101_v19 = vld [vmem:[%s16654_s6 + $0x3f8] sm:$0xff]  ;;  %v2084_v35 = vld [vmem:[%s16654_s6 + $0x370] sm:$0xff] }
 0x156   : > { %9855 = vmatmul.mubr.msk.bf16.gmra.mxu1 %vm1186_vm3, %v10040_v51  ;;  %v10041_v51 = vld [vmem:[%s16651_s3 + $0x18] sm:$0xff]  }
 0x157   : > { %9858 = vmatprep.mubr.msk.bf16.mxu1 %vm11368_vm0, %v16754_v37 }
 0x158   : > { %v12252_v27 = vpop.permute.xlu0 %2491  ;;  %v12254_v17 = vpop.permute.xlu1 %2406 }
 0x159   : > { %16772 = vst [vmem:[#allocation45_spill] sm:$0xff] %v12252_v27  ;;  %16773 = vst [vmem:[#allocation46_spill] sm:$0xff] %v12254_v17  ;;  %2501 = vperm.xlu0 %10027, %v2039_v22   ;;  %2806 = vperm.xlu1 %10028, %v2100_v60   ;;  %v2085_v22 = vld [vmem:[%s16654_s6 + $0x378] sm:$0xff]  ;;  %v2098_v60 = vld [vmem:[%s16654_s6 + $0x3e0] sm:$0xff] }
 0x15c   : > { %v12264_v6 = vpop.permute.xlu0 %2411  ;;  %v12269_v27 = vpop.permute.xlu1 %2476 }
 0x15d   : > { %16774 = vst [vmem:[#allocation47_spill] sm:$0xff] %v12264_v6  ;;  %16775 = vst [vmem:[#allocation48_spill] sm:$0xff] %v12269_v27  ;;  %2811 = vperm.xlu0 %10027, %v2101_v19   ;;  %2726 = vperm.xlu1 %10028, %v2084_v35   ;;  %v2099_v19 = vld [vmem:[%s16654_s6 + $0x3e8] sm:$0xff]  ;;  %v2082_v35 = vld [vmem:[%s16654_s6 + $0x360] sm:$0xff] }
 0x15e   : > { %9859 = vmatmul.mubr.msk.bf16.gmra.mxu1 %vm1186_vm3, %v10041_v51  ;;  %v10042_v51 = vld [vmem:[%s16651_s3 + $0x20] sm:$0xff]  }
 0x15f   : > { %9862 = vmatprep.mubr.msk.bf16.mxu1 %vm11368_vm0, %v16754_v37 }
 0x160   : > { %v12278_v17 = vpop.permute.xlu0 %2481  ;;  %v12280_v6 = vpop.permute.xlu1 %2396 }
 0x161   : > { %16776 = vst [vmem:[#allocation49_spill] sm:$0xff] %v12278_v17  ;;  %16777 = vst [vmem:[#allocation50_spill] sm:$0xff] %v12280_v6  ;;  %2731 = vperm.xlu0 %10027, %v2085_v22   ;;  %2796 = vperm.xlu1 %10028, %v2098_v60   ;;  %v2083_v22 = vld [vmem:[%s16654_s6 + $0x368] sm:$0xff]  ;;  %v2132_v60 = vld [vmem:[%s16654_s6 + $0x4f0] sm:$0xff] }
 0x164   : > { %v12290_v27 = vpop.permute.xlu0 %2401  ;;  %v12295_v17 = vpop.permute.xlu1 %2466 }
 0x165   : > { %16778 = vst [vmem:[#allocation51_spill] sm:$0xff] %v12290_v27  ;;  %16779 = vst [vmem:[#allocation52_spill] sm:$0xff] %v12295_v17  ;;  %2801 = vperm.xlu0 %10027, %v2099_v19   ;;  %2716 = vperm.xlu1 %10028, %v2082_v35   ;;  %v2133_v19 = vld [vmem:[%s16654_s6 + $0x4f8] sm:$0xff]  ;;  %v2116_v35 = vld [vmem:[%s16654_s6 + $0x470] sm:$0xff] }
 0x166   : > { %9863 = vmatmul.mubr.msk.bf16.gmra.mxu1 %vm1186_vm3, %v10042_v51  ;;  %v10043_v51 = vld [vmem:[%s16651_s3 + $0x28] sm:$0xff]  }
 0x167   : > { %9866 = vmatprep.mubr.msk.bf16.mxu1 %vm11368_vm0, %v16754_v37 }
 0x168   : > { %v12304_v6 = vpop.permute.xlu0 %2471  ;;  %v12308_v27 = vpop.permute.xlu1 %2386 }
 0x169   : > { %16780 = vst [vmem:[#allocation53_spill] sm:$0xff] %v12304_v6  ;;  %2721 = vperm.xlu0 %10027, %v2083_v22   ;;  %16781 = vst [vmem:[#allocation54_spill] sm:$0xff] %v12308_v27  ;;  %2966 = vperm.xlu1 %10028, %v2132_v60   ;;  %v2117_v22 = vld [vmem:[%s16654_s6 + $0x478] sm:$0xff]  ;;  %v2096_v60 = vld [vmem:[%s16654_s6 + $0x3d0] sm:$0xff] }
 0x16c   : > { %v12319_v6 = vpop.permute.xlu0 %2391  ;;  %v12327_v17 = vpop.permute.xlu1 %2456 }
 0x16d   : > { %16782 = vst [vmem:[#allocation55_spill] sm:$0xff] %v12319_v6  ;;  %2971 = vperm.xlu0 %10027, %v2133_v19   ;;  %2886 = vperm.xlu1 %10028, %v2116_v35   ;;  %16783 = vst [vmem:[#allocation56_spill] sm:$0xff] %v12327_v17  ;;  %v2097_v19 = vld [vmem:[%s16654_s6 + $0x3d8] sm:$0xff]  ;;  %v2080_v6 = vld [vmem:[%s16654_s6 + $0x350] sm:$0xff] }
 0x16e   : > { %9867 = vmatmul.mubr.msk.bf16.gmra.mxu1 %vm1186_vm3, %v10043_v51  ;;  %v10044_v17 = vld [vmem:[%s16651_s3 + $0x30] sm:$0xff]  }
 0x16f   : > { %9870 = vmatprep.mubr.msk.bf16.mxu1 %vm11368_vm0, %v16754_v37 }
 0x170   : > { %v12335_v35 = vpop.permute.xlu0 %2461  ;;  %v12343_v51 = vpop.permute.xlu1 %2376 }
 0x171   : > { %2891 = vperm.xlu0 %10027, %v2117_v22   ;;  %2786 = vperm.xlu1 %10028, %v2096_v60   ;;  %16784 = vst [vmem:[#allocation57_spill] sm:$0xff] %v12335_v35  ;;  %16785 = vst [vmem:[#allocation58_spill] sm:$0xff] %v12343_v51  ;;  %v2081_v22 = vld [vmem:[%s16654_s6 + $0x358] sm:$0xff]  ;;  %v2130_v60 = vld [vmem:[%s16654_s6 + $0x4e0] sm:$0xff] }
 0x174   : > { %v12352_v35 = vpop.permute.xlu0 %2381  ;;  %v12362_v27 = vpop.permute.xlu1 %2446 }
 0x175   : > { %2791 = vperm.xlu0 %10027, %v2097_v19   ;;  %2706 = vperm.xlu1 %10028, %v2080_v6   ;;  %16786 = vst [vmem:[#allocation59_spill] sm:$0xff] %v12352_v35  ;;  %v2131_v6 = vld [vmem:[%s16654_s6 + $0x4e8] sm:$0xff]  ;;  %v2114_v19 = vld [vmem:[%s16654_s6 + $0x460] sm:$0xff]  ;;  %16787 = vst [vmem:[#allocation60_spill] sm:$0xff] %v12362_v27 }
 0x176   : > { %9871 = vmatmul.mubr.msk.bf16.gmra.mxu1 %vm1186_vm3, %v10044_v17  ;;  %v10045_v17 = vld [vmem:[%s16651_s3 + $0x38] sm:$0xff]   ;;  %v2094_v35 = vld [vmem:[%s16654_s6 + $0x3c0] sm:$0xff] }
 0x177   : > { %9874 = vmatprep.mubr.msk.bf16.mxu1 %vm11368_vm0, %v16754_v37 }
 0x178   : > { %v12378_v27 = vpop.permute.xlu1 %2366 }
 0x179   : > { %2711 = vperm.xlu0 %10027, %v2081_v22   ;;  %2956 = vperm.xlu1 %10028, %v2130_v60   ;;  %v2115_v22 = vld [vmem:[%s16654_s6 + $0x468] sm:$0xff]  ;;  %v12370_v60 = vpop.permute.xlu0 %2451  ;;  %16789 = vst [vmem:[#allocation62_spill] sm:$0xff] %v12378_v27 }
 0x17a   : > { %16788 = vst [vmem:[#allocation61_spill] sm:$0xff] %v12370_v60  ;;  %v10046_v60 = vld [vmem:[%s16651_s3 + $0x40] sm:$0xff]  }
 0x17c   : > { %v12397_v51 = vpop.permute.xlu1 %2436 }
 0x17d   : > { %2961 = vperm.xlu0 %10027, %v2131_v6   ;;  %2876 = vperm.xlu1 %10028, %v2114_v19   ;;  %v2095_v6 = vld [vmem:[%s16654_s6 + $0x3c8] sm:$0xff]  ;;  %v2078_v19 = vld [vmem:[%s16654_s6 + $0x340] sm:$0xff]  ;;  %16791 = vst [vmem:[#allocation64_spill] sm:$0xff] %v12397_v51 }
 0x17e   : > { %9875 = vmatmul.mubr.msk.bf16.gmra.mxu1 %vm1186_vm3, %v10045_v17  ;;  %v12389_v17 = vpop.permute.xlu0 %2371  ;;  %v10047_v51 = vld [vmem:[%s16651_s3 + $0x48] sm:$0xff]  }
 0x17f   : > { %9878 = vmatprep.mubr.msk.bf16.mxu1 %vm11368_vm0, %v16754_v37  ;;  %16790 = vst [vmem:[#allocation63_spill] sm:$0xff] %v12389_v17  ;;  %v2112_v17 = vld [vmem:[%s16654_s6 + $0x450] sm:$0xff] }
 0x181   : > { %2881 = vperm.xlu0 %10027, %v2115_v22   ;;  %2776 = vperm.xlu1 %10028, %v2094_v35   ;;  %v2079_v35 = vld [vmem:[%s16654_s6 + $0x348] sm:$0xff]  ;;  %v2128_v22 = vld [vmem:[%s16654_s6 + $0x4d0] sm:$0xff] }
 0x185   : > { %2781 = vperm.xlu0 %10027, %v2095_v6   ;;  %2696 = vperm.xlu1 %10028, %v2078_v19   ;;  %v2129_v6 = vld [vmem:[%s16654_s6 + $0x4d8] sm:$0xff]  ;;  %v12405_v19 = vpop.permute.xlu0 %2441 }
 0x186   : > { %9879 = vmatmul.mubr.msk.bf16.gmra.mxu1 %vm1186_vm3, %v10046_v60  ;;  %16792 = vst [vmem:[#allocation65_spill] sm:$0xff] %v12405_v19  ;;  %v12413_v60 = vpop.permute.xlu1 %2356 }
 0x187   : > { %9882 = vmatprep.mubr.msk.bf16.mxu1 %vm11368_vm0, %v16754_v37  ;;  %16793 = vst [vmem:[#allocation66_spill] sm:$0xff] %v12413_v60 }
 0x189   : > { %2701 = vperm.xlu0 %10027, %v2079_v35   ;;  %2946 = vperm.xlu1 %10028, %v2128_v22   ;;  %v2113_v35 = vld [vmem:[%s16654_s6 + $0x458] sm:$0xff]  ;;  %v2092_v22 = vld [vmem:[%s16654_s6 + $0x3b0] sm:$0xff]  ;;  %v12422_v19 = vpop.permute.xlu0 %2361 }
 0x18a   : > { %16794 = vst [vmem:[#allocation67_spill] sm:$0xff] %v12422_v19  ;;  %v12432_v27 = vpop.permute.xlu1 %2426  ;;  %v2126_v19 = vld [vmem:[%s16654_s6 + $0x4c0] sm:$0xff] }
 0x18b   : > { %16795 = vst [vmem:[#allocation68_spill] sm:$0xff] %v12432_v27 }
 0x18d   : > { %2951 = vperm.xlu0 %10027, %v2129_v6   ;;  %2866 = vperm.xlu1 %10028, %v2112_v17   ;;  %v2093_v17 = vld [vmem:[%s16654_s6 + $0x3b8] sm:$0xff]  ;;  %v2076_v6 = vld [vmem:[%s16654_s6 + $0x330] sm:$0xff] }
 0x18e   : > { %9883 = vmatmul.mubr.msk.bf16.gmra.mxu1 %vm1186_vm3, %v10047_v51  ;;  %v10048_v51 = vld [vmem:[%s16651_s3 + $0x50] sm:$0xff]   ;;  %v12448_v27 = vpop.permute.xlu1 %2346 }
 0x18f   : > { %9886 = vmatprep.mubr.msk.bf16.mxu1 %vm11368_vm0, %v16754_v37  ;;  %16797 = vst [vmem:[#allocation70_spill] sm:$0xff] %v12448_v27 }
 0x191   : > { %2871 = vperm.xlu0 %10027, %v2113_v35   ;;  %2766 = vperm.xlu1 %10028, %v2092_v22   ;;  %v2077_v35 = vld [vmem:[%s16654_s6 + $0x338] sm:$0xff]  ;;  %v12440_v22 = vpop.permute.xlu0 %2431 }
 0x192   : > { %16796 = vst [vmem:[#allocation69_spill] sm:$0xff] %v12440_v22  ;;  %v10049_v22 = vld [vmem:[%s16651_s3 + $0x58] sm:$0xff]   ;;  %v12467_v60 = vpop.permute.xlu1 %2416 }
 0x193   : > { %16799 = vst [vmem:[#allocation72_spill] sm:$0xff] %v12467_v60  ;;  %v10050_v60 = vld [vmem:[%s16651_s3 + $0x60] sm:$0xff]  }
 0x195   : > { %2771 = vperm.xlu0 %10027, %v2093_v17   ;;  %2686 = vperm.xlu1 %10028, %v2076_v6   ;;  %v2127_v17 = vld [vmem:[%s16654_s6 + $0x4c8] sm:$0xff]  ;;  %v2110_v6 = vld [vmem:[%s16654_s6 + $0x440] sm:$0xff] }
 0x196   : > { %9887 = vmatmul.mubr.msk.bf16.gmra.mxu1 %vm1186_vm3, %v10048_v51  ;;  %v12459_v51 = vpop.permute.xlu0 %2351 }
 0x197   : > { %9890 = vmatprep.mubr.msk.bf16.mxu1 %vm11368_vm0, %v16754_v37  ;;  %16798 = vst [vmem:[#allocation71_spill] sm:$0xff] %v12459_v51  ;;  %v2074_v51 = vld [vmem:[%s16654_s6 + $0x320] sm:$0xff] }
 0x199   : > { %2691 = vperm.xlu0 %10027, %v2077_v35   ;;  %2936 = vperm.xlu1 %10028, %v2126_v19   ;;  %v2111_v19 = vld [vmem:[%s16654_s6 + $0x448] sm:$0xff]  ;;  %v2090_v35 = vld [vmem:[%s16654_s6 + $0x3a0] sm:$0xff] }
 0x19d   : > { %2941 = vperm.xlu0 %10027, %v2127_v17   ;;  %2856 = vperm.xlu1 %10028, %v2110_v6   ;;  %v2091_v17 = vld [vmem:[%s16654_s6 + $0x3a8] sm:$0xff]  ;;  %v12475_v6 = vpop.permute.xlu0 %2421 }
 0x19e   : > { %9891 = vmatmul.mubr.msk.bf16.gmra.mxu1 %vm1186_vm3, %v10049_v22  ;;  %16800 = vst [vmem:[#allocation73_spill] sm:$0xff] %v12475_v6  ;;  %v12483_v22 = vpop.permute.xlu1 %2336 }
 0x19f   : > { %9894 = vmatprep.mubr.msk.bf16.mxu1 %vm11368_vm0, %v16754_v37  ;;  %16801 = vst [vmem:[#allocation74_spill] sm:$0xff] %v12483_v22 }
 0x1a1   : > { %2861 = vperm.xlu0 %10027, %v2111_v19   ;;  %2756 = vperm.xlu1 %10028, %v2090_v35   ;;  %v2075_v19 = vld [vmem:[%s16654_s6 + $0x328] sm:$0xff]  ;;  %v2124_v35 = vld [vmem:[%s16654_s6 + $0x4b0] sm:$0xff]  ;;  %v12492_v6 = vpop.permute.xlu0 %2341 }
 0x1a2   : > { %16802 = vst [vmem:[#allocation75_spill] sm:$0xff] %v12492_v6  ;;  %v12502_v27 = vpop.permute.xlu1 %2646  ;;  %v2088_v6 = vld [vmem:[%s16654_s6 + $0x390] sm:$0xff] }
 0x1a3   : > { %16803 = vst [vmem:[#allocation76_spill] sm:$0xff] %v12502_v27 }
 0x1a5   : > { %2761 = vperm.xlu0 %10027, %v2091_v17   ;;  %2676 = vperm.xlu1 %10028, %v2074_v51   ;;  %v2125_v51 = vld [vmem:[%s16654_s6 + $0x4b8] sm:$0xff]  ;;  %v2108_v17 = vld [vmem:[%s16654_s6 + $0x430] sm:$0xff] }
 0x1a6   : > { %9895 = vmatmul.mubr.msk.bf16.gmra.mxu1 %vm1186_vm3, %v10050_v60  ;;  %v10051_v60 = vld [vmem:[%s16651_s3 + $0x68] sm:$0xff]   ;;  %v12518_v27 = vpop.permute.xlu1 %2566 }
 0x1a7   : > { %9898 = vmatprep.mubr.msk.bf16.mxu1 %vm11368_vm0, %v16754_v37  ;;  %16805 = vst [vmem:[#allocation78_spill] sm:$0xff] %v12518_v27 }
 0x1a9   : > { %2681 = vperm.xlu0 %10027, %v2075_v19   ;;  %2926 = vperm.xlu1 %10028, %v2124_v35   ;;  %v2109_v19 = vld [vmem:[%s16654_s6 + $0x438] sm:$0xff]  ;;  %v12510_v35 = vpop.permute.xlu0 %2651 }
 0x1aa   : > { %16804 = vst [vmem:[#allocation77_spill] sm:$0xff] %v12510_v35  ;;  %v10052_v35 = vld [vmem:[%s16651_s3 + $0x70] sm:$0xff]   ;;  %v12537_v27 = vpop.permute.xlu1 %2636 }
 0x1ab   : > { %16807 = vst [vmem:[#allocation80_spill] sm:$0xff] %v12537_v27  ;;  %v10053_v27 = vld [vmem:[%s16651_s3 + $0x78] sm:$0xff]  }
 0x1ad   : > { %2931 = vperm.xlu0 %10027, %v2125_v51   ;;  %2846 = vperm.xlu1 %10028, %v2108_v17   ;;  %v2089_v51 = vld [vmem:[%s16654_s6 + $0x398] sm:$0xff]  ;;  %v2072_v17 = vld [vmem:[%s16654_s6 + $0x310] sm:$0xff] }
 0x1ae   : > { %9899 = vmatmul.mubr.msk.bf16.gmra.mxu1 %vm1186_vm3, %v10051_v60  ;;  %v12529_v60 = vpop.permute.xlu0 %2571 }
 0x1af   : > { %9902 = vmatprep.mubr.msk.bf16.mxu1 %vm11368_vm0, %v16754_v37  ;;  %16806 = vst [vmem:[#allocation79_spill] sm:$0xff] %v12529_v60  ;;  %v2106_v60 = vld [vmem:[%s16654_s6 + $0x420] sm:$0xff] }
 0x1b1   : > { %2851 = vperm.xlu0 %10027, %v2109_v19   ;;  %2746 = vperm.xlu1 %10028, %v2088_v6   ;;  %v2073_v6 = vld [vmem:[%s16654_s6 + $0x318] sm:$0xff]  ;;  %v2122_v19 = vld [vmem:[%s16654_s6 + $0x4a0] sm:$0xff] }
 0x1b5   : > { %2751 = vperm.xlu0 %10027, %v2089_v51   ;;  %2666 = vperm.xlu1 %10028, %v2072_v17   ;;  %v2123_v51 = vld [vmem:[%s16654_s6 + $0x4a8] sm:$0xff]  ;;  %v12545_v17 = vpop.permute.xlu0 %2641 }
 0x1b6   : > { %9903 = vmatmul.mubr.msk.bf16.gmra.mxu1 %vm1186_vm3, %v10052_v35  ;;  %16808 = vst [vmem:[#allocation81_spill] sm:$0xff] %v12545_v17  ;;  %v12553_v35 = vpop.permute.xlu1 %2556 }
 0x1b7   : > { %9906 = vmatprep.mubr.msk.bf16.mxu1 %vm11368_vm0, %v16754_v37  ;;  %16809 = vst [vmem:[#allocation82_spill] sm:$0xff] %v12553_v35 }
 0x1b9   : > { %2671 = vperm.xlu0 %10027, %v2073_v6   ;;  %2916 = vperm.xlu1 %10028, %v2122_v19   ;;  %v2107_v6 = vld [vmem:[%s16654_s6 + $0x428] sm:$0xff]  ;;  %v2086_v19 = vld [vmem:[%s16654_s6 + $0x380] sm:$0xff]  ;;  %v12562_v17 = vpop.permute.xlu0 %2561 }
 0x1ba   : > { %16810 = vst [vmem:[#allocation83_spill] sm:$0xff] %v12562_v17  ;;  %v12572_v35 = vpop.permute.xlu1 %2626  ;;  %v2120_v17 = vld [vmem:[%s16654_s6 + $0x490] sm:$0xff] }
 0x1bb   : > { %16811 = vst [vmem:[#allocation84_spill] sm:$0xff] %v12572_v35 }
 0x1bd   : > { %2921 = vperm.xlu0 %10027, %v2123_v51   ;;  %2836 = vperm.xlu1 %10028, %v2106_v60   ;;  %v2087_v60 = vld [vmem:[%s16654_s6 + $0x388] sm:$0xff]  ;;  %v2070_v51 = vld [vmem:[%s16654_s6 + $0x300] sm:$0xff] }
 0x1be   : > { %9907 = vmatmul.mubr.msk.bf16.gmra.mxu1 %vm1186_vm3, %v10053_v27  ;;  %v10054_v27 = vld [vmem:[%s16651_s3 + $0x80] sm:$0xff]   ;;  %v12588_v35 = vpop.permute.xlu1 %2546 }
 0x1bf   : > { %9910 = vmatprep.mubr.msk.bf16.mxu1 %vm11368_vm0, %v16754_v37  ;;  %16813 = vst [vmem:[#allocation86_spill] sm:$0xff] %v12588_v35 }
 0x1c1   : > { %2841 = vperm.xlu0 %10027, %v2107_v6   ;;  %2736 = vperm.xlu1 %10028, %v2086_v19   ;;  %v2071_v6 = vld [vmem:[%s16654_s6 + $0x308] sm:$0xff]  ;;  %v12580_v19 = vpop.permute.xlu0 %2631 }
 0x1c2   : > { %16812 = vst [vmem:[#allocation85_spill] sm:$0xff] %v12580_v19  ;;  %v10055_v19 = vld [vmem:[%s16651_s3 + $0x88] sm:$0xff]   ;;  %v12607_v35 = vpop.permute.xlu1 %2616 }
 0x1c3   : > { %16815 = vst [vmem:[#allocation88_spill] sm:$0xff] %v12607_v35  ;;  %v10056_v35 = vld [vmem:[%s16651_s3 + $0x90] sm:$0xff]  }
 0x1c5   : > { %2741 = vperm.xlu0 %10027, %v2087_v60   ;;  %2656 = vperm.xlu1 %10028, %v2070_v51   ;;  %v2121_v60 = vld [vmem:[%s16654_s6 + $0x498] sm:$0xff]  ;;  %v2104_v51 = vld [vmem:[%s16654_s6 + $0x410] sm:$0xff] }
 0x1c6   : > { %9911 = vmatmul.mubr.msk.bf16.gmra.mxu1 %vm1186_vm3, %v10054_v27  ;;  %v12599_v27 = vpop.permute.xlu0 %2551 }
 0x1c7   : > { %9914 = vmatprep.mubr.msk.bf16.mxu1 %vm11368_vm0, %v16754_v37  ;;  %16814 = vst [vmem:[#allocation87_spill] sm:$0xff] %v12599_v27  ;;  %v2102_v27 = vld [vmem:[%s16654_s6 + $0x400] sm:$0xff] }
 0x1c9   : > { %2661 = vperm.xlu0 %10027, %v2071_v6   ;;  %2906 = vperm.xlu1 %10028, %v2120_v17   ;;  %v2105_v17 = vld [vmem:[%s16654_s6 + $0x418] sm:$0xff]  ;;  %v2118_v6 = vld [vmem:[%s16654_s6 + $0x480] sm:$0xff] }
 0x1cd   : > { %2911 = vperm.xlu0 %10027, %v2121_v60   ;;  %2826 = vperm.xlu1 %10028, %v2104_v51   ;;  %v2119_v60 = vld [vmem:[%s16654_s6 + $0x488] sm:$0xff]  ;;  %v12615_v51 = vpop.permute.xlu0 %2621 }
 0x1ce   : > { %9915 = vmatmul.mubr.msk.bf16.gmra.mxu1 %vm1186_vm3, %v10055_v19  ;;  %16816 = vst [vmem:[#allocation89_spill] sm:$0xff] %v12615_v51  ;;  %v12623_v19 = vpop.permute.xlu1 %2536 }
 0x1cf   : > { %9918 = vmatprep.mubr.msk.bf16.mxu1 %vm11368_vm0, %v16754_v37  ;;  %16817 = vst [vmem:[#allocation90_spill] sm:$0xff] %v12623_v19 }
 0x1d1   : > { %2831 = vperm.xlu0 %10027, %v2105_v17   ;;  %2896 = vperm.xlu1 %10028, %v2118_v6   ;;  %v2103_v17 = vld [vmem:[%s16654_s6 + $0x408] sm:$0xff]  ;;  %v2164_v6 = vld [vmem:[%s16654_s6 + $0x5f0] sm:$0xff]  ;;  %v12632_v51 = vpop.permute.xlu0 %2541 }
 0x1d2   : > { %16818 = vst [vmem:[#allocation91_spill] sm:$0xff] %v12632_v51  ;;  %v12642_v19 = vpop.permute.xlu1 %2606  ;;  %v2162_v51 = vld [vmem:[%s16654_s6 + $0x5e0] sm:$0xff] }
 0x1d3   : > { %16819 = vst [vmem:[#allocation92_spill] sm:$0xff] %v12642_v19 }
 0x1d5   : > { %2901 = vperm.xlu0 %10027, %v2119_v60   ;;  %2816 = vperm.xlu1 %10028, %v2102_v27   ;;  %v2165_v27 = vld [vmem:[%s16654_s6 + $0x5f8] sm:$0xff]  ;;  %v2148_v60 = vld [vmem:[%s16654_s6 + $0x570] sm:$0xff] }
 0x1d6   : > { %9919 = vmatmul.mubr.msk.bf16.gmra.mxu1 %vm1186_vm3, %v10056_v35  ;;  %v10057_v35 = vld [vmem:[%s16651_s3 + $0x98] sm:$0xff]   ;;  %v12658_v19 = vpop.permute.xlu1 %2526 }
 0x1d7   : > { %9922 = vmatprep.mubr.msk.bf16.mxu1 %vm11368_vm0, %v16754_v37  ;;  %16821 = vst [vmem:[#allocation94_spill] sm:$0xff] %v12658_v19 }
 0x1d9   : > { %2821 = vperm.xlu0 %10027, %v2103_v17   ;;  %3126 = vperm.xlu1 %10028, %v2164_v6   ;;  %v2149_v17 = vld [vmem:[%s16654_s6 + $0x578] sm:$0xff]  ;;  %v12650_v6 = vpop.permute.xlu0 %2611 }
 0x1da   : > { %16820 = vst [vmem:[#allocation93_spill] sm:$0xff] %v12650_v6  ;;  %v10058_v6 = vld [vmem:[%s16651_s3 + $0xa0] sm:$0xff]   ;;  %v12677_v19 = vpop.permute.xlu1 %2596 }
 0x1db   : > { %16823 = vst [vmem:[#allocation96_spill] sm:$0xff] %v12677_v19  ;;  %v10059_v19 = vld [vmem:[%s16651_s3 + $0xa8] sm:$0xff]  }
 0x1dd   : > { %3131 = vperm.xlu0 %10027, %v2165_v27   ;;  %3046 = vperm.xlu1 %10028, %v2148_v60   ;;  %v2163_v27 = vld [vmem:[%s16654_s6 + $0x5e8] sm:$0xff]  ;;  %v2146_v60 = vld [vmem:[%s16654_s6 + $0x560] sm:$0xff] }
 0x1de   : > { %9923 = vmatmul.mubr.msk.bf16.gmra.mxu1 %vm1186_vm3, %v10057_v35  ;;  %v12669_v35 = vpop.permute.xlu0 %2531 }
 0x1df   : > { %9926 = vmatprep.mubr.msk.bf16.mxu1 %vm11368_vm0, %v16754_v37  ;;  %16822 = vst [vmem:[#allocation95_spill] sm:$0xff] %v12669_v35  ;;  %v2144_v35 = vld [vmem:[%s16654_s6 + $0x550] sm:$0xff] }
 0x1e1   : > { %3051 = vperm.xlu0 %10027, %v2149_v17   ;;  %3116 = vperm.xlu1 %10028, %v2162_v51   ;;  %v2147_v51 = vld [vmem:[%s16654_s6 + $0x568] sm:$0xff]  ;;  %v2160_v17 = vld [vmem:[%s16654_s6 + $0x5d0] sm:$0xff] }
 0x1e5   : > { %3121 = vperm.xlu0 %10027, %v2163_v27   ;;  %3036 = vperm.xlu1 %10028, %v2146_v60   ;;  %v2161_v27 = vld [vmem:[%s16654_s6 + $0x5d8] sm:$0xff]  ;;  %v12685_v60 = vpop.permute.xlu0 %2601 }
 0x1e6   : > { %9927 = vmatmul.mubr.msk.bf16.gmra.mxu1 %vm1186_vm3, %v10058_v6  ;;  %16824 = vst [vmem:[#allocation97_spill] sm:$0xff] %v12685_v60  ;;  %v12693_v6 = vpop.permute.xlu1 %2516 }
 0x1e7   : > { %9930 = vmatprep.mubr.msk.bf16.mxu1 %vm11368_vm0, %v16754_v37  ;;  %16825 = vst [vmem:[#allocation98_spill] sm:$0xff] %v12693_v6 }
 0x1e9   : > { %3041 = vperm.xlu0 %10027, %v2147_v51   ;;  %3106 = vperm.xlu1 %10028, %v2160_v17   ;;  %v2145_v51 = vld [vmem:[%s16654_s6 + $0x558] sm:$0xff]  ;;  %v2158_v17 = vld [vmem:[%s16654_s6 + $0x5c0] sm:$0xff]  ;;  %v12702_v60 = vpop.permute.xlu0 %2521 }
 0x1ea   : > { %16826 = vst [vmem:[#allocation99_spill] sm:$0xff] %v12702_v60  ;;  %v12712_v6 = vpop.permute.xlu1 %2586  ;;  %v2156_v60 = vld [vmem:[%s16654_s6 + $0x5b0] sm:$0xff] }
 0x1eb   : > { %16827 = vst [vmem:[#allocation100_spill] sm:$0xff] %v12712_v6 }
 0x1ed   : > { %3111 = vperm.xlu0 %10027, %v2161_v27   ;;  %3026 = vperm.xlu1 %10028, %v2144_v35   ;;  %v2159_v35 = vld [vmem:[%s16654_s6 + $0x5c8] sm:$0xff]  ;;  %v2142_v27 = vld [vmem:[%s16654_s6 + $0x540] sm:$0xff] }
 0x1ee   : > { %9931 = vmatmul.mubr.msk.bf16.gmra.mxu1 %vm1186_vm3, %v10059_v19  ;;  %v10060_v19 = vld [vmem:[%s16651_s3 + $0xb0] sm:$0xff]   ;;  %v12728_v6 = vpop.permute.xlu1 %2506 }
 0x1ef   : > { %9934 = vmatprep.mubr.msk.bf16.mxu1 %vm11368_vm0, %v16754_v37  ;;  %16829 = vst [vmem:[#allocation102_spill] sm:$0xff] %v12728_v6 }
 0x1f1   : > { %3031 = vperm.xlu0 %10027, %v2145_v51   ;;  %3096 = vperm.xlu1 %10028, %v2158_v17   ;;  %v2143_v51 = vld [vmem:[%s16654_s6 + $0x548] sm:$0xff]  ;;  %v12720_v17 = vpop.permute.xlu0 %2591 }
 0x1f2   : > { %16828 = vst [vmem:[#allocation101_spill] sm:$0xff] %v12720_v17  ;;  %v10061_v17 = vld [vmem:[%s16651_s3 + $0xb8] sm:$0xff]   ;;  %v12747_v6 = vpop.permute.xlu1 %2576 }
 0x1f3   : > { %16831 = vst [vmem:[#allocation104_spill] sm:$0xff] %v12747_v6  ;;  %v10062_v6 = vld [vmem:[%s16651_s3 + $0xc0] sm:$0xff]  }
 0x1f5   : > { %3101 = vperm.xlu0 %10027, %v2159_v35   ;;  %3016 = vperm.xlu1 %10028, %v2142_v27   ;;  %v2157_v35 = vld [vmem:[%s16654_s6 + $0x5b8] sm:$0xff]  ;;  %v2140_v27 = vld [vmem:[%s16654_s6 + $0x530] sm:$0xff] }
 0x1f6   : > { %9935 = vmatmul.mubr.msk.bf16.gmra.mxu1 %vm1186_vm3, %v10060_v19  ;;  %v12739_v19 = vpop.permute.xlu0 %2511 }
 0x1f7   : > { %9938 = vmatprep.mubr.msk.bf16.mxu1 %vm11368_vm0, %v16754_v37  ;;  %16830 = vst [vmem:[#allocation103_spill] sm:$0xff] %v12739_v19  ;;  %v2138_v19 = vld [vmem:[%s16654_s6 + $0x520] sm:$0xff] }
 0x1f9   : > { %3021 = vperm.xlu0 %10027, %v2143_v51   ;;  %3086 = vperm.xlu1 %10028, %v2156_v60   ;;  %v2141_v60 = vld [vmem:[%s16654_s6 + $0x538] sm:$0xff]  ;;  %v2154_v51 = vld [vmem:[%s16654_s6 + $0x5a0] sm:$0xff] }
 0x1fd   : > { %3091 = vperm.xlu0 %10027, %v2157_v35   ;;  %3006 = vperm.xlu1 %10028, %v2140_v27   ;;  %v2155_v35 = vld [vmem:[%s16654_s6 + $0x5a8] sm:$0xff]  ;;  %v12755_v27 = vpop.permute.xlu0 %2581 }
 0x1fe   : > { %9939 = vmatmul.mubr.msk.bf16.gmra.mxu1 %vm1186_vm3, %v10061_v17  ;;  %16832 = vst [vmem:[#allocation105_spill] sm:$0xff] %v12755_v27  ;;  %v12763_v17 = vpop.permute.xlu1 %2496 }
 0x1ff   : > { %9942 = vmatprep.mubr.msk.bf16.mxu1 %vm11368_vm0, %v16754_v37  ;;  %16833 = vst [vmem:[#allocation106_spill] sm:$0xff] %v12763_v17  ;;  %v2152_v17 = vld [vmem:[%s16654_s6 + $0x590] sm:$0xff] }
 0x201   : > { %3011 = vperm.xlu0 %10027, %v2141_v60   ;;  %3076 = vperm.xlu1 %10028, %v2154_v51   ;;  %v2139_v60 = vld [vmem:[%s16654_s6 + $0x528] sm:$0xff]  ;;  %v2172_v51 = vld [vmem:[%s16654_s6 + $0x630] sm:$0xff]  ;;  %v12772_v27 = vpop.permute.xlu0 %2501 }
 0x202   : > { %16834 = vst [vmem:[#allocation107_spill] sm:$0xff] %v12772_v27  ;;  %v12781_v43 = vpop.permute.xlu1 %2806 }
 0x203   : > { %16835 = vst [vmem:[#allocation108_spill] sm:$0xff] %v12781_v43 }
 0x205   : > { %3081 = vperm.xlu0 %10027, %v2155_v35   ;;  %2996 = vperm.xlu1 %10028, %v2138_v19   ;;  %v2173_v19 = vld [vmem:[%s16654_s6 + $0x638] sm:$0xff] }
 0x206   : > { %v1300_v37 = vpop.f32.mrf.mxu1  ;;  %9943 = vmatmul.mubr.msk.bf16.gmra.mxu1 %vm1186_vm3, %v10062_v6  ;;  %v12792_v43 = vpop.permute.xlu1 %2726 }
 0x207   : > { %v1301_v22 = vadd.f32 %v1300_v37, %v11840_v8  ;;  %v2153_v8 = vld [vmem:[%s16654_s6 + $0x598] sm:$0xff]  ;;  %v12787_v37 = vpop.permute.xlu0 %2811  ;;  %16837 = vst [vmem:[#allocation110_spill] sm:$0xff] %v12792_v43 }
 0x208   : > { %v9848_v35 = vpop.f32.mrf.mxu1  ;;  %16836 = vst [vmem:[#allocation109_spill] sm:$0xff] %v12787_v37  ;;  %v2135_v37 = vld [vmem:[%s16654_s6 + $0x508] sm:$0xff] }
 0x209   : > { %3001 = vperm.xlu0 %10027, %v2139_v60   ;;  %3166 = vperm.xlu1 %10028, %v2172_v51   ;;  %10816 = vtanh.f32 %v1301_v22  ;;  %v2136_v51 = vld [vmem:[%s16654_s6 + $0x510] sm:$0xff]  ;;  %v2137_v22 = vld [vmem:[%s16654_s6 + $0x518] sm:$0xff] }
 0x20a   : > { %v1303_v29 = vpop.f32.mrf.mxu1 }
 0x20b   : > { %v1304_v6 = vadd.f32 %v1303_v29, %v11848_v11 }
 0x20c   : > { %v9849_v60 = vpop.f32.mrf.mxu1 }
 0x20d   : > { %3171 = vperm.xlu0 %10027, %v2173_v19   ;;  %3066 = vperm.xlu1 %10028, %v2152_v17   ;;  %10818 = vtanh.f32 %v1304_v6  ;;  %v2170_v17 = vld [vmem:[%s16654_s6 + $0x620] sm:$0xff]  ;;  %v12801_v6 = vpop.permute.xlu0 %2731 }
 0x20e   : > { %v1308_v35 = vpop.f32.mrf.mxu1  ;;  %16838 = vst [vmem:[#allocation111_spill] sm:$0xff] %v12801_v6 }
 0x20f   : > { %v1309_v11 = vadd.f32 %v1308_v35, %v11830_v2  ;;  %v2171_v2 = vld [vmem:[%s16654_s6 + $0x628] sm:$0xff]  ;;  %v12810_v35 = vpop.permute.xlu1 %2796 }
 0x210   : > { %v9852_v29 = vpop.f32.mrf.mxu1  ;;  %16839 = vst [vmem:[#allocation112_spill] sm:$0xff] %v12810_v35 }
 0x211   : > { %3071 = vperm.xlu0 %10027, %v2153_v8   ;;  %2986 = vperm.xlu1 %10028, %v2136_v51   ;;  %10820 = vtanh.f32 %v1309_v11  ;;  %v2150_v51 = vld [vmem:[%s16654_s6 + $0x580] sm:$0xff]  ;;  %v2151_v11 = vld [vmem:[%s16654_s6 + $0x588] sm:$0xff] }
 0x212   : > { %v1311_v19 = vpop.f32.mrf.mxu1 }
 0x213   : > { %v1312_v60 = vadd.f32 %v1311_v19, %v11838_v5  ;;  %v2134_v19 = vld [vmem:[%s16654_s6 + $0x500] sm:$0xff] }
 0x214   : > { %v9853_v8 = vpop.f32.mrf.mxu1 }
 0x215   : > { %2991 = vperm.xlu0 %10027, %v2137_v22   ;;  %3156 = vperm.xlu1 %10028, %v2170_v17   ;;  %10822 = vtanh.f32 %v1312_v60  ;;  %v12819_v17 = vpop.permute.xlu0 %2801 }
 0x216   : > { %v12812_v29 = vpop.f32.mrf.mxu1  ;;  %v12817_v22 = vpop.eup %10816  ;;  %16840 = vst [vmem:[#allocation113_spill] sm:$0xff] %v12819_v17  ;;  %v2168_v17 = vld [vmem:[%s16654_s6 + $0x610] sm:$0xff] }
 0x218   : > { %v9856_v5 = vpop.f32.mrf.mxu1 }
 0x219   : > { %3161 = vperm.xlu0 %10027, %v2171_v2   ;;  %3056 = vperm.xlu1 %10028, %v2150_v51   ;;  %v12830_v51 = vpop.permute.xlu1 %2716  ;;  %v12840_v6 = vpop.permute.xlu0 %2721  ;;  %v2166_v2 = vld [vmem:[%s16654_s6 + $0x600] sm:$0xff] }
 0x21a   : > { %v12824_v60 = vpop.eup %10818  ;;  %v12826_v8 = vpop.f32.mrf.mxu1  ;;  %16841 = vst [vmem:[#allocation114_spill] sm:$0xff] %v12830_v51  ;;  %16842 = vst [vmem:[#allocation115_spill] sm:$0xff] %v12840_v6 }
 0x21c   : > { %v9857_v5 = vpop.f32.mrf.mxu1 }
 0x21d   : > { %3061 = vperm.xlu0 %10027, %v2151_v11   ;;  %2976 = vperm.xlu1 %10028, %v2134_v19   ;;  %v2169_v19 = vld [vmem:[%s16654_s6 + $0x618] sm:$0xff]  ;;  %v12852_v51 = vpop.permute.xlu1 %2966  ;;  %v12861_v6 = vpop.permute.xlu0 %2971 }
 0x21e   : > { %v12838_v35 = vpop.f32.mrf.mxu1  ;;  %v12845_v5 = vpop.eup %10820  ;;  %16843 = vst [vmem:[#allocation116_spill] sm:$0xff] %v12852_v51  ;;  %16844 = vst [vmem:[#allocation117_spill] sm:$0xff] %v12861_v6 }
 0x220   : > { %v9860_v11 = vpop.f32.mrf.mxu1 }
 0x221   : > { %2981 = vperm.xlu0 %10027, %v2135_v37   ;;  %3146 = vperm.xlu1 %10028, %v2168_v17   ;;  %v2167_v11 = vld [vmem:[%s16654_s6 + $0x608] sm:$0xff]  ;;  %v12868_v51 = vpop.permute.xlu1 %2886  ;;  %v12878_v6 = vpop.permute.xlu0 %2891 }
 0x222   : > { %v12850_v43 = vpop.eup %10822  ;;  %v12854_v27 = vpop.f32.mrf.mxu1  ;;  %16845 = vst [vmem:[#allocation118_spill] sm:$0xff] %v12868_v51  ;;  %16846 = vst [vmem:[#allocation119_spill] sm:$0xff] %v12878_v6  ;;  %v10065_v6 = vld [vmem:[%s16653_s5 + $0x4] ss:$16 sps:$4 sm:$0xff]  }
 0x223   : > { %5407 = vmatprep.mubr.bf16.mxu0 %v10065_v6  ;;  %v7434_v6 = vld [vmem:[%s16656_s8 + $0x10] sm:$0xff] }
 0x224   : > { %v9861_v17 = vpop.f32.mrf.mxu1 }
 0x225   : > { %3151 = vperm.xlu0 %10027, %v2169_v19   ;;  %3136 = vperm.xlu1 %10028, %v2166_v2   ;;  %v7442_v2 = vld [vmem:[%s16656_s8 + $0x50] sm:$0xff]  ;;  %v7443_v17 = vld [vmem:[%s16656_s8 + $0x58] sm:$0xff] }
 0x226   : > { %v12866_v34 = vpop.f32.mrf.mxu1 }
 0x228   : > { %v9864_v19 = vpop.f32.mrf.mxu1 }
 0x229   : > { %3141 = vperm.xlu0 %10027, %v2167_v11   ;;  %7507 = vperm.xlu1 %10028, %v7444_v36   ;;  %v7440_v36 = vld [vmem:[%s16656_s8 + $0x40] sm:$0xff]  ;;  %v7441_v11 = vld [vmem:[%s16656_s8 + $0x48] sm:$0xff]  ;;  %v12886_v19 = vpop.permute.xlu1 %2786 }
 0x22a   : > { %v12876_v37 = vpop.f32.mrf.mxu1  ;;  %16847 = vst [vmem:[#allocation120_spill] sm:$0xff] %v12886_v19 }
 0x22c   : > { %v9865_v18 = vpop.f32.mrf.mxu1 }
 0x22d   : > { %7497 = vperm.xlu0 %10027, %v7442_v2   ;;  %7502 = vperm.xlu1 %10028, %v7443_v17   ;;  %v7438_v2 = vld [vmem:[%s16656_s8 + $0x30] sm:$0xff]  ;;  %v12891_v17 = vpop.permute.xlu0 %2791  ;;  %v7439_v18 = vld [vmem:[%s16656_s8 + $0x38] sm:$0xff] }
 0x22e   : > { %v1340_v51 = vpop.f32.mrf.mxu1  ;;  %16848 = vst [vmem:[#allocation121_spill] sm:$0xff] %v12891_v17  ;;  %v7437_v17 = vld [vmem:[%s16656_s8 + $0x28] sm:$0xff] }
 0x230   : > { %v9868_v41 = vpop.f32.mrf.mxu1 }
 0x231   : > { %7487 = vperm.xlu0 %10027, %v7440_v36   ;;  %7492 = vperm.xlu1 %10028, %v7441_v11   ;;  %v12899_v36 = vpop.permute.xlu1 %2706  ;;  %v7436_v11 = vld [vmem:[%s16656_s8 + $0x20] sm:$0xff]  ;;  %v12907_v25 = vpop.permute.xlu0 %2711 }
 0x232   : > { %v1343_v33 = vpop.f32.mrf.mxu1  ;;  %16849 = vst [vmem:[#allocation122_spill] sm:$0xff] %v12899_v36  ;;  %16850 = vst [vmem:[#allocation123_spill] sm:$0xff] %v12907_v25 }
 0x234   : > { %v9869_v41 = vpop.f32.mrf.mxu1 }
 0x235   : > { %7477 = vperm.xlu0 %10027, %v7438_v2   ;;  %7482 = vperm.xlu1 %10028, %v7439_v18   ;;  %v7435_v2 = vld [vmem:[%s16656_s8 + $0x18] sm:$0xff]  ;;  %v12915_v18 = vpop.permute.xlu1 %2956 }
 0x236   : > { %v1348_v19 = vpop.f32.mrf.mxu1  ;;  %16851 = vst [vmem:[#allocation124_spill] sm:$0xff] %v12915_v18 }
 0x238   : > { %v9872_v28 = vpop.f32.mrf.mxu1 }
 0x239   : > { %7467 = vperm.xlu0 %10027, %v7436_v11   ;;  %7472 = vperm.xlu1 %10028, %v7437_v17   ;;  %v7432_v11 = vld [vmem:[%s16656_s8] sm:$0xff]  ;;  %v12920_v17 = vpop.permute.xlu0 %2961  ;;  %v7433_v28 = vld [vmem:[%s16656_s8 + $0x8] sm:$0xff]  ;;  %v12925_v59 = vpop.permute.xlu1 %2876 }
 0x23a   : > { %v1351_v41 = vpop.f32.mrf.mxu1  ;;  %16852 = vst [vmem:[#allocation125_spill] sm:$0xff] %v12920_v17  ;;  %16853 = vst [vmem:[#allocation126_spill] sm:$0xff] %v12925_v59  ;;  %v1349_v59 = vadd.f32 %v1348_v19, %v11780_v46 }
 0x23b   : > { %v1352_v17 = vadd.f32 %v1351_v41, %v11788_v49 }
 0x23c   : > { %v9873_v36 = vpop.f32.mrf.mxu1 }
 0x23d   : > { %7457 = vperm.xlu0 %10027, %v7434_v6   ;;  %7462 = vperm.xlu1 %10028, %v7435_v2   ;;  %v8604_v36 = vld [vmem:[%s16658_s10] sm:$0xff]  ;;  %v12931_v3 = vpop.permute.xlu0 %2881 }
 0x23e   : > { %v1356_v25 = vpop.f32.mrf.mxu1  ;;  %16854 = vst [vmem:[#allocation127_spill] sm:$0xff] %v12931_v3 }
 0x23f   : > { %v1357_v18 = vadd.f32 %v1356_v25, %v11770_v42  ;;  %v1341_v42 = vadd.f32 %v1340_v51, %v11790_v50  ;;  %v1333_v50 = vadd.f32 %v12866_v34, %v11800_v54  ;;  %v1320_v54 = vadd.f32 %v12826_v8, %v11828_v1 }
 0x240   : > { %v9876_v6 = vpop.f32.mrf.mxu1 }
 0x241   : > { %7447 = vperm.xlu0 %10027, %v7432_v11   ;;  %7452 = vperm.xlu1 %10028, %v7433_v28   ;;  %10824 = vtanh.f32 %v1357_v18  ;;  %v1344_v28 = vadd.f32 %v1343_v33, %v11798_v53  ;;  %v1325_v53 = vadd.f32 %v12838_v35, %v11810_v58 }
 0x242   : > { %v1359_v2 = vpop.f32.mrf.mxu1 }
 0x243   : > { %v1360_v7 = vadd.f32 %v1359_v2, %v11778_v45  ;;  %v1336_v45 = vadd.f32 %v12876_v37, %v11808_v57 }
 0x244   : > { %v9877_v11 = vpop.f32.mrf.mxu1 }
 0x245   : > { %8607 = vperm.xlu0 %10027, %v8604_v36   ;;  %10826 = vtanh.f32 %v1360_v7 }
 0x246   : > { %v1364_v25 = vpop.f32.mrf.mxu1  ;;  %10828 = vtanh.f32 %v1352_v17 }
 0x247   : > { %v1365_v6 = vadd.f32 %v1364_v25, %v12020_v24  ;;  %10830 = vtanh.f32 %v1349_v59  ;;  %v1328_v59 = vadd.f32 %v12854_v27, %v11818_v61  ;;  %v1317_v61 = vadd.f32 %v12812_v29, %v11820_v62 }
 0x248   : > { %v9880_v0 = vpop.f32.mrf.mxu1  ;;  %10832 = vtanh.f32 %v1341_v42 }
 0x249   : > { %10834 = vtanh.f32 %v1344_v28 }
 0x24a   : > { %v1367_v49 = vpop.f32.mrf.mxu1  ;;  %10836 = vtanh.f32 %v1365_v6 }
 0x24b   : > { %v1368_v18 = vadd.f32 %v1367_v49, %v12028_v12 }
 0x24c   : > { %v9881_v46 = vpop.f32.mrf.mxu1 }
 0x24d   : > { %10838 = vtanh.f32 %v1368_v18 }
 0x24e   : > { %v1372_v24 = vpop.f32.mrf.mxu1  ;;  %10840 = vtanh.f32 %v1336_v45  ;;  %v10825_v0 = vpop.eup %10824 }
 0x24f   : > { %v1373_v7 = vadd.f32 %v1372_v24, %v11998_v14  ;;  %10842 = vtanh.f32 %v1333_v50 }
 0x250   : > { %v9884_v57 = vpop.f32.mrf.mxu1  ;;  %10844 = vtanh.f32 %v1325_v53 }
 0x251   : > { %10846 = vtanh.f32 %v1328_v59 }
 0x252   : > { %v10827_v12 = vpop.eup %10826  ;;  %v1375_v33 = vpop.f32.mrf.mxu1  ;;  %10848 = vtanh.f32 %v1373_v7 }
 0x253   : > { %v1376_v34 = vadd.f32 %v1375_v33, %v12008_v4  ;;  %v1556_v58 = vpack.c.bf16 %v10827_v12, %v10825_v0  ;;  %v10829_v35 = vpop.eup %10828 }
 0x254   : > { %v9885_v51 = vpop.f32.mrf.mxu1  ;;  %v10831_v14 = vpop.eup %10830 }
 0x255   : > { %10850 = vtanh.f32 %v1376_v34  ;;  %5376 = vmatpush1.bf16.msra.mxu0 %v1556_v58  ;;  %v10833_v37 = vpop.eup %10832  ;;  %v1555_v1 = vpack.c.bf16 %v10829_v35, %v10831_v14  ;;  %v16855_v34 = vpack.c.bf16 %v12850_v43, %v12845_v5  ;;  %v16856_v51 = vpack.c.bf16 %v12824_v60, %v12817_v22 }
 0x256   : > { %v12954_v27 = vpop.f32.mrf.mxu1  ;;  %5377 = vmatprep.subr.bf16.mxu0 %v16763_v26  ;;  %10852 = vtanh.f32 %v1320_v54  ;;  %v10835_v8 = vpop.eup %10834 }
 0x257   : > { %v12957_v4 = vpop.eup %10836  ;;  %10854 = vtanh.f32 %v1317_v61  ;;  %v1554_v62 = vpack.c.bf16 %v10835_v8, %v10833_v37  ;;  %v10092_v37 = vld [vmem:[%s16653_s5 + $0xc] ss:$16 sps:$4 sm:$0xff]  }
 0x258   : > { %v9888_v19 = vpop.f32.mrf.mxu1  ;;  %9191 = vmatprep.mubr.msk.bf16.mxu1 %vm5074_vm4, %v10092_v37 }
 0x259   : > { %5378 = vmatpush1.bf16.msra.mxu0 %v1555_v1 }
 0x25a   : > { %v12959_v41 = vpop.eup %10838  ;;  %v12961_v17 = vpop.f32.mrf.mxu1  ;;  %5379 = vmatprep.subr.bf16.mxu0 %v16763_v26 }
 0x25b   : > { %v1557_v29 = vpack.c.bf16 %v12959_v41, %v12957_v4  ;;  %v10841_v36 = vpop.eup %10840 }
 0x25c   : > { %v9889_v2 = vpop.f32.mrf.mxu1  ;;  %v10843_v11 = vpop.eup %10842 }
 0x25d   : > { %5380 = vmatpush1.bf16.msra.mxu0 %v1554_v62  ;;  %v10845_v25 = vpop.eup %10844  ;;  %v1553_v28 = vpack.c.bf16 %v10841_v36, %v10843_v11 }
 0x25e   : > { %v12966_v42 = vpop.f32.mrf.mxu1  ;;  %5381 = vmatprep.subr.bf16.mxu0 %v16763_v26  ;;  %v10847_v6 = vpop.eup %10846 }
 0x25f   : > { %v12969_v45 = vpop.eup %10848  ;;  %v1552_v50 = vpack.c.bf16 %v10847_v6, %v10845_v25 }
 0x260   : > { %v9892_v49 = vpop.f32.mrf.mxu1 }
 0x261   : > { %5382 = vmatpush1.bf16.msra.mxu0 %v1553_v28 }
 0x262   : > { %v12971_v18 = vpop.eup %10850  ;;  %v1391_v46 = vpop.f32.mrf.mxu1  ;;  %5383 = vmatprep.subr.bf16.mxu0 %v16763_v26 }
 0x263   : > { %v1558_v53 = vpack.c.bf16 %v12971_v18, %v12969_v45  ;;  %v10853_v24 = vpop.eup %10852 }
 0x264   : > { %v9893_v59 = vpop.f32.mrf.mxu1  ;;  %v10855_v7 = vpop.eup %10854 }
 0x265   : > { %5384 = vmatpush1.bf16.msra.mxu0 %v1552_v50  ;;  %v1551_v0 = vpack.c.bf16 %v10853_v24, %v10855_v7  ;;  %v16857_v7 = vld [vmem:[#allocation13_spill] sm:$0xff] }
 0x266   : > { %v1396_v57 = vpop.f32.mrf.mxu1  ;;  %5385 = vmatprep.subr.bf16.mxu0 %v16763_v26 }
 0x267   : > { %v1397_v59 = vadd.f32 %v1396_v57, %v11921_v9  ;;  %v16860_v9 = vld [vmem:[#allocation19_spill] sm:$0xff] }
 0x268   : > { %v9896_v12 = vpop.f32.mrf.mxu1 }
 0x269   : > { %5386 = vmatpush1.bf16.msra.mxu0 %v1551_v0  ;;  %v16858_v0 = vld [vmem:[#allocation18_spill] sm:$0xff] }
 0x26a   : > { %v1399_v33 = vpop.f32.mrf.mxu1  ;;  %5387 = vmatprep.subr.bf16.mxu0 %v16763_v26 }
 0x26c   : > { %v9897_v54 = vpop.f32.mrf.mxu1 }
 0x26d   : > { %5388 = vmatpush1.bf16.msra.mxu0 %v16855_v34 }
 0x26e   : > { %v1404_v58 = vpop.f32.mrf.mxu1  ;;  %5389 = vmatprep.subr.bf16.mxu0 %v16763_v26 }
 0x26f   : > { %v1405_v28 = vadd.f32 %v1404_v58, %v11900_v48  ;;  %v1389_v48 = vadd.f32 %v12966_v42, %v11944_v44 }
 0x270   : > { %v9900_v35 = vpop.f32.mrf.mxu1 }
 0x271   : > { %5390 = vmatpush1.bf16.msra.mxu0 %v16856_v51 }
 0x272   : > { %v1407_v61 = vpop.f32.mrf.mxu1  ;;  %5391 = vmatprep.subr.bf16.mxu0 %v16763_v26 }
 0x273   : > { %v1408_v49 = vadd.f32 %v1407_v61, %v11908_v55 }
 0x274   : > { %v9901_v14 = vpop.f32.mrf.mxu1 }
 0x276   : > { %v1412_v1 = vpop.f32.mrf.mxu1 }
 0x277   : > { %v1413_v25 = vadd.f32 %v1412_v1, %v11880_v32 }
 0x278   : > { %v9904_v43 = vpop.f32.mrf.mxu1 }
 0x27a   : > { %v1415_v5 = vpop.f32.mrf.mxu1 }
 0x27b   : > { %v1416_v36 = vadd.f32 %v1415_v5, %v11888_v39  ;;  %v1400_v39 = vadd.f32 %v1399_v33, %v11930_v20  ;;  %v16859_v33 = vld [vmem:[#allocation17_spill] sm:$0xff] }
 0x27c   : > { %v9905_v8 = vpop.f32.mrf.mxu1  ;;  %v1384_v58 = vadd.f32 %v12961_v17, %v16859_v33 }
 0x27e   : > { %v1420_v19 = vpop.f32.mrf.mxu1 }
 0x27f   : > { %v1421_v62 = vadd.f32 %v1420_v19, %v11860_v16 }
 0x280   : > { %v9908_v22 = vpop.f32.mrf.mxu1 }
 0x281   : > { %10856 = vtanh.f32 %v1421_v62 }
 0x282   : > { %v1423_v60 = vpop.f32.mrf.mxu1 }
 0x283   : > { %v1424_v2 = vadd.f32 %v1423_v60, %v11868_v23 }
 0x284   : > { %v9909_v11 = vpop.f32.mrf.mxu1 }
 0x285   : > { %10858 = vtanh.f32 %v1424_v2 }
 0x286   : > { %v1428_v6 = vpop.f32.mrf.mxu1  ;;  %10860 = vtanh.f32 %v1416_v36 }
 0x287   : > { %v1429_v50 = vadd.f32 %v1428_v6, %v12010_v38  ;;  %10862 = vtanh.f32 %v1413_v25  ;;  %v1392_v38 = vadd.f32 %v1391_v46, %v16857_v7  ;;  %v16861_v46 = vld [vmem:[#allocation16_spill] sm:$0xff] }
 0x288   : > { %v9912_v16 = vpop.f32.mrf.mxu1  ;;  %10864 = vtanh.f32 %v1405_v28  ;;  %v1381_v51 = vadd.f32 %v12954_v27, %v16861_v46 }
 0x289   : > { %10866 = vtanh.f32 %v1408_v49 }
 0x28a   : > { %v1431_v24 = vpop.f32.mrf.mxu1  ;;  %10868 = vtanh.f32 %v1429_v50 }
 0x28b   : > { %v1432_v23 = vadd.f32 %v1431_v24, %v12018_v47 }
 0x28c   : > { %v9913_v32 = vpop.f32.mrf.mxu1 }
 0x28d   : > { %10870 = vtanh.f32 %v1432_v23 }
 0x28e   : > { %v1436_v55 = vpop.f32.mrf.mxu1  ;;  %10872 = vtanh.f32 %v1400_v39  ;;  %v10857_v34 = vpop.eup %10856 }
 0x28f   : > { %v1437_v12 = vadd.f32 %v1436_v55, %v16858_v0  ;;  %10874 = vtanh.f32 %v1397_v59 }
 0x290   : > { %v9916_v54 = vpop.f32.mrf.mxu1  ;;  %10876 = vtanh.f32 %v1389_v48 }
 0x291   : > { %10878 = vtanh.f32 %v1392_v38 }
 0x292   : > { %v10859_v20 = vpop.eup %10858  ;;  %v1439_v47 = vpop.f32.mrf.mxu1  ;;  %10880 = vtanh.f32 %v1437_v12 }
 0x293   : > { %v1440_v57 = vadd.f32 %v1439_v47, %v16860_v9  ;;  %v1564_v35 = vpack.c.bf16 %v10859_v20, %v10857_v34  ;;  %v10861_v44 = vpop.eup %10860  ;;  %v10063_v34 = vld [vmem:[%s16653_s5] ss:$16 sps:$4 sm:$0xff]   ;;  %v10066_v20 = vld [vmem:[%s16653_s5 + $0x24] ss:$16 sps:$4 sm:$0xff]  }
 0x294   : > { %v9917_v42 = vpop.f32.mrf.mxu1  ;;  %v10863_v61 = vpop.eup %10862  ;;  %v16862_v9 = vld [vmem:[#allocation3_spill] sm:$0xff] }
 0x295   : > { %10882 = vtanh.f32 %v1440_v57  ;;  %5392 = vmatpush2.bf16.msra.mxu0 %v1564_v35  ;;  %v10865_v37 = vpop.eup %10864  ;;  %v1563_v17 = vpack.c.bf16 %v10861_v44, %v10863_v61  ;;  %v10071_v44 = vld [vmem:[%s16653_s5 + $0x40] ss:$16 sps:$4 sm:$0xff]   ;;  %v10072_v42 = vld [vmem:[%s16653_s5 + $0x64] ss:$16 sps:$4 sm:$0xff]  }
 0x296   : > { %v13009_v14 = vpop.f32.mrf.mxu1  ;;  %5393 = vmatprep.subr.bf16.mxu0 %v16763_v26  ;;  %10884 = vtanh.f32 %v1384_v58  ;;  %v10867_v1 = vpop.eup %10866  ;;  %v10069_v58 = vld [vmem:[%s16653_s5 + $0x44] ss:$16 sps:$4 sm:$0xff]  }
 0x297   : > { %v13012_v5 = vpop.eup %10868  ;;  %10886 = vtanh.f32 %v1381_v51  ;;  %v1562_v27 = vpack.c.bf16 %v10867_v1, %v10865_v37  ;;  %v16863_v51 = vld [vmem:[#allocation6_spill] sm:$0xff]  ;;  %v16864_v37 = vld [vmem:[#allocation4_spill] sm:$0xff] }
 0x298   : > { %v9920_v43 = vpop.f32.mrf.mxu1 }
 0x299   : > { %5394 = vmatpush2.bf16.msra.mxu0 %v1563_v17  ;;  %v16865_v43 = vld [vmem:[#allocation5_spill] sm:$0xff] }
 0x29a   : > { %v13014_v8 = vpop.eup %10870  ;;  %v13016_v19 = vpop.f32.mrf.mxu1  ;;  %5395 = vmatprep.subr.bf16.mxu0 %v16763_v26 }
 0x29b   : > { %v1565_v62 = vpack.c.bf16 %v13014_v8, %v13012_v5  ;;  %v10873_v22 = vpop.eup %10872  ;;  %v10096_v5 = vld [vmem:[%s16653_s5 + $0x2c] ss:$16 sps:$4 sm:$0xff]   ;;  %v10095_v8 = vld [vmem:[%s16653_s5 + $0x120] ss:$16 sps:$4 sm:$0xff]  }
 0x29c   : > { %v9921_v60 = vpop.f32.mrf.mxu1  ;;  %v10875_v36 = vpop.eup %10874 }
 0x29d   : > { %5396 = vmatpush2.bf16.msra.mxu0 %v1562_v27  ;;  %v10877_v11 = vpop.eup %10876  ;;  %v1561_v25 = vpack.c.bf16 %v10873_v22, %v10875_v36  ;;  %v16866_v60 = vld [vmem:[#allocation8_spill] sm:$0xff] }
 0x29e   : > { %v13021_v2 = vpop.f32.mrf.mxu1  ;;  %5397 = vmatprep.subr.bf16.mxu0 %v16763_v26  ;;  %v10879_v28 = vpop.eup %10878 }
 0x29f   : > { %v13024_v49 = vpop.eup %10880  ;;  %v1560_v24 = vpack.c.bf16 %v10879_v28, %v10877_v11  ;;  %v16867_v28 = vld [vmem:[#allocation7_spill] sm:$0xff] }
 0x2a0   : > { %v9924_v6 = vpop.f32.mrf.mxu1 }
 0x2a1   : > { %5398 = vmatpush2.bf16.msra.mxu0 %v1561_v25  ;;  %v10074_v25 = vld [vmem:[%s16653_s5 + $0x60] ss:$16 sps:$4 sm:$0xff]  }
 0x2a2   : > { %v13026_v50 = vpop.eup %10882  ;;  %v13028_v16 = vpop.f32.mrf.mxu1  ;;  %5399 = vmatprep.subr.bf16.mxu0 %v16763_v26 }
 0x2a3   : > { %v1566_v39 = vpack.c.bf16 %v13026_v50, %v13024_v49  ;;  %v10885_v23 = vpop.eup %10884  ;;  %v10090_v50 = vld [vmem:[%s16653_s5 + $0x8] ss:$16 sps:$4 sm:$0xff]  }
 0x2a4   : > { %v9925_v32 = vpop.f32.mrf.mxu1  ;;  %v10887_v59 = vpop.eup %10886 }
 0x2a5   : > { %5400 = vmatpush2.bf16.msra.mxu0 %v1560_v24  ;;  %v1559_v55 = vpack.c.bf16 %v10885_v23, %v10887_v59  ;;  %v10075_v24 = vld [vmem:[%s16653_s5 + $0x84] ss:$16 sps:$4 sm:$0xff]   ;;  %v16868_v32 = vld [vmem:[#allocation10_spill] sm:$0xff] }
 0x2a6   : > { %v1460_v48 = vpop.f32.mrf.mxu1  ;;  %5401 = vmatprep.subr.bf16.mxu0 %v16763_v26 }
 0x2a8   : > { %v9928_v7 = vpop.f32.mrf.mxu1 }
 0x2a9   : > { %5402 = vmatpush2.bf16.msra.mxu0 %v1559_v55  ;;  %v16869_v7 = vld [vmem:[#allocation9_spill] sm:$0xff] }
 0x2aa   : > { %v1463_v38 = vpop.f32.mrf.mxu1  ;;  %5403 = vmatprep.subr.bf16.mxu0 %v16763_v26 }
 0x2ab   : > { %v1464_v59 = vadd.f32 %v1463_v38, %v16868_v32  ;;  %v10078_v38 = vld [vmem:[%s16653_s5 + $0xa4] ss:$16 sps:$4 sm:$0xff]  }
 0x2ac   : > { %v9929_v0 = vpop.f32.mrf.mxu1 }
 0x2ad   : > { %5404 = vmatpush2.bf16.msra.mxu0 %v1558_v53  ;;  %v10068_v53 = vld [vmem:[%s16653_s5 + $0x20] ss:$16 sps:$4 sm:$0xff]   ;;  %v1461_v0 = vadd.f32 %v1460_v48, %v16869_v7  ;;  %v10104_v7 = vld [vmem:[%s16653_s5 + $0x48] ss:$16 sps:$4 sm:$0xff]  }
 0x2ae   : > { %v1468_v12 = vpop.f32.mrf.mxu1  ;;  %5405 = vmatprep.subr.bf16.mxu0 %v16763_v26 }
 0x2af   : > { %v1469_v6 = vadd.f32 %v1468_v12, %v16867_v28  ;;  %v10077_v12 = vld [vmem:[%s16653_s5 + $0x80] ss:$16 sps:$4 sm:$0xff]   ;;  %v10087_v28 = vld [vmem:[%s16653_s5 + $0x104] ss:$16 sps:$4 sm:$0xff]  }
 0x2b0   : > { %v9932_v54 = vpop.f32.mrf.mxu1 }
 0x2b1   : > { %5406 = vmatpush2.bf16.msra.mxu0 %v1557_v29  ;;  %v16870_v54 = vld [vmem:[#allocation12_spill] sm:$0xff] }
 0x2b2   : > { %v1471_v47 = vpop.f32.mrf.mxu1 }
 0x2b3   : > { %v1472_v36 = vadd.f32 %v1471_v47, %v16866_v60  ;;  %v16871_v47 = vld [vmem:[#allocation11_spill] sm:$0xff] }
 0x2b4   : > { %v9933_v33 = vpop.f32.mrf.mxu1  ;;  %5408 = vmatmul.mubr.bf16.vlgmr.msra.gmra.mxu0 %v10063_v34  ;;  %v1456_v34 = vadd.f32 %v13028_v16, %v16870_v54  ;;  %v10107_v54 = vld [vmem:[%s16653_s5 + $0x160] ss:$16 sps:$4 sm:$0xff]  }
 0x2b5   : > { %5415 = vmatprep.mubr.bf16.mxu0 %v10066_v20  ;;  %v1453_v33 = vadd.f32 %v13021_v2, %v16871_v47  ;;  %v10113_v47 = vld [vmem:[%s16653_s5 + $0x180] ss:$16 sps:$4 sm:$0xff]  }
 0x2b6   : > { %v1476_v45 = vpop.f32.mrf.mxu1 }
 0x2b7   : > { %v1477_v27 = vadd.f32 %v1476_v45, %v16865_v43  ;;  %v16872_v45 = vld [vmem:[#allocation15_spill] sm:$0xff] }
 0x2b8   : > { %v9936_v18 = vpop.f32.mrf.mxu1  ;;  %v10084_v43 = vld [vmem:[%s16653_s5 + $0xe4] ss:$16 sps:$4 sm:$0xff]  }
 0x2b9   : > { %v1448_v18 = vadd.f32 %v13016_v19, %v16872_v45  ;;  %v10080_v19 = vld [vmem:[%s16653_s5 + $0xa0] ss:$16 sps:$4 sm:$0xff]  }
 0x2ba   : > { %v1479_v4 = vpop.f32.mrf.mxu1  ;;  %v10119_v45 = vld [vmem:[%s16653_s5 + $0x1a0] ss:$16 sps:$4 sm:$0xff]  }
 0x2bb   : > { %v1480_v61 = vadd.f32 %v1479_v4, %v16863_v51 }
 0x2bc   : > { %v9937_v41 = vpop.f32.mrf.mxu1  ;;  %5416 = vmatmul.mubr.bf16.gmra.mxu0 %v10068_v53 }
 0x2bd   : > { %5423 = vmatprep.mubr.bf16.mxu0 %v10069_v58  ;;  %v16873_v58 = vld [vmem:[#allocation14_spill] sm:$0xff] }
 0x2be   : > { %v1484_v29 = vpop.f32.mrf.mxu1  ;;  %v1445_v4 = vadd.f32 %v13009_v14, %v16873_v58  ;;  %v10125_v58 = vld [vmem:[%s16653_s5 + $0x1c0] ss:$16 sps:$4 sm:$0xff]  }
 0x2bf   : > { %v1485_v57 = vadd.f32 %v1484_v29, %v16862_v9  ;;  %v10081_v9 = vld [vmem:[%s16653_s5 + $0xc4] ss:$16 sps:$4 sm:$0xff]  }
 0x2c0   : > { %v9940_v35 = vpop.f32.mrf.mxu1 }
 0x2c1   : > { %10888 = vtanh.f32 %v1485_v57 }
 0x2c2   : > { %v1487_v46 = vpop.f32.mrf.mxu1 }
 0x2c3   : > { %v1488_v17 = vadd.f32 %v1487_v46, %v16864_v37  ;;  %v10083_v37 = vld [vmem:[%s16653_s5 + $0xc0] ss:$16 sps:$4 sm:$0xff]  }
 0x2c4   : > { %v9941_v1 = vpop.f32.mrf.mxu1  ;;  %5424 = vmatmul.mubr.bf16.gmra.mxu0 %v10071_v44 }
 0x2c5   : > { %10890 = vtanh.f32 %v1488_v17  ;;  %5431 = vmatprep.mubr.bf16.mxu0 %v10072_v42  ;;  %v16874_v42 = vld [vmem:[#allocation21_spill] sm:$0xff]  ;;  %v16875_v17 = vld [vmem:[#allocation20_spill] sm:$0xff] }
 0x2c6   : > { %v1492_v22 = vpop.f32.mrf.mxu1  ;;  %10892 = vtanh.f32 %v1480_v61 }
 0x2c7   : > { %10894 = vtanh.f32 %v1477_v27  ;;  %v1493_v1 = vadd.f32 %v1492_v22, %v16875_v17  ;;  %v10086_v22 = vld [vmem:[%s16653_s5 + $0xe0] ss:$16 sps:$4 sm:$0xff]  }
 0x2c8   : > { %v9944_v11 = vpop.f32.mrf.mxu1  ;;  %10896 = vtanh.f32 %v1472_v36  ;;  %v10149_v17 = vld [vmem:[%s16653_s5 + $0x240] ss:$16 sps:$4 sm:$0xff]  }
 0x2c9   : > { %10898 = vtanh.f32 %v1469_v6 }
 0x2ca   : > { %v1495_v23 = vpop.f32.mrf.mxu1  ;;  %10900 = vtanh.f32 %v1464_v59  ;;  %v10101_v59 = vld [vmem:[%s16653_s5 + $0x140] ss:$16 sps:$4 sm:$0xff]  }
 0x2cb   : > { %10902 = vtanh.f32 %v1461_v0  ;;  %v1496_v46 = vadd.f32 %v1495_v23, %v16874_v42  ;;  %v10093_v23 = vld [vmem:[%s16653_s5 + $0x124] ss:$16 sps:$4 sm:$0xff]   ;;  %v10108_v0 = vld [vmem:[%s16653_s5 + $0x6c] ss:$16 sps:$4 sm:$0xff]  }
 0x2cc   : > { %5432 = vmatmul.mubr.bf16.gmra.mxu0 %v10074_v25  ;;  %v9945_v55 = vpop.f32.mrf.mxu1  ;;  %10904 = vtanh.f32 %v1456_v34  ;;  %v10111_v34 = vld [vmem:[%s16653_s5 + $0x184] ss:$16 sps:$4 sm:$0xff]   ;;  %v10144_v42 = vld [vmem:[%s16653_s5 + $0x12c] ss:$16 sps:$4 sm:$0xff]  }
 0x2cd   : > { %5439 = vmatprep.mubr.bf16.mxu0 %v10075_v24  ;;  %10906 = vtanh.f32 %v1453_v33  ;;  %v10089_v24 = vld [vmem:[%s16653_s5 + $0x100] ss:$16 sps:$4 sm:$0xff]   ;;  %v10105_v55 = vld [vmem:[%s16653_s5 + $0x164] ss:$16 sps:$4 sm:$0xff]  }
 0x2ce   : > { %v10889_v20 = vpop.eup %10888  ;;  %10908 = vtanh.f32 %v1448_v18  ;;  %v10117_v33 = vld [vmem:[%s16653_s5 + $0x1a4] ss:$16 sps:$4 sm:$0xff]  }
 0x2cf   : > { %10910 = vtanh.f32 %v1445_v4  ;;  %v10123_v18 = vld [vmem:[%s16653_s5 + $0x1c4] ss:$16 sps:$4 sm:$0xff]  }
 0x2d0   : > { %10912 = vtanh.f32 %v1496_v46  ;;  %v10129_v4 = vld [vmem:[%s16653_s5 + $0x1e4] ss:$16 sps:$4 sm:$0xff]   ;;  %v10143_v46 = vld [vmem:[%s16653_s5 + $0x220] ss:$16 sps:$4 sm:$0xff]  }
 0x2d1   : > { %10914 = vtanh.f32 %v1493_v1  ;;  %v10153_v1 = vld [vmem:[%s16653_s5 + $0x264] ss:$16 sps:$4 sm:$0xff]  }
 0x2d2   : > { %v10891_v48 = vpop.eup %10890 }
 0x2d3   : > { %v1572_v16 = vpack.c.bf16 %v10891_v48, %v10889_v20  ;;  %v10893_v53 = vpop.eup %10892  ;;  %v10114_v20 = vld [vmem:[%s16653_s5 + $0x8c] ss:$16 sps:$4 sm:$0xff]  }
 0x2d4   : > { %5440 = vmatmul.mubr.bf16.gmra.mxu0 %v10077_v12  ;;  %v10895_v2 = vpop.eup %10894  ;;  %v10110_v12 = vld [vmem:[%s16653_s5 + $0x68] ss:$16 sps:$4 sm:$0xff]   ;;  %v10120_v48 = vld [vmem:[%s16653_s5 + $0xac] ss:$16 sps:$4 sm:$0xff]  }
 0x2d5   : > { %6209 = vmatpush1.bf16.msra.mxu1 %v1572_v16  ;;  %5447 = vmatprep.mubr.bf16.mxu0 %v10078_v38  ;;  %v1571_v41 = vpack.c.bf16 %v10893_v53, %v10895_v2  ;;  %v10897_v29 = vpop.eup %10896  ;;  %v10116_v38 = vld [vmem:[%s16653_s5 + $0x88] ss:$16 sps:$4 sm:$0xff]   ;;  %v10126_v53 = vld [vmem:[%s16653_s5 + $0xcc] ss:$16 sps:$4 sm:$0xff]  }
 0x2d6   : > { %6210 = vmatprep.subr.bf16.mxu1 %v16763_v26  ;;  %v10899_v14 = vpop.eup %10898  ;;  %v10122_v16 = vld [vmem:[%s16653_s5 + $0xa8] ss:$16 sps:$4 sm:$0xff]  }
 0x2d7   : > { %v1570_v57 = vpack.c.bf16 %v10897_v29, %v10899_v14  ;;  %v10901_v35 = vpop.eup %10900  ;;  %v10128_v2 = vld [vmem:[%s16653_s5 + $0xc8] ss:$16 sps:$4 sm:$0xff]   ;;  %v10131_v29 = vld [vmem:[%s16653_s5 + $0x1e0] ss:$16 sps:$4 sm:$0xff]   ;;  %v10138_v14 = vld [vmem:[%s16653_s5 + $0x10c] ss:$16 sps:$4 sm:$0xff]  }
 0x2d8   : > { %v10903_v44 = vpop.eup %10902 }
 0x2d9   : > { %6211 = vmatpush1.bf16.msra.mxu1 %v1571_v41  ;;  %v1569_v51 = vpack.c.bf16 %v10901_v35, %v10903_v44  ;;  %v10905_v61 = vpop.eup %10904  ;;  %v10132_v41 = vld [vmem:[%s16653_s5 + $0xec] ss:$16 sps:$4 sm:$0xff]   ;;  %v10141_v35 = vld [vmem:[%s16653_s5 + $0x224] ss:$16 sps:$4 sm:$0xff]   ;;  %v10140_v44 = vld [vmem:[%s16653_s5 + $0x108] ss:$16 sps:$4 sm:$0xff]  }
 0x2da   : > { %6212 = vmatprep.subr.bf16.mxu1 %v16763_v26  ;;  %v10907_v27 = vpop.eup %10906 }
 0x2db   : > { %v1568_v60 = vpack.c.bf16 %v10905_v61, %v10907_v27  ;;  %v10909_v36 = vpop.eup %10908  ;;  %v10146_v61 = vld [vmem:[%s16653_s5 + $0x128] ss:$16 sps:$4 sm:$0xff]   ;;  %v10156_v27 = vld [vmem:[%s16653_s5 + $0x16c] ss:$16 sps:$4 sm:$0xff]  }
 0x2dc   : > { %5448 = vmatmul.mubr.bf16.gmra.mxu0 %v10080_v19  ;;  %v10911_v11 = vpop.eup %10910  ;;  %v10135_v19 = vld [vmem:[%s16653_s5 + $0x204] ss:$16 sps:$4 sm:$0xff]  }
 0x2dd   : > { %6213 = vmatpush1.bf16.msra.mxu1 %v1570_v57  ;;  %5455 = vmatprep.mubr.bf16.mxu0 %v10081_v9  ;;  %v1567_v25 = vpack.c.bf16 %v10909_v36, %v10911_v11  ;;  %v10913_v6 = vpop.eup %10912  ;;  %v10134_v9 = vld [vmem:[%s16653_s5 + $0xe8] ss:$16 sps:$4 sm:$0xff]   ;;  %v10137_v57 = vld [vmem:[%s16653_s5 + $0x200] ss:$16 sps:$4 sm:$0xff]   ;;  %v10159_v36 = vld [vmem:[%s16653_s5 + $0x284] ss:$16 sps:$4 sm:$0xff]  }
 0x2de   : > { %6214 = vmatprep.subr.bf16.mxu1 %v16763_v26  ;;  %v10915_v32 = vpop.eup %10914  ;;  %v10158_v11 = vld [vmem:[%s16653_s5 + $0x168] ss:$16 sps:$4 sm:$0xff]  }
 0x2df   : > { %v1573_v49 = vpack.c.bf16 %v10913_v6, %v10915_v32  ;;  %v10164_v6 = vld [vmem:[%s16653_s5 + $0x188] ss:$16 sps:$4 sm:$0xff]   ;;  %v10173_v32 = vld [vmem:[%s16653_s5 + $0x2c4] ss:$16 sps:$4 sm:$0xff]  }
 0x2e1   : > { %6215 = vmatpush1.bf16.msra.mxu1 %v1569_v51  ;;  %v10147_v51 = vld [vmem:[%s16653_s5 + $0x244] ss:$16 sps:$4 sm:$0xff]  }
 0x2e2   : > { %6216 = vmatprep.subr.bf16.mxu1 %v16763_v26 }
 0x2e4   : > { %5456 = vmatmul.mubr.bf16.gmra.mxu0 %v10083_v37  ;;  %v10150_v37 = vld [vmem:[%s16653_s5 + $0x14c] ss:$16 sps:$4 sm:$0xff]  }
 0x2e5   : > { %6217 = vmatpush1.bf16.msra.mxu1 %v1568_v60  ;;  %5463 = vmatprep.mubr.bf16.mxu0 %v10084_v43  ;;  %v10152_v43 = vld [vmem:[%s16653_s5 + $0x148] ss:$16 sps:$4 sm:$0xff]   ;;  %v10155_v60 = vld [vmem:[%s16653_s5 + $0x260] ss:$16 sps:$4 sm:$0xff]  }
 0x2e6   : > { %6218 = vmatprep.subr.bf16.mxu1 %v16763_v26 }
 0x2e9   : > { %6219 = vmatpush1.bf16.msra.mxu1 %v1567_v25  ;;  %v10162_v25 = vld [vmem:[%s16653_s5 + $0x18c] ss:$16 sps:$4 sm:$0xff]  }
 0x2ea   : > { %6220 = vmatprep.subr.bf16.mxu1 %v16763_v26 }
 0x2ec   : > { %5464 = vmatmul.mubr.bf16.gmra.mxu0 %v10086_v22  ;;  %v10161_v22 = vld [vmem:[%s16653_s5 + $0x280] ss:$16 sps:$4 sm:$0xff]  }
 0x2ed   : > { %6221 = vmatpush1.bf16.msra.mxu1 %v1566_v39  ;;  %5471 = vmatprep.mubr.bf16.mxu0 %v10087_v28  ;;  %v10102_v39 = vld [vmem:[%s16653_s5 + $0x4c] ss:$16 sps:$4 sm:$0xff]   ;;  %v10167_v28 = vld [vmem:[%s16653_s5 + $0x2a4] ss:$16 sps:$4 sm:$0xff]  }
 0x2ee   : > { %6222 = vmatprep.subr.bf16.mxu1 %v16763_v26 }
 0x2f1   : > { %6223 = vmatpush1.bf16.msra.mxu1 %v1565_v62  ;;  %v10098_v62 = vld [vmem:[%s16653_s5 + $0x28] ss:$16 sps:$4 sm:$0xff]  }
 0x2f2   : > { %6238 = vmatprep.subr.bf16.mxu1 %v16763_v26  ;;  %v10099_v26 = vld [vmem:[%s16653_s5 + $0x144] ss:$16 sps:$4 sm:$0xff]  }
 0x2f4   : > { %5472 = vmatmul.mubr.bf16.gmra.mxu0 %v10089_v24  ;;  %v10168_v24 = vld [vmem:[%s16653_s5 + $0x1ac] ss:$16 sps:$4 sm:$0xff]  }
 0x2f5   : > { %6239 = vmatpush2.bf16.msra.mxu1 %v1573_v49  ;;  %5479 = vmatprep.mubr.bf16.mxu0 %v10093_v23  ;;  %v10165_v23 = vld [vmem:[%s16653_s5 + $0x2a0] ss:$16 sps:$4 sm:$0xff]   ;;  %v10170_v49 = vld [vmem:[%s16653_s5 + $0x1a8] ss:$16 sps:$4 sm:$0xff]  }
 0x2f8   : > { %6241 = vmatmul.mubr.bf16.vlgmr.msra.gmra.mxu1 %v10090_v50  ;;  %v10174_v50 = vld [vmem:[%s16653_s5 + $0x1cc] ss:$16 sps:$4 sm:$0xff]  }
 0x2f9   : > { %9192 = vmatprep.mubr.msk.bf16.mxu1 %vm5074_vm4, %v10096_v5  ;;  %v10171_v5 = vld [vmem:[%s16653_s5 + $0x2c0] ss:$16 sps:$4 sm:$0xff]  }
 0x2fc   : > { %5480 = vmatmul.mubr.bf16.gmra.mxu0 %v10095_v8  ;;  %v10179_v8 = vld [vmem:[%s16653_s5 + $0x2e4] ss:$16 sps:$4 sm:$0xff]  }
 0x2fd   : > { %5487 = vmatprep.mubr.bf16.mxu0 %v10099_v26  ;;  %v10176_v26 = vld [vmem:[%s16653_s5 + $0x1c8] ss:$16 sps:$4 sm:$0xff]  }
 0x300   : > { %6249 = vmatmul.mubr.bf16.gmra.mxu1 %v10098_v62  ;;  %v10180_v62 = vld [vmem:[%s16653_s5 + $0x1ec] ss:$16 sps:$4 sm:$0xff]  }
 0x301   : > { %9193 = vmatprep.mubr.msk.bf16.mxu1 %vm5074_vm4, %v10102_v39  ;;  %v10177_v39 = vld [vmem:[%s16653_s5 + $0x2e0] ss:$16 sps:$4 sm:$0xff]  }
 0x304   : > { %5488 = vmatmul.mubr.bf16.gmra.mxu0 %v10101_v59  ;;  %v10185_v59 = vld [vmem:[%s16653_s5 + $0x304] ss:$16 sps:$4 sm:$0xff]  }
 0x305   : > { %5495 = vmatprep.mubr.bf16.mxu0 %v10105_v55  ;;  %v10182_v55 = vld [vmem:[%s16653_s5 + $0x1e8] ss:$16 sps:$4 sm:$0xff]  }
 0x308   : > { %6257 = vmatmul.mubr.bf16.gmra.mxu1 %v10104_v7  ;;  %v10186_v7 = vld [vmem:[%s16653_s5 + $0x20c] ss:$16 sps:$4 sm:$0xff]  }
 0x309   : > { %9194 = vmatprep.mubr.msk.bf16.mxu1 %vm5074_vm4, %v10108_v0  ;;  %v10183_v0 = vld [vmem:[%s16653_s5 + $0x300] ss:$16 sps:$4 sm:$0xff]  }
 0x30c   : > { %5496 = vmatmul.mubr.bf16.gmra.mxu0 %v10107_v54  ;;  %v10191_v54 = vld [vmem:[%s16653_s5 + $0x324] ss:$16 sps:$4 sm:$0xff]  }
 0x30d   : > { %5503 = vmatprep.mubr.bf16.mxu0 %v10111_v34 }
 0x310   : > { %6265 = vmatmul.mubr.bf16.gmra.mxu1 %v10110_v12  ;;  %v10188_v12 = vld [vmem:[%s16653_s5 + $0x208] ss:$16 sps:$4 sm:$0xff]  }
 0x311   : > { %9195 = vmatprep.mubr.msk.bf16.mxu1 %vm5074_vm4, %v10114_v20  ;;  %v10192_v20 = vld [vmem:[%s16653_s5 + $0x22c] ss:$16 sps:$4 sm:$0xff]  }
 0x314   : > { %5504 = vmatmul.mubr.bf16.gmra.mxu0 %v10113_v47 }
 0x315   : > { %5511 = vmatprep.mubr.bf16.mxu0 %v10117_v33 }
 0x318   : > { %6273 = vmatmul.mubr.bf16.gmra.mxu1 %v10116_v38  ;;  %v10189_v38 = vld [vmem:[%s16653_s5 + $0x320] ss:$16 sps:$4 sm:$0xff]  }
 0x319   : > { %9196 = vmatprep.mubr.msk.bf16.mxu1 %vm5074_vm4, %v10120_v48  ;;  %v10197_v48 = vld [vmem:[%s16653_s5 + $0x344] ss:$16 sps:$4 sm:$0xff]  }
 0x31c   : > { %5512 = vmatmul.mubr.bf16.gmra.mxu0 %v10119_v45 }
 0x31d   : > { %5519 = vmatprep.mubr.bf16.mxu0 %v10123_v18 }
 0x320   : > { %6281 = vmatmul.mubr.bf16.gmra.mxu1 %v10122_v16  ;;  %v10194_v16 = vld [vmem:[%s16653_s5 + $0x228] ss:$16 sps:$4 sm:$0xff]  }
 0x321   : > { %9197 = vmatprep.mubr.msk.bf16.mxu1 %vm5074_vm4, %v10126_v53  ;;  %v10198_v53 = vld [vmem:[%s16653_s5 + $0x24c] ss:$16 sps:$4 sm:$0xff]  }
 0x324   : > { %5520 = vmatmul.mubr.bf16.gmra.mxu0 %v10125_v58 }
 0x325   : > { %5527 = vmatprep.mubr.bf16.mxu0 %v10129_v4 }
 0x328   : > { %6289 = vmatmul.mubr.bf16.gmra.mxu1 %v10128_v2  ;;  %v10195_v2 = vld [vmem:[%s16653_s5 + $0x340] ss:$16 sps:$4 sm:$0xff]  }
 0x329   : > { %9198 = vmatprep.mubr.msk.bf16.mxu1 %vm5074_vm4, %v10132_v41  ;;  %v10203_v41 = vld [vmem:[%s16653_s5 + $0x364] ss:$16 sps:$4 sm:$0xff]  }
 0x32c   : > { %5528 = vmatmul.mubr.bf16.gmra.mxu0 %v10131_v29 }
 0x32d   : > { %5535 = vmatprep.mubr.bf16.mxu0 %v10135_v19 }
 0x330   : > { %6297 = vmatmul.mubr.bf16.gmra.mxu1 %v10134_v9  ;;  %v10200_v9 = vld [vmem:[%s16653_s5 + $0x248] ss:$16 sps:$4 sm:$0xff]  }
 0x331   : > { %9199 = vmatprep.mubr.msk.bf16.mxu1 %vm5074_vm4, %v10138_v14  ;;  %v10204_v14 = vld [vmem:[%s16653_s5 + $0x26c] ss:$16 sps:$4 sm:$0xff]  }
 0x334   : > { %5536 = vmatmul.mubr.bf16.gmra.mxu0 %v10137_v57 }
 0x335   : > { %5543 = vmatprep.mubr.bf16.mxu0 %v10141_v35 }
 0x338   : > { %6305 = vmatmul.mubr.bf16.gmra.mxu1 %v10140_v44  ;;  %v10201_v44 = vld [vmem:[%s16653_s5 + $0x360] ss:$16 sps:$4 sm:$0xff]  }
 0x339   : > { %9200 = vmatprep.mubr.msk.bf16.mxu1 %vm5074_vm4, %v10144_v42  ;;  %v10209_v42 = vld [vmem:[%s16653_s5 + $0x384] ss:$16 sps:$4 sm:$0xff]  }
 0x33c   : > { %5544 = vmatmul.mubr.bf16.gmra.mxu0 %v10143_v46 }
 0x33d   : > { %5551 = vmatprep.mubr.bf16.mxu0 %v10147_v51 }
 0x340   : > { %6313 = vmatmul.mubr.bf16.gmra.mxu1 %v10146_v61  ;;  %v10206_v61 = vld [vmem:[%s16653_s5 + $0x268] ss:$16 sps:$4 sm:$0xff]  }
 0x341   : > { %9201 = vmatprep.mubr.msk.bf16.mxu1 %vm5074_vm4, %v10150_v37  ;;  %v10210_v37 = vld [vmem:[%s16653_s5 + $0x28c] ss:$16 sps:$4 sm:$0xff]  }
 0x344   : > { %5552 = vmatmul.mubr.bf16.gmra.mxu0 %v10149_v17 }
 0x345   : > { %5559 = vmatprep.mubr.bf16.mxu0 %v10153_v1 }
 0x348   : > { %6321 = vmatmul.mubr.bf16.gmra.mxu1 %v10152_v43  ;;  %v10207_v43 = vld [vmem:[%s16653_s5 + $0x380] ss:$16 sps:$4 sm:$0xff]  }
 0x349   : > { %9202 = vmatprep.mubr.msk.bf16.mxu1 %vm5074_vm4, %v10156_v27  ;;  %v10215_v27 = vld [vmem:[%s16653_s5 + $0x3a4] ss:$16 sps:$4 sm:$0xff]  }
 0x34c   : > { %5560 = vmatmul.mubr.bf16.gmra.mxu0 %v10155_v60 }
 0x34d   : > { %5567 = vmatprep.mubr.bf16.mxu0 %v10159_v36 }
 0x350   : > { %6329 = vmatmul.mubr.bf16.gmra.mxu1 %v10158_v11  ;;  %v10212_v11 = vld [vmem:[%s16653_s5 + $0x288] ss:$16 sps:$4 sm:$0xff]  }
 0x351   : > { %9203 = vmatprep.mubr.msk.bf16.mxu1 %vm5074_vm4, %v10162_v25  ;;  %v10216_v25 = vld [vmem:[%s16653_s5 + $0x2ac] ss:$16 sps:$4 sm:$0xff]  }
 0x354   : > { %5568 = vmatmul.mubr.bf16.gmra.mxu0 %v10161_v22 }
 0x355   : > { %5575 = vmatprep.mubr.bf16.mxu0 %v10167_v28 }
 0x358   : > { %6337 = vmatmul.mubr.bf16.gmra.mxu1 %v10164_v6  ;;  %v10213_v6 = vld [vmem:[%s16653_s5 + $0x3a0] ss:$16 sps:$4 sm:$0xff]  }
 0x359   : > { %9204 = vmatprep.mubr.msk.bf16.mxu1 %vm5074_vm4, %v10168_v24  ;;  %v10221_v24 = vld [vmem:[%s16653_s5 + $0x3c4] ss:$16 sps:$4 sm:$0xff]  }
 0x35c   : > { %5576 = vmatmul.mubr.bf16.gmra.mxu0 %v10165_v23 }
 0x35d   : > { %5583 = vmatprep.mubr.bf16.mxu0 %v10173_v32 }
 0x360   : > { %6345 = vmatmul.mubr.bf16.gmra.mxu1 %v10170_v49  ;;  %v10218_v49 = vld [vmem:[%s16653_s5 + $0x2a8] ss:$16 sps:$4 sm:$0xff]  }
 0x361   : > { %9205 = vmatprep.mubr.msk.bf16.mxu1 %vm5074_vm4, %v10174_v50  ;;  %v10222_v50 = vld [vmem:[%s16653_s5 + $0x2cc] ss:$16 sps:$4 sm:$0xff]  }
 0x364   : > { %5584 = vmatmul.mubr.bf16.gmra.mxu0 %v10171_v5 }
 0x365   : > { %5591 = vmatprep.mubr.bf16.mxu0 %v10179_v8 }
 0x368   : > { %6353 = vmatmul.mubr.bf16.gmra.mxu1 %v10176_v26  ;;  %v10219_v26 = vld [vmem:[%s16653_s5 + $0x3c0] ss:$16 sps:$4 sm:$0xff]  }
 0x369   : > { %9206 = vmatprep.mubr.msk.bf16.mxu1 %vm5074_vm4, %v10180_v62  ;;  %v10227_v62 = vld [vmem:[%s16653_s5 + $0x3e4] ss:$16 sps:$4 sm:$0xff]  }
 0x36c   : > { %5592 = vmatmul.mubr.bf16.gmra.mxu0 %v10177_v39 }
 0x36d   : > { %5599 = vmatprep.mubr.bf16.mxu0 %v10185_v59 }
 0x370   : > { %6361 = vmatmul.mubr.bf16.gmra.mxu1 %v10182_v55  ;;  %v10224_v55 = vld [vmem:[%s16653_s5 + $0x2c8] ss:$16 sps:$4 sm:$0xff]  }
 0x371   : > { %9207 = vmatprep.mubr.msk.bf16.mxu1 %vm5074_vm4, %v10186_v7  ;;  %v10228_v7 = vld [vmem:[%s16653_s5 + $0x2ec] ss:$16 sps:$4 sm:$0xff]  }
 0x374   : > { %v13336_v34 = vpop.f32.mrf.mxu0  ;;  %5600 = vmatmul.mubr.bf16.gmra.mxu0 %v10183_v0 }
 0x375   : > { %5607 = vmatprep.mubr.bf16.mxu0 %v10191_v54 }
 0x376   : > { %v5411_v47 = vpop.f32.mrf.mxu0 }
 0x378   : > { %v13344_v33 = vpop.f32.mrf.mxu0  ;;  %6369 = vmatmul.mubr.bf16.gmra.mxu1 %v10188_v12  ;;  %v10225_v12 = vld [vmem:[%s16653_s5 + $0x3e0] ss:$16 sps:$4 sm:$0xff]  }
 0x379   : > { %9208 = vmatprep.mubr.msk.bf16.mxu1 %vm5074_vm4, %v10192_v20  ;;  %v10233_v20 = vld [vmem:[%s16653_s5 + $0x404] ss:$16 sps:$4 sm:$0xff]  }
 0x37a   : > { %v5414_v45 = vpop.f32.mrf.mxu0 }
 0x37b   : > { %v10234_v45 = vld [vmem:[%s16653_s5 + $0x30c] ss:$16 sps:$4 sm:$0xff]  }
 0x37c   : > { %v13353_v18 = vpop.f32.mrf.mxu0  ;;  %5608 = vmatmul.mubr.bf16.gmra.mxu0 %v10189_v38 }
 0x37d   : > { %5615 = vmatprep.mubr.bf16.mxu0 %v10197_v48  ;;  %v10230_v48 = vld [vmem:[%s16653_s5 + $0x2e8] ss:$16 sps:$4 sm:$0xff]  }
 0x37e   : > { %v5419_v58 = vpop.f32.mrf.mxu0 }
 0x37f   : > { %v10231_v58 = vld [vmem:[%s16653_s5 + $0x400] ss:$16 sps:$4 sm:$0xff]  }
 0x380   : > { %v13361_v4 = vpop.f32.mrf.mxu0  ;;  %6377 = vmatmul.mubr.bf16.gmra.mxu1 %v10194_v16 }
 0x381   : > { %9209 = vmatprep.mubr.msk.bf16.mxu1 %vm5074_vm4, %v10198_v53 }
 0x382   : > { %v5422_v29 = vpop.f32.mrf.mxu0 }
 0x384   : > { %v13370_v19 = vpop.f32.mrf.mxu0  ;;  %5616 = vmatmul.mubr.bf16.gmra.mxu0 %v10195_v2  ;;  %v10239_v2 = vld [vmem:[%s16653_s5 + $0x424] ss:$16 sps:$4 sm:$0xff]  }
 0x385   : > { %5623 = vmatprep.mubr.bf16.mxu0 %v10203_v41 }
 0x386   : > { %v5427_v57 = vpop.f32.mrf.mxu0 }
 0x388   : > { %v13378_v35 = vpop.f32.mrf.mxu0  ;;  %6385 = vmatmul.mubr.bf16.gmra.mxu1 %v10200_v9  ;;  %v10236_v9 = vld [vmem:[%s16653_s5 + $0x308] ss:$16 sps:$4 sm:$0xff]  }
 0x389   : > { %9210 = vmatprep.mubr.msk.bf16.mxu1 %vm5074_vm4, %v10204_v14  ;;  %v10240_v14 = vld [vmem:[%s16653_s5 + $0x32c] ss:$16 sps:$4 sm:$0xff]  }
 0x38a   : > { %v5430_v46 = vpop.f32.mrf.mxu0 }
 0x38c   : > { %v13387_v51 = vpop.f32.mrf.mxu0  ;;  %5624 = vmatmul.mubr.bf16.gmra.mxu0 %v10201_v44  ;;  %v16876_v44 = vld [vmem:[#allocation22_spill] sm:$0xff] }
 0x38d   : > { %5631 = vmatprep.mubr.bf16.mxu0 %v10209_v42  ;;  %v5410_v42 = vadd.f32 %v13336_v34, %v16876_v44 }
 0x38e   : > { %v5435_v17 = vpop.f32.mrf.mxu0 }
 0x390   : > { %v13395_v1 = vpop.f32.mrf.mxu0  ;;  %6393 = vmatmul.mubr.bf16.gmra.mxu1 %v10206_v61 }
 0x391   : > { %9211 = vmatprep.mubr.msk.bf16.mxu1 %vm5074_vm4, %v10210_v37  ;;  %v10237_v37 = vld [vmem:[%s16653_s5 + $0x420] ss:$16 sps:$4 sm:$0xff]  }
 0x392   : > { %v5438_v60 = vpop.f32.mrf.mxu0 }
 0x394   : > { %v13404_v36 = vpop.f32.mrf.mxu0  ;;  %5632 = vmatmul.mubr.bf16.gmra.mxu0 %v10207_v43  ;;  %v10245_v43 = vld [vmem:[%s16653_s5 + $0x444] ss:$16 sps:$4 sm:$0xff]  }
 0x395   : > { %5639 = vmatprep.mubr.bf16.mxu0 %v10215_v27 }
 0x396   : > { %v5443_v22 = vpop.f32.mrf.mxu0 }
 0x398   : > { %v13412_v28 = vpop.f32.mrf.mxu0  ;;  %6401 = vmatmul.mubr.bf16.gmra.mxu1 %v10212_v11  ;;  %v16877_v11 = vld [vmem:[#allocation23_spill] sm:$0xff] }
 0x399   : > { %9212 = vmatprep.mubr.msk.bf16.mxu1 %vm5074_vm4, %v10216_v25  ;;  %v5413_v34 = vadd.f32 %v13344_v33, %v16877_v11 }
 0x39a   : > { %v5446_v23 = vpop.f32.mrf.mxu0 }
 0x39b   : > { %v10246_v23 = vld [vmem:[%s16653_s5 + $0x34c] ss:$16 sps:$4 sm:$0xff]  }
 0x39c   : > { %v13421_v32 = vpop.f32.mrf.mxu0  ;;  %5640 = vmatmul.mubr.bf16.gmra.mxu0 %v10213_v6  ;;  %v10242_v6 = vld [vmem:[%s16653_s5 + $0x328] ss:$16 sps:$4 sm:$0xff]  }
 0x39d   : > { %5647 = vmatprep.mubr.bf16.mxu0 %v10221_v24 }
 0x39e   : > { %v5451_v5 = vpop.f32.mrf.mxu0 }
 0x39f   : > { %v16878_v5 = vld [vmem:[#allocation24_spill] sm:$0xff] }
 0x3a0   : > { %v13429_v8 = vpop.f32.mrf.mxu0  ;;  %6409 = vmatmul.mubr.bf16.gmra.mxu1 %v10218_v49  ;;  %v5418_v33 = vadd.f32 %v13353_v18, %v16878_v5  ;;  %v5421_v18 = vadd.f32 %v13361_v4, %v12060_v63  ;;  %v5426_v63 = vadd.f32 %v13370_v19, %v12063_v52  ;;  %v5429_v52 = vadd.f32 %v13378_v35, %v12072_v31 }
 0x3a1   : > { %9213 = vmatprep.mubr.msk.bf16.mxu1 %vm5074_vm4, %v10222_v50 }
 0x3a2   : > { %v5454_v39 = vpop.f32.mrf.mxu0 }
 0x3a3   : > { %v10243_v39 = vld [vmem:[%s16653_s5 + $0x440] ss:$16 sps:$4 sm:$0xff]  }
 0x3a4   : > { %v13438_v59 = vpop.f32.mrf.mxu0  ;;  %5648 = vmatmul.mubr.bf16.gmra.mxu0 %v10219_v26 }
 0x3a5   : > { %5655 = vmatprep.mubr.bf16.mxu0 %v10227_v62 }
 0x3a6   : > { %v5459_v0 = vpop.f32.mrf.mxu0 }
 0x3a8   : > { %v13446_v54 = vpop.f32.mrf.mxu0  ;;  %6417 = vmatmul.mubr.bf16.gmra.mxu1 %v10224_v55 }
 0x3a9   : > { %9214 = vmatprep.mubr.msk.bf16.mxu1 %vm5074_vm4, %v10228_v7  ;;  %v10251_v7 = vld [vmem:[%s16653_s5 + $0x464] ss:$16 sps:$4 sm:$0xff]  }
 0x3aa   : > { %v5462_v47 = vpop.f32.mrf.mxu0 }
 0x3ac   : > { %v13455_v38 = vpop.f32.mrf.mxu0  ;;  %5656 = vmatmul.mubr.bf16.gmra.mxu0 %v10225_v12 }
 0x3ad   : > { %5663 = vmatprep.mubr.bf16.mxu0 %v10233_v20 }
 0x3ae   : > { %v5467_v16 = vpop.f32.mrf.mxu0 }
 0x3af   : > { %v10252_v16 = vld [vmem:[%s16653_s5 + $0x36c] ss:$16 sps:$4 sm:$0xff]  }
 0x3b0   : > { %v13463_v53 = vpop.f32.mrf.mxu0  ;;  %6425 = vmatmul.mubr.bf16.gmra.mxu1 %v10230_v48  ;;  %v10248_v48 = vld [vmem:[%s16653_s5 + $0x348] ss:$16 sps:$4 sm:$0xff]  }
 0x3b1   : > { %9215 = vmatprep.mubr.msk.bf16.mxu1 %vm5074_vm4, %v10234_v45 }
 0x3b2   : > { %v5470_v41 = vpop.f32.mrf.mxu0 }
 0x3b4   : > { %v13472_v29 = vpop.f32.mrf.mxu0  ;;  %5664 = vmatmul.mubr.bf16.gmra.mxu0 %v10231_v58 }
 0x3b5   : > { %5671 = vmatprep.mubr.bf16.mxu0 %v10239_v2 }
 0x3b6   : > { %v5475_v57 = vpop.f32.mrf.mxu0 }
 0x3b7   : > { %v10257_v57 = vld [vmem:[%s16653_s5 + $0x484] ss:$16 sps:$4 sm:$0xff]  }
 0x3b8   : > { %v13482_v46 = vpop.f32.mrf.mxu0  ;;  %v6242_v61 = vpop.f32.mrf.mxu1  ;;  %6433 = vmatmul.mubr.bf16.gmra.mxu1 %v10236_v9  ;;  %v10249_v9 = vld [vmem:[%s16653_s5 + $0x460] ss:$16 sps:$4 sm:$0xff]  }
 0x3b9   : > { %v6243_v17 = vadd.f32 %v6242_v61, %v5410_v42  ;;  %9216 = vmatprep.mubr.msk.bf16.mxu1 %vm5074_vm4, %v10240_v14 }
 0x3ba   : > { %v5478_v27 = vpop.f32.mrf.mxu0  ;;  %v6244_v60 = vpop.f32.mrf.mxu1 }
 0x3bb   : > { %10916 = vtanh.f32 %v6243_v17  ;;  %v10258_v60 = vld [vmem:[%s16653_s5 + $0x38c] ss:$16 sps:$4 sm:$0xff]  }
 0x3bc   : > { %v13493_v25 = vpop.f32.mrf.mxu0  ;;  %5672 = vmatmul.mubr.bf16.gmra.mxu0 %v10237_v37  ;;  %v6245_v22 = vpop.f32.mrf.mxu1 }
 0x3bd   : > { %v6246_v24 = vadd.f32 %v6245_v22, %v5413_v34  ;;  %5679 = vmatprep.mubr.bf16.mxu0 %v10245_v43  ;;  %v10254_v43 = vld [vmem:[%s16653_s5 + $0x368] ss:$16 sps:$4 sm:$0xff]   ;;  %v5434_v34 = vadd.f32 %v13387_v51, %v12075_v13  ;;  %v5437_v13 = vadd.f32 %v13395_v1, %v12085_v10 }
 0x3be   : > { %v5483_v49 = vpop.f32.mrf.mxu0  ;;  %v6247_v50 = vpop.f32.mrf.mxu1 }
 0x3bf   : > { %10918 = vtanh.f32 %v6246_v24  ;;  %v10255_v24 = vld [vmem:[%s16653_s5 + $0x480] ss:$16 sps:$4 sm:$0xff]   ;;  %v10263_v49 = vld [vmem:[%s16653_s5 + $0x4a4] ss:$16 sps:$4 sm:$0xff]  }
 0x3c0   : > { %v13503_v26 = vpop.f32.mrf.mxu0  ;;  %v6250_v62 = vpop.f32.mrf.mxu1  ;;  %6441 = vmatmul.mubr.bf16.gmra.mxu1 %v10242_v6 }
 0x3c1   : > { %v6251_v55 = vadd.f32 %v6250_v62, %v5418_v33  ;;  %9217 = vmatprep.mubr.msk.bf16.mxu1 %vm5074_vm4, %v10246_v23 }
 0x3c2   : > { %v5486_v0 = vpop.f32.mrf.mxu0  ;;  %v6252_v12 = vpop.f32.mrf.mxu1 }
 0x3c3   : > { %10920 = vtanh.f32 %v6251_v55  ;;  %v10260_v55 = vld [vmem:[%s16653_s5 + $0x388] ss:$16 sps:$4 sm:$0xff]   ;;  %v10264_v0 = vld [vmem:[%s16653_s5 + $0x3ac] ss:$16 sps:$4 sm:$0xff]  }
 0x3c4   : > { %v13514_v20 = vpop.f32.mrf.mxu0  ;;  %5680 = vmatmul.mubr.bf16.gmra.mxu0 %v10243_v39  ;;  %v6253_v47 = vpop.f32.mrf.mxu1 }
 0x3c5   : > { %v6254_v45 = vadd.f32 %v6253_v47, %v5421_v18  ;;  %5687 = vmatprep.mubr.bf16.mxu0 %v10251_v7  ;;  %v5442_v18 = vadd.f32 %v13404_v36, %v12173_v30  ;;  %v5445_v30 = vadd.f32 %v13412_v28, %v12182_v40 }
 0x3c6   : > { %v5491_v58 = vpop.f32.mrf.mxu0  ;;  %v6255_v2 = vpop.f32.mrf.mxu1 }
 0x3c7   : > { %10922 = vtanh.f32 %v6254_v45  ;;  %v10261_v45 = vld [vmem:[%s16653_s5 + $0x4a0] ss:$16 sps:$4 sm:$0xff]   ;;  %v10269_v58 = vld [vmem:[%s16653_s5 + $0x4c4] ss:$16 sps:$4 sm:$0xff]  }
 0x3c8   : > { %v13524_v4 = vpop.f32.mrf.mxu0  ;;  %v6258_v41 = vpop.f32.mrf.mxu1  ;;  %6449 = vmatmul.mubr.bf16.gmra.mxu1 %v10248_v48 }
 0x3c9   : > { %v6259_v14 = vadd.f32 %v6258_v41, %v5426_v63  ;;  %9218 = vmatprep.mubr.msk.bf16.mxu1 %vm5074_vm4, %v10252_v16  ;;  %v13533_v61 = vpop.eup %10916 }
 0x3ca   : > { %v5494_v44 = vpop.f32.mrf.mxu0  ;;  %v6260_v42 = vpop.f32.mrf.mxu1 }
 0x3cb   : > { %10924 = vtanh.f32 %v6259_v14  ;;  %v10270_v42 = vld [vmem:[%s16653_s5 + $0x3cc] ss:$16 sps:$4 sm:$0xff]  }
 0x3cc   : > { %v13537_v19 = vpop.eup %10918  ;;  %v13539_v37 = vpop.f32.mrf.mxu0  ;;  %5688 = vmatmul.mubr.bf16.gmra.mxu0 %v10249_v9 }
 0x3cd   : > { %v6261_v17 = vpop.f32.mrf.mxu1  ;;  %5695 = vmatprep.mubr.bf16.mxu0 %v10257_v57  ;;  %v10266_v57 = vld [vmem:[%s16653_s5 + $0x3a8] ss:$16 sps:$4 sm:$0xff]  }
 0x3ce   : > { %v6262_v27 = vadd.f32 %v6261_v17, %v5429_v52  ;;  %v5499_v31 = vpop.f32.mrf.mxu0  ;;  %v5450_v17 = vadd.f32 %v13421_v32, %v12151_v21  ;;  %v5453_v21 = vadd.f32 %v13429_v8, %v12160_v15 }
 0x3cf   : > { %v6263_v35 = vpop.f32.mrf.mxu1 }
 0x3d0   : > { %10926 = vtanh.f32 %v6262_v27  ;;  %v13551_v22 = vpop.f32.mrf.mxu0  ;;  %6457 = vmatmul.mubr.bf16.gmra.mxu1 %v10254_v43  ;;  %v13560_v33 = vpop.eup %10920  ;;  %v10275_v35 = vld [vmem:[%s16653_s5 + $0x4e4] ss:$16 sps:$4 sm:$0xff]  }
 0x3d1   : > { %v6266_v6 = vpop.f32.mrf.mxu1  ;;  %9219 = vmatprep.mubr.msk.bf16.mxu1 %vm5074_vm4, %v10258_v60  ;;  %v10267_v60 = vld [vmem:[%s16653_s5 + $0x4c0] ss:$16 sps:$4 sm:$0xff]  }
 0x3d2   : > { %v6267_v23 = vadd.f32 %v6266_v6, %v5434_v34  ;;  %v5502_v50 = vpop.f32.mrf.mxu0 }
 0x3d3   : > { %v6268_v5 = vpop.f32.mrf.mxu1  ;;  %v10272_v50 = vld [vmem:[%s16653_s5 + $0x3c8] ss:$16 sps:$4 sm:$0xff]  }
 0x3d4   : > { %v13564_v51 = vpop.eup %10922  ;;  %v13566_v62 = vpop.f32.mrf.mxu0  ;;  %5696 = vmatmul.mubr.bf16.gmra.mxu0 %v10255_v24  ;;  %10928 = vtanh.f32 %v6267_v23 }
 0x3d5   : > { %v6269_v39 = vpop.f32.mrf.mxu1  ;;  %5703 = vmatprep.mubr.bf16.mxu0 %v10263_v49 }
 0x3d6   : > { %v6270_v7 = vadd.f32 %v6269_v39, %v5437_v13  ;;  %v5507_v10 = vpop.f32.mrf.mxu0  ;;  %v10276_v13 = vld [vmem:[%s16653_s5 + $0x3ec] ss:$16 sps:$4 sm:$0xff]  }
 0x3d7   : > { %v6271_v1 = vpop.f32.mrf.mxu1  ;;  %v10273_v10 = vld [vmem:[%s16653_s5 + $0x4e0] ss:$16 sps:$4 sm:$0xff]  }
 0x3d8   : > { %10930 = vtanh.f32 %v6270_v7  ;;  %v13578_v47 = vpop.f32.mrf.mxu0  ;;  %6465 = vmatmul.mubr.bf16.gmra.mxu1 %v10260_v55  ;;  %v13587_v41 = vpop.eup %10924  ;;  %v5458_v55 = vadd.f32 %v13438_v59, %v12129_v56  ;;  %v16879_v56 = vld [vmem:[#allocation31_spill] sm:$0xff] }
 0x3d9   : > { %v6274_v48 = vpop.f32.mrf.mxu1  ;;  %9220 = vmatprep.mubr.msk.bf16.mxu1 %vm5074_vm4, %v10264_v0  ;;  %v5461_v59 = vadd.f32 %v13446_v54, %v16879_v56  ;;  %v10285_v56 = vld [vmem:[%s16653_s5 + $0x520] ss:$16 sps:$4 sm:$0xff]  }
 0x3da   : > { %v6275_v16 = vadd.f32 %v6274_v48, %v5442_v18  ;;  %v5510_v2 = vpop.f32.mrf.mxu0  ;;  %v10281_v18 = vld [vmem:[%s16653_s5 + $0x504] ss:$16 sps:$4 sm:$0xff]  }
 0x3db   : > { %v6276_v63 = vpop.f32.mrf.mxu1 }
 0x3dc   : > { %v13593_v9 = vpop.f32.mrf.mxu0  ;;  %5704 = vmatmul.mubr.bf16.gmra.mxu0 %v10261_v45  ;;  %10932 = vtanh.f32 %v6275_v16 }
 0x3dd   : > { %v13591_v36 = vpop.eup %10926  ;;  %v6277_v14 = vpop.f32.mrf.mxu1  ;;  %5711 = vmatprep.mubr.bf16.mxu0 %v10269_v58 }
 0x3de   : > { %v6278_v44 = vadd.f32 %v6277_v14, %v5445_v30  ;;  %v5515_v40 = vpop.f32.mrf.mxu0  ;;  %v10278_v30 = vld [vmem:[%s16653_s5 + $0x3e8] ss:$16 sps:$4 sm:$0xff]  }
 0x3df   : > { %v6279_v28 = vpop.f32.mrf.mxu1  ;;  %v16880_v40 = vld [vmem:[#allocation27_spill] sm:$0xff] }
 0x3e0   : > { %10934 = vtanh.f32 %v6278_v44  ;;  %v13605_v43 = vpop.f32.mrf.mxu0  ;;  %6473 = vmatmul.mubr.bf16.gmra.mxu1 %v10266_v57  ;;  %v10282_v57 = vld [vmem:[%s16653_s5 + $0x40c] ss:$16 sps:$4 sm:$0xff]   ;;  %v5466_v28 = vadd.f32 %v13455_v38, %v16880_v40 }
 0x3e1   : > { %v6282_v27 = vpop.f32.mrf.mxu1  ;;  %9221 = vmatprep.mubr.msk.bf16.mxu1 %vm5074_vm4, %v10270_v42  ;;  %v13614_v24 = vpop.eup %10928  ;;  %v16881_v38 = vld [vmem:[#allocation28_spill] sm:$0xff] }
 0x3e2   : > { %v6283_v31 = vadd.f32 %v6282_v27, %v5450_v17  ;;  %v5518_v34 = vpop.f32.mrf.mxu0 }
 0x3e3   : > { %v6284_v6 = vpop.f32.mrf.mxu1 }
 0x3e4   : > { %v13620_v23 = vpop.f32.mrf.mxu0  ;;  %5712 = vmatmul.mubr.bf16.gmra.mxu0 %v10267_v60  ;;  %10936 = vtanh.f32 %v6283_v31  ;;  %v10279_v60 = vld [vmem:[%s16653_s5 + $0x500] ss:$16 sps:$4 sm:$0xff]  }
 0x3e5   : > { %v13618_v32 = vpop.eup %10930  ;;  %v6285_v49 = vpop.f32.mrf.mxu1  ;;  %5719 = vmatprep.mubr.bf16.mxu0 %v10275_v35  ;;  %v10287_v35 = vld [vmem:[%s16653_s5 + $0x524] ss:$16 sps:$4 sm:$0xff]  }
 0x3e6   : > { %v6286_v5 = vadd.f32 %v6285_v49, %v5453_v21  ;;  %v5523_v15 = vpop.f32.mrf.mxu0  ;;  %v5469_v49 = vadd.f32 %v13463_v53, %v16881_v38 }
 0x3e7   : > { %v6287_v8 = vpop.f32.mrf.mxu1  ;;  %v10284_v15 = vld [vmem:[%s16653_s5 + $0x408] ss:$16 sps:$4 sm:$0xff]  }
 0x3e8   : > { %10938 = vtanh.f32 %v6286_v5  ;;  %v13632_v7 = vpop.f32.mrf.mxu0  ;;  %6481 = vmatmul.mubr.bf16.gmra.mxu1 %v10272_v50 }
 0x3e9   : > { %v6290_v0 = vpop.f32.mrf.mxu1  ;;  %9222 = vmatprep.mubr.msk.bf16.mxu1 %vm5074_vm4, %v10276_v13  ;;  %v13641_v16 = vpop.eup %10932 }
 0x3ea   : > { %v6291_v1 = vadd.f32 %v6290_v0, %v5458_v55  ;;  %v5526_v48 = vpop.f32.mrf.mxu0  ;;  %v10288_v55 = vld [vmem:[%s16653_s5 + $0x42c] ss:$16 sps:$4 sm:$0xff]  }
 0x3eb   : > { %v6292_v45 = vpop.f32.mrf.mxu1 }
 0x3ec   : > { %v13647_v2 = vpop.f32.mrf.mxu0  ;;  %5720 = vmatmul.mubr.bf16.gmra.mxu0 %v10273_v10  ;;  %10940 = vtanh.f32 %v6291_v1  ;;  %v16882_v1 = vld [vmem:[#allocation42_spill] sm:$0xff] }
 0x3ed   : > { %v13645_v58 = vpop.eup %10934  ;;  %v6293_v63 = vpop.f32.mrf.mxu1  ;;  %5727 = vmatprep.mubr.bf16.mxu0 %v10281_v18  ;;  %v5474_v18 = vadd.f32 %v13472_v29, %v16882_v1  ;;  %v16883_v29 = vld [vmem:[#allocation43_spill] sm:$0xff] }
 0x3ee   : > { %v6294_v14 = vadd.f32 %v6293_v63, %v5461_v59  ;;  %v5531_v54 = vpop.f32.mrf.mxu0  ;;  %v10293_v63 = vld [vmem:[%s16653_s5 + $0x544] ss:$16 sps:$4 sm:$0xff]  }
 0x3ef   : > { %v6295_v42 = vpop.f32.mrf.mxu1  ;;  %v5477_v54 = vadd.f32 %v13482_v46, %v16883_v29 }
 0x3f0   : > { %10942 = vtanh.f32 %v6294_v14  ;;  %v13659_v17 = vpop.f32.mrf.mxu0  ;;  %6489 = vmatmul.mubr.bf16.gmra.mxu1 %v10278_v30 }
 0x3f1   : > { %v6298_v27 = vpop.f32.mrf.mxu1  ;;  %9223 = vmatprep.mubr.msk.bf16.mxu1 %vm5074_vm4, %v10282_v57  ;;  %v13668_v21 = vpop.eup %10936 }
 0x3f2   : > { %v6299_v31 = vadd.f32 %v6298_v27, %v5466_v28  ;;  %v5534_v34 = vpop.f32.mrf.mxu0  ;;  %v10290_v27 = vld [vmem:[%s16653_s5 + $0x428] ss:$16 sps:$4 sm:$0xff]  }
 0x3f3   : > { %v6300_v6 = vpop.f32.mrf.mxu1 }
 0x3f4   : > { %v13674_v5 = vpop.f32.mrf.mxu0  ;;  %5728 = vmatmul.mubr.bf16.gmra.mxu0 %v10279_v60  ;;  %10944 = vtanh.f32 %v6299_v31  ;;  %v10294_v31 = vld [vmem:[%s16653_s5 + $0x44c] ss:$16 sps:$4 sm:$0xff]  }
 0x3f5   : > { %v13672_v50 = vpop.eup %10938  ;;  %v6301_v13 = vpop.f32.mrf.mxu1  ;;  %5735 = vmatprep.mubr.bf16.mxu0 %v10287_v35  ;;  %v16884_v6 = vld [vmem:[#allocation40_spill] sm:$0xff] }
 0x3f6   : > { %v6302_v8 = vadd.f32 %v6301_v13, %v5469_v49  ;;  %v5539_v53 = vpop.f32.mrf.mxu0  ;;  %v5482_v38 = vadd.f32 %v13493_v25, %v16884_v6  ;;  %v16885_v25 = vld [vmem:[#allocation41_spill] sm:$0xff] }
 0x3f7   : > { %v6303_v10 = vpop.f32.mrf.mxu1 }
 0x3f8   : > { %10946 = vtanh.f32 %v6302_v8  ;;  %v13686_v48 = vpop.f32.mrf.mxu0  ;;  %6497 = vmatmul.mubr.bf16.gmra.mxu1 %v10284_v15  ;;  %v10291_v15 = vld [vmem:[%s16653_s5 + $0x540] ss:$16 sps:$4 sm:$0xff]  }
 0x3f9   : > { %v6306_v45 = vpop.f32.mrf.mxu1  ;;  %9224 = vmatprep.mubr.msk.bf16.mxu1 %vm5074_vm4, %v10288_v55  ;;  %v13695_v57 = vpop.eup %10940  ;;  %v10299_v55 = vld [vmem:[%s16653_s5 + $0x564] ss:$16 sps:$4 sm:$0xff]  }
 0x3fa   : > { %v6307_v59 = vadd.f32 %v6306_v45, %v5474_v18  ;;  %v5542_v30 = vpop.f32.mrf.mxu0  ;;  %v5485_v18 = vadd.f32 %v13503_v26, %v16885_v25  ;;  %v10302_v25 = vld [vmem:[%s16653_s5 + $0x468] ss:$16 sps:$4 sm:$0xff]  }
 0x3fb   : > { %v6308_v14 = vpop.f32.mrf.mxu1 }
 0x3fc   : > { %v13701_v40 = vpop.f32.mrf.mxu0  ;;  %5736 = vmatmul.mubr.bf16.gmra.mxu0 %v10285_v56  ;;  %10948 = vtanh.f32 %v6307_v59  ;;  %v10300_v14 = vld [vmem:[%s16653_s5 + $0x46c] ss:$16 sps:$4 sm:$0xff]  }
 0x3fd   : > { %v13699_v42 = vpop.eup %10942  ;;  %v6309_v28 = vpop.f32.mrf.mxu1  ;;  %5743 = vmatprep.mubr.bf16.mxu0 %v10293_v63  ;;  %v10296_v63 = vld [vmem:[%s16653_s5 + $0x448] ss:$16 sps:$4 sm:$0xff]  }
 0x3fe   : > { %v6310_v60 = vadd.f32 %v6309_v28, %v5477_v54  ;;  %v5547_v46 = vpop.f32.mrf.mxu0  ;;  %v16886_v28 = vld [vmem:[#allocation38_spill] sm:$0xff] }
 0x3ff   : > { %v6311_v34 = vpop.f32.mrf.mxu1  ;;  %v10297_v46 = vld [vmem:[%s16653_s5 + $0x560] ss:$16 sps:$4 sm:$0xff]  }
 0x400   : > { %10950 = vtanh.f32 %v6310_v60  ;;  %v13713_v49 = vpop.f32.mrf.mxu0  ;;  %6505 = vmatmul.mubr.bf16.gmra.mxu1 %v10290_v27  ;;  %v5490_v27 = vadd.f32 %v13514_v20, %v16886_v28  ;;  %v10305_v34 = vld [vmem:[%s16653_s5 + $0x584] ss:$16 sps:$4 sm:$0xff]  }
 0x401   : > { %v6314_v13 = vpop.f32.mrf.mxu1  ;;  %9225 = vmatprep.mubr.msk.bf16.mxu1 %vm5074_vm4, %v10294_v31  ;;  %v13722_v1 = vpop.eup %10944  ;;  %v16887_v20 = vld [vmem:[#allocation39_spill] sm:$0xff] }
 0x402   : > { %v6315_v8 = vadd.f32 %v6314_v13, %v5482_v38  ;;  %v5550_v53 = vpop.f32.mrf.mxu0 }
 0x403   : > { %v6316_v10 = vpop.f32.mrf.mxu1 }
 0x404   : > { %v13728_v56 = vpop.f32.mrf.mxu0  ;;  %5744 = vmatmul.mubr.bf16.gmra.mxu0 %v10291_v15  ;;  %10952 = vtanh.f32 %v6315_v8  ;;  %v5493_v8 = vadd.f32 %v13524_v4, %v16887_v20 }
 0x405   : > { %v13726_v45 = vpop.eup %10946  ;;  %v6317_v59 = vpop.f32.mrf.mxu1  ;;  %5751 = vmatprep.mubr.bf16.mxu0 %v10299_v55 }
 0x406   : > { %v6318_v30 = vadd.f32 %v6317_v59, %v5485_v18  ;;  %v7248_v29 = vpack.c.bf16 %v13726_v45, %v13722_v1  ;;  %v5555_v26 = vpop.f32.mrf.mxu0  ;;  %v10306_v59 = vld [vmem:[%s16653_s5 + $0x48c] ss:$16 sps:$4 sm:$0xff]  }
 0x407   : > { %v6319_v54 = vpop.f32.mrf.mxu1 }
 0x408   : > { %10954 = vtanh.f32 %v6318_v30  ;;  %v13740_v60 = vpop.f32.mrf.mxu0  ;;  %6513 = vmatmul.mubr.bf16.gmra.mxu1 %v10296_v63 }
 0x409   : > { %v6322_v31 = vpop.f32.mrf.mxu1  ;;  %9226 = vmatprep.mubr.msk.bf16.mxu1 %vm5074_vm4, %v10300_v14  ;;  %v13749_v15 = vpop.eup %10948  ;;  %v16888_v14 = vld [vmem:[#allocation36_spill] sm:$0xff] }
 0x40a   : > { %v6323_v6 = vadd.f32 %v6322_v31, %v5490_v27  ;;  %v5558_v38 = vpop.f32.mrf.mxu0  ;;  %v5498_v26 = vadd.f32 %v13539_v37, %v16888_v14  ;;  %v10303_v27 = vld [vmem:[%s16653_s5 + $0x580] ss:$16 sps:$4 sm:$0xff]   ;;  %v10311_v31 = vld [vmem:[%s16653_s5 + $0x5a4] ss:$16 sps:$4 sm:$0xff]   ;;  %v16890_v14 = vld [vmem:[#allocation34_spill] sm:$0xff] }
 0x40b   : > { %v6324_v13 = vpop.f32.mrf.mxu1  ;;  %v16889_v37 = vld [vmem:[#allocation37_spill] sm:$0xff] }
 0x40c   : > { %v13755_v53 = vpop.f32.mrf.mxu0  ;;  %5752 = vmatmul.mubr.bf16.gmra.mxu0 %v10297_v46  ;;  %10956 = vtanh.f32 %v6323_v6  ;;  %v5501_v13 = vadd.f32 %v13551_v22, %v16889_v37 }
 0x40d   : > { %v13753_v55 = vpop.eup %10950  ;;  %v6325_v10 = vpop.f32.mrf.mxu1  ;;  %5759 = vmatprep.mubr.bf16.mxu0 %v10305_v34 }
 0x40e   : > { %v6326_v18 = vadd.f32 %v6325_v10, %v5493_v8  ;;  %v5563_v4 = vpop.f32.mrf.mxu0 }
 0x40f   : > { %v6327_v30 = vpop.f32.mrf.mxu1 }
 0x410   : > { %10958 = vtanh.f32 %v6326_v18  ;;  %v13767_v54 = vpop.f32.mrf.mxu0  ;;  %6521 = vmatmul.mubr.bf16.gmra.mxu1 %v10302_v25  ;;  %v10308_v25 = vld [vmem:[%s16653_s5 + $0x488] ss:$16 sps:$4 sm:$0xff]  }
 0x411   : > { %v6330_v28 = vpop.f32.mrf.mxu1  ;;  %9227 = vmatprep.mubr.msk.bf16.mxu1 %vm5074_vm4, %v10306_v59  ;;  %v13776_v38 = vpop.eup %10952  ;;  %v10312_v59 = vld [vmem:[%s16653_s5 + $0x4ac] ss:$16 sps:$4 sm:$0xff]  }
 0x412   : > { %v6331_v46 = vadd.f32 %v6330_v28, %v5498_v26  ;;  %v5566_v34 = vpop.f32.mrf.mxu0  ;;  %v5506_v26 = vadd.f32 %v13566_v62, %v16890_v14  ;;  %v16891_v62 = vld [vmem:[#allocation35_spill] sm:$0xff]  ;;  %v10318_v14 = vld [vmem:[%s16653_s5 + $0x4cc] ss:$16 sps:$4 sm:$0xff]  }
 0x413   : > { %v6332_v6 = vpop.f32.mrf.mxu1 }
 0x414   : > { %v13782_v8 = vpop.f32.mrf.mxu0  ;;  %5760 = vmatmul.mubr.bf16.gmra.mxu0 %v10303_v27  ;;  %10960 = vtanh.f32 %v6331_v46  ;;  %v10317_v46 = vld [vmem:[%s16653_s5 + $0x5c4] ss:$16 sps:$4 sm:$0xff]  }
 0x415   : > { %v13780_v20 = vpop.eup %10954  ;;  %v6333_v10 = vpop.f32.mrf.mxu1  ;;  %5767 = vmatprep.mubr.bf16.mxu0 %v10311_v31  ;;  %v10309_v31 = vld [vmem:[%s16653_s5 + $0x5a0] ss:$16 sps:$4 sm:$0xff]  }
 0x416   : > { %v6334_v18 = vadd.f32 %v6333_v10, %v5501_v13  ;;  %v5571_v22 = vpop.f32.mrf.mxu0  ;;  %v5509_v10 = vadd.f32 %v13578_v47, %v16891_v62 }
 0x417   : > { %v6335_v30 = vpop.f32.mrf.mxu1 }
 0x418   : > { %10962 = vtanh.f32 %v6334_v18  ;;  %v13794_v28 = vpop.f32.mrf.mxu0  ;;  %6529 = vmatmul.mubr.bf16.gmra.mxu1 %v10308_v25 }
 0x419   : > { %v6338_v27 = vpop.f32.mrf.mxu1  ;;  %9228 = vmatprep.mubr.msk.bf16.mxu1 %vm5074_vm4, %v10312_v59  ;;  %v13803_v13 = vpop.eup %10956  ;;  %v10314_v59 = vld [vmem:[%s16653_s5 + $0x4a8] ss:$16 sps:$4 sm:$0xff]  }
 0x41a   : > { %v6339_v34 = vadd.f32 %v6338_v27, %v5506_v26  ;;  %v5574_v6 = vpop.f32.mrf.mxu0 }
 0x41b   : > { %v6340_v37 = vpop.f32.mrf.mxu1  ;;  %v16892_v6 = vld [vmem:[#allocation32_spill] sm:$0xff] }
 0x41c   : > { %v13809_v25 = vpop.f32.mrf.mxu0  ;;  %5768 = vmatmul.mubr.bf16.gmra.mxu0 %v10309_v31  ;;  %10964 = vtanh.f32 %v6339_v34  ;;  %v5514_v31 = vadd.f32 %v13593_v9, %v16892_v6  ;;  %v10323_v34 = vld [vmem:[%s16653_s5 + $0x5e4] ss:$16 sps:$4 sm:$0xff]  }
 0x41d   : > { %v13807_v18 = vpop.eup %10958  ;;  %v6341_v22 = vpop.f32.mrf.mxu1  ;;  %5775 = vmatprep.mubr.bf16.mxu0 %v10317_v46  ;;  %v10315_v46 = vld [vmem:[%s16653_s5 + $0x5c0] ss:$16 sps:$4 sm:$0xff]  }
 0x41e   : > { %v6342_v30 = vadd.f32 %v6341_v22, %v5509_v10  ;;  %v5579_v47 = vpop.f32.mrf.mxu0  ;;  %v16893_v9 = vld [vmem:[#allocation33_spill] sm:$0xff] }
 0x41f   : > { %v6343_v27 = vpop.f32.mrf.mxu1 }
 0x420   : > { %10966 = vtanh.f32 %v6342_v30  ;;  %v13821_v37 = vpop.f32.mrf.mxu0  ;;  %6537 = vmatmul.mubr.bf16.gmra.mxu1 %v10314_v59  ;;  %v5517_v27 = vadd.f32 %v13605_v43, %v16893_v9 }
 0x421   : > { %v6346_v62 = vpop.f32.mrf.mxu1  ;;  %9229 = vmatprep.mubr.msk.bf16.mxu1 %vm5074_vm4, %v10318_v14  ;;  %v13830_v47 = vpop.eup %10960  ;;  %v10320_v14 = vld [vmem:[%s16653_s5 + $0x4c8] ss:$16 sps:$4 sm:$0xff]  }
 0x422   : > { %v6347_v10 = vadd.f32 %v6346_v62, %v5514_v31  ;;  %v5582_v22 = vpop.f32.mrf.mxu0  ;;  %v10324_v31 = vld [vmem:[%s16653_s5 + $0x4ec] ss:$16 sps:$4 sm:$0xff]  }
 0x423   : > { %v6348_v30 = vpop.f32.mrf.mxu1 }
 0x424   : > { %v13836_v59 = vpop.f32.mrf.mxu0  ;;  %5776 = vmatmul.mubr.bf16.gmra.mxu0 %v10315_v46  ;;  %10968 = vtanh.f32 %v6347_v10  ;;  %v16894_v30 = vld [vmem:[#allocation29_spill] sm:$0xff] }
 0x425   : > { %v13834_v6 = vpop.eup %10962  ;;  %v6349_v11 = vpop.f32.mrf.mxu1  ;;  %5783 = vmatprep.mubr.bf16.mxu0 %v10323_v34  ;;  %v5522_v46 = vadd.f32 %v13620_v23, %v16894_v30  ;;  %v10329_v34 = vld [vmem:[%s16653_s5 + $0x604] ss:$16 sps:$4 sm:$0xff]   ;;  %v16895_v23 = vld [vmem:[#allocation30_spill] sm:$0xff] }
 0x426   : > { %v6350_v63 = vadd.f32 %v6349_v11, %v5517_v27  ;;  %v5587_v43 = vpop.f32.mrf.mxu0  ;;  %v10321_v11 = vld [vmem:[%s16653_s5 + $0x5e0] ss:$16 sps:$4 sm:$0xff]  }
 0x427   : > { %v6351_v22 = vpop.f32.mrf.mxu1 }
 0x428   : > { %10970 = vtanh.f32 %v6350_v63  ;;  %v13848_v9 = vpop.f32.mrf.mxu0  ;;  %6545 = vmatmul.mubr.bf16.gmra.mxu1 %v10320_v14  ;;  %v5525_v22 = vadd.f32 %v13632_v7, %v16895_v23 }
 0x429   : > { %v6354_v12 = vpop.f32.mrf.mxu1  ;;  %9230 = vmatprep.mubr.msk.bf16.mxu1 %vm5074_vm4, %v10324_v31  ;;  %v13857_v43 = vpop.eup %10964  ;;  %v10326_v31 = vld [vmem:[%s16653_s5 + $0x4e8] ss:$16 sps:$4 sm:$0xff]  }
 0x42a   : > { %v6355_v10 = vadd.f32 %v6354_v12, %v5522_v46  ;;  %v5590_v27 = vpop.f32.mrf.mxu0  ;;  %v10330_v12 = vld [vmem:[%s16653_s5 + $0x50c] ss:$16 sps:$4 sm:$0xff]  }
 0x42b   : > { %v6356_v63 = vpop.f32.mrf.mxu1 }
 0x42c   : > { %v13863_v14 = vpop.f32.mrf.mxu0  ;;  %5784 = vmatmul.mubr.bf16.gmra.mxu0 %v10321_v11  ;;  %10972 = vtanh.f32 %v6355_v10  ;;  %v16896_v63 = vld [vmem:[#allocation25_spill] sm:$0xff] }
 0x42d   : > { %v13861_v30 = vpop.eup %10966  ;;  %v6357_v4 = vpop.f32.mrf.mxu1  ;;  %5791 = vmatprep.mubr.bf16.mxu0 %v10329_v34  ;;  %v5530_v11 = vadd.f32 %v13647_v2, %v16896_v63  ;;  %v10335_v34 = vld [vmem:[%s16653_s5 + $0x624] ss:$16 sps:$4 sm:$0xff]   ;;  %v16897_v2 = vld [vmem:[#allocation26_spill] sm:$0xff] }
 0x42e   : > { %v6358_v52 = vadd.f32 %v6357_v4, %v5525_v22  ;;  %v5595_v7 = vpop.f32.mrf.mxu0  ;;  %v10327_v4 = vld [vmem:[%s16653_s5 + $0x600] ss:$16 sps:$4 sm:$0xff]  }
 0x42f   : > { %v6359_v27 = vpop.f32.mrf.mxu1 }
 0x430   : > { %10974 = vtanh.f32 %v6358_v52  ;;  %v13875_v23 = vpop.f32.mrf.mxu0  ;;  %6553 = vmatmul.mubr.bf16.gmra.mxu1 %v10326_v31  ;;  %v5533_v27 = vadd.f32 %v13659_v17, %v16897_v2 }
 0x431   : > { %v6362_v26 = vpop.f32.mrf.mxu1  ;;  %9231 = vmatprep.mubr.msk.bf16.mxu1 %vm5074_vm4, %v10330_v12  ;;  %v13884_v7 = vpop.eup %10968  ;;  %v10332_v12 = vld [vmem:[%s16653_s5 + $0x508] ss:$16 sps:$4 sm:$0xff]  }
 0x432   : > { %v6363_v10 = vadd.f32 %v6362_v26, %v5530_v11  ;;  %v5598_v22 = vpop.f32.mrf.mxu0  ;;  %v10336_v26 = vld [vmem:[%s16653_s5 + $0x52c] ss:$16 sps:$4 sm:$0xff]  }
 0x433   : > { %v6364_v52 = vpop.f32.mrf.mxu1 }
 0x434   : > { %v13890_v31 = vpop.f32.mrf.mxu0  ;;  %5792 = vmatmul.mubr.bf16.gmra.mxu0 %v10327_v4  ;;  %10976 = vtanh.f32 %v6363_v10  ;;  %v16898_v52 = vld [vmem:[#allocation74_spill] sm:$0xff]  ;;  %v10341_v10 = vld [vmem:[%s16653_s5 + $0x644] ss:$16 sps:$4 sm:$0xff]  }
 0x435   : > { %v13888_v63 = vpop.eup %10970  ;;  %v6365_v39 = vpop.f32.mrf.mxu1  ;;  %5799 = vmatprep.mubr.bf16.mxu0 %v10335_v34  ;;  %v5538_v4 = vadd.f32 %v13674_v5, %v16898_v52  ;;  %v16899_v5 = vld [vmem:[#allocation75_spill] sm:$0xff] }
 0x436   : > { %v6366_v62 = vadd.f32 %v6365_v39, %v5533_v27  ;;  %v5603_v17 = vpop.f32.mrf.mxu0  ;;  %v10333_v39 = vld [vmem:[%s16653_s5 + $0x620] ss:$16 sps:$4 sm:$0xff]  }
 0x437   : > { %v6367_v22 = vpop.f32.mrf.mxu1 }
 0x438   : > { %10978 = vtanh.f32 %v6366_v62  ;;  %v13902_v2 = vpop.f32.mrf.mxu0  ;;  %6561 = vmatmul.mubr.bf16.gmra.mxu1 %v10332_v12  ;;  %v5541_v62 = vadd.f32 %v13686_v48, %v16899_v5  ;;  %v16900_v48 = vld [vmem:[#allocation70_spill] sm:$0xff] }
 0x439   : > { %v6370_v44 = vpop.f32.mrf.mxu1  ;;  %9232 = vmatprep.mubr.msk.bf16.mxu1 %vm5074_vm4, %v10336_v26  ;;  %v10973_v22 = vpop.eup %10972  ;;  %v5546_v5 = vadd.f32 %v13701_v40, %v16900_v48  ;;  %v16901_v40 = vld [vmem:[#allocation71_spill] sm:$0xff] }
 0x43a   : > { %v6371_v34 = vadd.f32 %v6370_v44, %v5538_v4  ;;  %v5606_v27 = vpop.f32.mrf.mxu0  ;;  %v10338_v44 = vld [vmem:[%s16653_s5 + $0x528] ss:$16 sps:$4 sm:$0xff]   ;;  %v10342_v4 = vld [vmem:[%s16653_s5 + $0x54c] ss:$16 sps:$4 sm:$0xff]  }
 0x43b   : > { %v6372_v17 = vpop.f32.mrf.mxu1 }
 0x43c   : > { %v13913_v46 = vpop.f32.mrf.mxu0  ;;  %5800 = vmatmul.mubr.bf16.gmra.mxu0 %v10333_v39  ;;  %10980 = vtanh.f32 %v6371_v34  ;;  %v10347_v34 = vld [vmem:[%s16653_s5 + $0x664] ss:$16 sps:$4 sm:$0xff]  }
 0x43d   : > { %v10975_v52 = vpop.eup %10974  ;;  %v6373_v12 = vpop.f32.mrf.mxu1  ;;  %5807 = vmatprep.mubr.bf16.mxu0 %v10341_v10  ;;  %v10339_v10 = vld [vmem:[%s16653_s5 + $0x640] ss:$16 sps:$4 sm:$0xff]  }
 0x43e   : > { %v6374_v26 = vadd.f32 %v6373_v12, %v5541_v62  ;;  %v7255_v27 = vpack.c.bf16 %v10975_v52, %v10973_v22  ;;  %v5611_v17 = vpop.f32.mrf.mxu0  ;;  %v5549_v12 = vadd.f32 %v13713_v49, %v16901_v40  ;;  %v16902_v49 = vld [vmem:[#allocation66_spill] sm:$0xff] }
 0x43f   : > { %v6375_v0 = vpop.f32.mrf.mxu1  ;;  %v5554_v40 = vadd.f32 %v13728_v56, %v16902_v49  ;;  %v10353_v56 = vld [vmem:[%s16653_s5 + $0x684] ss:$16 sps:$4 sm:$0xff]   ;;  %v16908_v49 = vld [vmem:[#allocation62_spill] sm:$0xff] }
 0x440   : > { %10982 = vtanh.f32 %v6374_v26  ;;  %v13923_v39 = vpop.f32.mrf.mxu0  ;;  %6569 = vmatmul.mubr.bf16.gmra.mxu1 %v10338_v44 }
 0x441   : > { %v6378_v11 = vpop.f32.mrf.mxu1  ;;  %9233 = vmatprep.mubr.msk.bf16.mxu1 %vm5074_vm4, %v10342_v4  ;;  %v10977_v52 = vpop.eup %10976 }
 0x442   : > { %v6379_v62 = vadd.f32 %v6378_v11, %v5546_v5  ;;  %v5614_v0 = vpop.f32.mrf.mxu0  ;;  %v10344_v11 = vld [vmem:[%s16653_s5 + $0x548] ss:$16 sps:$4 sm:$0xff]   ;;  %v10348_v5 = vld [vmem:[%s16653_s5 + $0x56c] ss:$16 sps:$4 sm:$0xff]  }
 0x443   : > { %v6380_v22 = vpop.f32.mrf.mxu1 }
 0x444   : > { %v13934_v17 = vpop.f32.mrf.mxu0  ;;  %5808 = vmatmul.mubr.bf16.gmra.mxu0 %v10339_v10  ;;  %10984 = vtanh.f32 %v6379_v62 }
 0x445   : > { %v10979_v26 = vpop.eup %10978  ;;  %v6381_v44 = vpop.f32.mrf.mxu1  ;;  %5815 = vmatprep.mubr.bf16.mxu0 %v10347_v34  ;;  %v10345_v34 = vld [vmem:[%s16653_s5 + $0x660] ss:$16 sps:$4 sm:$0xff]  }
 0x446   : > { %v6382_v4 = vadd.f32 %v6381_v44, %v5549_v12  ;;  %v7256_v48 = vpack.c.bf16 %v10979_v26, %v10977_v52  ;;  %v5619_v0 = vpop.f32.mrf.mxu0  ;;  %v16904_v44 = vld [vmem:[#allocation67_spill] sm:$0xff] }
 0x447   : > { %v6383_v22 = vpop.f32.mrf.mxu1  ;;  %v5557_v1 = vadd.f32 %v13740_v60, %v16904_v44  ;;  %v10354_v60 = vld [vmem:[%s16653_s5 + $0x58c] ss:$16 sps:$4 sm:$0xff]   ;;  %v16912_v44 = vld [vmem:[#allocation63_spill] sm:$0xff] }
 0x448   : > { %10986 = vtanh.f32 %v6382_v4  ;;  %9433 = vmatprep.subr.bf16.mxu0 %v7256_v48  ;;  %v13944_v10 = vpop.f32.mrf.mxu0  ;;  %6577 = vmatmul.mubr.bf16.gmra.mxu1 %v10344_v11  ;;  %v16906_v4 = vpack.c.bf16 %v13699_v42, %v13695_v57 }
 0x449   : > { %v6386_v35 = vpop.f32.mrf.mxu1  ;;  %9434 = vmatpush3.bf16.msra.mxu0 %v7248_v29  ;;  %9234 = vmatprep.mubr.msk.bf16.mxu1 %vm5074_vm4, %v10348_v5  ;;  %v13956_v26 = vpop.eup %10980  ;;  %v16907_v5 = vpack.c.bf16 %v13888_v63, %v13884_v7  ;;  %v16910_v7 = vpack.c.bf16 %v13861_v30, %v13857_v43  ;;  %v16914_v43 = vpack.c.bf16 %v13645_v58, %v13641_v16 }
 0x44a   : > { %v6387_v62 = vadd.f32 %v6386_v35, %v5554_v40  ;;  %9435 = vmatprep.subr.bf16.mxu0 %v7255_v27  ;;  %v5622_v52 = vpop.f32.mrf.mxu0  ;;  %16903 = vst [vmem:[#allocation13_spill] sm:$0xff] %v13956_v26  ;;  %v10350_v27 = vld [vmem:[%s16653_s5 + $0x568] ss:$16 sps:$4 sm:$0xff]   ;;  %v5562_v40 = vadd.f32 %v13755_v53, %v16908_v49  ;;  %v10359_v53 = vld [vmem:[%s16653_s5 + $0x6a4] ss:$16 sps:$4 sm:$0xff]  }
 0x44b   : > { %v6388_v12 = vpop.f32.mrf.mxu1  ;;  %v10357_v49 = vld [vmem:[%s16653_s5 + $0x6a0] ss:$16 sps:$4 sm:$0xff]  }
 0x44c   : > { %v13962_v29 = vpop.f32.mrf.mxu0  ;;  %5816 = vmatmul.mubr.bf16.gmra.mxu0 %v10345_v34  ;;  %10988 = vtanh.f32 %v6387_v62  ;;  %v10351_v34 = vld [vmem:[%s16653_s5 + $0x680] ss:$16 sps:$4 sm:$0xff]   ;;  %v16909_v62 = vpack.c.bf16 %v13672_v50, %v13668_v21 }
 0x44d   : > { %v13960_v45 = vpop.eup %10982  ;;  %v6389_v35 = vpop.f32.mrf.mxu1  ;;  %9436 = vmatpush3.bf16.msra.mxu0 %v16906_v4  ;;  %5823 = vmatprep.mubr.bf16.mxu0 %v10353_v56  ;;  %v16915_v4 = vpack.c.bf16 %v13834_v6, %v13830_v47  ;;  %v16918_v47 = vpack.c.bf16 %v13807_v18, %v13803_v13  ;;  %v16922_v13 = vpack.c.bf16 %v13591_v36, %v13587_v41 }
 0x44e   : > { %16905 = vst [vmem:[#allocation18_spill] sm:$0xff] %v13960_v45  ;;  %v6390_v11 = vadd.f32 %v6389_v35, %v5557_v1  ;;  %9437 = vmatprep.subr.bf16.mxu0 %v16907_v5  ;;  %v5627_v0 = vpop.f32.mrf.mxu0  ;;  %v5565_v1 = vadd.f32 %v13767_v54, %v16912_v44  ;;  %v10360_v54 = vld [vmem:[%s16653_s5 + $0x5ac] ss:$16 sps:$4 sm:$0xff]   ;;  %v16923_v44 = vpack.c.bf16 %v13780_v20, %v13776_v38  ;;  %v10371_v38 = vld [vmem:[%s16653_s5 + $0x6e4] ss:$16 sps:$4 sm:$0xff]  }
 0x44f   : > { %v6391_v22 = vpop.f32.mrf.mxu1  ;;  %v16916_v0 = vld [vmem:[#allocation58_spill] sm:$0xff]  ;;  %v16926_v20 = vpack.c.bf16 %v13753_v55, %v13749_v15  ;;  %v16930_v15 = vpack.c.bf16 %v13537_v19, %v13533_v61  ;;  %v10369_v61 = vld [vmem:[%s16653_s5 + $0x6e0] ss:$16 sps:$4 sm:$0xff]  }
 0x450   : > { %10990 = vtanh.f32 %v6390_v11  ;;  %v13980_v57 = vpop.f32.mrf.mxu0  ;;  %6585 = vmatmul.mubr.bf16.gmra.mxu1 %v10350_v27  ;;  %v10356_v27 = vld [vmem:[%s16653_s5 + $0x588] ss:$16 sps:$4 sm:$0xff]   ;;  %v5570_v22 = vadd.f32 %v13782_v8, %v16916_v0  ;;  %v10365_v8 = vld [vmem:[%s16653_s5 + $0x6c4] ss:$16 sps:$4 sm:$0xff]   ;;  %v10372_v55 = vld [vmem:[%s16653_s5 + $0x5ec] ss:$16 sps:$4 sm:$0xff]  }
 0x451   : > { %v6394_v42 = vpop.f32.mrf.mxu1  ;;  %9438 = vmatpush3.bf16.msra.mxu0 %v16909_v62  ;;  %9235 = vmatprep.mubr.msk.bf16.mxu1 %vm5074_vm4, %v10354_v60  ;;  %v13995_v12 = vpop.eup %10984  ;;  %v16920_v62 = vld [vmem:[#allocation59_spill] sm:$0xff] }
 0x452   : > { %v6395_v56 = vadd.f32 %v6394_v42, %v5562_v40  ;;  %9439 = vmatprep.subr.bf16.mxu0 %v16910_v7  ;;  %v5630_v63 = vpop.f32.mrf.mxu0  ;;  %16911 = vst [vmem:[#allocation17_spill] sm:$0xff] %v13995_v12  ;;  %v16917_v42 = vpack.c.bf16 %v13618_v32, %v13614_v24  ;;  %v16928_v0 = vld [vmem:[#allocation55_spill] sm:$0xff] }
 0x453   : > { %v6396_v52 = vpop.f32.mrf.mxu1  ;;  %v10362_v63 = vld [vmem:[%s16653_s5 + $0x5a8] ss:$16 sps:$4 sm:$0xff]  }
 0x454   : > { %v14001_v21 = vpop.f32.mrf.mxu0  ;;  %5824 = vmatmul.mubr.bf16.gmra.mxu0 %v10351_v34  ;;  %10992 = vtanh.f32 %v6395_v56 }
 0x455   : > { %v13999_v35 = vpop.eup %10986  ;;  %v6397_v50 = vpop.f32.mrf.mxu1  ;;  %9440 = vmatpush3.bf16.msra.mxu0 %v16914_v43  ;;  %5831 = vmatprep.mubr.bf16.mxu0 %v10359_v53  ;;  %v5573_v53 = vadd.f32 %v13794_v28, %v16920_v62  ;;  %v10366_v28 = vld [vmem:[%s16653_s5 + $0x5cc] ss:$16 sps:$4 sm:$0xff]   ;;  %v10363_v43 = vld [vmem:[%s16653_s5 + $0x6c0] ss:$16 sps:$4 sm:$0xff]  }
 0x456   : > { %16913 = vst [vmem:[#allocation19_spill] sm:$0xff] %v13999_v35  ;;  %v6398_v11 = vadd.f32 %v6397_v50, %v5565_v1  ;;  %9441 = vmatprep.subr.bf16.mxu0 %v16915_v4  ;;  %v5635_v60 = vpop.f32.mrf.mxu0  ;;  %v16925_v4 = vpack.c.bf16 %v13564_v51, %v13560_v33 }
 0x457   : > { %v6399_v5 = vpop.f32.mrf.mxu1 }
 0x458   : > { %10994 = vtanh.f32 %v6398_v11  ;;  %v14019_v16 = vpop.f32.mrf.mxu0  ;;  %6593 = vmatmul.mubr.bf16.gmra.mxu1 %v10356_v27  ;;  %v16924_v27 = vld [vmem:[#allocation54_spill] sm:$0xff] }
 0x459   : > { %v6402_v58 = vpop.f32.mrf.mxu1  ;;  %9442 = vmatpush3.bf16.msra.mxu0 %v16917_v42  ;;  %9236 = vmatprep.mubr.msk.bf16.mxu1 %vm5074_vm4, %v10360_v54  ;;  %v14034_v56 = vpop.eup %10988  ;;  %v5578_v11 = vadd.f32 %v13809_v25, %v16924_v27 }
 0x45a   : > { %v6403_v40 = vadd.f32 %v6402_v58, %v5570_v22  ;;  %9443 = vmatprep.subr.bf16.mxu0 %v16918_v47  ;;  %v5638_v6 = vpop.f32.mrf.mxu0  ;;  %16919 = vst [vmem:[#allocation16_spill] sm:$0xff] %v14034_v56  ;;  %v5581_v22 = vadd.f32 %v13821_v37, %v16928_v0  ;;  %v16931_v47 = vld [vmem:[#allocation50_spill] sm:$0xff]  ;;  %v10383_v0 = vld [vmem:[%s16653_s5 + $0x724] ss:$16 sps:$4 sm:$0xff]  }
 0x45b   : > { %v6404_v34 = vpop.f32.mrf.mxu1  ;;  %v5586_v6 = vadd.f32 %v13836_v59, %v16931_v47  ;;  %v16933_v59 = vld [vmem:[#allocation51_spill] sm:$0xff] }
 0x45c   : > { %v14040_v24 = vpop.f32.mrf.mxu0  ;;  %5832 = vmatmul.mubr.bf16.gmra.mxu0 %v10357_v49  ;;  %10996 = vtanh.f32 %v6403_v40  ;;  %v10368_v49 = vld [vmem:[%s16653_s5 + $0x5c8] ss:$16 sps:$4 sm:$0xff]  }
 0x45d   : > { %v14038_v7 = vpop.eup %10990  ;;  %v6405_v32 = vpop.f32.mrf.mxu1  ;;  %9444 = vmatpush3.bf16.msra.mxu0 %v16922_v13  ;;  %5839 = vmatprep.mubr.bf16.mxu0 %v10365_v8  ;;  %v5589_v13 = vadd.f32 %v13848_v9, %v16933_v59  ;;  %v10381_v59 = vld [vmem:[%s16653_s5 + $0x720] ss:$16 sps:$4 sm:$0xff]  }
 0x45e   : > { %16921 = vst [vmem:[#allocation3_spill] sm:$0xff] %v14038_v7  ;;  %v6406_v52 = vadd.f32 %v6405_v32, %v5573_v53  ;;  %9445 = vmatprep.subr.bf16.mxu0 %v16923_v44  ;;  %v5643_v1 = vpop.f32.mrf.mxu0  ;;  %v10377_v53 = vld [vmem:[%s16653_s5 + $0x704] ss:$16 sps:$4 sm:$0xff]  }
 0x45f   : > { %v6407_v50 = vpop.f32.mrf.mxu1 }
 0x460   : > { %10998 = vtanh.f32 %v6406_v52  ;;  %v14058_v41 = vpop.f32.mrf.mxu0  ;;  %6601 = vmatmul.mubr.bf16.gmra.mxu1 %v10362_v63  ;;  %v10374_v50 = vld [vmem:[%s16653_s5 + $0x5e8] ss:$16 sps:$4 sm:$0xff]  }
 0x461   : > { %v6410_v36 = vpop.f32.mrf.mxu1  ;;  %9446 = vmatpush3.bf16.msra.mxu0 %v16925_v4  ;;  %9237 = vmatprep.mubr.msk.bf16.mxu1 %vm5074_vm4, %v10366_v28  ;;  %v14073_v5 = vpop.eup %10992 }
 0x462   : > { %v6411_v54 = vadd.f32 %v6410_v36, %v5578_v11  ;;  %9447 = vmatprep.subr.bf16.mxu0 %v16926_v20  ;;  %v5646_v25 = vpop.f32.mrf.mxu0  ;;  %16927 = vst [vmem:[#allocation6_spill] sm:$0xff] %v14073_v5  ;;  %v10378_v11 = vld [vmem:[%s16653_s5 + $0x60c] ss:$16 sps:$4 sm:$0xff]  }
 0x463   : > { %v6412_v60 = vpop.f32.mrf.mxu1  ;;  %v10375_v25 = vld [vmem:[%s16653_s5 + $0x700] ss:$16 sps:$4 sm:$0xff]  }
 0x464   : > { %v14079_v33 = vpop.f32.mrf.mxu0  ;;  %5840 = vmatmul.mubr.bf16.gmra.mxu0 %v10363_v43  ;;  %11000 = vtanh.f32 %v6411_v54  ;;  %v16935_v54 = vld [vmem:[#allocation46_spill] sm:$0xff] }
 0x465   : > { %v14077_v58 = vpop.eup %10994  ;;  %v6413_v51 = vpop.f32.mrf.mxu1  ;;  %9448 = vmatpush3.bf16.msra.mxu0 %v16930_v15  ;;  %5847 = vmatprep.mubr.bf16.mxu0 %v10371_v38  ;;  %v5594_v4 = vadd.f32 %v13863_v14, %v16935_v54  ;;  %v16937_v14 = vld [vmem:[#allocation47_spill] sm:$0xff] }
 0x466   : > { %16929 = vst [vmem:[#allocation4_spill] sm:$0xff] %v14077_v58  ;;  %v6414_v40 = vadd.f32 %v6413_v51, %v5581_v22  ;;  %v5651_v42 = vpop.f32.mrf.mxu0 }
 0x467   : > { %v6415_v8 = vpop.f32.mrf.mxu1 }
 0x468   : > { %11002 = vtanh.f32 %v6414_v40  ;;  %v14094_v34 = vpop.f32.mrf.mxu0  ;;  %6609 = vmatmul.mubr.bf16.gmra.mxu1 %v10368_v49  ;;  %v5597_v40 = vadd.f32 %v13875_v23, %v16937_v14  ;;  %v10380_v8 = vld [vmem:[%s16653_s5 + $0x608] ss:$16 sps:$4 sm:$0xff]  }
 0x469   : > { %v6418_v62 = vpop.f32.mrf.mxu1  ;;  %9238 = vmatprep.mubr.msk.bf16.mxu1 %vm5074_vm4, %v10372_v55  ;;  %v14103_v52 = vpop.eup %10996 }
 0x46a   : > { %v6419_v19 = vadd.f32 %v6418_v62, %v5586_v6  ;;  %v5654_v32 = vpop.f32.mrf.mxu0  ;;  %16932 = vst [vmem:[#allocation5_spill] sm:$0xff] %v14103_v52  ;;  %v10384_v6 = vld [vmem:[%s16653_s5 + $0x62c] ss:$16 sps:$4 sm:$0xff]  }
 0x46b   : > { %v6420_v63 = vpop.f32.mrf.mxu1 }
 0x46c   : > { %v14109_v44 = vpop.f32.mrf.mxu0  ;;  %5848 = vmatmul.mubr.bf16.gmra.mxu0 %v10369_v61  ;;  %11004 = vtanh.f32 %v6419_v19  ;;  %v16939_v19 = vld [vmem:[#allocation72_spill] sm:$0xff] }
 0x46d   : > { %v14107_v28 = vpop.eup %10998  ;;  %v6421_v1 = vpop.f32.mrf.mxu1  ;;  %5855 = vmatprep.mubr.bf16.mxu0 %v10377_v53  ;;  %v5602_v53 = vadd.f32 %v13890_v31, %v16939_v19  ;;  %v16940_v31 = vld [vmem:[#allocation73_spill] sm:$0xff] }
 0x46e   : > { %16934 = vst [vmem:[#allocation8_spill] sm:$0xff] %v14107_v28  ;;  %v6422_v27 = vadd.f32 %v6421_v1, %v5589_v13  ;;  %v5659_v9 = vpop.f32.mrf.mxu0  ;;  %v10389_v1 = vld [vmem:[%s16653_s5 + $0x744] ss:$16 sps:$4 sm:$0xff]  }
 0x46f   : > { %v6423_v43 = vpop.f32.mrf.mxu1  ;;  %v5605_v9 = vadd.f32 %v13902_v2, %v16940_v31 }
 0x470   : > { %11006 = vtanh.f32 %v6422_v27  ;;  %v14121_v38 = vpop.f32.mrf.mxu0  ;;  %6617 = vmatmul.mubr.bf16.gmra.mxu1 %v10374_v50 }
 0x471   : > { %v6426_v20 = vpop.f32.mrf.mxu1  ;;  %9239 = vmatprep.mubr.msk.bf16.mxu1 %vm5074_vm4, %v10378_v11  ;;  %v14130_v49 = vpop.eup %11000 }
 0x472   : > { %v6427_v60 = vadd.f32 %v6426_v20, %v5594_v4  ;;  %v5662_v22 = vpop.f32.mrf.mxu0  ;;  %16936 = vst [vmem:[#allocation7_spill] sm:$0xff] %v14130_v49  ;;  %v10386_v20 = vld [vmem:[%s16653_s5 + $0x628] ss:$16 sps:$4 sm:$0xff]  }
 0x473   : > { %v6428_v51 = vpop.f32.mrf.mxu1 }
 0x474   : > { %v14136_v55 = vpop.f32.mrf.mxu0  ;;  %5856 = vmatmul.mubr.bf16.gmra.mxu0 %v10375_v25  ;;  %11008 = vtanh.f32 %v6427_v60  ;;  %v10390_v60 = vld [vmem:[%s16653_s5 + $0x64c] ss:$16 sps:$4 sm:$0xff]  }
 0x475   : > { %v14134_v15 = vpop.eup %11002  ;;  %v6429_v42 = vpop.f32.mrf.mxu1  ;;  %5863 = vmatprep.mubr.bf16.mxu0 %v10383_v0  ;;  %v16941_v51 = vld [vmem:[#allocation68_spill] sm:$0xff] }
 0x476   : > { %16938 = vst [vmem:[#allocation10_spill] sm:$0xff] %v14134_v15  ;;  %v6430_v47 = vadd.f32 %v6429_v42, %v5597_v40  ;;  %v5667_v23 = vpop.f32.mrf.mxu0  ;;  %v5610_v14 = vadd.f32 %v13913_v46, %v16941_v51  ;;  %v16942_v46 = vld [vmem:[#allocation69_spill] sm:$0xff] }
 0x477   : > { %v6431_v61 = vpop.f32.mrf.mxu1  ;;  %v10401_v51 = vld [vmem:[%s16653_s5 + $0x784] ss:$16 sps:$4 sm:$0xff]  }
 0x478   : > { %11010 = vtanh.f32 %v6430_v47  ;;  %v14148_v32 = vpop.f32.mrf.mxu0  ;;  %6625 = vmatmul.mubr.bf16.gmra.mxu1 %v10380_v8  ;;  %v10387_v8 = vld [vmem:[%s16653_s5 + $0x740] ss:$16 sps:$4 sm:$0xff]  }
 0x479   : > { %v6434_v63 = vpop.f32.mrf.mxu1  ;;  %9240 = vmatprep.mubr.msk.bf16.mxu1 %vm5074_vm4, %v10384_v6  ;;  %v14157_v11 = vpop.eup %11004  ;;  %v10395_v6 = vld [vmem:[%s16653_s5 + $0x764] ss:$16 sps:$4 sm:$0xff]  }
 0x47a   : > { %v6435_v13 = vadd.f32 %v6434_v63, %v5602_v53  ;;  %v5670_v50 = vpop.f32.mrf.mxu0  ;;  %v5613_v53 = vadd.f32 %v13923_v39, %v16942_v46  ;;  %v10398_v46 = vld [vmem:[%s16653_s5 + $0x668] ss:$16 sps:$4 sm:$0xff]  }
 0x47b   : > { %v6436_v27 = vpop.f32.mrf.mxu1 }
 0x47c   : > { %v14163_v54 = vpop.f32.mrf.mxu0  ;;  %5864 = vmatmul.mubr.bf16.gmra.mxu0 %v10381_v59  ;;  %11012 = vtanh.f32 %v6435_v13  ;;  %v10396_v27 = vld [vmem:[%s16653_s5 + $0x66c] ss:$16 sps:$4 sm:$0xff]  }
 0x47d   : > { %v14161_v43 = vpop.eup %11006  ;;  %v6437_v4 = vpop.f32.mrf.mxu1  ;;  %5871 = vmatprep.mubr.bf16.mxu0 %v10389_v1  ;;  %v10392_v1 = vld [vmem:[%s16653_s5 + $0x648] ss:$16 sps:$4 sm:$0xff]  }
 0x47e   : > { %v6438_v25 = vadd.f32 %v6437_v4, %v5605_v9  ;;  %v5675_v2 = vpop.f32.mrf.mxu0  ;;  %v16943_v4 = vld [vmem:[#allocation64_spill] sm:$0xff] }
 0x47f   : > { %v6439_v22 = vpop.f32.mrf.mxu1  ;;  %v10393_v2 = vld [vmem:[%s16653_s5 + $0x760] ss:$16 sps:$4 sm:$0xff]  }
 0x480   : > { %11014 = vtanh.f32 %v6438_v25  ;;  %v14175_v40 = vpop.f32.mrf.mxu0  ;;  %6633 = vmatmul.mubr.bf16.gmra.mxu1 %v10386_v20  ;;  %v5618_v20 = vadd.f32 %v13934_v17, %v16943_v4  ;;  %v16945_v17 = vld [vmem:[#allocation65_spill] sm:$0xff] }
 0x481   : > { %v6442_v42 = vpop.f32.mrf.mxu1  ;;  %9241 = vmatprep.mubr.msk.bf16.mxu1 %vm5074_vm4, %v10390_v60  ;;  %v14184_v19 = vpop.eup %11008 }
 0x482   : > { %v6443_v47 = vadd.f32 %v6442_v42, %v5610_v14  ;;  %v5678_v23 = vpop.f32.mrf.mxu0 }
 0x483   : > { %v6444_v61 = vpop.f32.mrf.mxu1 }
 0x484   : > { %v14190_v59 = vpop.f32.mrf.mxu0  ;;  %5872 = vmatmul.mubr.bf16.gmra.mxu0 %v10387_v8  ;;  %11016 = vtanh.f32 %v6443_v47  ;;  %v5621_v47 = vadd.f32 %v13944_v10, %v16945_v17 }
 0x485   : > { %v14188_v63 = vpop.eup %11010  ;;  %v6445_v13 = vpop.f32.mrf.mxu1  ;;  %5879 = vmatprep.mubr.bf16.mxu0 %v10395_v6 }
 0x486   : > { %v6446_v50 = vadd.f32 %v6445_v13, %v5613_v53  ;;  %v5683_v39 = vpop.f32.mrf.mxu0  ;;  %v10402_v13 = vld [vmem:[%s16653_s5 + $0x68c] ss:$16 sps:$4 sm:$0xff]  }
 0x487   : > { %v6447_v9 = vpop.f32.mrf.mxu1 }
 0x488   : > { %11018 = vtanh.f32 %v6446_v50  ;;  %v14202_v25 = vpop.f32.mrf.mxu0  ;;  %6641 = vmatmul.mubr.bf16.gmra.mxu1 %v10392_v1 }
 0x489   : > { %v6450_v60 = vpop.f32.mrf.mxu1  ;;  %9242 = vmatprep.mubr.msk.bf16.mxu1 %vm5074_vm4, %v10396_v27  ;;  %v14211_v8 = vpop.eup %11012  ;;  %v16947_v27 = vld [vmem:[#allocation60_spill] sm:$0xff] }
 0x48a   : > { %v6451_v22 = vadd.f32 %v6450_v60, %v5618_v20  ;;  %v5686_v14 = vpop.f32.mrf.mxu0  ;;  %16944 = vst [vmem:[#allocation9_spill] sm:$0xff] %v14211_v8  ;;  %v5626_v39 = vadd.f32 %v13962_v29, %v16947_v27  ;;  %v10399_v20 = vld [vmem:[%s16653_s5 + $0x780] ss:$16 sps:$4 sm:$0xff]   ;;  %v16951_v27 = vld [vmem:[#allocation56_spill] sm:$0xff] }
 0x48b   : > { %v6452_v42 = vpop.f32.mrf.mxu1  ;;  %v16949_v29 = vld [vmem:[#allocation61_spill] sm:$0xff] }
 0x48c   : > { %v14217_v23 = vpop.f32.mrf.mxu0  ;;  %5880 = vmatmul.mubr.bf16.gmra.mxu0 %v10393_v2  ;;  %11020 = vtanh.f32 %v6451_v22  ;;  %v10407_v2 = vld [vmem:[%s16653_s5 + $0x7a4] ss:$16 sps:$4 sm:$0xff]   ;;  %v5629_v42 = vadd.f32 %v13980_v57, %v16949_v29 }
 0x48d   : > { %v14215_v6 = vpop.eup %11014  ;;  %v6453_v61 = vpop.f32.mrf.mxu1  ;;  %5887 = vmatprep.mubr.bf16.mxu0 %v10401_v51 }
 0x48e   : > { %16946 = vst [vmem:[#allocation12_spill] sm:$0xff] %v14215_v6  ;;  %v6454_v53 = vadd.f32 %v6453_v61, %v5621_v47  ;;  %v5691_v10 = vpop.f32.mrf.mxu0 }
 0x48f   : > { %v6455_v50 = vpop.f32.mrf.mxu1 }
 0x490   : > { %11022 = vtanh.f32 %v6454_v53  ;;  %v14229_v9 = vpop.f32.mrf.mxu0  ;;  %6649 = vmatmul.mubr.bf16.gmra.mxu1 %v10398_v46  ;;  %v10404_v46 = vld [vmem:[%s16653_s5 + $0x688] ss:$16 sps:$4 sm:$0xff]  }
 0x491   : > { %v6458_v4 = vpop.f32.mrf.mxu1  ;;  %9243 = vmatprep.mubr.msk.bf16.mxu1 %vm5074_vm4, %v10402_v13  ;;  %v14238_v14 = vpop.eup %11016  ;;  %v10408_v13 = vld [vmem:[%s16653_s5 + $0x6ac] ss:$16 sps:$4 sm:$0xff]  }
 0x492   : > { %v6459_v60 = vadd.f32 %v6458_v4, %v5626_v39  ;;  %v5694_v22 = vpop.f32.mrf.mxu0  ;;  %16948 = vst [vmem:[#allocation11_spill] sm:$0xff] %v14238_v14  ;;  %v5634_v39 = vadd.f32 %v14001_v21, %v16951_v27  ;;  %v16953_v21 = vld [vmem:[#allocation57_spill] sm:$0xff]  ;;  %v10414_v27 = vld [vmem:[%s16653_s5 + $0x6cc] ss:$16 sps:$4 sm:$0xff]  }
 0x493   : > { %v6460_v51 = vpop.f32.mrf.mxu1 }
 0x494   : > { %v14244_v47 = vpop.f32.mrf.mxu0  ;;  %5888 = vmatmul.mubr.bf16.gmra.mxu0 %v10399_v20  ;;  %11024 = vtanh.f32 %v6459_v60  ;;  %v10413_v60 = vld [vmem:[%s16653_s5 + $0x7c4] ss:$16 sps:$4 sm:$0xff]  }
 0x495   : > { %v14242_v17 = vpop.eup %11018  ;;  %v6461_v61 = vpop.f32.mrf.mxu1  ;;  %5895 = vmatprep.mubr.bf16.mxu0 %v10407_v2  ;;  %v10405_v2 = vld [vmem:[%s16653_s5 + $0x7a0] ss:$16 sps:$4 sm:$0xff]  }
 0x496   : > { %16950 = vst [vmem:[#allocation15_spill] sm:$0xff] %v14242_v17  ;;  %v6462_v53 = vadd.f32 %v6461_v61, %v5629_v42  ;;  %v5699_v57 = vpop.f32.mrf.mxu0  ;;  %v5637_v61 = vadd.f32 %v14019_v16, %v16953_v21 }
 0x497   : > { %v6463_v50 = vpop.f32.mrf.mxu1 }
 0x498   : > { %11026 = vtanh.f32 %v6462_v53  ;;  %v14256_v4 = vpop.f32.mrf.mxu0  ;;  %6657 = vmatmul.mubr.bf16.gmra.mxu1 %v10404_v46 }
 0x499   : > { %v6466_v20 = vpop.f32.mrf.mxu1  ;;  %9244 = vmatprep.mubr.msk.bf16.mxu1 %vm5074_vm4, %v10408_v13  ;;  %v14265_v42 = vpop.eup %11020  ;;  %v10410_v13 = vld [vmem:[%s16653_s5 + $0x6a8] ss:$16 sps:$4 sm:$0xff]  }
 0x49a   : > { %v6467_v22 = vadd.f32 %v6466_v20, %v5634_v39  ;;  %v5702_v51 = vpop.f32.mrf.mxu0  ;;  %16952 = vst [vmem:[#allocation14_spill] sm:$0xff] %v14265_v42 }
 0x49b   : > { %v6468_v29 = vpop.f32.mrf.mxu1  ;;  %v16955_v51 = vld [vmem:[#allocation52_spill] sm:$0xff] }
 0x49c   : > { %v14271_v46 = vpop.f32.mrf.mxu0  ;;  %5896 = vmatmul.mubr.bf16.gmra.mxu0 %v10405_v2  ;;  %11028 = vtanh.f32 %v6467_v22  ;;  %v5642_v2 = vadd.f32 %v14040_v24, %v16955_v51  ;;  %v10419_v22 = vld [vmem:[%s16653_s5 + $0x7e4] ss:$16 sps:$4 sm:$0xff]  }
 0x49d   : > { %v14269_v53 = vpop.eup %11022  ;;  %v6469_v57 = vpop.f32.mrf.mxu1  ;;  %5903 = vmatprep.mubr.bf16.mxu0 %v10413_v60  ;;  %v10411_v60 = vld [vmem:[%s16653_s5 + $0x7c0] ss:$16 sps:$4 sm:$0xff]  }
 0x49e   : > { %16954 = vst [vmem:[#allocation21_spill] sm:$0xff] %v14269_v53  ;;  %v6470_v50 = vadd.f32 %v6469_v57, %v5637_v61  ;;  %v5707_v16 = vpop.f32.mrf.mxu0  ;;  %v16957_v24 = vld [vmem:[#allocation53_spill] sm:$0xff] }
 0x49f   : > { %v6471_v20 = vpop.f32.mrf.mxu1 }
 0x4a0   : > { %11030 = vtanh.f32 %v6470_v50  ;;  %v14283_v29 = vpop.f32.mrf.mxu0  ;;  %6665 = vmatmul.mubr.bf16.gmra.mxu1 %v10410_v13  ;;  %v5645_v50 = vadd.f32 %v14058_v41, %v16957_v24  ;;  %v16959_v24 = vld [vmem:[#allocation48_spill] sm:$0xff] }
 0x4a1   : > { %v6474_v21 = vpop.f32.mrf.mxu1  ;;  %9245 = vmatprep.mubr.msk.bf16.mxu1 %vm5074_vm4, %v10414_v27  ;;  %v14292_v20 = vpop.eup %11024  ;;  %v10416_v27 = vld [vmem:[%s16653_s5 + $0x6c8] ss:$16 sps:$4 sm:$0xff]  }
 0x4a2   : > { %v6475_v61 = vadd.f32 %v6474_v21, %v5642_v2  ;;  %v5710_v57 = vpop.f32.mrf.mxu0  ;;  %16956 = vst [vmem:[#allocation20_spill] sm:$0xff] %v14292_v20  ;;  %v10420_v21 = vld [vmem:[%s16653_s5 + $0x6ec] ss:$16 sps:$4 sm:$0xff]  }
 0x4a3   : > { %v6476_v16 = vpop.f32.mrf.mxu1 }
 0x4a4   : > { %v14298_v13 = vpop.f32.mrf.mxu0  ;;  %5904 = vmatmul.mubr.bf16.gmra.mxu0 %v10411_v60  ;;  %11032 = vtanh.f32 %v6475_v61  ;;  %v5650_v60 = vadd.f32 %v14079_v33, %v16959_v24  ;;  %v10425_v61 = vld [vmem:[%s16653_s5 + $0x804] ss:$16 sps:$4 sm:$0xff]  }
 0x4a5   : > { %v14296_v51 = vpop.eup %11026  ;;  %v6477_v48 = vpop.f32.mrf.mxu1  ;;  %5911 = vmatprep.mubr.bf16.mxu0 %v10419_v22  ;;  %v16961_v33 = vld [vmem:[#allocation49_spill] sm:$0xff] }
 0x4a6   : > { %16958 = vst [vmem:[#allocation22_spill] sm:$0xff] %v14296_v51  ;;  %v6478_v2 = vadd.f32 %v6477_v48, %v5645_v50  ;;  %v5715_v41 = vpop.f32.mrf.mxu0  ;;  %v10417_v48 = vld [vmem:[%s16653_s5 + $0x7e0] ss:$16 sps:$4 sm:$0xff]  }
 0x4a7   : > { %v6479_v16 = vpop.f32.mrf.mxu1 }
 0x4a8   : > { %11034 = vtanh.f32 %v6478_v2  ;;  %v14310_v1 = vpop.f32.mrf.mxu0  ;;  %6673 = vmatmul.mubr.bf16.gmra.mxu1 %v10416_v27  ;;  %v5653_v2 = vadd.f32 %v14094_v34, %v16961_v33  ;;  %v16963_v33 = vld [vmem:[#allocation44_spill] sm:$0xff] }
 0x4a9   : > { %v6482_v30 = vpop.f32.mrf.mxu1  ;;  %9246 = vmatprep.mubr.msk.bf16.mxu1 %vm5074_vm4, %v10420_v21  ;;  %v14319_v16 = vpop.eup %11028 }
 0x4aa   : > { %v6483_v22 = vadd.f32 %v6482_v30, %v5650_v60  ;;  %v5718_v50 = vpop.f32.mrf.mxu0  ;;  %16960 = vst [vmem:[#allocation23_spill] sm:$0xff] %v14319_v16  ;;  %v10422_v30 = vld [vmem:[%s16653_s5 + $0x6e8] ss:$16 sps:$4 sm:$0xff]   ;;  %v10426_v60 = vld [vmem:[%s16653_s5 + $0x70c] ss:$16 sps:$4 sm:$0xff]  }
 0x4ab   : > { %v6484_v41 = vpop.f32.mrf.mxu1 }
 0x4ac   : > { %v14325_v27 = vpop.f32.mrf.mxu0  ;;  %5912 = vmatmul.mubr.bf16.gmra.mxu0 %v10417_v48  ;;  %11036 = vtanh.f32 %v6483_v22  ;;  %v5658_v48 = vadd.f32 %v14109_v44, %v16963_v33  ;;  %v10431_v22 = vld [vmem:[%s16653_s5 + $0x824] ss:$16 sps:$4 sm:$0xff]  }
 0x4ad   : > { %v14323_v24 = vpop.eup %11030  ;;  %v6485_v10 = vpop.f32.mrf.mxu1  ;;  %5919 = vmatprep.mubr.bf16.mxu0 %v10425_v61  ;;  %v16964_v44 = vld [vmem:[#allocation45_spill] sm:$0xff] }
 0x4ae   : > { %16962 = vst [vmem:[#allocation24_spill] sm:$0xff] %v14323_v24  ;;  %v6486_v21 = vadd.f32 %v6485_v10, %v5653_v2  ;;  %v5723_v34 = vpop.f32.mrf.mxu0  ;;  %v10423_v10 = vld [vmem:[%s16653_s5 + $0x800] ss:$16 sps:$4 sm:$0xff]  }
 0x4af   : > { %v6487_v41 = vpop.f32.mrf.mxu1 }
 0x4b0   : > { %11038 = vtanh.f32 %v6486_v21  ;;  %v14337_v18 = vpop.f32.mrf.mxu0  ;;  %6681 = vmatmul.mubr.bf16.gmra.mxu1 %v10422_v30  ;;  %v5661_v41 = vadd.f32 %v14121_v38, %v16964_v44 }
 0x4b1   : > { %v6490_v39 = vpop.f32.mrf.mxu1  ;;  %9247 = vmatprep.mubr.msk.bf16.mxu1 %vm5074_vm4, %v10426_v60  ;;  %v14346_v34 = vpop.eup %11032  ;;  %v10428_v60 = vld [vmem:[%s16653_s5 + $0x708] ss:$16 sps:$4 sm:$0xff]  }
 0x4b2   : > { %v6491_v61 = vadd.f32 %v6490_v39, %v5658_v48  ;;  %v5726_v2 = vpop.f32.mrf.mxu0  ;;  %v10432_v39 = vld [vmem:[%s16653_s5 + $0x72c] ss:$16 sps:$4 sm:$0xff]  }
 0x4b3   : > { %v6492_v21 = vpop.f32.mrf.mxu1 }
 0x4b4   : > { %v14352_v30 = vpop.f32.mrf.mxu0  ;;  %5920 = vmatmul.mubr.bf16.gmra.mxu0 %v10423_v10  ;;  %11040 = vtanh.f32 %v6491_v61  ;;  %v16965_v21 = vld [vmem:[#allocation106_spill] sm:$0xff]  ;;  %v10437_v61 = vld [vmem:[%s16653_s5 + $0x844] ss:$16 sps:$4 sm:$0xff]  }
 0x4b5   : > { %v14350_v33 = vpop.eup %11034  ;;  %v6493_v37 = vpop.f32.mrf.mxu1  ;;  %5927 = vmatprep.mubr.bf16.mxu0 %v10431_v22  ;;  %v5666_v10 = vadd.f32 %v14136_v55, %v16965_v21  ;;  %v16966_v55 = vld [vmem:[#allocation107_spill] sm:$0xff] }
 0x4b6   : > { %v6494_v57 = vadd.f32 %v6493_v37, %v5661_v41  ;;  %v5731_v38 = vpop.f32.mrf.mxu0  ;;  %v10429_v37 = vld [vmem:[%s16653_s5 + $0x820] ss:$16 sps:$4 sm:$0xff]  }
 0x4b7   : > { %v6495_v2 = vpop.f32.mrf.mxu1 }
 0x4b8   : > { %11042 = vtanh.f32 %v6494_v57  ;;  %v14364_v44 = vpop.f32.mrf.mxu0  ;;  %6689 = vmatmul.mubr.bf16.gmra.mxu1 %v10428_v60  ;;  %v5669_v57 = vadd.f32 %v14148_v32, %v16966_v55  ;;  %v16967_v55 = vld [vmem:[#allocation102_spill] sm:$0xff] }
 0x4b9   : > { %v6498_v36 = vpop.f32.mrf.mxu1  ;;  %9248 = vmatprep.mubr.msk.bf16.mxu1 %vm5074_vm4, %v10432_v39  ;;  %v14373_v2 = vpop.eup %11036 }
 0x4ba   : > { %v6499_v22 = vadd.f32 %v6498_v36, %v5666_v10  ;;  %v5734_v41 = vpop.f32.mrf.mxu0  ;;  %v10434_v36 = vld [vmem:[%s16653_s5 + $0x728] ss:$16 sps:$4 sm:$0xff]   ;;  %v10438_v10 = vld [vmem:[%s16653_s5 + $0x74c] ss:$16 sps:$4 sm:$0xff]  }
 0x4bb   : > { %v6500_v38 = vpop.f32.mrf.mxu1 }
 0x4bc   : > { %v14379_v60 = vpop.f32.mrf.mxu0  ;;  %5928 = vmatmul.mubr.bf16.gmra.mxu0 %v10429_v37  ;;  %11044 = vtanh.f32 %v6499_v22  ;;  %v5674_v37 = vadd.f32 %v14163_v54, %v16967_v55  ;;  %v10443_v22 = vld [vmem:[%s16653_s5 + $0x864] ss:$16 sps:$4 sm:$0xff]  }
 0x4bd   : > { %v14377_v21 = vpop.eup %11038  ;;  %v6501_v50 = vpop.f32.mrf.mxu1  ;;  %5935 = vmatprep.mubr.bf16.mxu0 %v10437_v61  ;;  %v16968_v54 = vld [vmem:[#allocation103_spill] sm:$0xff] }
 0x4be   : > { %v6502_v39 = vadd.f32 %v6501_v50, %v5669_v57  ;;  %v5739_v32 = vpop.f32.mrf.mxu0  ;;  %v10435_v50 = vld [vmem:[%s16653_s5 + $0x840] ss:$16 sps:$4 sm:$0xff]  }
 0x4bf   : > { %v6503_v38 = vpop.f32.mrf.mxu1 }
 0x4c0   : > { %11046 = vtanh.f32 %v6502_v39  ;;  %v14391_v62 = vpop.f32.mrf.mxu0  ;;  %6697 = vmatmul.mubr.bf16.gmra.mxu1 %v10434_v36  ;;  %v5677_v39 = vadd.f32 %v14175_v40, %v16968_v54  ;;  %v16969_v40 = vld [vmem:[#allocation98_spill] sm:$0xff] }
 0x4c1   : > { %v6506_v48 = vpop.f32.mrf.mxu1  ;;  %9249 = vmatprep.mubr.msk.bf16.mxu1 %vm5074_vm4, %v10438_v10  ;;  %v11041_v38 = vpop.eup %11040  ;;  %v5682_v54 = vadd.f32 %v14190_v59, %v16969_v40 }
 0x4c2   : > { %v6507_v61 = vadd.f32 %v6506_v48, %v5674_v37  ;;  %v5742_v57 = vpop.f32.mrf.mxu0  ;;  %v10440_v48 = vld [vmem:[%s16653_s5 + $0x748] ss:$16 sps:$4 sm:$0xff]  }
 0x4c3   : > { %v6508_v32 = vpop.f32.mrf.mxu1  ;;  %v10444_v57 = vld [vmem:[%s16653_s5 + $0x76c] ss:$16 sps:$4 sm:$0xff]  }
 0x4c4   : > { %v14402_v0 = vpop.f32.mrf.mxu0  ;;  %5936 = vmatmul.mubr.bf16.gmra.mxu0 %v10435_v50  ;;  %11048 = vtanh.f32 %v6507_v61 }
 0x4c5   : > { %v11043_v55 = vpop.eup %11042  ;;  %v6509_v36 = vpop.f32.mrf.mxu1  ;;  %5943 = vmatprep.mubr.bf16.mxu0 %v10443_v22  ;;  %v10441_v22 = vld [vmem:[%s16653_s5 + $0x860] ss:$16 sps:$4 sm:$0xff]  }
 0x4c6   : > { %v6510_v10 = vadd.f32 %v6509_v36, %v5677_v39  ;;  %v7272_v37 = vpack.c.bf16 %v11043_v55, %v11041_v38  ;;  %v5747_v32 = vpop.f32.mrf.mxu0  ;;  %v16971_v55 = vld [vmem:[#allocation99_spill] sm:$0xff] }
 0x4c7   : > { %v6511_v41 = vpop.f32.mrf.mxu1  ;;  %v5685_v36 = vadd.f32 %v14202_v25, %v16971_v55  ;;  %v10450_v32 = vld [vmem:[%s16653_s5 + $0x78c] ss:$16 sps:$4 sm:$0xff]  }
 0x4c8   : > { %11050 = vtanh.f32 %v6510_v10  ;;  %9491 = vmatprep.subr.bf16.mxu0 %v7272_v37  ;;  %v14412_v50 = vpop.f32.mrf.mxu0  ;;  %6705 = vmatmul.mubr.bf16.gmra.mxu1 %v10440_v48  ;;  %v10449_v41 = vld [vmem:[%s16653_s5 + $0x884] ss:$16 sps:$4 sm:$0xff]  }
 0x4c9   : > { %v6514_v31 = vpop.f32.mrf.mxu1  ;;  %9250 = vmatprep.mubr.msk.bf16.mxu1 %vm5074_vm4, %v10444_v57  ;;  %v14421_v59 = vpop.eup %11044 }
 0x4ca   : > { %v6515_v38 = vadd.f32 %v6514_v31, %v5682_v54  ;;  %v5750_v61 = vpop.f32.mrf.mxu0  ;;  %16970 = vst [vmem:[#allocation31_spill] sm:$0xff] %v14421_v59  ;;  %v10446_v31 = vld [vmem:[%s16653_s5 + $0x768] ss:$16 sps:$4 sm:$0xff]  }
 0x4cb   : > { %v6516_v39 = vpop.f32.mrf.mxu1  ;;  %v14437_v61 = vpop.permute.xlu1 %2776 }
 0x4cc   : > { %v14427_v48 = vpop.f32.mrf.mxu0  ;;  %5944 = vmatmul.mubr.bf16.gmra.mxu0 %v10441_v22  ;;  %11052 = vtanh.f32 %v6515_v38  ;;  %v16973_v22 = vld [vmem:[#allocation94_spill] sm:$0xff]  ;;  %v10455_v38 = vld [vmem:[%s16653_s5 + $0x8a4] ss:$16 sps:$4 sm:$0xff]  }
 0x4cd   : > { %v14425_v10 = vpop.eup %11046  ;;  %v6517_v37 = vpop.f32.mrf.mxu1  ;;  %5951 = vmatprep.mubr.bf16.mxu0 %v10449_v41  ;;  %v5690_v39 = vadd.f32 %v14217_v23, %v16973_v22  ;;  %v10447_v41 = vld [vmem:[%s16653_s5 + $0x880] ss:$16 sps:$4 sm:$0xff]  }
 0x4ce   : > { %16972 = vst [vmem:[#allocation27_spill] sm:$0xff] %v14425_v10  ;;  %v6518_v57 = vadd.f32 %v6517_v37, %v5685_v36  ;;  %v5755_v25 = vpop.f32.mrf.mxu0  ;;  %v14452_v23 = vpop.permute.xlu0 %2781 }
 0x4cf   : > { %v6519_v54 = vpop.f32.mrf.mxu1 }
 0x4d0   : > { %11054 = vtanh.f32 %v6518_v57  ;;  %v14441_v55 = vpop.f32.mrf.mxu0  ;;  %6713 = vmatmul.mubr.bf16.gmra.mxu1 %v10446_v31  ;;  %v16975_v57 = vld [vmem:[#allocation95_spill] sm:$0xff] }
 0x4d1   : > { %v6522_v36 = vpop.f32.mrf.mxu1  ;;  %9251 = vmatprep.mubr.msk.bf16.mxu1 %vm5074_vm4, %v10450_v32  ;;  %v14450_v40 = vpop.eup %11048  ;;  %v5693_v31 = vadd.f32 %v14229_v9, %v16975_v57  ;;  %v10452_v32 = vld [vmem:[%s16653_s5 + $0x788] ss:$16 sps:$4 sm:$0xff]  }
 0x4d2   : > { %v6523_v37 = vadd.f32 %v6522_v36, %v5690_v39  ;;  %v5758_v25 = vpop.f32.mrf.mxu0  ;;  %16974 = vst [vmem:[#allocation28_spill] sm:$0xff] %v14450_v40  ;;  %v14463_v36 = vpop.permute.xlu1 %2696 }
 0x4d3   : > { %v6524_v54 = vpop.f32.mrf.mxu1 }
 0x4d4   : > { %v14458_v59 = vpop.f32.mrf.mxu0  ;;  %5952 = vmatmul.mubr.bf16.gmra.mxu0 %v10447_v41  ;;  %v10456_v54 = vld [vmem:[%s16653_s5 + $0x7ac] ss:$16 sps:$4 sm:$0xff]   ;;  %11056 = vtanh.f32 %v6523_v37 }
 0x4d5   : > { %v14456_v22 = vpop.eup %11050  ;;  %v6525_v39 = vpop.f32.mrf.mxu1  ;;  %5959 = vmatprep.mubr.bf16.mxu0 %v10455_v38  ;;  %v16977_v41 = vld [vmem:[#allocation90_spill] sm:$0xff]  ;;  %v10453_v38 = vld [vmem:[%s16653_s5 + $0x8a0] ss:$16 sps:$4 sm:$0xff]  }
 0x4d6   : > { %16976 = vst [vmem:[#allocation42_spill] sm:$0xff] %v14456_v22  ;;  %v6526_v25 = vadd.f32 %v6525_v39, %v5693_v31  ;;  %v5763_v57 = vpop.f32.mrf.mxu0  ;;  %v5698_v26 = vadd.f32 %v14244_v47, %v16977_v41  ;;  %v14477_v31 = vpop.permute.xlu0 %2701 }
 0x4d7   : > { %v6527_v10 = vpop.f32.mrf.mxu1  ;;  %v14485_v57 = vpop.permute.xlu1 %2946 }
 0x4d8   : > { %11058 = vtanh.f32 %v6526_v25  ;;  %v14472_v45 = vpop.f32.mrf.mxu0  ;;  %6721 = vmatmul.mubr.bf16.gmra.mxu1 %v10452_v32  ;;  %v10461_v10 = vld [vmem:[%s16653_s5 + $0x8c4] ss:$16 sps:$4 sm:$0xff]   ;;  %16979 = vst [vmem:[#allocation40_spill] sm:$0xff] %v14485_v57 }
 0x4d9   : > { %v6530_v8 = vpop.f32.mrf.mxu1  ;;  %9252 = vmatprep.mubr.msk.bf16.mxu1 %vm5074_vm4, %v10456_v54  ;;  %v14483_v25 = vpop.eup %11052  ;;  %v16980_v32 = vld [vmem:[#allocation91_spill] sm:$0xff] }
 0x4da   : > { %v6531_v39 = vadd.f32 %v6530_v8, %v5698_v26  ;;  %v5766_v37 = vpop.f32.mrf.mxu0  ;;  %16978 = vst [vmem:[#allocation43_spill] sm:$0xff] %v14483_v25  ;;  %v5701_v41 = vadd.f32 %v14256_v4, %v16980_v32  ;;  %v10458_v8 = vld [vmem:[%s16653_s5 + $0x7a8] ss:$16 sps:$4 sm:$0xff]   ;;  %v14501_v22 = vpop.permute.xlu0 %2951 }
 0x4db   : > { %v6532_v47 = vpop.f32.mrf.mxu1  ;;  %v10462_v37 = vld [vmem:[%s16653_s5 + $0x7cc] ss:$16 sps:$4 sm:$0xff]   ;;  %16982 = vst [vmem:[#allocation38_spill] sm:$0xff] %v14501_v22 }
 0x4dc   : > { %v14491_v40 = vpop.f32.mrf.mxu0  ;;  %5960 = vmatmul.mubr.bf16.gmra.mxu0 %v10453_v38  ;;  %11060 = vtanh.f32 %v6531_v39  ;;  %v16983_v38 = vld [vmem:[#allocation86_spill] sm:$0xff]  ;;  %v10467_v39 = vld [vmem:[%s16653_s5 + $0x8e4] ss:$16 sps:$4 sm:$0xff]  }
 0x4dd   : > { %v14489_v9 = vpop.eup %11054  ;;  %v6533_v26 = vpop.f32.mrf.mxu1  ;;  %5967 = vmatprep.mubr.bf16.mxu0 %v10461_v10  ;;  %v5706_v57 = vadd.f32 %v14271_v46, %v16983_v38  ;;  %v10459_v10 = vld [vmem:[%s16653_s5 + $0x8c0] ss:$16 sps:$4 sm:$0xff]  }
 0x4de   : > { %16981 = vst [vmem:[#allocation41_spill] sm:$0xff] %v14489_v9  ;;  %v6534_v54 = vadd.f32 %v6533_v26, %v5701_v41  ;;  %v5771_v4 = vpop.f32.mrf.mxu0  ;;  %v14510_v26 = vpop.permute.xlu1 %2866  ;;  %v16989_v9 = vld [vmem:[#allocation82_spill] sm:$0xff] }
 0x4df   : > { %v6535_v32 = vpop.f32.mrf.mxu1  ;;  %16984 = vst [vmem:[#allocation39_spill] sm:$0xff] %v14510_v26  ;;  %v5714_v12 = vadd.f32 %v14298_v13, %v16989_v9  ;;  %v16991_v9 = vld [vmem:[#allocation83_spill] sm:$0xff] }
 0x4e0   : > { %11062 = vtanh.f32 %v6534_v54  ;;  %v14505_v6 = vpop.f32.mrf.mxu0  ;;  %6729 = vmatmul.mubr.bf16.gmra.mxu1 %v10458_v8  ;;  %v16986_v32 = vld [vmem:[#allocation87_spill] sm:$0xff] }
 0x4e1   : > { %v6538_v41 = vpop.f32.mrf.mxu1  ;;  %9253 = vmatprep.mubr.msk.bf16.mxu1 %vm5074_vm4, %v10462_v37  ;;  %v14516_v54 = vpop.eup %11056  ;;  %v5709_v8 = vadd.f32 %v14283_v29, %v16986_v32 }
 0x4e2   : > { %v6539_v47 = vadd.f32 %v6538_v41, %v5706_v57  ;;  %v5774_v4 = vpop.f32.mrf.mxu0  ;;  %16985 = vst [vmem:[#allocation36_spill] sm:$0xff] %v14516_v54  ;;  %v10464_v57 = vld [vmem:[%s16653_s5 + $0x7c8] ss:$16 sps:$4 sm:$0xff]   ;;  %v14527_v37 = vpop.permute.xlu0 %2871 }
 0x4e3   : > { %v6540_v46 = vpop.f32.mrf.mxu1  ;;  %16988 = vst [vmem:[#allocation34_spill] sm:$0xff] %v14527_v37  ;;  %v10468_v4 = vld [vmem:[%s16653_s5 + $0x7ec] ss:$16 sps:$4 sm:$0xff]  }
 0x4e4   : > { %v14522_v22 = vpop.f32.mrf.mxu0  ;;  %5968 = vmatmul.mubr.bf16.gmra.mxu0 %v10459_v10  ;;  %11064 = vtanh.f32 %v6539_v47  ;;  %v14534_v10 = vpop.permute.xlu1 %2766  ;;  %v10473_v47 = vld [vmem:[%s16653_s5 + $0x904] ss:$16 sps:$4 sm:$0xff]  }
 0x4e5   : > { %v14520_v38 = vpop.eup %11058  ;;  %v6541_v25 = vpop.f32.mrf.mxu1  ;;  %5975 = vmatprep.mubr.bf16.mxu0 %v10467_v39  ;;  %v10465_v39 = vld [vmem:[%s16653_s5 + $0x8e0] ss:$16 sps:$4 sm:$0xff]  }
 0x4e6   : > { %16987 = vst [vmem:[#allocation37_spill] sm:$0xff] %v14520_v38  ;;  %v6542_v41 = vadd.f32 %v6541_v25, %v5709_v8  ;;  %v5779_v46 = vpop.f32.mrf.mxu0  ;;  %v14549_v13 = vpop.permute.xlu0 %2771 }
 0x4e7   : > { %v6543_v32 = vpop.f32.mrf.mxu1 }
 0x4e8   : > { %11066 = vtanh.f32 %v6542_v41  ;;  %v14538_v35 = vpop.f32.mrf.mxu0  ;;  %6737 = vmatmul.mubr.bf16.gmra.mxu1 %v10464_v57  ;;  %v5717_v57 = vadd.f32 %v14310_v1, %v16991_v9 }
 0x4e9   : > { %v6546_v25 = vpop.f32.mrf.mxu1  ;;  %9254 = vmatprep.mubr.msk.bf16.mxu1 %vm5074_vm4, %v10468_v4  ;;  %v14547_v29 = vpop.eup %11060  ;;  %v10470_v4 = vld [vmem:[%s16653_s5 + $0x7e8] ss:$16 sps:$4 sm:$0xff]  }
 0x4ea   : > { %v6547_v8 = vadd.f32 %v6546_v25, %v5714_v12  ;;  %v5782_v46 = vpop.f32.mrf.mxu0  ;;  %16990 = vst [vmem:[#allocation35_spill] sm:$0xff] %v14547_v29  ;;  %v14560_v25 = vpop.permute.xlu1 %2686 }
 0x4eb   : > { %v6548_v32 = vpop.f32.mrf.mxu1 }
 0x4ec   : > { %v14555_v54 = vpop.f32.mrf.mxu0  ;;  %5976 = vmatmul.mubr.bf16.gmra.mxu0 %v10465_v39  ;;  %v10474_v32 = vld [vmem:[%s16653_s5 + $0x80c] ss:$16 sps:$4 sm:$0xff]   ;;  %11068 = vtanh.f32 %v6547_v8 }
 0x4ed   : > { %v14553_v41 = vpop.eup %11062  ;;  %v6549_v12 = vpop.f32.mrf.mxu1  ;;  %5983 = vmatprep.mubr.bf16.mxu0 %v10473_v47  ;;  %v16993_v39 = vld [vmem:[#allocation78_spill] sm:$0xff]  ;;  %v10471_v47 = vld [vmem:[%s16653_s5 + $0x900] ss:$16 sps:$4 sm:$0xff]  }
 0x4ee   : > { %16992 = vst [vmem:[#allocation32_spill] sm:$0xff] %v14553_v41  ;;  %v6550_v46 = vadd.f32 %v6549_v12, %v5717_v57  ;;  %v5787_v9 = vpop.f32.mrf.mxu0  ;;  %v5722_v3 = vadd.f32 %v14325_v27, %v16993_v39  ;;  %v14574_v57 = vpop.permute.xlu0 %2691 }
 0x4ef   : > { %v6551_v38 = vpop.f32.mrf.mxu1  ;;  %v14582_v9 = vpop.permute.xlu1 %2936 }
 0x4f0   : > { %11070 = vtanh.f32 %v6550_v46  ;;  %v14569_v14 = vpop.f32.mrf.mxu0  ;;  %6745 = vmatmul.mubr.bf16.gmra.mxu1 %v10470_v4  ;;  %v10479_v38 = vld [vmem:[%s16653_s5 + $0x924] ss:$16 sps:$4 sm:$0xff]   ;;  %16995 = vst [vmem:[#allocation29_spill] sm:$0xff] %v14582_v9 }
 0x4f1   : > { %v6554_v17 = vpop.f32.mrf.mxu1  ;;  %9255 = vmatprep.mubr.msk.bf16.mxu1 %vm5074_vm4, %v10474_v32  ;;  %v14580_v46 = vpop.eup %11064  ;;  %v16996_v4 = vld [vmem:[#allocation79_spill] sm:$0xff] }
 0x4f2   : > { %v6555_v12 = vadd.f32 %v6554_v17, %v5722_v3  ;;  %v5790_v8 = vpop.f32.mrf.mxu0  ;;  %16994 = vst [vmem:[#allocation33_spill] sm:$0xff] %v14580_v46  ;;  %v5725_v39 = vadd.f32 %v14337_v18, %v16996_v4  ;;  %v10476_v17 = vld [vmem:[%s16653_s5 + $0x808] ss:$16 sps:$4 sm:$0xff]   ;;  %v14598_v41 = vpop.permute.xlu0 %2941 }
 0x4f3   : > { %v6556_v27 = vpop.f32.mrf.mxu1  ;;  %v10480_v8 = vld [vmem:[%s16653_s5 + $0x82c] ss:$16 sps:$4 sm:$0xff]   ;;  %16998 = vst [vmem:[#allocation25_spill] sm:$0xff] %v14598_v41 }
 0x4f4   : > { %v14588_v29 = vpop.f32.mrf.mxu0  ;;  %5984 = vmatmul.mubr.bf16.gmra.mxu0 %v10471_v47  ;;  %11072 = vtanh.f32 %v6555_v12  ;;  %v16999_v47 = vld [vmem:[#allocation104_spill] sm:$0xff]  ;;  %v10485_v12 = vld [vmem:[%s16653_s5 + $0x944] ss:$16 sps:$4 sm:$0xff]  }
 0x4f5   : > { %v14586_v1 = vpop.eup %11066  ;;  %v6557_v3 = vpop.f32.mrf.mxu1  ;;  %5991 = vmatprep.mubr.bf16.mxu0 %v10479_v38  ;;  %v5730_v9 = vadd.f32 %v14352_v30, %v16999_v47  ;;  %v10477_v38 = vld [vmem:[%s16653_s5 + $0x920] ss:$16 sps:$4 sm:$0xff]  }
 0x4f6   : > { %16997 = vst [vmem:[#allocation30_spill] sm:$0xff] %v14586_v1  ;;  %v6558_v32 = vadd.f32 %v6557_v3, %v5725_v39  ;;  %v5795_v18 = vpop.f32.mrf.mxu0  ;;  %v14607_v3 = vpop.permute.xlu1 %2856  ;;  %v17004_v1 = vld [vmem:[#allocation100_spill] sm:$0xff] }
 0x4f7   : > { %v6559_v4 = vpop.f32.mrf.mxu1  ;;  %v5738_v7 = vadd.f32 %v14379_v60, %v17004_v1  ;;  %v17006_v1 = vld [vmem:[#allocation101_spill] sm:$0xff] }
 0x4f8   : > { %11074 = vtanh.f32 %v6558_v32  ;;  %v14602_v56 = vpop.f32.mrf.mxu0  ;;  %6753 = vmatmul.mubr.bf16.gmra.mxu1 %v10476_v17  ;;  %v17001_v4 = vld [vmem:[#allocation105_spill] sm:$0xff] }
 0x4f9   : > { %v6562_v39 = vpop.f32.mrf.mxu1  ;;  %9256 = vmatprep.mubr.msk.bf16.mxu1 %vm5074_vm4, %v10480_v8  ;;  %v14613_v32 = vpop.eup %11068  ;;  %v5733_v17 = vadd.f32 %v14364_v44, %v17001_v4 }
 0x4fa   : > { %v6563_v27 = vadd.f32 %v6562_v39, %v5730_v9  ;;  %v5798_v18 = vpop.f32.mrf.mxu0  ;;  %17000 = vst [vmem:[#allocation26_spill] sm:$0xff] %v14613_v32  ;;  %v10482_v9 = vld [vmem:[%s16653_s5 + $0x828] ss:$16 sps:$4 sm:$0xff]   ;;  %v14624_v8 = vpop.permute.xlu0 %2861 }
 0x4fb   : > { %v6564_v30 = vpop.f32.mrf.mxu1  ;;  %17003 = vst [vmem:[#allocation75_spill] sm:$0xff] %v14624_v8  ;;  %v10486_v18 = vld [vmem:[%s16653_s5 + $0x84c] ss:$16 sps:$4 sm:$0xff]  }
 0x4fc   : > { %v14619_v41 = vpop.f32.mrf.mxu0  ;;  %5992 = vmatmul.mubr.bf16.gmra.mxu0 %v10477_v38  ;;  %11076 = vtanh.f32 %v6563_v27  ;;  %v14631_v38 = vpop.permute.xlu1 %2756  ;;  %v10491_v27 = vld [vmem:[%s16653_s5 + $0x964] ss:$16 sps:$4 sm:$0xff]  }
 0x4fd   : > { %v14617_v47 = vpop.eup %11070  ;;  %v6565_v46 = vpop.f32.mrf.mxu1  ;;  %5999 = vmatprep.mubr.bf16.mxu0 %v10485_v12  ;;  %v10483_v12 = vld [vmem:[%s16653_s5 + $0x940] ss:$16 sps:$4 sm:$0xff]  }
 0x4fe   : > { %17002 = vst [vmem:[#allocation74_spill] sm:$0xff] %v14617_v47  ;;  %v6566_v39 = vadd.f32 %v6565_v46, %v5733_v17  ;;  %v5803_v30 = vpop.f32.mrf.mxu0  ;;  %v14646_v60 = vpop.permute.xlu0 %2761 }
 0x4ff   : > { %v6567_v4 = vpop.f32.mrf.mxu1 }
 0x500   : > { %11078 = vtanh.f32 %v6566_v39  ;;  %v14635_v42 = vpop.f32.mrf.mxu0  ;;  %6761 = vmatmul.mubr.bf16.gmra.mxu1 %v10482_v9  ;;  %v5741_v9 = vadd.f32 %v14391_v62, %v17006_v1 }
 0x501   : > { %v6570_v46 = vpop.f32.mrf.mxu1  ;;  %9257 = vmatprep.mubr.msk.bf16.mxu1 %vm5074_vm4, %v10486_v18  ;;  %v14644_v44 = vpop.eup %11072  ;;  %v10488_v18 = vld [vmem:[%s16653_s5 + $0x848] ss:$16 sps:$4 sm:$0xff]  }
 0x502   : > { %v6571_v17 = vadd.f32 %v6570_v46, %v5738_v7  ;;  %v5806_v30 = vpop.f32.mrf.mxu0  ;;  %17005 = vst [vmem:[#allocation70_spill] sm:$0xff] %v14644_v44  ;;  %v14657_v46 = vpop.permute.xlu1 %2676 }
 0x503   : > { %v6572_v4 = vpop.f32.mrf.mxu1 }
 0x504   : > { %v14652_v32 = vpop.f32.mrf.mxu0  ;;  %6000 = vmatmul.mubr.bf16.gmra.mxu0 %v10483_v12  ;;  %v10492_v4 = vld [vmem:[%s16653_s5 + $0x86c] ss:$16 sps:$4 sm:$0xff]   ;;  %11080 = vtanh.f32 %v6571_v17 }
 0x505   : > { %v14650_v39 = vpop.eup %11074  ;;  %v6573_v7 = vpop.f32.mrf.mxu1  ;;  %6007 = vmatprep.mubr.bf16.mxu0 %v10491_v27  ;;  %v17008_v12 = vld [vmem:[#allocation96_spill] sm:$0xff]  ;;  %v10489_v27 = vld [vmem:[%s16653_s5 + $0x960] ss:$16 sps:$4 sm:$0xff]  }
 0x506   : > { %17007 = vst [vmem:[#allocation71_spill] sm:$0xff] %v14650_v39  ;;  %v6574_v30 = vadd.f32 %v6573_v7, %v5741_v9  ;;  %v5811_v1 = vpop.f32.mrf.mxu0  ;;  %v5746_v53 = vadd.f32 %v14402_v0, %v17008_v12  ;;  %v14671_v9 = vpop.permute.xlu0 %2681 }
 0x507   : > { %v6575_v47 = vpop.f32.mrf.mxu1  ;;  %v14679_v1 = vpop.permute.xlu1 %2926 }
 0x508   : > { %11082 = vtanh.f32 %v6574_v30  ;;  %v14666_v5 = vpop.f32.mrf.mxu0  ;;  %6769 = vmatmul.mubr.bf16.gmra.mxu1 %v10488_v18  ;;  %v10497_v47 = vld [vmem:[%s16653_s5 + $0x984] ss:$16 sps:$4 sm:$0xff]   ;;  %17010 = vst [vmem:[#allocation67_spill] sm:$0xff] %v14679_v1 }
 0x509   : > { %v6578_v58 = vpop.f32.mrf.mxu1  ;;  %9258 = vmatprep.mubr.msk.bf16.mxu1 %vm5074_vm4, %v10492_v4  ;;  %v14677_v30 = vpop.eup %11076  ;;  %v17011_v18 = vld [vmem:[#allocation97_spill] sm:$0xff] }
 0x50a   : > { %v6579_v7 = vadd.f32 %v6578_v58, %v5746_v53  ;;  %v5814_v17 = vpop.f32.mrf.mxu0  ;;  %17009 = vst [vmem:[#allocation66_spill] sm:$0xff] %v14677_v30  ;;  %v5749_v12 = vadd.f32 %v14412_v50, %v17011_v18  ;;  %v10494_v53 = vld [vmem:[%s16653_s5 + $0x868] ss:$16 sps:$4 sm:$0xff]   ;;  %v14695_v1 = vpop.permute.xlu0 %2931 }
 0x50b   : > { %v6580_v0 = vpop.f32.mrf.mxu1  ;;  %v10498_v17 = vld [vmem:[%s16653_s5 + $0x88c] ss:$16 sps:$4 sm:$0xff]   ;;  %17013 = vst [vmem:[#allocation63_spill] sm:$0xff] %v14695_v1 }
 0x50c   : > { %v14685_v44 = vpop.f32.mrf.mxu0  ;;  %6008 = vmatmul.mubr.bf16.gmra.mxu0 %v10489_v27  ;;  %11084 = vtanh.f32 %v6579_v7  ;;  %v17014_v27 = vld [vmem:[#allocation92_spill] sm:$0xff]  ;;  %v10503_v7 = vld [vmem:[%s16653_s5 + $0x9a4] ss:$16 sps:$4 sm:$0xff]  }
 0x50d   : > { %v14683_v62 = vpop.eup %11078  ;;  %v6581_v58 = vpop.f32.mrf.mxu1  ;;  %6015 = vmatprep.mubr.bf16.mxu0 %v10497_v47  ;;  %v5754_v39 = vadd.f32 %v14427_v48, %v17014_v27  ;;  %v10495_v47 = vld [vmem:[%s16653_s5 + $0x980] ss:$16 sps:$4 sm:$0xff]   ;;  %v17018_v1 = vld [vmem:[#allocation88_spill] sm:$0xff] }
 0x50e   : > { %17012 = vst [vmem:[#allocation62_spill] sm:$0xff] %v14683_v62  ;;  %v6582_v4 = vadd.f32 %v6581_v58, %v5749_v12  ;;  %v5819_v50 = vpop.f32.mrf.mxu0  ;;  %v14704_v58 = vpop.permute.xlu1 %2846  ;;  %v5762_v20 = vadd.f32 %v14458_v59, %v17018_v1  ;;  %v17020_v1 = vld [vmem:[#allocation89_spill] sm:$0xff] }
 0x50f   : > { %v6583_v18 = vpop.f32.mrf.mxu1 }
 0x510   : > { %11086 = vtanh.f32 %v6582_v4  ;;  %v14699_v37 = vpop.f32.mrf.mxu0  ;;  %6777 = vmatmul.mubr.bf16.gmra.mxu1 %v10494_v53  ;;  %v17016_v18 = vld [vmem:[#allocation93_spill] sm:$0xff] }
 0x511   : > { %v6586_v12 = vpop.f32.mrf.mxu1  ;;  %9259 = vmatprep.mubr.msk.bf16.mxu1 %vm5074_vm4, %v10498_v17  ;;  %v14710_v4 = vpop.eup %11080  ;;  %v5757_v53 = vadd.f32 %v14441_v55, %v17016_v18 }
 0x512   : > { %v6587_v0 = vadd.f32 %v6586_v12, %v5754_v39  ;;  %v5822_v50 = vpop.f32.mrf.mxu0  ;;  %17015 = vst [vmem:[#allocation58_spill] sm:$0xff] %v14710_v4  ;;  %v10500_v39 = vld [vmem:[%s16653_s5 + $0x888] ss:$16 sps:$4 sm:$0xff]   ;;  %v14721_v17 = vpop.permute.xlu0 %2851 }
 0x513   : > { %v6588_v48 = vpop.f32.mrf.mxu1  ;;  %v10504_v50 = vld [vmem:[%s16653_s5 + $0x8ac] ss:$16 sps:$4 sm:$0xff]  }
 0x514   : > { %v14716_v30 = vpop.f32.mrf.mxu0  ;;  %6016 = vmatmul.mubr.bf16.gmra.mxu0 %v10495_v47  ;;  %11088 = vtanh.f32 %v6587_v0  ;;  %v14728_v47 = vpop.permute.xlu1 %2746  ;;  %v10509_v0 = vld [vmem:[%s16653_s5 + $0x9c4] ss:$16 sps:$4 sm:$0xff]  }
 0x515   : > { %v14714_v27 = vpop.eup %11082  ;;  %v6589_v62 = vpop.f32.mrf.mxu1  ;;  %6023 = vmatprep.mubr.bf16.mxu0 %v10503_v7  ;;  %v10501_v7 = vld [vmem:[%s16653_s5 + $0x9a0] ss:$16 sps:$4 sm:$0xff]  }
 0x516   : > { %17017 = vst [vmem:[#allocation59_spill] sm:$0xff] %v14714_v27  ;;  %v6590_v12 = vadd.f32 %v6589_v62, %v5757_v53  ;;  %v5827_v48 = vpop.f32.mrf.mxu0  ;;  %v14743_v59 = vpop.permute.xlu0 %2751 }
 0x517   : > { %v6591_v18 = vpop.f32.mrf.mxu1 }
 0x518   : > { %11090 = vtanh.f32 %v6590_v12  ;;  %v14732_v51 = vpop.f32.mrf.mxu0  ;;  %6785 = vmatmul.mubr.bf16.gmra.mxu1 %v10500_v39  ;;  %v5765_v39 = vadd.f32 %v14472_v45, %v17020_v1 }
 0x519   : > { %v6594_v62 = vpop.f32.mrf.mxu1  ;;  %9260 = vmatprep.mubr.msk.bf16.mxu1 %vm5074_vm4, %v10504_v50  ;;  %v14741_v55 = vpop.eup %11084  ;;  %v10506_v50 = vld [vmem:[%s16653_s5 + $0x8a8] ss:$16 sps:$4 sm:$0xff]  }
 0x51a   : > { %v6595_v53 = vadd.f32 %v6594_v62, %v5762_v20  ;;  %v5830_v48 = vpop.f32.mrf.mxu0  ;;  %17019 = vst [vmem:[#allocation54_spill] sm:$0xff] %v14741_v55  ;;  %v14754_v62 = vpop.permute.xlu1 %2666 }
 0x51b   : > { %v6596_v18 = vpop.f32.mrf.mxu1 }
 0x51c   : > { %v14749_v4 = vpop.f32.mrf.mxu0  ;;  %6024 = vmatmul.mubr.bf16.gmra.mxu0 %v10501_v7  ;;  %v10510_v18 = vld [vmem:[%s16653_s5 + $0x8cc] ss:$16 sps:$4 sm:$0xff]   ;;  %11092 = vtanh.f32 %v6595_v53 }
 0x51d   : > { %v14747_v12 = vpop.eup %11086  ;;  %v6597_v20 = vpop.f32.mrf.mxu1  ;;  %6031 = vmatprep.mubr.bf16.mxu0 %v10509_v0  ;;  %v17022_v7 = vld [vmem:[#allocation84_spill] sm:$0xff]  ;;  %v10507_v0 = vld [vmem:[%s16653_s5 + $0x9c0] ss:$16 sps:$4 sm:$0xff]  }
 0x51e   : > { %17021 = vst [vmem:[#allocation55_spill] sm:$0xff] %v14747_v12  ;;  %v6598_v48 = vadd.f32 %v6597_v20, %v5765_v39  ;;  %v5835_v1 = vpop.f32.mrf.mxu0  ;;  %v5770_v52 = vadd.f32 %v14491_v40, %v17022_v7  ;;  %v14768_v39 = vpop.permute.xlu0 %2671 }
 0x51f   : > { %v6599_v27 = vpop.f32.mrf.mxu1  ;;  %v14776_v1 = vpop.permute.xlu1 %2916 }
 0x520   : > { %11094 = vtanh.f32 %v6598_v48  ;;  %v14763_v28 = vpop.f32.mrf.mxu0  ;;  %6793 = vmatmul.mubr.bf16.gmra.mxu1 %v10506_v50  ;;  %v10515_v27 = vld [vmem:[%s16653_s5 + $0x9e4] ss:$16 sps:$4 sm:$0xff]   ;;  %17024 = vst [vmem:[#allocation51_spill] sm:$0xff] %v14776_v1 }
 0x521   : > { %v6602_v26 = vpop.f32.mrf.mxu1  ;;  %9261 = vmatprep.mubr.msk.bf16.mxu1 %vm5074_vm4, %v10510_v18  ;;  %v14774_v48 = vpop.eup %11088  ;;  %v17025_v50 = vld [vmem:[#allocation85_spill] sm:$0xff] }
 0x522   : > { %v6603_v20 = vadd.f32 %v6602_v26, %v5770_v52  ;;  %v5838_v53 = vpop.f32.mrf.mxu0  ;;  %17023 = vst [vmem:[#allocation50_spill] sm:$0xff] %v14774_v48  ;;  %v5773_v7 = vadd.f32 %v14505_v6, %v17025_v50  ;;  %v10512_v26 = vld [vmem:[%s16653_s5 + $0x8c8] ss:$16 sps:$4 sm:$0xff]   ;;  %v14792_v12 = vpop.permute.xlu0 %2921 }
 0x523   : > { %v6604_v40 = vpop.f32.mrf.mxu1  ;;  %v10516_v53 = vld [vmem:[%s16653_s5 + $0x8ec] ss:$16 sps:$4 sm:$0xff]   ;;  %17027 = vst [vmem:[#allocation47_spill] sm:$0xff] %v14792_v12 }
 0x524   : > { %v14782_v55 = vpop.f32.mrf.mxu0  ;;  %6032 = vmatmul.mubr.bf16.gmra.mxu0 %v10507_v0  ;;  %11096 = vtanh.f32 %v6603_v20  ;;  %v17028_v0 = vld [vmem:[#allocation80_spill] sm:$0xff]  ;;  %v10521_v20 = vld [vmem:[%s16653_s5 + $0xa04] ss:$16 sps:$4 sm:$0xff]  }
 0x525   : > { %v14780_v45 = vpop.eup %11090  ;;  %v6605_v52 = vpop.f32.mrf.mxu1  ;;  %6039 = vmatprep.mubr.bf16.mxu0 %v10515_v27  ;;  %v5778_v1 = vadd.f32 %v14522_v22, %v17028_v0  ;;  %v10513_v27 = vld [vmem:[%s16653_s5 + $0x9e0] ss:$16 sps:$4 sm:$0xff]   ;;  %v17032_v12 = vld [vmem:[#allocation76_spill] sm:$0xff] }
 0x526   : > { %17026 = vst [vmem:[#allocation46_spill] sm:$0xff] %v14780_v45  ;;  %v6606_v18 = vadd.f32 %v6605_v52, %v5773_v7  ;;  %v5843_v6 = vpop.f32.mrf.mxu0  ;;  %v14801_v52 = vpop.permute.xlu1 %2836  ;;  %v5786_v24 = vadd.f32 %v14555_v54, %v17032_v12  ;;  %v17034_v12 = vld [vmem:[#allocation77_spill] sm:$0xff] }
 0x527   : > { %v6607_v50 = vpop.f32.mrf.mxu1 }
 0x528   : > { %11098 = vtanh.f32 %v6606_v18  ;;  %v14796_v16 = vpop.f32.mrf.mxu0  ;;  %6801 = vmatmul.mubr.bf16.gmra.mxu1 %v10512_v26  ;;  %v17030_v50 = vld [vmem:[#allocation81_spill] sm:$0xff] }
 0x529   : > { %v6610_v7 = vpop.f32.mrf.mxu1  ;;  %9262 = vmatprep.mubr.msk.bf16.mxu1 %vm5074_vm4, %v10516_v53  ;;  %v14807_v18 = vpop.eup %11092  ;;  %v5781_v26 = vadd.f32 %v14538_v35, %v17030_v50 }
 0x52a   : > { %v6611_v40 = vadd.f32 %v6610_v7, %v5778_v1  ;;  %v5846_v6 = vpop.f32.mrf.mxu0  ;;  %17029 = vst [vmem:[#allocation72_spill] sm:$0xff] %v14807_v18  ;;  %v10518_v1 = vld [vmem:[%s16653_s5 + $0x8e8] ss:$16 sps:$4 sm:$0xff]   ;;  %v14818_v53 = vpop.permute.xlu0 %2841 }
 0x52b   : > { %v6612_v22 = vpop.f32.mrf.mxu1  ;;  %v10522_v6 = vld [vmem:[%s16653_s5 + $0x90c] ss:$16 sps:$4 sm:$0xff]  }
 0x52c   : > { %v14813_v48 = vpop.f32.mrf.mxu0  ;;  %6040 = vmatmul.mubr.bf16.gmra.mxu0 %v10513_v27  ;;  %11100 = vtanh.f32 %v6611_v40  ;;  %v14825_v27 = vpop.permute.xlu1 %2736  ;;  %v10527_v40 = vld [vmem:[%s16653_s5 + $0xa24] ss:$16 sps:$4 sm:$0xff]  }
 0x52d   : > { %v14811_v0 = vpop.eup %11094  ;;  %v6613_v45 = vpop.f32.mrf.mxu1  ;;  %6047 = vmatprep.mubr.bf16.mxu0 %v10521_v20  ;;  %v10519_v20 = vld [vmem:[%s16653_s5 + $0xa00] ss:$16 sps:$4 sm:$0xff]  }
 0x52e   : > { %17031 = vst [vmem:[#allocation73_spill] sm:$0xff] %v14811_v0  ;;  %v6614_v7 = vadd.f32 %v6613_v45, %v5781_v26  ;;  %v5851_v22 = vpop.f32.mrf.mxu0  ;;  %v14840_v54 = vpop.permute.xlu0 %2741 }
 0x52f   : > { %v6615_v50 = vpop.f32.mrf.mxu1 }
 0x530   : > { %11102 = vtanh.f32 %v6614_v7  ;;  %v14829_v49 = vpop.f32.mrf.mxu0  ;;  %6809 = vmatmul.mubr.bf16.gmra.mxu1 %v10518_v1  ;;  %v5789_v1 = vadd.f32 %v14569_v14, %v17034_v12 }
 0x531   : > { %v6618_v45 = vpop.f32.mrf.mxu1  ;;  %9263 = vmatprep.mubr.msk.bf16.mxu1 %vm5074_vm4, %v10522_v6  ;;  %v14838_v35 = vpop.eup %11096  ;;  %v10524_v6 = vld [vmem:[%s16653_s5 + $0x908] ss:$16 sps:$4 sm:$0xff]  }
 0x532   : > { %v6619_v26 = vadd.f32 %v6618_v45, %v5786_v24  ;;  %v5854_v22 = vpop.f32.mrf.mxu0  ;;  %17033 = vst [vmem:[#allocation68_spill] sm:$0xff] %v14838_v35  ;;  %v2657_v45 = vpop.permute.xlu1 %2656 }
 0x533   : > { %v6620_v50 = vpop.f32.mrf.mxu1 }
 0x534   : > { %v14846_v18 = vpop.f32.mrf.mxu0  ;;  %6048 = vmatmul.mubr.bf16.gmra.mxu0 %v10519_v20  ;;  %v10528_v50 = vld [vmem:[%s16653_s5 + $0x92c] ss:$16 sps:$4 sm:$0xff]   ;;  %11104 = vtanh.f32 %v6619_v26  ;;  %v5794_v20 = vadd.f32 %v14588_v29, %v2657_v45  ;;  %v10533_v26 = vld [vmem:[%s16653_s5 + $0xa44] ss:$16 sps:$4 sm:$0xff]  }
 0x535   : > { %v14844_v7 = vpop.eup %11098  ;;  %v6621_v24 = vpop.f32.mrf.mxu1  ;;  %6055 = vmatprep.mubr.bf16.mxu0 %v10527_v40  ;;  %v10525_v40 = vld [vmem:[%s16653_s5 + $0xa20] ss:$16 sps:$4 sm:$0xff]  }
 0x536   : > { %17035 = vst [vmem:[#allocation69_spill] sm:$0xff] %v14844_v7  ;;  %v6622_v22 = vadd.f32 %v6621_v24, %v5789_v1  ;;  %v5859_v12 = vpop.f32.mrf.mxu0  ;;  %v2662_v1 = vpop.permute.xlu0 %2661 }
 0x537   : > { %v6623_v0 = vpop.f32.mrf.mxu1  ;;  %v5797_v45 = vadd.f32 %v14602_v56, %v2662_v1 }
 0x538   : > { %11106 = vtanh.f32 %v6622_v22  ;;  %v14857_v15 = vpop.f32.mrf.mxu0  ;;  %6817 = vmatmul.mubr.bf16.gmra.mxu1 %v10524_v6 }
 0x539   : > { %v6626_v8 = vpop.f32.mrf.mxu1  ;;  %9264 = vmatprep.mubr.msk.bf16.mxu1 %vm5074_vm4, %v10528_v50  ;;  %v14866_v29 = vpop.eup %11100 }
 0x53a   : > { %v6627_v24 = vadd.f32 %v6626_v8, %v5794_v20  ;;  %v5862_v0 = vpop.f32.mrf.mxu0  ;;  %17036 = vst [vmem:[#allocation64_spill] sm:$0xff] %v14866_v29  ;;  %v10530_v8 = vld [vmem:[%s16653_s5 + $0x928] ss:$16 sps:$4 sm:$0xff]   ;;  %v10534_v20 = vld [vmem:[%s16653_s5 + $0x94c] ss:$16 sps:$4 sm:$0xff]  }
 0x53b   : > { %v6628_v12 = vpop.f32.mrf.mxu1 }
 0x53c   : > { %v14871_v6 = vpop.f32.mrf.mxu0  ;;  %6056 = vmatmul.mubr.bf16.gmra.mxu0 %v10525_v40  ;;  %11108 = vtanh.f32 %v6627_v24  ;;  %v5802_v40 = vadd.f32 %v14619_v41, %v14754_v62  ;;  %v10539_v24 = vld [vmem:[%s16653_s5 + $0xa64] ss:$16 sps:$4 sm:$0xff]   ;;  %v5805_v41 = vadd.f32 %v14635_v42, %v14768_v39 }
 0x53d   : > { %v14869_v22 = vpop.eup %11102  ;;  %v6629_v14 = vpop.f32.mrf.mxu1  ;;  %6063 = vmatprep.mubr.bf16.mxu0 %v10533_v26 }
 0x53e   : > { %17037 = vst [vmem:[#allocation65_spill] sm:$0xff] %v14869_v22  ;;  %v6630_v50 = vadd.f32 %v6629_v14, %v5797_v45  ;;  %v5867_v56 = vpop.f32.mrf.mxu0  ;;  %v10531_v14 = vld [vmem:[%s16653_s5 + $0xa40] ss:$16 sps:$4 sm:$0xff]  }
 0x53f   : > { %v6631_v1 = vpop.f32.mrf.mxu1 }
 0x540   : > { %11110 = vtanh.f32 %v6630_v50  ;;  %v14883_v12 = vpop.f32.mrf.mxu0  ;;  %6825 = vmatmul.mubr.bf16.gmra.mxu1 %v10530_v8 }
 0x541   : > { %v6634_v35 = vpop.f32.mrf.mxu1  ;;  %9265 = vmatprep.mubr.msk.bf16.mxu1 %vm5074_vm4, %v10534_v20  ;;  %v14892_v1 = vpop.eup %11104 }
 0x542   : > { %v6635_v26 = vadd.f32 %v6634_v35, %v5802_v40  ;;  %v5870_v45 = vpop.f32.mrf.mxu0  ;;  %17038 = vst [vmem:[#allocation60_spill] sm:$0xff] %v14892_v1  ;;  %v10536_v35 = vld [vmem:[%s16653_s5 + $0x948] ss:$16 sps:$4 sm:$0xff]   ;;  %v10540_v40 = vld [vmem:[%s16653_s5 + $0x96c] ss:$16 sps:$4 sm:$0xff]  }
 0x543   : > { %v6636_v56 = vpop.f32.mrf.mxu1 }
 0x544   : > { %v14898_v8 = vpop.f32.mrf.mxu0  ;;  %6064 = vmatmul.mubr.bf16.gmra.mxu0 %v10531_v14  ;;  %11112 = vtanh.f32 %v6635_v26  ;;  %v5810_v14 = vadd.f32 %v14652_v32, %v14657_v46  ;;  %v10545_v26 = vld [vmem:[%s16653_s5 + $0xa84] ss:$16 sps:$4 sm:$0xff]   ;;  %v5813_v32 = vadd.f32 %v14666_v5, %v14671_v9 }
 0x545   : > { %v14896_v62 = vpop.eup %11106  ;;  %v6637_v50 = vpop.f32.mrf.mxu1  ;;  %6071 = vmatprep.mubr.bf16.mxu0 %v10539_v24  ;;  %v10537_v24 = vld [vmem:[%s16653_s5 + $0xa60] ss:$16 sps:$4 sm:$0xff]  }
 0x546   : > { %17039 = vst [vmem:[#allocation61_spill] sm:$0xff] %v14896_v62  ;;  %v6638_v20 = vadd.f32 %v6637_v50, %v5805_v41  ;;  %v5875_v42 = vpop.f32.mrf.mxu0 }
 0x547   : > { %v6639_v39 = vpop.f32.mrf.mxu1 }
 0x548   : > { %11114 = vtanh.f32 %v6638_v20  ;;  %v14910_v56 = vpop.f32.mrf.mxu0  ;;  %6833 = vmatmul.mubr.bf16.gmra.mxu1 %v10536_v35 }
 0x549   : > { %v6642_v0 = vpop.f32.mrf.mxu1  ;;  %9266 = vmatprep.mubr.msk.bf16.mxu1 %vm5074_vm4, %v10540_v40  ;;  %v14919_v39 = vpop.eup %11108 }
 0x54a   : > { %v6643_v41 = vadd.f32 %v6642_v0, %v5810_v14  ;;  %v5878_v50 = vpop.f32.mrf.mxu0  ;;  %17040 = vst [vmem:[#allocation56_spill] sm:$0xff] %v14919_v39  ;;  %v10542_v0 = vld [vmem:[%s16653_s5 + $0x968] ss:$16 sps:$4 sm:$0xff]   ;;  %v10546_v14 = vld [vmem:[%s16653_s5 + $0x98c] ss:$16 sps:$4 sm:$0xff]  }
 0x54b   : > { %v6644_v42 = vpop.f32.mrf.mxu1 }
 0x54c   : > { %v14925_v35 = vpop.f32.mrf.mxu0  ;;  %6072 = vmatmul.mubr.bf16.gmra.mxu0 %v10537_v24  ;;  %11116 = vtanh.f32 %v6643_v41  ;;  %v5818_v24 = vadd.f32 %v14685_v44, %v14560_v25  ;;  %v10551_v41 = vld [vmem:[%s16653_s5 + $0xaa4] ss:$16 sps:$4 sm:$0xff]   ;;  %v5821_v25 = vadd.f32 %v14699_v37, %v14574_v57 }
 0x54d   : > { %v14923_v46 = vpop.eup %11110  ;;  %v6645_v20 = vpop.f32.mrf.mxu1  ;;  %6079 = vmatprep.mubr.bf16.mxu0 %v10545_v26  ;;  %v10543_v26 = vld [vmem:[%s16653_s5 + $0xa80] ss:$16 sps:$4 sm:$0xff]  }
 0x54e   : > { %17041 = vst [vmem:[#allocation57_spill] sm:$0xff] %v14923_v46  ;;  %v6646_v40 = vadd.f32 %v6645_v20, %v5813_v32  ;;  %v5883_v5 = vpop.f32.mrf.mxu0 }
 0x54f   : > { %v6647_v9 = vpop.f32.mrf.mxu1 }
 0x550   : > { %11118 = vtanh.f32 %v6646_v40  ;;  %v14937_v42 = vpop.f32.mrf.mxu0  ;;  %6841 = vmatmul.mubr.bf16.gmra.mxu1 %v10542_v0 }
 0x551   : > { %v6650_v45 = vpop.f32.mrf.mxu1  ;;  %9267 = vmatprep.mubr.msk.bf16.mxu1 %vm5074_vm4, %v10546_v14  ;;  %v14946_v9 = vpop.eup %11112 }
 0x552   : > { %v6651_v32 = vadd.f32 %v6650_v45, %v5818_v24  ;;  %v5886_v20 = vpop.f32.mrf.mxu0  ;;  %v10548_v45 = vld [vmem:[%s16653_s5 + $0x988] ss:$16 sps:$4 sm:$0xff]   ;;  %v10552_v24 = vld [vmem:[%s16653_s5 + $0x9ac] ss:$16 sps:$4 sm:$0xff]  }
 0x553   : > { %v6652_v5 = vpop.f32.mrf.mxu1 }
 0x554   : > { %v14952_v0 = vpop.f32.mrf.mxu0  ;;  %6080 = vmatmul.mubr.bf16.gmra.mxu0 %v10543_v26  ;;  %11120 = vtanh.f32 %v6651_v32  ;;  %v5826_v26 = vadd.f32 %v14716_v30, %v14463_v36  ;;  %v10557_v32 = vld [vmem:[%s16653_s5 + $0xac4] ss:$16 sps:$4 sm:$0xff]   ;;  %v5829_v36 = vadd.f32 %v14732_v51, %v14477_v31 }
 0x555   : > { %v14950_v44 = vpop.eup %11114  ;;  %v6653_v40 = vpop.f32.mrf.mxu1  ;;  %6087 = vmatprep.mubr.bf16.mxu0 %v10551_v41  ;;  %v10549_v41 = vld [vmem:[%s16653_s5 + $0xaa0] ss:$16 sps:$4 sm:$0xff]  }
 0x556   : > { %v6654_v14 = vadd.f32 %v6653_v40, %v5821_v25  ;;  %v5891_v37 = vpop.f32.mrf.mxu0 }
 0x557   : > { %v6655_v57 = vpop.f32.mrf.mxu1 }
 0x558   : > { %11122 = vtanh.f32 %v6654_v14  ;;  %v14964_v5 = vpop.f32.mrf.mxu0  ;;  %6849 = vmatmul.mubr.bf16.gmra.mxu1 %v10548_v45 }
 0x559   : > { %v6658_v50 = vpop.f32.mrf.mxu1  ;;  %9268 = vmatprep.mubr.msk.bf16.mxu1 %vm5074_vm4, %v10552_v24  ;;  %v14973_v57 = vpop.eup %11116 }
 0x55a   : > { %v6659_v25 = vadd.f32 %v6658_v50, %v5826_v26  ;;  %v5894_v40 = vpop.f32.mrf.mxu0  ;;  %v10554_v50 = vld [vmem:[%s16653_s5 + $0x9a8] ss:$16 sps:$4 sm:$0xff]   ;;  %v10558_v26 = vld [vmem:[%s16653_s5 + $0x9cc] ss:$16 sps:$4 sm:$0xff]  }
 0x55b   : > { %v6660_v37 = vpop.f32.mrf.mxu1 }
 0x55c   : > { %v14979_v45 = vpop.f32.mrf.mxu0  ;;  %6088 = vmatmul.mubr.bf16.gmra.mxu0 %v10549_v41  ;;  %11124 = vtanh.f32 %v6659_v25  ;;  %v17042_v37 = vld [vmem:[#allocation122_spill] sm:$0xff]  ;;  %v10563_v25 = vld [vmem:[%s16653_s5 + $0xae4] ss:$16 sps:$4 sm:$0xff]  }
 0x55d   : > { %v14977_v30 = vpop.eup %11118  ;;  %v6661_v14 = vpop.f32.mrf.mxu1  ;;  %6095 = vmatprep.mubr.bf16.mxu0 %v10557_v32  ;;  %v5834_v41 = vadd.f32 %v14749_v4, %v17042_v37  ;;  %v10555_v32 = vld [vmem:[%s16653_s5 + $0xac0] ss:$16 sps:$4 sm:$0xff]  }
 0x55e   : > { %v6662_v24 = vadd.f32 %v6661_v14, %v5829_v36  ;;  %v5899_v51 = vpop.f32.mrf.mxu0  ;;  %v17043_v4 = vld [vmem:[#allocation123_spill] sm:$0xff] }
 0x55f   : > { %v6663_v31 = vpop.f32.mrf.mxu1 }
 0x560   : > { %11126 = vtanh.f32 %v6662_v24  ;;  %v14991_v20 = vpop.f32.mrf.mxu0  ;;  %6857 = vmatmul.mubr.bf16.gmra.mxu1 %v10554_v50  ;;  %v5837_v24 = vadd.f32 %v14763_v28, %v17043_v4  ;;  %v17044_v4 = vld [vmem:[#allocation114_spill] sm:$0xff] }
 0x561   : > { %v6666_v7 = vpop.f32.mrf.mxu1  ;;  %9269 = vmatprep.mubr.msk.bf16.mxu1 %vm5074_vm4, %v10558_v26  ;;  %v15000_v31 = vpop.eup %11120 }
 0x562   : > { %v6667_v36 = vadd.f32 %v6666_v7, %v5834_v41  ;;  %v5902_v14 = vpop.f32.mrf.mxu0  ;;  %v10560_v7 = vld [vmem:[%s16653_s5 + $0x9c8] ss:$16 sps:$4 sm:$0xff]   ;;  %v10564_v41 = vld [vmem:[%s16653_s5 + $0x9ec] ss:$16 sps:$4 sm:$0xff]  }
 0x563   : > { %v6668_v51 = vpop.f32.mrf.mxu1 }
 0x564   : > { %v15006_v50 = vpop.f32.mrf.mxu0  ;;  %6096 = vmatmul.mubr.bf16.gmra.mxu0 %v10555_v32  ;;  %11128 = vtanh.f32 %v6667_v36  ;;  %v5842_v32 = vadd.f32 %v14782_v55, %v17044_v4  ;;  %v10569_v36 = vld [vmem:[%s16653_s5 + $0xb04] ss:$16 sps:$4 sm:$0xff]  }
 0x565   : > { %v15004_v37 = vpop.eup %11122  ;;  %v6669_v40 = vpop.f32.mrf.mxu1  ;;  %6103 = vmatprep.mubr.bf16.mxu0 %v10563_v25  ;;  %v17045_v55 = vld [vmem:[#allocation115_spill] sm:$0xff] }
 0x566   : > { %v6670_v26 = vadd.f32 %v6669_v40, %v5837_v24  ;;  %v5907_v28 = vpop.f32.mrf.mxu0  ;;  %v10561_v40 = vld [vmem:[%s16653_s5 + $0xae0] ss:$16 sps:$4 sm:$0xff]  }
 0x567   : > { %v6671_v51 = vpop.f32.mrf.mxu1 }
 0x568   : > { %11130 = vtanh.f32 %v6670_v26  ;;  %v15018_v29 = vpop.f32.mrf.mxu0  ;;  %6865 = vmatmul.mubr.bf16.gmra.mxu1 %v10560_v7  ;;  %v5845_v26 = vadd.f32 %v14796_v16, %v17045_v55  ;;  %v17046_v55 = vld [vmem:[#allocation110_spill] sm:$0xff] }
 0x569   : > { %v6674_v22 = vpop.f32.mrf.mxu1  ;;  %9270 = vmatprep.mubr.msk.bf16.mxu1 %vm5074_vm4, %v10564_v41  ;;  %v15027_v51 = vpop.eup %11124 }
 0x56a   : > { %v6675_v25 = vadd.f32 %v6674_v22, %v5842_v32  ;;  %v5910_v24 = vpop.f32.mrf.mxu0  ;;  %v10566_v22 = vld [vmem:[%s16653_s5 + $0x9e8] ss:$16 sps:$4 sm:$0xff]   ;;  %v10570_v32 = vld [vmem:[%s16653_s5 + $0xa0c] ss:$16 sps:$4 sm:$0xff]  }
 0x56b   : > { %v6676_v28 = vpop.f32.mrf.mxu1 }
 0x56c   : > { %v15033_v7 = vpop.f32.mrf.mxu0  ;;  %6104 = vmatmul.mubr.bf16.gmra.mxu0 %v10561_v40  ;;  %11132 = vtanh.f32 %v6675_v25  ;;  %v5850_v40 = vadd.f32 %v14813_v48, %v17046_v55  ;;  %v10575_v25 = vld [vmem:[%s16653_s5 + $0xb24] ss:$16 sps:$4 sm:$0xff]  }
 0x56d   : > { %v15031_v4 = vpop.eup %11126  ;;  %v6677_v14 = vpop.f32.mrf.mxu1  ;;  %6111 = vmatprep.mubr.bf16.mxu0 %v10569_v36  ;;  %v17047_v48 = vld [vmem:[#allocation111_spill] sm:$0xff] }
 0x56e   : > { %v6678_v41 = vadd.f32 %v6677_v14, %v5845_v26  ;;  %v5915_v16 = vpop.f32.mrf.mxu0  ;;  %v10567_v14 = vld [vmem:[%s16653_s5 + $0xb00] ss:$16 sps:$4 sm:$0xff]  }
 0x56f   : > { %v6679_v28 = vpop.f32.mrf.mxu1 }
 0x570   : > { %11134 = vtanh.f32 %v6678_v41  ;;  %v15045_v1 = vpop.f32.mrf.mxu0  ;;  %6873 = vmatmul.mubr.bf16.gmra.mxu1 %v10566_v22  ;;  %v5853_v41 = vadd.f32 %v14829_v49, %v17047_v48 }
 0x571   : > { %v6682_v62 = vpop.f32.mrf.mxu1  ;;  %9271 = vmatprep.mubr.msk.bf16.mxu1 %vm5074_vm4, %v10570_v32  ;;  %v15054_v28 = vpop.eup %11128 }
 0x572   : > { %v6683_v36 = vadd.f32 %v6682_v62, %v5850_v40  ;;  %v5918_v26 = vpop.f32.mrf.mxu0  ;;  %v10572_v62 = vld [vmem:[%s16653_s5 + $0xa08] ss:$16 sps:$4 sm:$0xff]   ;;  %v10576_v40 = vld [vmem:[%s16653_s5 + $0xa2c] ss:$16 sps:$4 sm:$0xff]  }
 0x573   : > { %v6684_v16 = vpop.f32.mrf.mxu1 }
 0x574   : > { %v15060_v22 = vpop.f32.mrf.mxu0  ;;  %6112 = vmatmul.mubr.bf16.gmra.mxu0 %v10567_v14  ;;  %11136 = vtanh.f32 %v6683_v36  ;;  %v5858_v14 = vadd.f32 %v14846_v18, %v14825_v27  ;;  %v10581_v36 = vld [vmem:[%s16653_s5 + $0xb44] ss:$16 sps:$4 sm:$0xff]   ;;  %v5861_v18 = vadd.f32 %v14857_v15, %v14840_v54 }
 0x575   : > { %v15058_v55 = vpop.eup %11130  ;;  %v6685_v24 = vpop.f32.mrf.mxu1  ;;  %6119 = vmatprep.mubr.bf16.mxu0 %v10575_v25 }
 0x576   : > { %v6686_v32 = vadd.f32 %v6685_v24, %v5853_v41  ;;  %v5923_v49 = vpop.f32.mrf.mxu0  ;;  %v10573_v24 = vld [vmem:[%s16653_s5 + $0xb20] ss:$16 sps:$4 sm:$0xff]  }
 0x577   : > { %v6687_v16 = vpop.f32.mrf.mxu1 }
 0x578   : > { %11138 = vtanh.f32 %v6686_v32  ;;  %v15072_v48 = vpop.f32.mrf.mxu0  ;;  %6881 = vmatmul.mubr.bf16.gmra.mxu1 %v10572_v62 }
 0x579   : > { %v6690_v39 = vpop.f32.mrf.mxu1  ;;  %9272 = vmatprep.mubr.msk.bf16.mxu1 %vm5074_vm4, %v10576_v40  ;;  %v15081_v16 = vpop.eup %11132 }
 0x57a   : > { %v6691_v25 = vadd.f32 %v6690_v39, %v5858_v14  ;;  %v5926_v41 = vpop.f32.mrf.mxu0  ;;  %v10578_v39 = vld [vmem:[%s16653_s5 + $0xa28] ss:$16 sps:$4 sm:$0xff]   ;;  %v10582_v14 = vld [vmem:[%s16653_s5 + $0xa4c] ss:$16 sps:$4 sm:$0xff]  }
 0x57b   : > { %v6692_v49 = vpop.f32.mrf.mxu1 }
 0x57c   : > { %v15087_v62 = vpop.f32.mrf.mxu0  ;;  %6120 = vmatmul.mubr.bf16.gmra.mxu0 %v10573_v24  ;;  %11140 = vtanh.f32 %v6691_v25  ;;  %v5866_v24 = vadd.f32 %v14871_v6, %v14728_v47  ;;  %v10587_v25 = vld [vmem:[%s16653_s5 + $0xb64] ss:$16 sps:$4 sm:$0xff]   ;;  %v5869_v47 = vadd.f32 %v14883_v12, %v14743_v59 }
 0x57d   : > { %v15085_v27 = vpop.eup %11134  ;;  %v6693_v32 = vpop.f32.mrf.mxu1  ;;  %6127 = vmatprep.mubr.bf16.mxu0 %v10581_v36  ;;  %v10579_v36 = vld [vmem:[%s16653_s5 + $0xb40] ss:$16 sps:$4 sm:$0xff]  }
 0x57e   : > { %v6694_v40 = vadd.f32 %v6693_v32, %v5861_v18  ;;  %v5931_v15 = vpop.f32.mrf.mxu0 }
 0x57f   : > { %v6695_v54 = vpop.f32.mrf.mxu1 }
 0x580   : > { %11142 = vtanh.f32 %v6694_v40  ;;  %v15099_v49 = vpop.f32.mrf.mxu0  ;;  %6889 = vmatmul.mubr.bf16.gmra.mxu1 %v10578_v39 }
 0x581   : > { %v6698_v26 = vpop.f32.mrf.mxu1  ;;  %9273 = vmatprep.mubr.msk.bf16.mxu1 %vm5074_vm4, %v10582_v14  ;;  %v15108_v54 = vpop.eup %11136 }
 0x582   : > { %v6699_v18 = vadd.f32 %v6698_v26, %v5866_v24  ;;  %v5934_v32 = vpop.f32.mrf.mxu0  ;;  %v10584_v26 = vld [vmem:[%s16653_s5 + $0xa48] ss:$16 sps:$4 sm:$0xff]   ;;  %v10588_v24 = vld [vmem:[%s16653_s5 + $0xa6c] ss:$16 sps:$4 sm:$0xff]  }
 0x583   : > { %v6700_v15 = vpop.f32.mrf.mxu1 }
 0x584   : > { %v15114_v39 = vpop.f32.mrf.mxu0  ;;  %6128 = vmatmul.mubr.bf16.gmra.mxu0 %v10579_v36  ;;  %11144 = vtanh.f32 %v6699_v18  ;;  %v5874_v36 = vadd.f32 %v14898_v8, %v14631_v38  ;;  %v10593_v18 = vld [vmem:[%s16653_s5 + $0xb84] ss:$16 sps:$4 sm:$0xff]   ;;  %v5877_v38 = vadd.f32 %v14910_v56, %v14646_v60 }
 0x585   : > { %v15112_v6 = vpop.eup %11138  ;;  %v6701_v40 = vpop.f32.mrf.mxu1  ;;  %6135 = vmatprep.mubr.bf16.mxu0 %v10587_v25  ;;  %v10585_v25 = vld [vmem:[%s16653_s5 + $0xb60] ss:$16 sps:$4 sm:$0xff]  }
 0x586   : > { %v6702_v14 = vadd.f32 %v6701_v40, %v5869_v47  ;;  %v5939_v59 = vpop.f32.mrf.mxu0 }
 0x587   : > { %v6703_v12 = vpop.f32.mrf.mxu1 }
 0x588   : > { %11146 = vtanh.f32 %v6702_v14  ;;  %v15126_v15 = vpop.f32.mrf.mxu0  ;;  %6897 = vmatmul.mubr.bf16.gmra.mxu1 %v10584_v26 }
 0x589   : > { %v6706_v41 = vpop.f32.mrf.mxu1  ;;  %9274 = vmatprep.mubr.msk.bf16.mxu1 %vm5074_vm4, %v10588_v24  ;;  %v15135_v59 = vpop.eup %11140  ;;  %v10590_v24 = vld [vmem:[%s16653_s5 + $0xa68] ss:$16 sps:$4 sm:$0xff]  }
 0x58a   : > { %v6707_v47 = vadd.f32 %v6706_v41, %v5874_v36  ;;  %v5942_v40 = vpop.f32.mrf.mxu0  ;;  %17048 = vst [vmem:[#allocation52_spill] sm:$0xff] %v15135_v59  ;;  %v10594_v41 = vld [vmem:[%s16653_s5 + $0xa8c] ss:$16 sps:$4 sm:$0xff]  }
 0x58b   : > { %v6708_v14 = vpop.f32.mrf.mxu1 }
 0x58c   : > { %v15141_v26 = vpop.f32.mrf.mxu0  ;;  %6136 = vmatmul.mubr.bf16.gmra.mxu0 %v10585_v25  ;;  %11148 = vtanh.f32 %v6707_v47  ;;  %v5882_v25 = vadd.f32 %v14925_v35, %v14534_v10  ;;  %v10599_v47 = vld [vmem:[%s16653_s5 + $0xba4] ss:$16 sps:$4 sm:$0xff]   ;;  %v5885_v10 = vadd.f32 %v14937_v42, %v14549_v13 }
 0x58d   : > { %v15139_v8 = vpop.eup %11142  ;;  %v6709_v12 = vpop.f32.mrf.mxu1  ;;  %6143 = vmatprep.mubr.bf16.mxu0 %v10593_v18  ;;  %v10591_v18 = vld [vmem:[%s16653_s5 + $0xb80] ss:$16 sps:$4 sm:$0xff]  }
 0x58e   : > { %17049 = vst [vmem:[#allocation53_spill] sm:$0xff] %v15139_v8  ;;  %v6710_v32 = vadd.f32 %v6709_v12, %v5877_v38  ;;  %v5947_v60 = vpop.f32.mrf.mxu0 }
 0x58f   : > { %v6711_v56 = vpop.f32.mrf.mxu1 }
 0x590   : > { %11150 = vtanh.f32 %v6710_v32  ;;  %v15153_v40 = vpop.f32.mrf.mxu0  ;;  %6905 = vmatmul.mubr.bf16.gmra.mxu1 %v10590_v24 }
 0x591   : > { %v6714_v14 = vpop.f32.mrf.mxu1  ;;  %9275 = vmatprep.mubr.msk.bf16.mxu1 %vm5074_vm4, %v10594_v41  ;;  %v15162_v60 = vpop.eup %11144  ;;  %v10596_v41 = vld [vmem:[%s16653_s5 + $0xa88] ss:$16 sps:$4 sm:$0xff]  }
 0x592   : > { %v6715_v38 = vadd.f32 %v6714_v14, %v5882_v25  ;;  %v5950_v12 = vpop.f32.mrf.mxu0  ;;  %v10600_v25 = vld [vmem:[%s16653_s5 + $0xaac] ss:$16 sps:$4 sm:$0xff]  }
 0x593   : > { %v6716_v32 = vpop.f32.mrf.mxu1 }
 0x594   : > { %v15168_v24 = vpop.f32.mrf.mxu0  ;;  %6144 = vmatmul.mubr.bf16.gmra.mxu0 %v10591_v18  ;;  %11152 = vtanh.f32 %v6715_v38  ;;  %v5890_v18 = vadd.f32 %v14952_v0, %v14437_v61  ;;  %v10605_v38 = vld [vmem:[%s16653_s5 + $0xbc4] ss:$16 sps:$4 sm:$0xff]   ;;  %v5893_v61 = vadd.f32 %v14964_v5, %v14452_v23 }
 0x595   : > { %v15166_v35 = vpop.eup %11146  ;;  %v6717_v56 = vpop.f32.mrf.mxu1  ;;  %6151 = vmatprep.mubr.bf16.mxu0 %v10599_v47  ;;  %v10597_v47 = vld [vmem:[%s16653_s5 + $0xba0] ss:$16 sps:$4 sm:$0xff]  }
 0x596   : > { %v6718_v36 = vadd.f32 %v6717_v56, %v5885_v10  ;;  %v5955_v13 = vpop.f32.mrf.mxu0 }
 0x597   : > { %v6719_v42 = vpop.f32.mrf.mxu1 }
 0x598   : > { %11154 = vtanh.f32 %v6718_v36  ;;  %v15180_v12 = vpop.f32.mrf.mxu0  ;;  %6913 = vmatmul.mubr.bf16.gmra.mxu1 %v10596_v41 }
 0x599   : > { %v6722_v32 = vpop.f32.mrf.mxu1  ;;  %9276 = vmatprep.mubr.msk.bf16.mxu1 %vm5074_vm4, %v10600_v25  ;;  %v15189_v13 = vpop.eup %11148  ;;  %v10602_v25 = vld [vmem:[%s16653_s5 + $0xaa8] ss:$16 sps:$4 sm:$0xff]  }
 0x59a   : > { %v6723_v10 = vadd.f32 %v6722_v32, %v5890_v18  ;;  %v5958_v56 = vpop.f32.mrf.mxu0  ;;  %v10606_v18 = vld [vmem:[%s16653_s5 + $0xacc] ss:$16 sps:$4 sm:$0xff]  }
 0x59b   : > { %v6724_v36 = vpop.f32.mrf.mxu1  ;;  %v17050_v56 = vld [vmem:[#allocation120_spill] sm:$0xff] }
 0x59c   : > { %v15195_v41 = vpop.f32.mrf.mxu0  ;;  %6152 = vmatmul.mubr.bf16.gmra.mxu0 %v10597_v47  ;;  %11156 = vtanh.f32 %v6723_v10  ;;  %v5898_v47 = vadd.f32 %v14979_v45, %v17050_v56  ;;  %v10611_v10 = vld [vmem:[%s16653_s5 + $0xbe4] ss:$16 sps:$4 sm:$0xff]   ;;  %v15218_v45 = vpop.permute.xlu1 %2906 }
 0x59d   : > { %v15193_v0 = vpop.eup %11150  ;;  %v6725_v42 = vpop.f32.mrf.mxu1  ;;  %6159 = vmatprep.mubr.bf16.mxu0 %v10605_v38  ;;  %v10603_v38 = vld [vmem:[%s16653_s5 + $0xbc0] ss:$16 sps:$4 sm:$0xff]   ;;  %17052 = vst [vmem:[#allocation49_spill] sm:$0xff] %v15218_v45 }
 0x59e   : > { %v6726_v14 = vadd.f32 %v6725_v42, %v5893_v61  ;;  %v5963_v23 = vpop.f32.mrf.mxu0 }
 0x59f   : > { %v6727_v5 = vpop.f32.mrf.mxu1 }
 0x5a0   : > { %11158 = vtanh.f32 %v6726_v14  ;;  %v15207_v36 = vpop.f32.mrf.mxu0  ;;  %6921 = vmatmul.mubr.bf16.gmra.mxu1 %v10602_v25  ;;  %v17053_v5 = vld [vmem:[#allocation121_spill] sm:$0xff] }
 0x5a1   : > { %17051 = vst [vmem:[#allocation48_spill] sm:$0xff] %v15207_v36  ;;  %v6730_v46 = vpop.f32.mrf.mxu1  ;;  %9277 = vmatprep.mubr.msk.bf16.mxu1 %vm5074_vm4, %v10606_v18  ;;  %v15216_v23 = vpop.eup %11152  ;;  %v5901_v25 = vadd.f32 %v14991_v20, %v17053_v5  ;;  %v10608_v36 = vld [vmem:[%s16653_s5 + $0xac8] ss:$16 sps:$4 sm:$0xff]  }
 0x5a2   : > { %v6731_v61 = vadd.f32 %v6730_v46, %v5898_v47  ;;  %v5966_v42 = vpop.f32.mrf.mxu0  ;;  %v10612_v47 = vld [vmem:[%s16653_s5 + $0xaec] ss:$16 sps:$4 sm:$0xff]   ;;  %v15234_v5 = vpop.permute.xlu0 %2911 }
 0x5a3   : > { %v6732_v14 = vpop.f32.mrf.mxu1  ;;  %17055 = vst [vmem:[#allocation45_spill] sm:$0xff] %v15234_v5 }
 0x5a4   : > { %v15224_v32 = vpop.f32.mrf.mxu0  ;;  %6160 = vmatmul.mubr.bf16.gmra.mxu0 %v10603_v38  ;;  %11160 = vtanh.f32 %v6731_v61  ;;  %v17056_v38 = vld [vmem:[#allocation112_spill] sm:$0xff]  ;;  %v10617_v61 = vld [vmem:[%s16653_s5 + $0xc04] ss:$16 sps:$4 sm:$0xff]  }
 0x5a5   : > { %v15222_v56 = vpop.eup %11154  ;;  %17054 = vst [vmem:[#allocation44_spill] sm:$0xff] %v15224_v32  ;;  %v6733_v18 = vpop.f32.mrf.mxu1  ;;  %6167 = vmatprep.mubr.bf16.mxu0 %v10611_v10  ;;  %v5906_v45 = vadd.f32 %v15006_v50, %v17056_v38  ;;  %v10609_v10 = vld [vmem:[%s16653_s5 + $0xbe0] ss:$16 sps:$4 sm:$0xff]  }
 0x5a6   : > { %v6734_v46 = vadd.f32 %v6733_v18, %v5901_v25  ;;  %v5971_v20 = vpop.f32.mrf.mxu0  ;;  %v15243_v18 = vpop.permute.xlu1 %2826  ;;  %v17058_v38 = vld [vmem:[#allocation113_spill] sm:$0xff] }
 0x5a7   : > { %v6735_v14 = vpop.f32.mrf.mxu1  ;;  %v15260_v59 = vpop.permute.xlu0 %2831 }
 0x5a8   : > { %11162 = vtanh.f32 %v6734_v46  ;;  %v15238_v32 = vpop.f32.mrf.mxu0  ;;  %6929 = vmatmul.mubr.bf16.gmra.mxu1 %v10608_v36  ;;  %v5909_v36 = vadd.f32 %v15018_v29, %v17058_v38  ;;  %v17061_v38 = vld [vmem:[#allocation108_spill] sm:$0xff] }
 0x5a9   : > { %17057 = vst [vmem:[#allocation106_spill] sm:$0xff] %v15238_v32  ;;  %v6738_v25 = vpop.f32.mrf.mxu1  ;;  %9278 = vmatprep.mubr.msk.bf16.mxu1 %vm5074_vm4, %v10612_v47  ;;  %v15249_v50 = vpop.eup %11156  ;;  %v10614_v47 = vld [vmem:[%s16653_s5 + $0xae8] ss:$16 sps:$4 sm:$0xff]  }
 0x5aa   : > { %v6739_v46 = vadd.f32 %v6738_v25, %v5906_v45  ;;  %v5974_v20 = vpop.f32.mrf.mxu0  ;;  %v10618_v25 = vld [vmem:[%s16653_s5 + $0xb0c] ss:$16 sps:$4 sm:$0xff]  }
 0x5ab   : > { %v6740_v14 = vpop.f32.mrf.mxu1 }
 0x5ac   : > { %v15255_v5 = vpop.f32.mrf.mxu0  ;;  %6168 = vmatmul.mubr.bf16.gmra.mxu0 %v10609_v10  ;;  %11164 = vtanh.f32 %v6739_v46  ;;  %v15267_v10 = vpop.permute.xlu1 %2896  ;;  %v10623_v46 = vld [vmem:[%s16653_s5 + $0xc24] ss:$16 sps:$4 sm:$0xff]  }
 0x5ad   : > { %v15253_v42 = vpop.eup %11158  ;;  %17059 = vst [vmem:[#allocation107_spill] sm:$0xff] %v15255_v5  ;;  %v6741_v32 = vpop.f32.mrf.mxu1  ;;  %6175 = vmatprep.mubr.bf16.mxu0 %v10617_v61  ;;  %17060 = vst [vmem:[#allocation102_spill] sm:$0xff] %v15267_v10  ;;  %v5914_v5 = vadd.f32 %v15033_v7, %v17061_v38  ;;  %v10615_v61 = vld [vmem:[%s16653_s5 + $0xc00] ss:$16 sps:$4 sm:$0xff]  }
 0x5ae   : > { %v6742_v45 = vadd.f32 %v6741_v32, %v5909_v36  ;;  %v5979_v20 = vpop.f32.mrf.mxu0  ;;  %v15282_v7 = vpop.permute.xlu0 %2901  ;;  %v17064_v38 = vld [vmem:[#allocation109_spill] sm:$0xff] }
 0x5af   : > { %v6743_v14 = vpop.f32.mrf.mxu1  ;;  %17063 = vst [vmem:[#allocation98_spill] sm:$0xff] %v15282_v7 }
 0x5b0   : > { %11166 = vtanh.f32 %v6742_v45  ;;  %v15271_v8 = vpop.f32.mrf.mxu0  ;;  %6937 = vmatmul.mubr.bf16.gmra.mxu1 %v10614_v47  ;;  %v5917_v47 = vadd.f32 %v15045_v1, %v17064_v38 }
 0x5b1   : > { %17062 = vst [vmem:[#allocation103_spill] sm:$0xff] %v15271_v8  ;;  %v6746_v32 = vpop.f32.mrf.mxu1  ;;  %9279 = vmatprep.mubr.msk.bf16.mxu1 %vm5074_vm4, %v10618_v25  ;;  %v15280_v14 = vpop.eup %11160  ;;  %v10620_v8 = vld [vmem:[%s16653_s5 + $0xb08] ss:$16 sps:$4 sm:$0xff]  }
 0x5b2   : > { %v6747_v36 = vadd.f32 %v6746_v32, %v5914_v5  ;;  %v5982_v20 = vpop.f32.mrf.mxu0  ;;  %v2817_v5 = vpop.permute.xlu1 %2816 }
 0x5b3   : > { %v6748_v45 = vpop.f32.mrf.mxu1  ;;  %v10624_v20 = vld [vmem:[%s16653_s5 + $0xb2c] ss:$16 sps:$4 sm:$0xff]  }
 0x5b4   : > { %v15288_v10 = vpop.f32.mrf.mxu0  ;;  %6176 = vmatmul.mubr.bf16.gmra.mxu0 %v10615_v61  ;;  %11168 = vtanh.f32 %v6747_v36  ;;  %v5922_v61 = vadd.f32 %v15060_v22, %v2817_v5  ;;  %v10629_v36 = vld [vmem:[%s16653_s5 + $0xc44] ss:$16 sps:$4 sm:$0xff]  }
 0x5b5   : > { %v15286_v29 = vpop.eup %11162  ;;  %17065 = vst [vmem:[#allocation99_spill] sm:$0xff] %v15288_v10  ;;  %v6749_v25 = vpop.f32.mrf.mxu1  ;;  %6183 = vmatprep.mubr.bf16.mxu0 %v10623_v46  ;;  %v10621_v46 = vld [vmem:[%s16653_s5 + $0xc20] ss:$16 sps:$4 sm:$0xff]  }
 0x5b6   : > { %v6750_v32 = vadd.f32 %v6749_v25, %v5917_v47  ;;  %v5987_v45 = vpop.f32.mrf.mxu0  ;;  %v2822_v47 = vpop.permute.xlu0 %2821 }
 0x5b7   : > { %v6751_v38 = vpop.f32.mrf.mxu1  ;;  %v5925_v5 = vadd.f32 %v15072_v48, %v2822_v47  ;;  %v5930_v48 = vadd.f32 %v15087_v62, %v15243_v18  ;;  %v5933_v62 = vadd.f32 %v15099_v49, %v15260_v59  ;;  %v5938_v49 = vadd.f32 %v15114_v39, %v14801_v52  ;;  %v10641_v52 = vld [vmem:[%s16655_s7 + $0x4] ss:$52 sps:$4 sm:$0xff]  }
 0x5b8   : > { %11170 = vtanh.f32 %v6750_v32  ;;  %v15299_v7 = vpop.f32.mrf.mxu0  ;;  %6945 = vmatmul.mubr.bf16.gmra.mxu1 %v10620_v8 }
 0x5b9   : > { %17066 = vst [vmem:[#allocation94_spill] sm:$0xff] %v15299_v7  ;;  %v6754_v10 = vpop.f32.mrf.mxu1  ;;  %9280 = vmatprep.mubr.msk.bf16.mxu1 %vm5074_vm4, %v10624_v20  ;;  %v11165_v22 = vpop.eup %11164  ;;  %v10630_v20 = vld [vmem:[%s16653_s5 + $0xb4c] ss:$16 sps:$4 sm:$0xff]  }
 0x5ba   : > { %v6755_v25 = vadd.f32 %v6754_v10, %v5922_v61  ;;  %v5990_v45 = vpop.f32.mrf.mxu0  ;;  %v10626_v10 = vld [vmem:[%s16653_s5 + $0xb28] ss:$16 sps:$4 sm:$0xff]  }
 0x5bb   : > { %v6756_v38 = vpop.f32.mrf.mxu1 }
 0x5bc   : > { %v15309_v1 = vpop.f32.mrf.mxu0  ;;  %6184 = vmatmul.mubr.bf16.gmra.mxu0 %v10621_v46  ;;  %11172 = vtanh.f32 %v6755_v25  ;;  %v10635_v25 = vld [vmem:[%s16653_s5 + $0xc64] ss:$16 sps:$4 sm:$0xff]  }
 0x5bd   : > { %v11167_v32 = vpop.eup %11166  ;;  %v6757_v8 = vpop.f32.mrf.mxu1  ;;  %6191 = vmatprep.mubr.bf16.mxu0 %v10629_v36  ;;  %v10627_v36 = vld [vmem:[%s16653_s5 + $0xc40] ss:$16 sps:$4 sm:$0xff]  }
 0x5be   : > { %v6758_v61 = vadd.f32 %v6757_v8, %v5925_v5  ;;  %v7303_v45 = vpack.c.bf16 %v11167_v32, %v11165_v22  ;;  %v5995_v38 = vpop.f32.mrf.mxu0 }
 0x5bf   : > { %v6759_v7 = vpop.f32.mrf.mxu1 }
 0x5c0   : > { %11174 = vtanh.f32 %v6758_v61  ;;  %v15319_v46 = vpop.f32.mrf.mxu0  ;;  %6953 = vmatmul.mubr.bf16.gmra.mxu1 %v10626_v10  ;;  %v10632_v61 = vld [vmem:[%s16653_s5 + $0xb48] ss:$16 sps:$4 sm:$0xff]  }
 0x5c1   : > { %v6762_v47 = vpop.f32.mrf.mxu1  ;;  %9281 = vmatprep.mubr.msk.bf16.mxu1 %vm5074_vm4, %v10630_v20  ;;  %v11169_v32 = vpop.eup %11168 }
 0x5c2   : > { %v6763_v5 = vadd.f32 %v6762_v47, %v5930_v48  ;;  %v5998_v7 = vpop.f32.mrf.mxu0  ;;  %v10636_v48 = vld [vmem:[%s16653_s5 + $0xb6c] ss:$16 sps:$4 sm:$0xff]  }
 0x5c3   : > { %v6764_v22 = vpop.f32.mrf.mxu1 }
 0x5c4   : > { %v15330_v8 = vpop.f32.mrf.mxu0  ;;  %6192 = vmatmul.mubr.bf16.gmra.mxu0 %v10627_v36  ;;  %11176 = vtanh.f32 %v6763_v5 }
 0x5c5   : > { %v11171_v18 = vpop.eup %11170  ;;  %v6765_v10 = vpop.f32.mrf.mxu1  ;;  %6199 = vmatprep.mubr.bf16.mxu0 %v10635_v25  ;;  %v10633_v25 = vld [vmem:[%s16653_s5 + $0xc60] ss:$16 sps:$4 sm:$0xff]  }
 0x5c6   : > { %v6766_v20 = vadd.f32 %v6765_v10, %v5933_v62  ;;  %v7304_v38 = vpack.c.bf16 %v11171_v18, %v11169_v32  ;;  %v6003_v47 = vpop.f32.mrf.mxu0  ;;  %v17067_v32 = vpack.c.bf16 %v15112_v6, %v15108_v54  ;;  %v5941_v18 = vadd.f32 %v15126_v15, %v14818_v53  ;;  %v10638_v6 = vld [vmem:[%s16653_s5 + $0xb68] ss:$16 sps:$4 sm:$0xff]   ;;  %v10642_v53 = vld [vmem:[%s16653_s5 + $0xb8c] ss:$16 sps:$4 sm:$0xff]  }
 0x5c7   : > { %v6767_v7 = vpop.f32.mrf.mxu1 }
 0x5c8   : > { %11178 = vtanh.f32 %v6766_v20  ;;  %9607 = vmatprep.subr.bf16.mxu1 %v7304_v38  ;;  %v15340_v59 = vpop.f32.mrf.mxu0  ;;  %6961 = vmatmul.mubr.bf16.gmra.mxu1 %v10632_v61  ;;  %v17071_v38 = vpack.c.bf16 %v15286_v29, %v15280_v14  ;;  %v15374_v7 = vpop.permute.xlu1 %3126  ;;  %v17073_v29 = vpack.c.bf16 %v15058_v55, %v15054_v28  ;;  %v17074_v14 = vpack.c.bf16 %v15253_v42, %v15249_v50  ;;  %v10647_v28 = vld [vmem:[%s16655_s7 + $0x6c] ss:$52 sps:$4 sm:$0xff]   ;;  %v10644_v42 = vld [vmem:[%s16653_s5 + $0xb88] ss:$16 sps:$4 sm:$0xff]  }
 0x5c9   : > { %v6770_v36 = vpop.f32.mrf.mxu1  ;;  %9608 = vmatpush3.bf16.msra.mxu1 %v17067_v32  ;;  %9282 = vmatprep.mubr.msk.bf16.mxu1 %vm5074_vm4, %v10636_v48  ;;  %v15352_v62 = vpop.eup %11172  ;;  %17072 = vst [vmem:[#allocation91_spill] sm:$0xff] %v15374_v7 }
 0x5ca   : > { %v6771_v22 = vadd.f32 %v6770_v36, %v5938_v49  ;;  %9609 = vmatprep.subr.bf16.mxu1 %v7303_v45  ;;  %v6006_v39 = vpop.f32.mrf.mxu0  ;;  %17068 = vst [vmem:[#allocation95_spill] sm:$0xff] %v15352_v62  ;;  %v17070_v45 = vpack.c.bf16 %v15085_v27, %v15081_v16  ;;  %v5946_v16 = vadd.f32 %v15141_v26, %v14704_v58  ;;  %v10639_v36 = vld [vmem:[%s16655_s7] ss:$52 sps:$4 sm:$0xff]   ;;  %v15392_v32 = vpop.permute.xlu0 %3131 }
 0x5cb   : > { %v6772_v5 = vpop.f32.mrf.mxu1  ;;  %17075 = vst [vmem:[#allocation86_spill] sm:$0xff] %v15392_v32 }
 0x5cc   : > { %v15358_v61 = vpop.f32.mrf.mxu0  ;;  %6200 = vmatmul.mubr.bf16.gmra.mxu0 %v10633_v25  ;;  %11180 = vtanh.f32 %v6771_v22  ;;  %v15406_v50 = vpop.permute.xlu1 %3046 }
 0x5cd   : > { %v15356_v10 = vpop.eup %11174  ;;  %v6773_v54 = vpop.f32.mrf.mxu1  ;;  %9610 = vmatpush3.bf16.msra.mxu1 %v17070_v45  ;;  %7999 = vmatprep.mubr.bf16.mxu0 %v10641_v52  ;;  %v5949_v52 = vadd.f32 %v15153_v40, %v14721_v17  ;;  %17076 = vst [vmem:[#allocation87_spill] sm:$0xff] %v15406_v50  ;;  %v17077_v17 = vpack.c.bf16 %v14188_v63, %v14184_v19  ;;  %v10648_v63 = vld [vmem:[%s16653_s5 + $0xbac] ss:$16 sps:$4 sm:$0xff]  }
 0x5ce   : > { %17069 = vst [vmem:[#allocation90_spill] sm:$0xff] %v15356_v10  ;;  %v6774_v20 = vadd.f32 %v6773_v54, %v5941_v18  ;;  %9611 = vmatprep.subr.bf16.mxu1 %v17071_v38  ;;  %v6011_v48 = vpop.f32.mrf.mxu0  ;;  %v17078_v40 = vpack.c.bf16 %v15031_v4, %v15027_v51  ;;  %v5954_v19 = vadd.f32 %v15168_v24, %v14607_v3 }
 0x5cf   : > { %v6775_v47 = vpop.f32.mrf.mxu1  ;;  %v17082_v3 = vpack.c.bf16 %v14161_v43, %v14157_v11  ;;  %v17083_v24 = vpack.c.bf16 %v15004_v37, %v15000_v31  ;;  %v17085_v38 = vpack.c.bf16 %v15193_v0, %v15189_v13  ;;  %v17087_v11 = vld [vmem:[#allocation75_spill] sm:$0xff]  ;;  %v10650_v13 = vld [vmem:[%s16653_s5 + $0xba8] ss:$16 sps:$4 sm:$0xff]  }
 0x5d0   : > { %11182 = vtanh.f32 %v6774_v20  ;;  %v15378_v27 = vpop.f32.mrf.mxu0  ;;  %6969 = vmatmul.mubr.bf16.gmra.mxu1 %v10638_v6  ;;  %v17079_v6 = vpack.c.bf16 %v14377_v21, %v14373_v2  ;;  %v17080_v20 = vpack.c.bf16 %v15222_v56, %v15216_v23  ;;  %v10645_v2 = vld [vmem:[%s16655_s7 + $0x68] ss:$52 sps:$4 sm:$0xff]   ;;  %v15432_v21 = vpop.permute.xlu0 %3051  ;;  %v17084_v56 = vpack.c.bf16 %v14350_v33, %v14346_v34 }
 0x5d1   : > { %v6778_v49 = vpop.f32.mrf.mxu1  ;;  %9612 = vmatpush3.bf16.msra.mxu1 %v17073_v29  ;;  %9283 = vmatprep.mubr.msk.bf16.mxu1 %vm5074_vm4, %v10642_v53  ;;  %v15390_v22 = vpop.eup %11176  ;;  %17081 = vst [vmem:[#allocation82_spill] sm:$0xff] %v15432_v21  ;;  %v5957_v43 = vadd.f32 %v15180_v12, %v17087_v11  ;;  %v10653_v34 = vld [vmem:[%s16655_s7 + $0xd4] ss:$52 sps:$4 sm:$0xff]   ;;  %v17091_v29 = vpack.c.bf16 %v14977_v30, %v14973_v57  ;;  %v10654_v30 = vld [vmem:[%s16653_s5 + $0xbcc] ss:$16 sps:$4 sm:$0xff]  }
 0x5d2   : > { %v6779_v25 = vadd.f32 %v6778_v49, %v5946_v16  ;;  %9613 = vmatprep.subr.bf16.mxu1 %v17074_v14  ;;  %v6014_v58 = vpop.f32.mrf.mxu0  ;;  %v15448_v49 = vpop.permute.xlu1 %3116  ;;  %v17109_v11 = vld [vmem:[#allocation34_spill] sm:$0xff] }
 0x5d3   : > { %v6780_v26 = vpop.f32.mrf.mxu1  ;;  %17086 = vst [vmem:[#allocation83_spill] sm:$0xff] %v15448_v49  ;;  %v17092_v58 = vld [vmem:[#allocation24_spill] sm:$0xff] }
 0x5d4   : > { %v15401_v39 = vpop.f32.mrf.mxu0  ;;  %8000 = vmatmul.mubr.bf16.vlgmr.msra.gmra.mxu0 %v10639_v36  ;;  %11184 = vtanh.f32 %v6779_v25  ;;  %v17088_v36 = vld [vmem:[#allocation10_spill] sm:$0xff]  ;;  %v17089_v25 = vld [vmem:[#allocation7_spill] sm:$0xff] }
 0x5d5   : > { %v15399_v55 = vpop.eup %11178  ;;  %v6781_v5 = vpop.f32.mrf.mxu1  ;;  %9492 = vmatpush3.bf16.msra.mxu0 %v17077_v17  ;;  %9614 = vmatpush3.bf16.msra.mxu1 %v17078_v40  ;;  %v17090_v12 = vpack.c.bf16 %v17088_v36, %v17089_v25  ;;  %v17093_v26 = vld [vmem:[#allocation23_spill] sm:$0xff]  ;;  %v17112_v25 = vld [vmem:[#allocation4_spill] sm:$0xff] }
 0x5d6   : > { %v6782_v18 = vadd.f32 %v6781_v5, %v5949_v52  ;;  %9493 = vmatprep.subr.bf16.mxu0 %v17079_v6  ;;  %9615 = vmatprep.subr.bf16.mxu1 %v17080_v20  ;;  %v6019_v45 = vpop.f32.mrf.mxu0  ;;  %v17094_v52 = vpack.c.bf16 %v17092_v58, %v17093_v26  ;;  %v17097_v17 = vld [vmem:[#allocation39_spill] sm:$0xff]  ;;  %v17115_v58 = vld [vmem:[#allocation57_spill] sm:$0xff]  ;;  %v17116_v26 = vld [vmem:[#allocation56_spill] sm:$0xff] }
 0x5d7   : > { %v6783_v53 = vpop.f32.mrf.mxu1  ;;  %8007 = vmatprep.mubr.bf16.mxu0 %v10647_v28  ;;  %v17095_v28 = vpack.c.bf16 %v15166_v35, %v15162_v60  ;;  %v5962_v57 = vadd.f32 %v15195_v41, %v17097_v17  ;;  %v10651_v60 = vld [vmem:[%s16655_s7 + $0xd0] ss:$52 sps:$4 sm:$0xff]   ;;  %v15489_v35 = vpop.permute.xlu1 %3036  ;;  %v17099_v45 = vld [vmem:[#allocation8_spill] sm:$0xff]  ;;  %v17119_v17 = vld [vmem:[#allocation14_spill] sm:$0xff] }
 0x5d8   : > { %11186 = vtanh.f32 %v6782_v18  ;;  %v15427_v51 = vpop.f32.mrf.mxu0  ;;  %6977 = vmatmul.mubr.bf16.gmra.mxu1 %v10644_v42  ;;  %v15477_v18 = vpop.permute.xlu0 %3121  ;;  %17098 = vst [vmem:[#allocation79_spill] sm:$0xff] %v15489_v35  ;;  %v17100_v53 = vld [vmem:[#allocation5_spill] sm:$0xff] }
 0x5d9   : > { %v6786_v4 = vpop.f32.mrf.mxu1  ;;  %9494 = vmatpush3.bf16.msra.mxu0 %v17082_v3  ;;  %9616 = vmatpush3.bf16.msra.mxu1 %v17083_v24  ;;  %v15446_v16 = vpop.eup %11180  ;;  %17096 = vst [vmem:[#allocation78_spill] sm:$0xff] %v15477_v18  ;;  %v17101_v41 = vpack.c.bf16 %v17099_v45, %v17100_v53  ;;  %v17107_v3 = vld [vmem:[#allocation52_spill] sm:$0xff]  ;;  %v17122_v45 = vld [vmem:[#allocation126_spill] sm:$0xff] }
 0x5da   : > { %v6787_v23 = vadd.f32 %v6786_v4, %v5954_v19  ;;  %9495 = vmatprep.subr.bf16.mxu0 %v17084_v56  ;;  %9617 = vmatprep.subr.bf16.mxu1 %v17085_v38  ;;  %v6022_v48 = vpop.f32.mrf.mxu0  ;;  %v17102_v19 = vpack.c.bf16 %v14950_v44, %v14946_v9  ;;  %v17104_v4 = vld [vmem:[#allocation20_spill] sm:$0xff] }
 0x5db   : > { %v6788_v47 = vpop.f32.mrf.mxu1  ;;  %9284 = vmatprep.mubr.msk.bf16.mxu1 %vm5074_vm4, %v10648_v63  ;;  %v17103_v63 = vld [vmem:[#allocation22_spill] sm:$0xff]  ;;  %v17123_v53 = vld [vmem:[#allocation44_spill] sm:$0xff] }
 0x5dc   : > { %v15458_v31 = vpop.f32.mrf.mxu0  ;;  %8008 = vmatmul.mubr.bf16.gmra.mxu0 %v10645_v2  ;;  %11188 = vtanh.f32 %v6787_v23  ;;  %v17105_v2 = vpack.c.bf16 %v17103_v63, %v17104_v4  ;;  %v17106_v23 = vld [vmem:[#allocation53_spill] sm:$0xff] }
 0x5dd   : > { %v15456_v33 = vpop.eup %11182  ;;  %v6789_v37 = vpop.f32.mrf.mxu1  ;;  %9496 = vmatpush3.bf16.msra.mxu0 %v17090_v12  ;;  %9618 = vmatpush3.bf16.msra.mxu1 %v17091_v29  ;;  %v17108_v24 = vpack.c.bf16 %v17106_v23, %v17107_v3  ;;  %v10659_v48 = vld [vmem:[%s16655_s7 + $0x13c] ss:$52 sps:$4 sm:$0xff]   ;;  %v17125_v23 = vld [vmem:[#allocation16_spill] sm:$0xff] }
 0x5de   : > { %v6790_v0 = vadd.f32 %v6789_v37, %v5957_v43  ;;  %9497 = vmatprep.subr.bf16.mxu0 %v17094_v52  ;;  %9619 = vmatprep.subr.bf16.mxu1 %v17095_v28  ;;  %v6027_v5 = vpop.f32.mrf.mxu0  ;;  %v17110_v43 = vld [vmem:[#allocation48_spill] sm:$0xff]  ;;  %v17113_v12 = vld [vmem:[#allocation6_spill] sm:$0xff]  ;;  %v17117_v52 = vpack.c.bf16 %v17115_v58, %v17116_v26 }
 0x5df   : > { %v6791_v42 = vpop.f32.mrf.mxu1  ;;  %8015 = vmatprep.mubr.bf16.mxu0 %v10653_v34  ;;  %v5965_v9 = vadd.f32 %v17110_v43, %v17109_v11  ;;  %v17114_v29 = vpack.c.bf16 %v17112_v25, %v17113_v12  ;;  %v10660_v28 = vld [vmem:[%s16653_s5 + $0xbec] ss:$16 sps:$4 sm:$0xff]   ;;  %v10662_v26 = vld [vmem:[%s16653_s5 + $0xbe8] ss:$16 sps:$4 sm:$0xff]  }
 0x5e0   : > { %11190 = vtanh.f32 %v6790_v0  ;;  %v15484_v40 = vpop.f32.mrf.mxu0  ;;  %6985 = vmatmul.mubr.bf16.gmra.mxu1 %v10650_v13  ;;  %v10656_v13 = vld [vmem:[%s16653_s5 + $0xbc8] ss:$16 sps:$4 sm:$0xff]   ;;  %v15518_v0 = vpop.permute.xlu0 %3041  ;;  %v17118_v42 = vld [vmem:[#allocation21_spill] sm:$0xff] }
 0x5e1   : > { %v6794_v6 = vpop.f32.mrf.mxu1  ;;  %9498 = vmatpush3.bf16.msra.mxu0 %v17101_v41  ;;  %9620 = vmatpush3.bf16.msra.mxu1 %v17102_v19  ;;  %v15506_v47 = vpop.eup %11184  ;;  %17111 = vst [vmem:[#allocation104_spill] sm:$0xff] %v15518_v0  ;;  %v5970_v41 = vadd.f32 %v17123_v53, %v17122_v45  ;;  %v17136_v45 = vld [vmem:[#allocation12_spill] sm:$0xff]  ;;  %v17137_v53 = vld [vmem:[#allocation9_spill] sm:$0xff] }
 0x5e2   : > { %v6795_v20 = vadd.f32 %v6794_v6, %v5962_v57  ;;  %9499 = vmatprep.subr.bf16.mxu0 %v17105_v2  ;;  %9621 = vmatprep.subr.bf16.mxu1 %v17108_v24  ;;  %v6030_v56 = vpop.f32.mrf.mxu0  ;;  %v17120_v57 = vpack.c.bf16 %v17118_v42, %v17119_v17  ;;  %v17124_v2 = vld [vmem:[#allocation3_spill] sm:$0xff]  ;;  %v17134_v17 = vld [vmem:[#allocation17_spill] sm:$0xff] }
 0x5e3   : > { %v6796_v38 = vpop.f32.mrf.mxu1  ;;  %9285 = vmatprep.mubr.msk.bf16.mxu1 %vm5074_vm4, %v10654_v30  ;;  %v17126_v3 = vpack.c.bf16 %v17124_v2, %v17125_v23  ;;  %v10665_v24 = vld [vmem:[%s16655_s7 + $0x1a4] ss:$52 sps:$4 sm:$0xff]  }
 0x5e4   : > { %v15513_v34 = vpop.f32.mrf.mxu0  ;;  %8016 = vmatmul.mubr.bf16.gmra.mxu0 %v10651_v60  ;;  %11192 = vtanh.f32 %v6795_v20  ;;  %v15534_v60 = vpop.permute.xlu1 %3106  ;;  %v10657_v20 = vld [vmem:[%s16655_s7 + $0x138] ss:$52 sps:$4 sm:$0xff]   ;;  %v17127_v56 = vld [vmem:[#allocation15_spill] sm:$0xff] }
 0x5e5   : > { %v15511_v44 = vpop.eup %11186  ;;  %v6797_v37 = vpop.f32.mrf.mxu1  ;;  %9500 = vmatpush3.bf16.msra.mxu0 %v17114_v29  ;;  %9622 = vmatpush3.bf16.msra.mxu1 %v17117_v52  ;;  %17121 = vst [vmem:[#allocation105_spill] sm:$0xff] %v15534_v60  ;;  %v17128_v38 = vld [vmem:[#allocation11_spill] sm:$0xff]  ;;  %v17139_v2 = vld [vmem:[#allocation118_spill] sm:$0xff] }
 0x5e6   : > { %v6798_v36 = vadd.f32 %v6797_v37, %v5965_v9  ;;  %9501 = vmatprep.subr.bf16.mxu0 %v17120_v57  ;;  %v6035_v30 = vpop.f32.mrf.mxu0  ;;  %8023 = vmatprep.mubr.bf16.mxu0 %v10659_v48  ;;  %v17129_v48 = vpack.c.bf16 %v17127_v56, %v17128_v38  ;;  %v15555_v37 = vpop.permute.xlu0 %3111  ;;  %v17133_v42 = vld [vmem:[#allocation19_spill] sm:$0xff] }
 0x5e7   : > { %v6799_v6 = vpop.f32.mrf.mxu1  ;;  %17130 = vst [vmem:[#allocation100_spill] sm:$0xff] %v15555_v37  ;;  %v17135_v57 = vpack.c.bf16 %v17133_v42, %v17134_v17  ;;  %v10666_v30 = vld [vmem:[%s16653_s5 + $0xc0c] ss:$16 sps:$4 sm:$0xff]   ;;  %v17140_v23 = vld [vmem:[#allocation107_spill] sm:$0xff]  ;;  %v17165_v37 = vld [vmem:[#allocation65_spill] sm:$0xff] }
 0x5e8   : > { %11194 = vtanh.f32 %v6798_v36  ;;  %v15538_v19 = vpop.f32.mrf.mxu0  ;;  %6993 = vmatmul.mubr.bf16.gmra.mxu1 %v10656_v13  ;;  %v17131_v13 = vld [vmem:[#allocation127_spill] sm:$0xff]  ;;  %v17132_v36 = vld [vmem:[#allocation106_spill] sm:$0xff]  ;;  %v15566_v52 = vpop.permute.xlu1 %3026 }
 0x5e9   : > { %v6802_v63 = vpop.f32.mrf.mxu1  ;;  %9502 = vmatpush3.bf16.msra.mxu0 %v17126_v3  ;;  %9286 = vmatprep.mubr.msk.bf16.mxu1 %vm5074_vm4, %v10660_v28  ;;  %v15553_v9 = vpop.eup %11188  ;;  %v5973_v25 = vadd.f32 %v17132_v36, %v17131_v13  ;;  %v5978_v3 = vadd.f32 %v17140_v23, %v17139_v2  ;;  %v10663_v38 = vld [vmem:[%s16655_s7 + $0x1a0] ss:$52 sps:$4 sm:$0xff]   ;;  %v10668_v2 = vld [vmem:[%s16653_s5 + $0xc08] ss:$16 sps:$4 sm:$0xff]  }
 0x5ea   : > { %v6803_v4 = vadd.f32 %v6802_v63, %v5970_v41  ;;  %9503 = vmatprep.subr.bf16.mxu0 %v17129_v48  ;;  %v6038_v11 = vpop.f32.mrf.mxu0  ;;  %v17138_v41 = vpack.c.bf16 %v17136_v45, %v17137_v53  ;;  %v15586_v48 = vpop.permute.xlu0 %3031  ;;  %v10671_v36 = vld [vmem:[%s16655_s7 + $0x20c] ss:$52 sps:$4 sm:$0xff]  }
 0x5eb   : > { %v6804_v43 = vpop.f32.mrf.mxu1  ;;  %v17141_v11 = vld [vmem:[#allocation18_spill] sm:$0xff]  ;;  %v17148_v45 = vld [vmem:[#allocation119_spill] sm:$0xff] }
 0x5ec   : > { %v15561_v29 = vpop.f32.mrf.mxu0  ;;  %8024 = vmatmul.mubr.bf16.gmra.mxu0 %v10657_v20  ;;  %11196 = vtanh.f32 %v6803_v4  ;;  %v17142_v43 = vld [vmem:[#allocation13_spill] sm:$0xff]  ;;  %v17149_v53 = vld [vmem:[#allocation103_spill] sm:$0xff] }
 0x5ed   : > { %v15559_v12 = vpop.eup %11190  ;;  %v6805_v58 = vpop.f32.mrf.mxu1  ;;  %9504 = vmatpush3.bf16.msra.mxu0 %v17135_v57  ;;  %8031 = vmatprep.mubr.bf16.mxu0 %v10665_v24  ;;  %v17143_v13 = vpack.c.bf16 %v17141_v11, %v17142_v43 }
 0x5ee   : > { %v6806_v28 = vadd.f32 %v6805_v58, %v5973_v25  ;;  %9505 = vmatprep.subr.bf16.mxu0 %v17138_v41  ;;  %v6043_v63 = vpop.f32.mrf.mxu0  ;;  %v17144_v25 = vld [vmem:[#allocation61_spill] sm:$0xff]  ;;  %v17145_v58 = vld [vmem:[#allocation60_spill] sm:$0xff]  ;;  %v15600_v57 = vpop.permute.xlu1 %3096  ;;  %v5981_v41 = vadd.f32 %v17149_v53, %v17148_v45 }
 0x5ef   : > { %v6807_v20 = vpop.f32.mrf.mxu1  ;;  %17147 = vst [vmem:[#allocation101_spill] sm:$0xff] %v15600_v57 }
 0x5f0   : > { %11198 = vtanh.f32 %v6806_v28  ;;  %v15581_v56 = vpop.f32.mrf.mxu0  ;;  %7001 = vmatmul.mubr.bf16.gmra.mxu1 %v10662_v26  ;;  %v17146_v26 = vpack.c.bf16 %v17144_v25, %v17145_v58  ;;  %v17151_v25 = vld [vmem:[#allocation102_spill] sm:$0xff]  ;;  %v17152_v58 = vld [vmem:[#allocation99_spill] sm:$0xff] }
 0x5f1   : > { %v6810_v24 = vpop.f32.mrf.mxu1  ;;  %9506 = vmatpush3.bf16.msra.mxu0 %v17143_v13  ;;  %9287 = vmatprep.mubr.msk.bf16.mxu1 %vm5074_vm4, %v10666_v30  ;;  %v15598_v17 = vpop.eup %11192 }
 0x5f2   : > { %v6811_v4 = vadd.f32 %v6810_v24, %v5978_v3  ;;  %9549 = vmatprep.subr.bf16.mxu0 %v17146_v26  ;;  %v6046_v28 = vpop.f32.mrf.mxu0  ;;  %v10672_v3 = vld [vmem:[%s16653_s5 + $0xc2c] ss:$16 sps:$4 sm:$0xff]   ;;  %v15619_v13 = vpop.permute.xlu0 %3101  ;;  %v5986_v26 = vadd.f32 %v17152_v58, %v17151_v25 }
 0x5f3   : > { %v6812_v42 = vpop.f32.mrf.mxu1  ;;  %17150 = vst [vmem:[#allocation96_spill] sm:$0xff] %v15619_v13 }
 0x5f4   : > { %v15606_v30 = vpop.f32.mrf.mxu0  ;;  %8032 = vmatmul.mubr.bf16.gmra.mxu0 %v10663_v38  ;;  %11200 = vtanh.f32 %v6811_v4  ;;  %v7425_v38 = vld [vmem:[%s16655_s7 + $0x270] sm:$0x33]  ;;  %v10669_v4 = vld [vmem:[%s16655_s7 + $0x208] ss:$52 sps:$4 sm:$0xff]   ;;  %v15628_v42 = vpop.permute.xlu1 %3016 }
 0x5f5   : > { %v15604_v63 = vpop.eup %11194  ;;  %v6813_v20 = vpop.f32.mrf.mxu1  ;;  %8039 = vmatprep.mubr.bf16.mxu0 %v10671_v36  ;;  %v9370_v53 = vcombine.high %v7425_v38, %v7425_v38 }
 0x5f6   : > { %v6814_v23 = vadd.f32 %v6813_v20, %v5981_v41  ;;  %v6051_v11 = vpop.f32.mrf.mxu0 }
 0x5f7   : > { %v6815_v43 = vpop.f32.mrf.mxu1 }
 0x5f8   : > { %11202 = vtanh.f32 %v6814_v23  ;;  %v15623_v36 = vpop.f32.mrf.mxu0  ;;  %7009 = vmatmul.mubr.bf16.gmra.mxu1 %v10668_v2  ;;  %v17153_v43 = vld [vmem:[#allocation98_spill] sm:$0xff]  ;;  %v15649_v54 = vpop.permute.xlu1 %3086 }
 0x5f9   : > { %v6818_v28 = vpop.f32.mrf.mxu1  ;;  %9288 = vmatprep.mubr.msk.bf16.mxu1 %vm5074_vm4, %v10672_v3  ;;  %v15631_v11 = vpop.eup %11196  ;;  %v17154_v23 = vld [vmem:[#allocation94_spill] sm:$0xff]  ;;  %17155 = vst [vmem:[#allocation97_spill] sm:$0xff] %v15649_v54  ;;  %v17176_v54 = vld [vmem:[#allocation63_spill] sm:$0xff] }
 0x5fa   : > { %v6819_v45 = vadd.f32 %v6818_v28, %v5986_v26  ;;  %v6054_v41 = vpop.f32.mrf.mxu0  ;;  %v5989_v25 = vadd.f32 %v17154_v23, %v17153_v43  ;;  %v10674_v26 = vld [vmem:[%s16653_s5 + $0xc28] ss:$16 sps:$4 sm:$0xff]   ;;  %v15642_v28 = vpop.permute.xlu0 %3021 }
 0x5fb   : > { %v6820_v20 = vpop.f32.mrf.mxu1  ;;  %v10677_v41 = vld [vmem:[%s16653_s5 + $0xc4c] ss:$16 sps:$4 sm:$0xff]  }
 0x5fc   : > { %v15637_v2 = vpop.f32.mrf.mxu0  ;;  %8040 = vmatmul.mubr.bf16.gmra.mxu0 %v10669_v4  ;;  %11204 = vtanh.f32 %v6819_v45  ;;  %v17156_v4 = vld [vmem:[#allocation49_spill] sm:$0xff]  ;;  %v10682_v45 = vld [vmem:[%s16655_s7 + $0xc] ss:$52 sps:$4 sm:$0xff]  }
 0x5fd   : > { %v15635_v58 = vpop.eup %11198  ;;  %v6821_v15 = vpop.f32.mrf.mxu1  ;;  %8047 = vmatprep.mubr.bf16.mxu0 %v9370_v53  ;;  %v5994_v14 = vadd.f32 %v15309_v1, %v17156_v4  ;;  %v9369_v53 = vcombine.low %v7425_v38, %v7425_v38  ;;  %v17158_v1 = vld [vmem:[#allocation45_spill] sm:$0xff]  ;;  %v10679_v38 = vld [vmem:[%s16653_s5 + $0xc48] ss:$16 sps:$4 sm:$0xff]  }
 0x5fe   : > { %v6822_v3 = vadd.f32 %v6821_v15, %v5989_v25  ;;  %v6059_v43 = vpop.f32.mrf.mxu0  ;;  %v15661_v24 = vpop.permute.xlu0 %3091 }
 0x5ff   : > { %v6823_v23 = vpop.f32.mrf.mxu1  ;;  %17157 = vst [vmem:[#allocation92_spill] sm:$0xff] %v15661_v24 }
 0x600   : > { %11206 = vtanh.f32 %v6822_v3  ;;  %v15653_v5 = vpop.f32.mrf.mxu0  ;;  %7017 = vmatmul.mubr.bf16.gmra.mxu1 %v10674_v26  ;;  %v5997_v3 = vadd.f32 %v15319_v46, %v17158_v1 }
 0x601   : > { %v6826_v15 = vpop.f32.mrf.mxu1  ;;  %9289 = vmatprep.mubr.msk.bf16.mxu1 %vm5074_vm4, %v10677_v41  ;;  %v15659_v6 = vpop.eup %11200 }
 0x602   : > { %v6827_v25 = vadd.f32 %v6826_v15, %v5994_v14  ;;  %v6062_v43 = vpop.f32.mrf.mxu0  ;;  %v15672_v41 = vpop.permute.xlu1 %3006 }
 0x603   : > { %v6828_v23 = vpop.f32.mrf.mxu1  ;;  %v10683_v43 = vld [vmem:[%s16653_s5 + $0xc6c] ss:$16 sps:$4 sm:$0xff]  }
 0x604   : > { %v15667_v26 = vpop.f32.mrf.mxu0  ;;  %8048 = vmatmul.mubr.bf16.gmra.mxu0 %v9369_v53  ;;  %11208 = vtanh.f32 %v6827_v25  ;;  %v17159_v53 = vld [vmem:[#allocation51_spill] sm:$0xff]  ;;  %v10688_v25 = vld [vmem:[%s16655_s7 + $0x74] ss:$52 sps:$4 sm:$0xff]  }
 0x605   : > { %v15665_v4 = vpop.eup %11202  ;;  %v6829_v14 = vpop.f32.mrf.mxu1  ;;  %8087 = vmatprep.mubr.bf16.mxu0 %v10682_v45  ;;  %v6002_v20 = vadd.f32 %v15330_v8, %v17159_v53  ;;  %v10680_v45 = vld [vmem:[%s16655_s7 + $0x8] ss:$52 sps:$4 sm:$0xff]  }
 0x606   : > { %v6830_v15 = vadd.f32 %v6829_v14, %v5997_v3  ;;  %v6067_v23 = vpop.f32.mrf.mxu0  ;;  %v15686_v3 = vpop.permute.xlu0 %3011 }
 0x607   : > { %v6831_v1 = vpop.f32.mrf.mxu1 }
 0x608   : > { %11210 = vtanh.f32 %v6830_v15  ;;  %v15681_v32 = vpop.f32.mrf.mxu0  ;;  %7025 = vmatmul.mubr.bf16.gmra.mxu1 %v10679_v38  ;;  %v15694_v1 = vpop.permute.xlu1 %3076  ;;  %v17161_v38 = vld [vmem:[#allocation47_spill] sm:$0xff] }
 0x609   : > { %v6834_v7 = vpop.f32.mrf.mxu1  ;;  %9290 = vmatprep.mubr.msk.bf16.mxu1 %vm5074_vm4, %v10683_v43  ;;  %v15692_v8 = vpop.eup %11204  ;;  %17160 = vst [vmem:[#allocation93_spill] sm:$0xff] %v15694_v1  ;;  %v6005_v53 = vadd.f32 %v15340_v59, %v17161_v38  ;;  %v10685_v43 = vld [vmem:[%s16653_s5 + $0xc68] ss:$16 sps:$4 sm:$0xff]   ;;  %v10708_v59 = vld [vmem:[%s16655_s7 + $0x1c] ss:$52 sps:$4 sm:$0xff]  }
 0x60a   : > { %v6835_v14 = vadd.f32 %v6834_v7, %v6002_v20  ;;  %v6070_v15 = vpop.f32.mrf.mxu0  ;;  %v17162_v20 = vld [vmem:[#allocation71_spill] sm:$0xff] }
 0x60b   : > { %v6836_v23 = vpop.f32.mrf.mxu1  ;;  %v17163_v15 = vld [vmem:[#allocation70_spill] sm:$0xff] }
 0x60c   : > { %v15700_v18 = vpop.f32.mrf.mxu0  ;;  %8088 = vmatmul.mubr.bf16.vlgmr.msra.gmra.mxu0 %v10680_v45  ;;  %v17164_v23 = vpack.c.bf16 %v17162_v20, %v17163_v15  ;;  %11212 = vtanh.f32 %v6835_v14  ;;  %v17166_v45 = vld [vmem:[#allocation64_spill] sm:$0xff]  ;;  %v10686_v14 = vld [vmem:[%s16655_s7 + $0x70] ss:$52 sps:$4 sm:$0xff]  }
 0x60d   : > { %v15698_v46 = vpop.eup %11206  ;;  %v6837_v49 = vpop.f32.mrf.mxu1  ;;  %8095 = vmatprep.mubr.bf16.mxu0 %v10688_v25  ;;  %v17167_v60 = vpack.c.bf16 %v17165_v37, %v17166_v45  ;;  %v17170_v37 = vld [vmem:[#allocation74_spill] sm:$0xff]  ;;  %v17174_v45 = vld [vmem:[#allocation68_spill] sm:$0xff] }
 0x60e   : > { %v6838_v7 = vadd.f32 %v6837_v49, %v6005_v53  ;;  %9550 = vmatpush3.bf16.msra.mxu0 %v17164_v23  ;;  %v6075_v13 = vpop.f32.mrf.mxu0  ;;  %v15716_v49 = vpop.permute.xlu0 %3081  ;;  %v17169_v53 = vld [vmem:[#allocation67_spill] sm:$0xff] }
 0x60f   : > { %9551 = vmatprep.subr.bf16.mxu0 %v17167_v60  ;;  %v6839_v57 = vpop.f32.mrf.mxu1  ;;  %17168 = vst [vmem:[#allocation88_spill] sm:$0xff] %v15716_v49  ;;  %v6010_v25 = vadd.f32 %v15358_v61, %v17169_v53  ;;  %v15725_v23 = vpop.permute.xlu1 %2996  ;;  %v17171_v60 = vld [vmem:[#allocation26_spill] sm:$0xff]  ;;  %v6013_v49 = vadd.f32 %v15378_v27, %v17176_v54  ;;  %v17186_v54 = vld [vmem:[#allocation35_spill] sm:$0xff] }
 0x610   : > { %11214 = vtanh.f32 %v6838_v7  ;;  %v15720_v20 = vpop.f32.mrf.mxu0  ;;  %7033 = vmatmul.mubr.bf16.gmra.mxu1 %v10685_v43  ;;  %v17172_v13 = vpack.c.bf16 %v17170_v37, %v17171_v60  ;;  %v10691_v57 = vld [vmem:[%s16655_s7 + $0xdc] ss:$52 sps:$4 sm:$0xff]   ;;  %v10714_v27 = vld [vmem:[%s16655_s7 + $0x84] ss:$52 sps:$4 sm:$0xff]  }
 0x611   : > { %v6842_v15 = vpop.f32.mrf.mxu1  ;;  %8263 = vmatprep.mubr.bf16.mxu1 %v10708_v59  ;;  %v17173_v7 = vld [vmem:[#allocation69_spill] sm:$0xff]  ;;  %v15736_v24 = vpop.eup %11208  ;;  %v10706_v59 = vld [vmem:[%s16655_s7 + $0x18] ss:$52 sps:$4 sm:$0xff]  }
 0x612   : > { %9552 = vmatpush3.bf16.msra.mxu0 %v17172_v13  ;;  %v6843_v61 = vadd.f32 %v6842_v15, %v6010_v25  ;;  %v17175_v53 = vpack.c.bf16 %v17173_v7, %v17174_v45  ;;  %v6078_v43 = vpop.f32.mrf.mxu0  ;;  %v15747_v25 = vpop.permute.xlu0 %3001  ;;  %v17177_v13 = vld [vmem:[#allocation30_spill] sm:$0xff]  ;;  %v17181_v45 = vld [vmem:[#allocation72_spill] sm:$0xff] }
 0x613   : > { %v6844_v38 = vpop.f32.mrf.mxu1 }
 0x614   : > { %9553 = vmatprep.subr.bf16.mxu0 %v17175_v53  ;;  %v15742_v37 = vpop.f32.mrf.mxu0  ;;  %8096 = vmatmul.mubr.bf16.gmra.mxu0 %v10686_v14  ;;  %v17178_v38 = vld [vmem:[#allocation33_spill] sm:$0xff]  ;;  %11216 = vtanh.f32 %v6843_v61  ;;  %v17185_v61 = vld [vmem:[#allocation32_spill] sm:$0xff] }
 0x615   : > { %v15740_v1 = vpop.eup %11210  ;;  %v6845_v60 = vpop.f32.mrf.mxu1  ;;  %v17179_v7 = vpack.c.bf16 %v17177_v13, %v17178_v38  ;;  %8103 = vmatprep.mubr.bf16.mxu0 %v10691_v57  ;;  %v17180_v14 = vld [vmem:[#allocation73_spill] sm:$0xff] }
 0x616   : > { %v6846_v15 = vadd.f32 %v6845_v60, %v6013_v49  ;;  %v17182_v53 = vpack.c.bf16 %v17180_v14, %v17181_v45  ;;  %v6083_v43 = vpop.f32.mrf.mxu0  ;;  %v15760_v49 = vpop.permute.xlu1 %3166  ;;  %v17184_v60 = vld [vmem:[#allocation29_spill] sm:$0xff]  ;;  %v17187_v14 = vpack.c.bf16 %v17185_v61, %v17186_v54  ;;  %v17188_v45 = vld [vmem:[#allocation46_spill] sm:$0xff] }
 0x617   : > { %9554 = vmatpush3.bf16.msra.mxu0 %v17179_v7  ;;  %v6847_v21 = vpop.f32.mrf.mxu1  ;;  %17183 = vst [vmem:[#allocation89_spill] sm:$0xff] %v15760_v49  ;;  %v6018_v57 = vadd.f32 %v15401_v39, %v17184_v60  ;;  %v10689_v7 = vld [vmem:[%s16655_s7 + $0xd8] ss:$52 sps:$4 sm:$0xff]   ;;  %v15780_v50 = vpop.permute.xlu0 %3171 }
 0x618   : > { %9555 = vmatprep.subr.bf16.mxu0 %v17182_v53  ;;  %11218 = vtanh.f32 %v6846_v15  ;;  %v15764_v13 = vpop.f32.mrf.mxu0  ;;  %8264 = vmatmul.mubr.bf16.vlgmr.msra.gmra.mxu1 %v10706_v59  ;;  %v10694_v21 = vld [vmem:[%s16655_s7 + $0x144] ss:$52 sps:$4 sm:$0xff]   ;;  %17191 = vst [vmem:[#allocation84_spill] sm:$0xff] %v15780_v50  ;;  %v17192_v59 = vld [vmem:[#allocation25_spill] sm:$0xff] }
 0x619   : > { %v6850_v38 = vpop.f32.mrf.mxu1  ;;  %8271 = vmatprep.mubr.bf16.mxu1 %v10714_v27  ;;  %v17189_v39 = vld [vmem:[#allocation50_spill] sm:$0xff]  ;;  %v15778_v49 = vpop.eup %11212  ;;  %v6021_v54 = vadd.f32 %v15427_v51, %v17192_v59  ;;  %v10712_v27 = vld [vmem:[%s16655_s7 + $0x80] ss:$52 sps:$4 sm:$0xff]  }
 0x61a   : > { %v6851_v15 = vadd.f32 %v6850_v38, %v6018_v57  ;;  %v17190_v53 = vpack.c.bf16 %v17188_v45, %v17189_v39  ;;  %v6086_v43 = vpop.f32.mrf.mxu0  ;;  %v15791_v57 = vpop.permute.xlu1 %3066  ;;  %v17194_v45 = vld [vmem:[#allocation37_spill] sm:$0xff]  ;;  %v17195_v39 = vld [vmem:[#allocation36_spill] sm:$0xff] }
 0x61b   : > { %9556 = vmatpush3.bf16.msra.mxu0 %v17187_v14  ;;  %v6852_v60 = vpop.f32.mrf.mxu1  ;;  %17193 = vst [vmem:[#allocation85_spill] sm:$0xff] %v15791_v57  ;;  %v10720_v51 = vld [vmem:[%s16655_s7 + $0xec] ss:$52 sps:$4 sm:$0xff]  }
 0x61c   : > { %9557 = vmatprep.subr.bf16.mxu0 %v17190_v53  ;;  %v15786_v14 = vpop.f32.mrf.mxu0  ;;  %8104 = vmatmul.mubr.bf16.gmra.mxu0 %v10689_v7  ;;  %v17196_v53 = vpack.c.bf16 %v17194_v45, %v17195_v39  ;;  %11220 = vtanh.f32 %v6851_v15  ;;  %v17197_v7 = vld [vmem:[#allocation55_spill] sm:$0xff]  ;;  %v17198_v60 = vld [vmem:[#allocation54_spill] sm:$0xff]  ;;  %v17203_v15 = vld [vmem:[#allocation41_spill] sm:$0xff] }
 0x61d   : > { %v15784_v61 = vpop.eup %11214  ;;  %v6853_v0 = vpop.f32.mrf.mxu1  ;;  %8111 = vmatprep.mubr.bf16.mxu0 %v10694_v21  ;;  %v17199_v59 = vpack.c.bf16 %v17197_v7, %v17198_v60  ;;  %v10692_v39 = vld [vmem:[%s16655_s7 + $0x140] ss:$52 sps:$4 sm:$0xff]  }
 0x61e   : > { %v6854_v38 = vadd.f32 %v6853_v0, %v6021_v54  ;;  %v6091_v50 = vpop.f32.mrf.mxu0  ;;  %v17200_v0 = vld [vmem:[#allocation40_spill] sm:$0xff]  ;;  %v17204_v43 = vld [vmem:[#allocation43_spill] sm:$0xff] }
 0x61f   : > { %9558 = vmatpush3.bf16.msra.mxu0 %v17196_v53  ;;  %v6855_v57 = vpop.f32.mrf.mxu1  ;;  %v6026_v54 = vadd.f32 %v15458_v31, %v17200_v0  ;;  %v15811_v53 = vpop.permute.xlu0 %3071  ;;  %v17205_v7 = vpack.c.bf16 %v17203_v15, %v17204_v43  ;;  %v10697_v50 = vld [vmem:[%s16655_s7 + $0x1ac] ss:$52 sps:$4 sm:$0xff]  }
 0x620   : > { %9559 = vmatprep.subr.bf16.mxu0 %v17199_v59  ;;  %11222 = vtanh.f32 %v6854_v38  ;;  %v15806_v45 = vpop.f32.mrf.mxu0  ;;  %8272 = vmatmul.mubr.bf16.gmra.mxu1 %v10712_v27  ;;  %17202 = vst [vmem:[#allocation81_spill] sm:$0xff] %v15811_v53  ;;  %v17206_v57 = vld [vmem:[#allocation59_spill] sm:$0xff]  ;;  %v17207_v38 = vld [vmem:[#allocation58_spill] sm:$0xff]  ;;  %v15824_v27 = vpop.permute.xlu1 %2986 }
 0x621   : > { %17201 = vst [vmem:[#allocation80_spill] sm:$0xff] %v15806_v45  ;;  %v6858_v21 = vpop.f32.mrf.mxu1  ;;  %8279 = vmatprep.mubr.bf16.mxu1 %v10720_v51  ;;  %v17208_v60 = vpack.c.bf16 %v17206_v57, %v17207_v38  ;;  %v15822_v35 = vpop.eup %11216  ;;  %v17209_v53 = vld [vmem:[#allocation38_spill] sm:$0xff]  ;;  %v17212_v57 = vld [vmem:[#allocation28_spill] sm:$0xff] }
 0x622   : > { %v6859_v31 = vadd.f32 %v6858_v21, %v6026_v54  ;;  %v6094_v59 = vpop.f32.mrf.mxu0  ;;  %v6029_v43 = vadd.f32 %v15484_v40, %v17209_v53  ;;  %v10718_v51 = vld [vmem:[%s16655_s7 + $0xe8] ss:$52 sps:$4 sm:$0xff]  }
 0x623   : > { %9560 = vmatpush3.bf16.msra.mxu0 %v17205_v7  ;;  %v6860_v0 = vpop.f32.mrf.mxu1  ;;  %v17211_v21 = vld [vmem:[#allocation42_spill] sm:$0xff]  ;;  %v10726_v40 = vld [vmem:[%s16655_s7 + $0x154] ss:$52 sps:$4 sm:$0xff]  }
 0x624   : > { %9561 = vmatprep.subr.bf16.mxu0 %v17208_v60  ;;  %v15830_v7 = vpop.f32.mrf.mxu0  ;;  %8112 = vmatmul.mubr.bf16.gmra.mxu0 %v10692_v39  ;;  %v17213_v38 = vpack.c.bf16 %v17211_v21, %v17212_v57  ;;  %11224 = vtanh.f32 %v6859_v31  ;;  %v17214_v53 = vld [vmem:[#allocation62_spill] sm:$0xff]  ;;  %v15855_v31 = vpop.permute.xlu1 %3156  ;;  %v17223_v60 = vld [vmem:[#allocation125_spill] sm:$0xff] }
 0x625   : > { %v15828_v15 = vpop.eup %11218  ;;  %17210 = vst [vmem:[#allocation76_spill] sm:$0xff] %v15830_v7  ;;  %v6861_v62 = vpop.f32.mrf.mxu1  ;;  %8119 = vmatprep.mubr.bf16.mxu0 %v10697_v50  ;;  %v17215_v39 = vld [vmem:[#allocation66_spill] sm:$0xff]  ;;  %17219 = vst [vmem:[#allocation122_spill] sm:$0xff] %v15855_v31 }
 0x626   : > { %v6862_v54 = vadd.f32 %v6861_v62, %v6029_v43  ;;  %v17216_v59 = vpack.c.bf16 %v17214_v53, %v17215_v39  ;;  %v6099_v0 = vpop.f32.mrf.mxu0  ;;  %v15846_v62 = vpop.permute.xlu0 %2991  ;;  %v17217_v43 = vld [vmem:[#allocation124_spill] sm:$0xff]  ;;  %v17220_v53 = vld [vmem:[#allocation27_spill] sm:$0xff] }
 0x627   : > { %9562 = vmatpush3.bf16.msra.mxu0 %v17213_v38  ;;  %v6863_v7 = vpop.f32.mrf.mxu1  ;;  %v6034_v50 = vadd.f32 %v15513_v34, %v17217_v43  ;;  %v10695_v38 = vld [vmem:[%s16655_s7 + $0x1a8] ss:$52 sps:$4 sm:$0xff]   ;;  %v17221_v39 = vld [vmem:[#allocation31_spill] sm:$0xff] }
 0x628   : > { %9563 = vmatprep.subr.bf16.mxu0 %v17216_v59  ;;  %11226 = vtanh.f32 %v6862_v54  ;;  %v15850_v21 = vpop.f32.mrf.mxu0  ;;  %8280 = vmatmul.mubr.bf16.gmra.mxu1 %v10718_v51  ;;  %v17222_v59 = vpack.c.bf16 %v17220_v53, %v17221_v39  ;;  %v10700_v7 = vld [vmem:[%s16655_s7 + $0x214] ss:$52 sps:$4 sm:$0xff]   ;;  %v10724_v53 = vld [vmem:[%s16655_s7 + $0x150] ss:$52 sps:$4 sm:$0xff]  }
 0x629   : > { %17218 = vst [vmem:[#allocation77_spill] sm:$0xff] %v15850_v21  ;;  %v6866_v57 = vpop.f32.mrf.mxu1  ;;  %8287 = vmatprep.mubr.bf16.mxu1 %v10726_v40  ;;  %v15863_v43 = vpop.eup %11220  ;;  %v6037_v21 = vadd.f32 %v15538_v19, %v17223_v60  ;;  %v10732_v19 = vld [vmem:[%s16655_s7 + $0x1bc] ss:$52 sps:$4 sm:$0xff]  }
 0x62a   : > { %v6867_v34 = vadd.f32 %v6866_v57, %v6034_v50  ;;  %v6102_v54 = vpop.f32.mrf.mxu0  ;;  %v15874_v39 = vpop.permute.xlu0 %3161 }
 0x62b   : > { %9564 = vmatpush3.bf16.msra.mxu0 %v17222_v59  ;;  %v6868_v0 = vpop.f32.mrf.mxu1  ;;  %17225 = vst [vmem:[#allocation114_spill] sm:$0xff] %v15874_v39  ;;  %v15884_v59 = vpop.permute.xlu1 %3056  ;;  %v17227_v54 = vld [vmem:[#allocation116_spill] sm:$0xff] }
 0x62c   : > { %v15869_v31 = vpop.f32.mrf.mxu0  ;;  %8120 = vmatmul.mubr.bf16.gmra.mxu0 %v10695_v38  ;;  %11228 = vtanh.f32 %v6867_v34  ;;  %v7426_v38 = vld [vmem:[%s16655_s7 + $0x278] sm:$0x33]  ;;  %17226 = vst [vmem:[#allocation115_spill] sm:$0xff] %v15884_v59  ;;  %v10698_v0 = vld [vmem:[%s16655_s7 + $0x210] ss:$52 sps:$4 sm:$0xff]  }
 0x62d   : > { %v15867_v51 = vpop.eup %11222  ;;  %17224 = vst [vmem:[#allocation123_spill] sm:$0xff] %v15869_v31  ;;  %v6869_v10 = vpop.f32.mrf.mxu1  ;;  %8127 = vmatprep.mubr.bf16.mxu0 %v10700_v7  ;;  %v9372_v34 = vcombine.high %v7426_v38, %v7426_v38 }
 0x62e   : > { %v6870_v40 = vadd.f32 %v6869_v10, %v6037_v21  ;;  %v6107_v60 = vpop.f32.mrf.mxu0  ;;  %v6042_v10 = vadd.f32 %v15561_v29, %v17227_v54  ;;  %v15895_v59 = vpop.permute.xlu0 %3061 }
 0x62f   : > { %v6871_v57 = vpop.f32.mrf.mxu1  ;;  %17229 = vst [vmem:[#allocation111_spill] sm:$0xff] %v15895_v59 }
 0x630   : > { %11230 = vtanh.f32 %v6870_v40  ;;  %v15888_v21 = vpop.f32.mrf.mxu0  ;;  %8288 = vmatmul.mubr.bf16.gmra.mxu1 %v10724_v53  ;;  %v17230_v40 = vld [vmem:[#allocation117_spill] sm:$0xff]  ;;  %v10730_v53 = vld [vmem:[%s16655_s7 + $0x1b8] ss:$52 sps:$4 sm:$0xff]  }
 0x631   : > { %17228 = vst [vmem:[#allocation110_spill] sm:$0xff] %v15888_v21  ;;  %v6874_v7 = vpop.f32.mrf.mxu1  ;;  %8295 = vmatprep.mubr.bf16.mxu1 %v10732_v19  ;;  %v15893_v39 = vpop.eup %11224  ;;  %v6045_v29 = vadd.f32 %v15581_v56, %v17230_v40  ;;  %v10738_v56 = vld [vmem:[%s16655_s7 + $0x224] ss:$52 sps:$4 sm:$0xff]  }
 0x632   : > { %v6875_v60 = vadd.f32 %v6874_v7, %v6042_v10  ;;  %v6110_v57 = vpop.f32.mrf.mxu0  ;;  %v2977_v19 = vpop.permute.xlu1 %2976 }
 0x633   : > { %v6876_v50 = vpop.f32.mrf.mxu1  ;;  %v6050_v40 = vadd.f32 %v15606_v30, %v2977_v19 }
 0x634   : > { %v15901_v21 = vpop.f32.mrf.mxu0  ;;  %8128 = vmatmul.mubr.bf16.gmra.mxu0 %v10698_v0  ;;  %11232 = vtanh.f32 %v6875_v60  ;;  %v7428_v60 = vld [vmem:[%s16655_s7 + $0x288] sm:$0x33] }
 0x635   : > { %v15899_v54 = vpop.eup %11226  ;;  %17231 = vst [vmem:[#allocation120_spill] sm:$0xff] %v15901_v21  ;;  %v6877_v31 = vpop.f32.mrf.mxu1  ;;  %8135 = vmatprep.mubr.bf16.mxu0 %v9372_v34  ;;  %v9371_v21 = vcombine.low %v7426_v38, %v7426_v38 }
 0x636   : > { %v6878_v10 = vadd.f32 %v6877_v31, %v6045_v29  ;;  %v6115_v7 = vpop.f32.mrf.mxu0  ;;  %v2982_v31 = vpop.permute.xlu0 %2981  ;;  %v10705_v29 = vld [vmem:[%s16655_s7 + $0x14] ss:$52 sps:$4 sm:$0xff]  }
 0x637   : > { %v6879_v57 = vpop.f32.mrf.mxu1  ;;  %v6053_v19 = vadd.f32 %v15623_v36, %v2982_v31 }
 0x638   : > { %11234 = vtanh.f32 %v6878_v10  ;;  %v15912_v0 = vpop.f32.mrf.mxu0  ;;  %8296 = vmatmul.mubr.bf16.gmra.mxu1 %v10730_v53 }
 0x639   : > { %v6882_v59 = vpop.f32.mrf.mxu1  ;;  %8303 = vmatprep.mubr.bf16.mxu1 %v10738_v56  ;;  %v11229_v30 = vpop.eup %11228 }
 0x63a   : > { %v6883_v34 = vadd.f32 %v6882_v59, %v6050_v40  ;;  %v6118_v50 = vpop.f32.mrf.mxu0  ;;  %v10736_v59 = vld [vmem:[%s16655_s7 + $0x220] ss:$52 sps:$4 sm:$0xff]   ;;  %v6058_v40 = vadd.f32 %v15637_v2, %v15824_v27  ;;  %v6061_v2 = vadd.f32 %v15653_v5, %v15846_v62  ;;  %v17233_v62 = vpack.c.bf16 %v15665_v4, %v15659_v6 }
 0x63b   : > { %v6884_v45 = vpop.f32.mrf.mxu1 }
 0x63c   : > { %v15921_v7 = vpop.f32.mrf.mxu0  ;;  %8136 = vmatmul.mubr.bf16.gmra.mxu0 %v9371_v21  ;;  %v9376_v45 = vcombine.high %v7428_v60, %v7428_v60  ;;  %11236 = vtanh.f32 %v6883_v34  ;;  %v10703_v21 = vld [vmem:[%s16655_s7 + $0x10] ss:$52 sps:$4 sm:$0xff]  }
 0x63d   : > { %v11231_v10 = vpop.eup %11230  ;;  %17232 = vst [vmem:[#allocation121_spill] sm:$0xff] %v15921_v7  ;;  %v6885_v38 = vpop.f32.mrf.mxu1  ;;  %8175 = vmatprep.mubr.bf16.mxu0 %v10705_v29  ;;  %v10711_v29 = vld [vmem:[%s16655_s7 + $0x7c] ss:$52 sps:$4 sm:$0xff]  }
 0x63e   : > { %v6886_v53 = vadd.f32 %v6885_v38, %v6053_v19  ;;  %v7319_v50 = vpack.c.bf16 %v11231_v10, %v11229_v30  ;;  %v6123_v56 = vpop.f32.mrf.mxu0 }
 0x63f   : > { %v6887_v57 = vpop.f32.mrf.mxu1 }
 0x640   : > { %11238 = vtanh.f32 %v6886_v53  ;;  %v15928_v36 = vpop.f32.mrf.mxu0  ;;  %8304 = vmatmul.mubr.bf16.gmra.mxu1 %v10736_v59  ;;  %v9375_v53 = vcombine.low %v7428_v60, %v7428_v60  ;;  %v10709_v60 = vld [vmem:[%s16655_s7 + $0x78] ss:$52 sps:$4 sm:$0xff]  }
 0x641   : > { %v6890_v31 = vpop.f32.mrf.mxu1  ;;  %8311 = vmatprep.mubr.bf16.mxu1 %v9376_v45  ;;  %v11233_v19 = vpop.eup %11232  ;;  %v6066_v45 = vadd.f32 %v15667_v26, %v15725_v23  ;;  %v10717_v26 = vld [vmem:[%s16655_s7 + $0xe4] ss:$52 sps:$4 sm:$0xff]  }
 0x642   : > { %v6891_v7 = vadd.f32 %v6890_v31, %v6058_v40  ;;  %v6126_v34 = vpop.f32.mrf.mxu0 }
 0x643   : > { %v6892_v30 = vpop.f32.mrf.mxu1  ;;  %v6069_v34 = vadd.f32 %v15681_v32, %v15747_v25 }
 0x644   : > { %v15938_v10 = vpop.f32.mrf.mxu0  ;;  %8176 = vmatmul.mubr.bf16.vlgmr.msra.gmra.mxu0 %v10703_v21  ;;  %11240 = vtanh.f32 %v6891_v7 }
 0x645   : > { %v11235_v27 = vpop.eup %11234  ;;  %v6893_v38 = vpop.f32.mrf.mxu1  ;;  %8183 = vmatprep.mubr.bf16.mxu0 %v10711_v29 }
 0x646   : > { %v6894_v56 = vadd.f32 %v6893_v38, %v6061_v2  ;;  %v7320_v59 = vpack.c.bf16 %v11235_v27, %v11233_v19  ;;  %v6131_v57 = vpop.f32.mrf.mxu0  ;;  %v17236_v27 = vpack.c.bf16 %v15899_v54, %v15893_v39  ;;  %v6074_v38 = vadd.f32 %v15700_v18, %v15672_v41  ;;  %v10723_v39 = vld [vmem:[%s16655_s7 + $0x14c] ss:$52 sps:$4 sm:$0xff]  }
 0x647   : > { %v6895_v40 = vpop.f32.mrf.mxu1  ;;  %v17238_v18 = vpack.c.bf16 %v15867_v51, %v15863_v43  ;;  %v17240_v51 = vpack.c.bf16 %v15828_v15, %v15822_v35  ;;  %v10729_v35 = vld [vmem:[%s16655_s7 + $0x1b4] ss:$52 sps:$4 sm:$0xff]  }
 0x648   : > { %11242 = vtanh.f32 %v6894_v56  ;;  %9665 = vmatprep.subr.bf16.mxu0 %v7320_v59  ;;  %v15942_v31 = vpop.f32.mrf.mxu0  ;;  %8312 = vmatmul.mubr.bf16.gmra.mxu1 %v9375_v53  ;;  %v17237_v59 = vpack.c.bf16 %v15604_v63, %v15598_v17  ;;  %v6077_v40 = vadd.f32 %v15720_v20, %v15686_v3 }
 0x649   : > { %v6898_v5 = vpop.f32.mrf.mxu1  ;;  %9666 = vmatpush3.bf16.msra.mxu0 %v17233_v62  ;;  %v15953_v29 = vpop.eup %11236  ;;  %v17239_v62 = vpack.c.bf16 %v15559_v12, %v15553_v9  ;;  %v10721_v9 = vld [vmem:[%s16655_s7 + $0x148] ss:$52 sps:$4 sm:$0xff]  }
 0x64a   : > { %v6899_v7 = vadd.f32 %v6898_v5, %v6066_v45  ;;  %9667 = vmatprep.subr.bf16.mxu0 %v7319_v50  ;;  %v6134_v23 = vpop.f32.mrf.mxu0  ;;  %17234 = vst [vmem:[#allocation112_spill] sm:$0xff] %v15953_v29  ;;  %v17235_v50 = vpack.c.bf16 %v15635_v58, %v15631_v11  ;;  %v10715_v11 = vld [vmem:[%s16655_s7 + $0xe0] ss:$52 sps:$4 sm:$0xff]  }
 0x64b   : > { %v6900_v21 = vpop.f32.mrf.mxu1  ;;  %v17241_v23 = vpack.c.bf16 %v15511_v44, %v15506_v47 }
 0x64c   : > { %v15959_v4 = vpop.f32.mrf.mxu0  ;;  %8184 = vmatmul.mubr.bf16.gmra.mxu0 %v10709_v60  ;;  %11244 = vtanh.f32 %v6899_v7  ;;  %v6082_v60 = vadd.f32 %v15742_v37, %v15628_v42  ;;  %v17242_v42 = vpack.c.bf16 %v15784_v61, %v15778_v49  ;;  %v17244_v61 = vpack.c.bf16 %v15740_v1, %v15736_v24  ;;  %v10735_v24 = vld [vmem:[%s16655_s7 + $0x21c] ss:$52 sps:$4 sm:$0xff]  }
 0x64d   : > { %v15957_v6 = vpop.eup %11238  ;;  %v6901_v30 = vpop.f32.mrf.mxu1  ;;  %9668 = vmatpush3.bf16.msra.mxu0 %v17235_v50  ;;  %8191 = vmatprep.mubr.bf16.mxu0 %v10717_v26  ;;  %v17243_v50 = vpack.c.bf16 %v15456_v33, %v15446_v16  ;;  %v10727_v16 = vld [vmem:[%s16655_s7 + $0x1b0] ss:$52 sps:$4 sm:$0xff]  }
 0x64e   : > { %v6902_v19 = vadd.f32 %v6901_v30, %v6069_v34  ;;  %9669 = vmatprep.subr.bf16.mxu0 %v17236_v27  ;;  %v6139_v32 = vpop.f32.mrf.mxu0  ;;  %v6085_v34 = vadd.f32 %v15764_v13, %v15642_v28  ;;  %v6090_v27 = vadd.f32 %v15786_v14, %v15566_v52  ;;  %v17246_v52 = vpack.c.bf16 %v15698_v46, %v15692_v8  ;;  %v10765_v8 = vld [vmem:[%s16655_s7 + $0x2c] ss:$52 sps:$4 sm:$0xff]  }
 0x64f   : > { %v6903_v25 = vpop.f32.mrf.mxu1  ;;  %8439 = vmatprep.mubr.bf16.mxu1 %v10765_v8 }
 0x650   : > { %11246 = vtanh.f32 %v6902_v19  ;;  %v15971_v53 = vpop.f32.mrf.mxu0 }
 0x651   : > { %v6906_v56 = vpop.f32.mrf.mxu1  ;;  %9670 = vmatpush3.bf16.msra.mxu0 %v17237_v59  ;;  %v15985_v57 = vpop.eup %11240 }
 0x652   : > { %v6907_v58 = vadd.f32 %v6906_v56, %v6074_v38  ;;  %9671 = vmatprep.subr.bf16.mxu0 %v17238_v18  ;;  %v6142_v41 = vpop.f32.mrf.mxu0  ;;  %v17245_v38 = vpack.c.bf16 %v15399_v55, %v15390_v22  ;;  %v17248_v18 = vld [vmem:[#allocation90_spill] sm:$0xff] }
 0x653   : > { %v6908_v54 = vpop.f32.mrf.mxu1  ;;  %v17249_v41 = vld [vmem:[#allocation95_spill] sm:$0xff] }
 0x654   : > { %v15991_v5 = vpop.f32.mrf.mxu0  ;;  %8192 = vmatmul.mubr.bf16.gmra.mxu0 %v10715_v11  ;;  %11248 = vtanh.f32 %v6907_v58  ;;  %v17247_v11 = vld [vmem:[#allocation80_spill] sm:$0xff]  ;;  %v17250_v54 = vpack.c.bf16 %v17248_v18, %v17249_v41  ;;  %v17259_v18 = vld [vmem:[#allocation110_spill] sm:$0xff] }
 0x655   : > { %v15989_v45 = vpop.eup %11242  ;;  %v6909_v17 = vpop.f32.mrf.mxu1  ;;  %9672 = vmatpush3.bf16.msra.mxu0 %v17239_v62  ;;  %8199 = vmatprep.mubr.bf16.mxu0 %v10723_v39  ;;  %v6093_v58 = vadd.f32 %v17247_v11, %v15586_v48  ;;  %v17252_v62 = vld [vmem:[#allocation79_spill] sm:$0xff] }
 0x656   : > { %v6910_v63 = vadd.f32 %v6909_v17, %v6077_v40  ;;  %9673 = vmatprep.subr.bf16.mxu0 %v17240_v51  ;;  %v6147_v3 = vpop.f32.mrf.mxu0  ;;  %v7427_v17 = vld [vmem:[%s16655_s7 + $0x280] sm:$0x33]  ;;  %v17253_v51 = vld [vmem:[#allocation76_spill] sm:$0xff] }
 0x657   : > { %v6911_v20 = vpop.f32.mrf.mxu1  ;;  %v6098_v3 = vadd.f32 %v17253_v51, %v17252_v62 }
 0x658   : > { %11250 = vtanh.f32 %v6910_v63  ;;  %v16003_v7 = vpop.f32.mrf.mxu0  ;;  %v17251_v63 = vmov 0.0  }
 0x659   : > { %v6914_v26 = vpop.f32.mrf.mxu1  ;;  %9674 = vmatpush3.bf16.msra.mxu0 %v17241_v23  ;;  %v16017_v21 = vpop.eup %11244 }
 0x65a   : > { %v6915_v12 = vadd.f32 %v6914_v26, %v6082_v60  ;;  %9675 = vmatprep.subr.bf16.mxu0 %v17242_v42  ;;  %v6150_v37 = vpop.f32.mrf.mxu0  ;;  %v10733_v26 = vld [vmem:[%s16655_s7 + $0x218] ss:$52 sps:$4 sm:$0xff]  }
 0x65b   : > { %v6916_v15 = vpop.f32.mrf.mxu1  ;;  %v17254_v37 = vld [vmem:[#allocation104_spill] sm:$0xff] }
 0x65c   : > { %v16023_v19 = vpop.f32.mrf.mxu0  ;;  %8200 = vmatmul.mubr.bf16.gmra.mxu0 %v10721_v9  ;;  %11252 = vtanh.f32 %v6915_v12  ;;  %v9374_v12 = vcombine.high %v7427_v17, %v7427_v17  ;;  %v17255_v15 = vld [vmem:[#allocation77_spill] sm:$0xff] }
 0x65d   : > { %v16021_v30 = vpop.eup %11246  ;;  %v6917_v47 = vpop.f32.mrf.mxu1  ;;  %9676 = vmatpush3.bf16.msra.mxu0 %v17243_v50  ;;  %8207 = vmatprep.mubr.bf16.mxu0 %v10729_v35 }
 0x65e   : > { %v6918_v44 = vadd.f32 %v6917_v47, %v6085_v34  ;;  %9677 = vmatprep.subr.bf16.mxu0 %v17244_v61  ;;  %v6155_v28 = vpop.f32.mrf.mxu0  ;;  %v6101_v34 = vadd.f32 %v17255_v15, %v17254_v37  ;;  %v10748_v37 = vld [vmem:[%s16655_s7 + $0x8c] ss:$52 sps:$4 sm:$0xff]  }
 0x65f   : > { %v6919_v13 = vpop.f32.mrf.mxu1  ;;  %v17274_v28 = vld [vmem:[#allocation83_spill] sm:$0xff] }
 0x660   : > { %11254 = vtanh.f32 %v6918_v44  ;;  %v16035_v32 = vpop.f32.mrf.mxu0 }
 0x661   : > { %v6922_v25 = vpop.f32.mrf.mxu1  ;;  %9678 = vmatpush3.bf16.msra.mxu0 %v17245_v38  ;;  %v16049_v56 = vpop.eup %11248 }
 0x662   : > { %v6923_v33 = vadd.f32 %v6922_v25, %v6090_v27  ;;  %9679 = vmatprep.subr.bf16.mxu0 %v17246_v52  ;;  %v6158_v1 = vpop.f32.mrf.mxu0  ;;  %v17256_v25 = vld [vmem:[#allocation87_spill] sm:$0xff]  ;;  %v9373_v52 = vcombine.low %v7427_v17, %v7427_v17 }
 0x663   : > { %v6924_v14 = vpop.f32.mrf.mxu1 }
 0x664   : > { %v16055_v39 = vpop.f32.mrf.mxu0  ;;  %8208 = vmatmul.mubr.bf16.gmra.mxu0 %v10727_v16  ;;  %11256 = vtanh.f32 %v6923_v33  ;;  %v17257_v16 = vld [vmem:[#allocation123_spill] sm:$0xff] }
 0x665   : > { %v16053_v59 = vpop.eup %11250  ;;  %v6925_v22 = vpop.f32.mrf.mxu1  ;;  %9680 = vmatpush3.bf16.msra.mxu0 %v17250_v54  ;;  %8215 = vmatprep.mubr.bf16.mxu0 %v10735_v24  ;;  %v6106_v33 = vadd.f32 %v17257_v16, %v17256_v25  ;;  %v10745_v14 = vld [vmem:[%s16655_s7 + $0x24] ss:$52 sps:$4 sm:$0xff]  }
 0x666   : > { %v6926_v55 = vadd.f32 %v6925_v22, %v6093_v58  ;;  %v6163_v48 = vpop.f32.mrf.mxu0  ;;  %9946 = vmatprep.subr.bf16.mxu0 %v17251_v63 }
 0x667   : > { %v6927_v40 = vpop.f32.mrf.mxu1 }
 0x668   : > { %11258 = vtanh.f32 %v6926_v55  ;;  %v16071_v20 = vpop.f32.mrf.mxu0  ;;  %v17258_v55 = vld [vmem:[#allocation82_spill] sm:$0xff] }
 0x669   : > { %v6930_v60 = vpop.f32.mrf.mxu1  ;;  %v16076_v42 = vpop.eup %11252  ;;  %v6109_v41 = vadd.f32 %v17259_v18, %v17258_v55  ;;  %v10746_v18 = vld [vmem:[%s16655_s7 + $0x88] ss:$52 sps:$4 sm:$0xff]  }
 0x66a   : > { %v6931_v9 = vadd.f32 %v6930_v60, %v6098_v3  ;;  %v6166_v23 = vpop.f32.mrf.mxu0  ;;  %v17260_v3 = vld [vmem:[#allocation115_spill] sm:$0xff]  ;;  %v17261_v60 = vld [vmem:[#allocation120_spill] sm:$0xff] }
 0x66b   : > { %v6932_v35 = vpop.f32.mrf.mxu1  ;;  %v10743_v23 = vld [vmem:[%s16655_s7 + $0x20] ss:$52 sps:$4 sm:$0xff]  }
 0x66c   : > { %v16082_v44 = vpop.f32.mrf.mxu0  ;;  %8216 = vmatmul.mubr.bf16.gmra.mxu0 %v10733_v26  ;;  %11260 = vtanh.f32 %v6931_v9  ;;  %v6114_v26 = vadd.f32 %v17261_v60, %v17260_v3  ;;  %v17265_v3 = vld [vmem:[#allocation81_spill] sm:$0xff] }
 0x66d   : > { %v16080_v47 = vpop.eup %11254  ;;  %v6933_v50 = vpop.f32.mrf.mxu1  ;;  %8223 = vmatprep.mubr.bf16.mxu0 %v9374_v12  ;;  %v6125_v60 = vadd.f32 %v15928_v36, %v17265_v3 }
 0x66e   : > { %v6934_v61 = vadd.f32 %v6933_v50, %v6101_v34  ;;  %v6171_v13 = vpop.f32.mrf.mxu0 }
 0x66f   : > { %v6935_v27 = vpop.f32.mrf.mxu1 }
 0x670   : > { %11262 = vtanh.f32 %v6934_v61  ;;  %v16088_v38 = vpop.f32.mrf.mxu0  ;;  %v17262_v61 = vld [vmem:[#allocation111_spill] sm:$0xff] }
 0x671   : > { %v6938_v24 = vpop.f32.mrf.mxu1  ;;  %v16093_v22 = vpop.eup %11256  ;;  %v6117_v13 = vadd.f32 %v15912_v0, %v17262_v61  ;;  %v17266_v61 = vld [vmem:[#allocation93_spill] sm:$0xff] }
 0x672   : > { %v6939_v1 = vadd.f32 %v6938_v24, %v6106_v33  ;;  %v6174_v11 = vpop.f32.mrf.mxu0 }
 0x673   : > { %v6940_v58 = vpop.f32.mrf.mxu1  ;;  %v17264_v11 = vld [vmem:[#allocation121_spill] sm:$0xff] }
 0x674   : > { %v16099_v8 = vpop.f32.mrf.mxu0  ;;  %8224 = vmatmul.mubr.bf16.gmra.mxu0 %v9373_v52  ;;  %11264 = vtanh.f32 %v6939_v1 }
 0x675   : > { %v16097_v54 = vpop.eup %11258  ;;  %v6941_v48 = vpop.f32.mrf.mxu1  ;;  %8351 = vmatprep.mubr.bf16.mxu0 %v10745_v14  ;;  %v17263_v14 = vld [vmem:[#allocation85_spill] sm:$0xff] }
 0x676   : > { %v6942_v40 = vadd.f32 %v6941_v48, %v6109_v41  ;;  %v6179_v62 = vpop.f32.mrf.mxu0  ;;  %v6122_v58 = vadd.f32 %v17264_v11, %v17263_v14  ;;  %v10751_v48 = vld [vmem:[%s16655_s7 + $0xf4] ss:$52 sps:$4 sm:$0xff]  }
 0x677   : > { %v6943_v51 = vpop.f32.mrf.mxu1 }
 0x678   : > { %11266 = vtanh.f32 %v6942_v40  ;;  %v16105_v9 = vpop.f32.mrf.mxu0 }
 0x679   : > { %v6946_v12 = vpop.f32.mrf.mxu1  ;;  %v16113_v50 = vpop.eup %11260 }
 0x67a   : > { %v6947_v35 = vadd.f32 %v6946_v12, %v6114_v26  ;;  %v6182_v15 = vpop.f32.mrf.mxu0 }
 0x67b   : > { %v6948_v34 = vpop.f32.mrf.mxu1 }
 0x67c   : > { %v16119_v25 = vpop.f32.mrf.mxu0  ;;  %8352 = vmatmul.mubr.bf16.vlgmr.msra.gmra.mxu0 %v10743_v23  ;;  %11268 = vtanh.f32 %v6947_v35 }
 0x67d   : > { %v16117_v27 = vpop.eup %11262  ;;  %v6949_v16 = vpop.f32.mrf.mxu1  ;;  %8359 = vmatprep.mubr.bf16.mxu0 %v10748_v37 }
 0x67e   : > { %v6950_v33 = vadd.f32 %v6949_v16, %v6117_v13  ;;  %v6187_v52 = vpop.f32.mrf.mxu0  ;;  %v6130_v13 = vadd.f32 %v15938_v10, %v17266_v61  ;;  %v10757_v61 = vld [vmem:[%s16655_s7 + $0x1c4] ss:$52 sps:$4 sm:$0xff]  }
 0x67f   : > { %v6951_v1 = vpop.f32.mrf.mxu1  ;;  %v10754_v52 = vld [vmem:[%s16655_s7 + $0x15c] ss:$52 sps:$4 sm:$0xff]  }
 0x680   : > { %11270 = vtanh.f32 %v6950_v33  ;;  %v16125_v55 = vpop.f32.mrf.mxu0  ;;  %v10749_v33 = vld [vmem:[%s16655_s7 + $0xf0] ss:$52 sps:$4 sm:$0xff]  }
 0x681   : > { %v6954_v0 = vpop.f32.mrf.mxu1  ;;  %v16133_v51 = vpop.eup %11264 }
 0x682   : > { %v6955_v41 = vadd.f32 %v6954_v0, %v6122_v58  ;;  %v6190_v40 = vpop.f32.mrf.mxu0  ;;  %v17267_v0 = vld [vmem:[#allocation88_spill] sm:$0xff] }
 0x683   : > { %v6956_v62 = vpop.f32.mrf.mxu1 }
 0x684   : > { %v16139_v12 = vpop.f32.mrf.mxu0  ;;  %8360 = vmatmul.mubr.bf16.gmra.mxu0 %v10746_v18  ;;  %11272 = vtanh.f32 %v6955_v41  ;;  %v6133_v18 = vadd.f32 %v15942_v31, %v17267_v0 }
 0x685   : > { %v16137_v26 = vpop.eup %11266  ;;  %v6957_v23 = vpop.f32.mrf.mxu1  ;;  %8367 = vmatprep.mubr.bf16.mxu0 %v10751_v48 }
 0x686   : > { %v6958_v35 = vadd.f32 %v6957_v23, %v6125_v60  ;;  %v6195_v15 = vpop.f32.mrf.mxu0  ;;  %v17268_v23 = vld [vmem:[#allocation97_spill] sm:$0xff] }
 0x687   : > { %v6959_v34 = vpop.f32.mrf.mxu1 }
 0x688   : > { %11274 = vtanh.f32 %v6958_v35  ;;  %v16145_v16 = vpop.f32.mrf.mxu0  ;;  %v6138_v35 = vadd.f32 %v15959_v4, %v17268_v23  ;;  %v10752_v34 = vld [vmem:[%s16655_s7 + $0x158] ss:$52 sps:$4 sm:$0xff]   ;;  %v17270_v23 = vld [vmem:[#allocation101_spill] sm:$0xff] }
 0x689   : > { %v6962_v36 = vpop.f32.mrf.mxu1  ;;  %v16153_v58 = vpop.eup %11268 }
 0x68a   : > { %v6963_v1 = vadd.f32 %v6962_v36, %v6130_v13  ;;  %v6198_v14 = vpop.f32.mrf.mxu0 }
 0x68b   : > { %v6964_v11 = vpop.f32.mrf.mxu1 }
 0x68c   : > { %v16159_v41 = vpop.f32.mrf.mxu0  ;;  %8368 = vmatmul.mubr.bf16.gmra.mxu0 %v10749_v33  ;;  %11276 = vtanh.f32 %v6963_v1  ;;  %v17269_v1 = vld [vmem:[#allocation92_spill] sm:$0xff] }
 0x68d   : > { %v16157_v10 = vpop.eup %11270  ;;  %v6965_v48 = vpop.f32.mrf.mxu1  ;;  %8375 = vmatprep.mubr.bf16.mxu0 %v10754_v52  ;;  %v6141_v14 = vadd.f32 %v15971_v53, %v17269_v1 }
 0x68e   : > { %v6966_v40 = vadd.f32 %v6965_v48, %v6133_v18  ;;  %v6203_v3 = vpop.f32.mrf.mxu0 }
 0x68f   : > { %v6967_v60 = vpop.f32.mrf.mxu1 }
 0x690   : > { %11278 = vtanh.f32 %v6966_v40  ;;  %v16165_v15 = vpop.f32.mrf.mxu0 }
 0x691   : > { %v6970_v31 = vpop.f32.mrf.mxu1  ;;  %v16173_v52 = vpop.eup %11272 }
 0x692   : > { %v6971_v13 = vadd.f32 %v6970_v31, %v6138_v35  ;;  %v6206_v36 = vpop.f32.mrf.mxu0  ;;  %v6146_v35 = vadd.f32 %v15991_v5, %v17270_v23 }
 0x693   : > { %v6972_v33 = vpop.f32.mrf.mxu1 }
 0x694   : > { %v9449_v0 = vpop.f32.mrf.mxu0  ;;  %8376 = vmatmul.mubr.bf16.gmra.mxu0 %v10752_v34  ;;  %11280 = vtanh.f32 %v6971_v13  ;;  %v10755_v34 = vld [vmem:[%s16655_s7 + $0x1c0] ss:$52 sps:$4 sm:$0xff]  }
 0x695   : > { %v16177_v4 = vpop.eup %11274  ;;  %v6973_v11 = vpop.f32.mrf.mxu1  ;;  %8383 = vmatprep.mubr.bf16.mxu0 %v10757_v61  ;;  %v10760_v61 = vld [vmem:[%s16655_s7 + $0x22c] ss:$52 sps:$4 sm:$0xff]  }
 0x696   : > { %v6974_v18 = vadd.f32 %v6973_v11, %v6141_v14  ;;  %v9450_v3 = vpop.f32.mrf.mxu0  ;;  %v17271_v14 = vld [vmem:[#allocation96_spill] sm:$0xff] }
 0x697   : > { %v6975_v40 = vpop.f32.mrf.mxu1  ;;  %v16181_v60 = vadd.f32 %v9450_v3, %v9449_v0  ;;  %v6149_v5 = vadd.f32 %v16003_v7, %v17271_v14  ;;  %v17272_v7 = vld [vmem:[#allocation105_spill] sm:$0xff] }
 0x698   : > { %11282 = vtanh.f32 %v6974_v18  ;;  %v16185_v31 = vpop.f32.mrf.mxu0  ;;  %v6154_v14 = vadd.f32 %v16023_v19, %v17272_v7 }
 0x699   : > { %v6978_v53 = vpop.f32.mrf.mxu1  ;;  %v16195_v1 = vpop.eup %11276 }
 0x69a   : > { %v6979_v13 = vadd.f32 %v6978_v53, %v6146_v35  ;;  %v16193_v33 = vpop.f32.mrf.mxu0  ;;  %v7429_v53 = vld [vmem:[%s16655_s7 + $0x290] sm:$0x33] }
 0x69b   : > { %v6980_v36 = vpop.f32.mrf.mxu1  ;;  %v9377_v24 = vcombine.low %v7429_v53, %v7429_v53 }
 0x69c   : > { %v9455_v18 = vpop.f32.mrf.mxu0  ;;  %8384 = vmatmul.mubr.bf16.gmra.mxu0 %v10755_v34  ;;  %11284 = vtanh.f32 %v6979_v13  ;;  %v16215_v13 = vpop.permute.xlu1 %3146 }
 0x69d   : > { %v16199_v11 = vpop.eup %11278  ;;  %v6981_v0 = vpop.f32.mrf.mxu1  ;;  %8391 = vmatprep.mubr.bf16.mxu0 %v10760_v61  ;;  %v10758_v61 = vld [vmem:[%s16655_s7 + $0x228] ss:$52 sps:$4 sm:$0xff]  }
 0x69e   : > { %v6982_v40 = vadd.f32 %v6981_v0, %v6149_v5  ;;  %v9456_v35 = vpop.f32.mrf.mxu0  ;;  %v9378_v5 = vcombine.high %v7429_v53, %v7429_v53 }
 0x69f   : > { %v6983_v23 = vpop.f32.mrf.mxu1  ;;  %v16206_v36 = vadd.f32 %v9456_v35, %v9455_v18  ;;  %v16221_v18 = vpop.permute.xlu0 %3151  ;;  %v17273_v35 = vld [vmem:[#allocation100_spill] sm:$0xff] }
 0x6a0   : > { %11286 = vtanh.f32 %v6982_v40  ;;  %v16210_v34 = vpop.f32.mrf.mxu0  ;;  %v6157_v19 = vadd.f32 %v16035_v32, %v17273_v35  ;;  %v3137_v3 = vpop.permute.xlu1 %3136  ;;  %v6162_v32 = vadd.f32 %v16055_v39, %v17274_v28 }
 0x6a1   : > { %v6986_v2 = vpop.f32.mrf.mxu1  ;;  %v16219_v40 = vpop.eup %11280 }
 0x6a2   : > { %v6987_v0 = vadd.f32 %v6986_v2, %v6154_v14  ;;  %v16217_v62 = vpop.f32.mrf.mxu0 }
 0x6a3   : > { %v6988_v23 = vpop.f32.mrf.mxu1 }
 0x6a4   : > { %v9461_v48 = vpop.f32.mrf.mxu0  ;;  %8392 = vmatmul.mubr.bf16.gmra.mxu0 %v10758_v61  ;;  %11288 = vtanh.f32 %v6987_v0  ;;  %v3142_v61 = vpop.permute.xlu0 %3141  ;;  %v17275_v0 = vld [vmem:[#allocation78_spill] sm:$0xff] }
 0x6a5   : > { %v16225_v7 = vpop.eup %11282  ;;  %v6989_v43 = vpop.f32.mrf.mxu1  ;;  %8399 = vmatprep.mubr.bf16.mxu0 %v9378_v5 }
 0x6a6   : > { %v6990_v49 = vadd.f32 %v6989_v43, %v6157_v19  ;;  %v9462_v23 = vpop.f32.mrf.mxu0  ;;  %v16243_v39 = vpop.permute.xlu1 %7507 }
 0x6a7   : > { %v6991_v14 = vpop.f32.mrf.mxu1  ;;  %v16229_v46 = vadd.f32 %v9462_v23, %v9461_v48  ;;  %17276 = vst [vmem:[#allocation113_spill] sm:$0xff] %v16243_v39 }
 0x6a8   : > { %11290 = vtanh.f32 %v6990_v49  ;;  %v16233_v17 = vpop.f32.mrf.mxu0  ;;  %v6165_v14 = vadd.f32 %v16071_v20, %v17275_v0  ;;  %v17279_v0 = vld [vmem:[#allocation91_spill] sm:$0xff] }
 0x6a9   : > { %v6994_v35 = vpop.f32.mrf.mxu1  ;;  %v16237_v2 = vpop.eup %11284 }
 0x6aa   : > { %v6995_v43 = vadd.f32 %v6994_v35, %v6162_v32  ;;  %v16235_v19 = vpop.f32.mrf.mxu0 }
 0x6ab   : > { %v6996_v5 = vpop.f32.mrf.mxu1 }
 0x6ac   : > { %v9467_v23 = vpop.f32.mrf.mxu0  ;;  %8400 = vmatmul.mubr.bf16.gmra.mxu0 %v9377_v24  ;;  %11292 = vtanh.f32 %v6995_v43  ;;  %v16249_v5 = vpop.permute.xlu0 %7497  ;;  %v6170_v24 = vadd.f32 %v16082_v44, %v17279_v0 }
 0x6ad   : > { %v16241_v49 = vpop.eup %11286  ;;  %v6997_v48 = vpop.f32.mrf.mxu1  ;;  %9954 = vmatprep.mubr.msk.bf16.mxu0 %vm11368_vm0, %v17251_v63  ;;  %17277 = vst [vmem:[#allocation108_spill] sm:$0xff] %v16249_v5 }
 0x6ae   : > { %v6998_v28 = vadd.f32 %v6997_v48, %v6165_v14  ;;  %v9468_v35 = vpop.f32.mrf.mxu0  ;;  %v16261_v43 = vpop.permute.xlu1 %7502 }
 0x6af   : > { %v6999_v32 = vpop.f32.mrf.mxu1  ;;  %v16251_v20 = vadd.f32 %v9468_v35, %v9467_v23  ;;  %17282 = vst [vmem:[#allocation7_spill] sm:$0xff] %v16261_v43  ;;  %v6178_v43 = vadd.f32 %v16099_v8, %v3137_v3 }
 0x6b0   : > { %11294 = vtanh.f32 %v6998_v28  ;;  %v16255_v39 = vpop.f32.mrf.mxu0  ;;  %v17283_v32 = vld [vmem:[#allocation86_spill] sm:$0xff] }
 0x6b1   : > { %17278 = vst [vmem:[#allocation109_spill] sm:$0xff] %v16251_v20  ;;  %v7002_v37 = vpop.f32.mrf.mxu1  ;;  %17280 = vst [vmem:[#allocation75_spill] sm:$0xff] %v16255_v39  ;;  %v16259_v29 = vpop.eup %11288  ;;  %v6173_v5 = vadd.f32 %v16088_v38, %v17283_v32 }
 0x6b2   : > { %v7003_v14 = vadd.f32 %v7002_v37, %v6170_v24  ;;  %v16257_v53 = vpop.f32.mrf.mxu0  ;;  %v16267_v20 = vpop.permute.xlu0 %7487 }
 0x6b3   : > { %v7004_v48 = vpop.f32.mrf.mxu1  ;;  %17281 = vst [vmem:[#allocation10_spill] sm:$0xff] %v16257_v53  ;;  %17284 = vst [vmem:[#allocation24_spill] sm:$0xff] %v16267_v20  ;;  %v16276_v32 = vpop.permute.xlu1 %7492 }
 0x6b4   : > { %v9473_v35 = vpop.f32.mrf.mxu0  ;;  %11296 = vtanh.f32 %v7003_v14  ;;  %17286 = vst [vmem:[#allocation39_spill] sm:$0xff] %v16276_v32  ;;  %v6181_v14 = vadd.f32 %v16105_v9, %v3142_v61 }
 0x6b5   : > { %v16265_v28 = vpop.eup %11290  ;;  %v7005_v23 = vpop.f32.mrf.mxu1 }
 0x6b6   : > { %v7006_v44 = vadd.f32 %v7005_v23, %v6173_v5  ;;  %v9474_v24 = vpop.f32.mrf.mxu0  ;;  %v16280_v23 = vpop.permute.xlu0 %7477 }
 0x6b7   : > { %v7007_v0 = vpop.f32.mrf.mxu1  ;;  %v16271_v48 = vadd.f32 %v9474_v24, %v9473_v35 }
 0x6b8   : > { %11298 = vtanh.f32 %v7006_v44  ;;  %v16274_v38 = vpop.f32.mrf.mxu0 }
 0x6b9   : > { %v7010_v53 = vpop.f32.mrf.mxu1  ;;  %17285 = vst [vmem:[#allocation23_spill] sm:$0xff] %v16274_v38  ;;  %v11293_v5 = vpop.eup %11292 }
 0x6ba   : > { %v7011_v39 = vadd.f32 %v7010_v53, %v6178_v43  ;;  %v16278_v20 = vpop.f32.mrf.mxu0  ;;  %v16283_v38 = vpop.permute.xlu1 %7482 }
 0x6bb   : > { %v7012_v63 = vpop.f32.mrf.mxu1  ;;  %17287 = vst [vmem:[#allocation8_spill] sm:$0xff] %v16278_v20  ;;  %v16291_v9 = vpop.permute.xlu0 %7467 }
 0x6bc   : > { %v9479_v35 = vpop.f32.mrf.mxu0  ;;  %11300 = vtanh.f32 %v7011_v39  ;;  %v6186_v63 = vadd.f32 %v16119_v25, %v16215_v13 }
 0x6bd   : > { %v11295_v0 = vpop.eup %11294  ;;  %v7013_v44 = vpop.f32.mrf.mxu1 }
 0x6be   : > { %v7014_v24 = vadd.f32 %v7013_v44, %v6181_v14  ;;  %v7335_v37 = vpack.c.bf16 %v11295_v0, %v11293_v5  ;;  %v9480_v3 = vpop.f32.mrf.mxu0  ;;  %v6189_v5 = vadd.f32 %v16125_v55, %v16221_v18  ;;  %v17291_v18 = vpack.c.bf16 %v16137_v26, %v16133_v51 }
 0x6bf   : > { %v7015_v8 = vpop.f32.mrf.mxu1  ;;  %v16285_v53 = vadd.f32 %v9480_v3, %v9479_v35 }
 0x6c0   : > { %11302 = vtanh.f32 %v7014_v24  ;;  %v16289_v32 = vpop.f32.mrf.mxu0  ;;  %v16297_v24 = vpop.permute.xlu1 %7472 }
 0x6c1   : > { %v7018_v43 = vpop.f32.mrf.mxu1  ;;  %17288 = vst [vmem:[#allocation5_spill] sm:$0xff] %v16289_v32  ;;  %v11297_v39 = vpop.eup %11296 }
 0x6c2   : > { %v7019_v61 = vadd.f32 %v7018_v43, %v6186_v63  ;;  %v16293_v14 = vpop.f32.mrf.mxu0  ;;  %v7458_v32 = vpop.permute.xlu0 %7457 }
 0x6c3   : > { %v7020_v20 = vpop.f32.mrf.mxu1  ;;  %17289 = vst [vmem:[#allocation22_spill] sm:$0xff] %v16293_v14 }
 0x6c4   : > { %v9485_v35 = vpop.f32.mrf.mxu0  ;;  %11304 = vtanh.f32 %v7019_v61  ;;  %v17290_v20 = vld [vmem:[#allocation122_spill] sm:$0xff] }
 0x6c5   : > { %v11299_v0 = vpop.eup %11298  ;;  %v7021_v44 = vpop.f32.mrf.mxu1  ;;  %v6194_v43 = vadd.f32 %v16139_v12, %v17290_v20 }
 0x6c6   : > { %v7022_v8 = vadd.f32 %v7021_v44, %v6189_v5  ;;  %v7336_v25 = vpack.c.bf16 %v11299_v0, %v11297_v39  ;;  %v9486_v3 = vpop.f32.mrf.mxu0  ;;  %v7463_v44 = vpop.permute.xlu1 %7462 }
 0x6c7   : > { %v7023_v13 = vpop.f32.mrf.mxu1  ;;  %v16299_v63 = vadd.f32 %v9486_v3, %v9485_v35  ;;  %v17293_v3 = vpack.c.bf16 %v16117_v27, %v16113_v50  ;;  %v7448_v51 = vpop.permute.xlu0 %7447  ;;  %v17295_v27 = vld [vmem:[#allocation89_spill] sm:$0xff] }
 0x6c8   : > { %11306 = vtanh.f32 %v7022_v8  ;;  %9723 = vmatprep.subr.bf16.mxu1 %v7336_v25  ;;  %v9488_v55 = vpop.f32.mrf.mxu0  ;;  %v17292_v8 = vld [vmem:[#allocation114_spill] sm:$0xff] }
 0x6c9   : > { %v7026_v14 = vpop.f32.mrf.mxu1  ;;  %9724 = vmatpush3.bf16.msra.mxu1 %v17291_v18  ;;  %v16306_v0 = vpop.eup %11300  ;;  %v6197_v35 = vadd.f32 %v16145_v16, %v17292_v8  ;;  %v9454_v55 = vadd.f32 %v16193_v33, %v16185_v31  ;;  %v6202_v18 = vadd.f32 %v16159_v41, %v17295_v27  ;;  %v17302_v27 = vpack.c.bf16 %v16199_v11, %v16195_v1 }
 0x6ca   : > { %9725 = vmatprep.subr.bf16.mxu1 %v7335_v37  ;;  %v7027_v5 = vadd.f32 %v7026_v14, %v6194_v43  ;;  %v9489_v61 = vpop.f32.mrf.mxu0  ;;  %v17294_v37 = vpack.c.bf16 %v16265_v28, %v16259_v29  ;;  %v8002_v43 = vadd.f32 %v16181_v60, %v7448_v51  ;;  %v17296_v29 = vpack.c.bf16 %v16097_v54, %v16093_v22  ;;  %v7453_v28 = vpop.permute.xlu1 %7452 }
 0x6cb   : > { %v7028_v39 = vpop.f32.mrf.mxu1  ;;  %v17297_v60 = vpack.c.bf16 %v16241_v49, %v16237_v2  ;;  %v17304_v1 = vpack.c.bf16 %v16177_v4, %v16173_v52  ;;  %v17306_v4 = vpack.c.bf16 %v16157_v10, %v16153_v58  ;;  %v10768_v58 = vld [vmem:[%s16655_s7 + $0x94] ss:$52 sps:$4 sm:$0xff]  }
 0x6cc   : > { %v9507_v12 = vpop.f32.mrf.mxu0  ;;  %11308 = vtanh.f32 %v7027_v5 }
 0x6cd   : > { %v16310_v25 = vpop.eup %11302  ;;  %v7029_v13 = vpop.f32.mrf.mxu1  ;;  %9726 = vmatpush3.bf16.msra.mxu1 %v17293_v3 }
 0x6ce   : > { %v7030_v26 = vadd.f32 %v7029_v13, %v6197_v35  ;;  %9727 = vmatprep.subr.bf16.mxu1 %v17294_v37  ;;  %v7337_v14 = vpack.c.bf16 %v16310_v25, %v16306_v0  ;;  %v9508_v16 = vpop.f32.mrf.mxu0  ;;  %v17298_v13 = vld [vmem:[#allocation84_spill] sm:$0xff]  ;;  %v17300_v37 = vpack.c.bf16 %v16225_v7, %v16219_v40 }
 0x6cf   : > { %v7031_v20 = vpop.f32.mrf.mxu1  ;;  %v9509_v50 = vadd.f32 %v9508_v16, %v9507_v12  ;;  %v6205_v41 = vadd.f32 %v16165_v15, %v17298_v13  ;;  %v8005_v12 = vadd.f32 %v9454_v55, %v7453_v28  ;;  %v9460_v55 = vadd.f32 %v16217_v62, %v16210_v34 }
 0x6d0   : > { %11310 = vtanh.f32 %v7030_v26  ;;  %v9510_v61 = vpop.f32.mrf.mxu0  ;;  %v17299_v26 = vpack.c.bf16 %v16080_v47, %v16076_v42 }
 0x6d1   : > { %v7034_v39 = vpop.f32.mrf.mxu1  ;;  %9728 = vmatpush3.bf16.msra.mxu1 %v17296_v29  ;;  %v16328_v5 = vadd.f32 %v9509_v50, %v8002_v43  ;;  %v16333_v35 = vpop.eup %11304  ;;  %v8010_v43 = vadd.f32 %v16206_v36, %v7458_v32  ;;  %v17301_v50 = vpack.c.bf16 %v16053_v59, %v16049_v56  ;;  %v8013_v32 = vadd.f32 %v9460_v55, %v7463_v44 }
 0x6d2   : > { %9729 = vmatprep.subr.bf16.mxu1 %v17297_v60  ;;  %v7035_v8 = vadd.f32 %v7034_v39, %v6202_v18  ;;  %v9511_v33 = vpop.f32.mrf.mxu0  ;;  %v17303_v56 = vpack.c.bf16 %v16021_v30, %v16017_v21  ;;  %v8018_v44 = vadd.f32 %v16229_v46, %v16291_v9  ;;  %v17305_v30 = vpack.c.bf16 %v15989_v45, %v15985_v57 }
 0x6d3   : > { %v7036_v31 = vpop.f32.mrf.mxu1  ;;  %v9512_v3 = vadd.f32 %v9511_v33, %v9510_v61 }
 0x6d4   : > { %v9513_v54 = vpop.f32.mrf.mxu0  ;;  %11312 = vtanh.f32 %v7035_v8  ;;  %v9466_v31 = vadd.f32 %v16235_v19, %v16233_v17 }
 0x6d5   : > { %v16337_v51 = vpop.eup %11306  ;;  %v7037_v22 = vpop.f32.mrf.mxu1  ;;  %9730 = vmatpush3.bf16.msra.mxu1 %v17299_v26  ;;  %v16342_v2 = vadd.f32 %v9512_v3, %v8005_v12  ;;  %v10763_v3 = vld [vmem:[%s16655_s7 + $0x28] ss:$52 sps:$4 sm:$0xff]  }
 0x6d6   : > { %v7038_v49 = vadd.f32 %v7037_v22, %v6205_v41  ;;  %9731 = vmatprep.subr.bf16.mxu1 %v17300_v37  ;;  %v7338_v15 = vpack.c.bf16 %v16337_v51, %v16333_v35  ;;  %v9514_v20 = vpop.f32.mrf.mxu0  ;;  %v8021_v17 = vadd.f32 %v9466_v31, %v16297_v24  ;;  %v17309_v37 = vmov 0.0   ;;  %v17314_v31 = vld [vmem:[#allocation23_spill] sm:$0xff]  ;;  %v10769_v35 = vld [vmem:[%s16655_s7 + $0xf8] ss:$52 sps:$4 sm:$0xff]  }
 0x6d7   : > { %v7039_v16 = vpop.f32.mrf.mxu1  ;;  %v9515_v42 = vadd.f32 %v9514_v20, %v9513_v54  ;;  %v17307_v54 = vld [vmem:[#allocation112_spill] sm:$0xff]  ;;  %v17310_v20 = vld [vmem:[#allocation109_spill] sm:$0xff] }
 0x6d8   : > { %11314 = vtanh.f32 %v7038_v49  ;;  %v9516_v47 = vpop.f32.mrf.mxu0  ;;  %v17308_v26 = vpack.c.bf16 %v15957_v6, %v17307_v54  ;;  %v8026_v16 = vadd.f32 %v17310_v20, %v16280_v23 }
 0x6d9   : > { %9732 = vmatpush3.bf16.msra.mxu1 %v17301_v50  ;;  %v9623_v40 = vpop.f32.mrf.mxu1  ;;  %v16355_v7 = vadd.f32 %v9515_v42, %v8010_v43  ;;  %v11309_v36 = vpop.eup %11308  ;;  %v17311_v42 = vld [vmem:[#allocation75_spill] sm:$0xff] }
 0x6da   : > { %9733 = vmatprep.subr.bf16.mxu1 %v17302_v27  ;;  %v9517_v18 = vpop.f32.mrf.mxu0 }
 0x6db   : > { %v9624_v39 = vpop.f32.mrf.mxu1  ;;  %v9518_v61 = vadd.f32 %v9517_v18, %v9516_v47  ;;  %v17312_v47 = vld [vmem:[#allocation10_spill] sm:$0xff] }
 0x6dc   : > { %v16360_v62 = vadd.f32 %v9624_v39, %v9623_v40  ;;  %v9519_v29 = vpop.f32.mrf.mxu0  ;;  %v9472_v50 = vadd.f32 %v17312_v47, %v17311_v42 }
 0x6dd   : > { %v11311_v34 = vpop.eup %11310  ;;  %9734 = vmatpush3.bf16.msra.mxu1 %v17303_v56  ;;  %v9626_v59 = vpop.f32.mrf.mxu1  ;;  %v16365_v28 = vadd.f32 %v9518_v61, %v8013_v32 }
 0x6de   : > { %9735 = vmatprep.subr.bf16.mxu1 %v17304_v1  ;;  %v7339_v11 = vpack.c.bf16 %v11311_v34, %v11309_v36  ;;  %v9520_v60 = vpop.f32.mrf.mxu0  ;;  %v8029_v23 = vadd.f32 %v9472_v50, %v16283_v38  ;;  %v10766_v34 = vld [vmem:[%s16655_s7 + $0x90] ss:$52 sps:$4 sm:$0xff]   ;;  %v10776_v50 = vld [vmem:[%s16655_s7 + $0x98] ss:$52 sps:$4 sm:$0xff]  }
 0x6df   : > { %v9627_v8 = vpop.f32.mrf.mxu1  ;;  %v9521_v33 = vadd.f32 %v9520_v60, %v9519_v29 }
 0x6e0   : > { %v16374_v13 = vadd.f32 %v9627_v8, %v9626_v59  ;;  %v9522_v21 = vpop.f32.mrf.mxu0  ;;  %v10771_v59 = vld [vmem:[%s16655_s7 + $0xfc] ss:$52 sps:$4 sm:$0xff]   ;;  %v17313_v8 = vld [vmem:[#allocation24_spill] sm:$0xff] }
 0x6e1   : > { %9736 = vmatpush3.bf16.msra.mxu1 %v17305_v30  ;;  %v9629_v41 = vpop.f32.mrf.mxu1  ;;  %v16379_v52 = vadd.f32 %v9521_v33, %v8018_v44  ;;  %v11313_v9 = vpop.eup %11312  ;;  %v8034_v38 = vadd.f32 %v16271_v48, %v17313_v8  ;;  %v17315_v33 = vld [vmem:[#allocation8_spill] sm:$0xff] }
 0x6e2   : > { %9737 = vmatprep.subr.bf16.mxu1 %v17306_v4  ;;  %v9523_v12 = vpop.f32.mrf.mxu0 }
 0x6e3   : > { %v9630_v46 = vpop.f32.mrf.mxu1  ;;  %v9524_v19 = vadd.f32 %v9523_v12, %v9522_v21  ;;  %v9478_v21 = vadd.f32 %v17315_v33, %v17314_v31 }
 0x6e4   : > { %v16388_v22 = vadd.f32 %v9630_v46, %v9629_v41  ;;  %v9525_v45 = vpop.f32.mrf.mxu0 }
 0x6e5   : > { %v11315_v57 = vpop.eup %11314  ;;  %9738 = vmatpush3.bf16.msra.mxu1 %v17308_v26  ;;  %v9632_v10 = vpop.f32.mrf.mxu1  ;;  %v16396_v49 = vadd.f32 %v9524_v19, %v8021_v17  ;;  %v17316_v19 = vld [vmem:[#allocation39_spill] sm:$0xff] }
 0x6e6   : > { %v7340_v24 = vpack.c.bf16 %v11315_v57, %v11313_v9  ;;  %9982 = vmatprep.subr.bf16.mxu1 %v17309_v37  ;;  %v9526_v43 = vpop.f32.mrf.mxu0  ;;  %v10772_v9 = vld [vmem:[%s16655_s7 + $0x30] ss:$52 sps:$4 sm:$0xff]  }
 0x6e7   : > { %v9633_v55 = vpop.f32.mrf.mxu1  ;;  %v9527_v6 = vadd.f32 %v9526_v43, %v9525_v45  ;;  %v10775_v45 = vld [vmem:[%s16655_s7 + $0x164] ss:$52 sps:$4 sm:$0xff]  }
 0x6e8   : > { %8440 = vmatmul.mubr.bf16.vlgmr.msra.gmra.mxu1 %v10763_v3  ;;  %9947 = vmatpush3.bf16.msra.mxu0 %v7340_v24  ;;  %v16403_v40 = vadd.f32 %v9633_v55, %v9632_v10  ;;  %v9528_v27 = vpop.f32.mrf.mxu0  ;;  %v8037_v3 = vadd.f32 %v9478_v21, %v17316_v19  ;;  %v17319_v24 = vld [vmem:[#allocation22_spill] sm:$0xff]  ;;  %v10783_v19 = vld [vmem:[%s16655_s7 + $0x234] ss:$52 sps:$4 sm:$0xff]  }
 0x6e9   : > { %9948 = vmatprep.subr.bf16.mxu0 %v17309_v37  ;;  %8447 = vmatprep.mubr.bf16.mxu1 %v10768_v58  ;;  %v9635_v18 = vpop.f32.mrf.mxu1  ;;  %v16406_v39 = vadd.f32 %v9527_v6, %v8026_v16  ;;  %v17317_v58 = vld [vmem:[#allocation108_spill] sm:$0xff] }
 0x6ea   : > { %v9529_v36 = vpop.f32.mrf.mxu0  ;;  %v8042_v10 = vadd.f32 %v16285_v53, %v17317_v58 }
 0x6eb   : > { %v9636_v32 = vpop.f32.mrf.mxu1  ;;  %v9530_v61 = vadd.f32 %v9529_v36, %v9528_v27  ;;  %v17320_v27 = vld [vmem:[#allocation7_spill] sm:$0xff] }
 0x6ec   : > { %9949 = vmatpush3.bf16.msra.mxu0 %v7339_v11  ;;  %v16412_v29 = vadd.f32 %v9636_v32, %v9635_v18  ;;  %v9531_v56 = vpop.f32.mrf.mxu0  ;;  %v10773_v32 = vld [vmem:[%s16655_s7 + $0x160] ss:$52 sps:$4 sm:$0xff]  }
 0x6ed   : > { %9950 = vmatprep.subr.bf16.mxu0 %v17309_v37  ;;  %v9638_v1 = vpop.f32.mrf.mxu1  ;;  %v16418_v60 = vadd.f32 %v9530_v61, %v8029_v23 }
 0x6ee   : > { %v9532_v11 = vpop.f32.mrf.mxu0 }
 0x6ef   : > { %v9639_v44 = vpop.f32.mrf.mxu1  ;;  %v9533_v30 = vadd.f32 %v9532_v11, %v9531_v56 }
 0x6f0   : > { %8448 = vmatmul.mubr.bf16.gmra.mxu1 %v10766_v34  ;;  %9951 = vmatpush3.bf16.msra.mxu0 %v7338_v15  ;;  %v16427_v41 = vadd.f32 %v9639_v44, %v9638_v1  ;;  %v9534_v4 = vpop.f32.mrf.mxu0  ;;  %v10779_v34 = vld [vmem:[%s16655_s7 + $0x1cc] ss:$52 sps:$4 sm:$0xff]  }
 0x6f1   : > { %9952 = vmatprep.subr.bf16.mxu0 %v17309_v37  ;;  %8455 = vmatprep.mubr.bf16.mxu1 %v10771_v59  ;;  %v9641_v12 = vpop.f32.mrf.mxu1  ;;  %v16430_v46 = vadd.f32 %v9533_v30, %v8034_v38  ;;  %v17321_v38 = vld [vmem:[#allocation113_spill] sm:$0xff] }
 0x6f2   : > { %v9535_v48 = vpop.f32.mrf.mxu0  ;;  %v8050_v11 = vadd.f32 %v16299_v63, %v17321_v38  ;;  %v10777_v63 = vld [vmem:[%s16655_s7 + $0x1c8] ss:$52 sps:$4 sm:$0xff]  }
 0x6f3   : > { %v9642_v17 = vpop.f32.mrf.mxu1  ;;  %v9536_v57 = vadd.f32 %v9535_v48, %v9534_v4 }
 0x6f4   : > { %9953 = vmatpush3.bf16.msra.mxu0 %v7337_v14  ;;  %v16442_v51 = vadd.f32 %v9642_v17, %v9641_v12  ;;  %v9537_v15 = vpop.f32.mrf.mxu0  ;;  %v17318_v14 = vld [vmem:[#allocation5_spill] sm:$0xff] }
 0x6f5   : > { %v9644_v54 = vpop.f32.mrf.mxu1  ;;  %v16447_v26 = vadd.f32 %v9536_v57, %v8037_v3  ;;  %v9484_v20 = vadd.f32 %v17319_v24, %v17318_v14  ;;  %v10780_v12 = vld [vmem:[%s16655_s7 + $0x100] ss:$52 sps:$4 sm:$0xff]   ;;  %v10784_v14 = vld [vmem:[%s16655_s7 + $0x168] ss:$52 sps:$4 sm:$0xff]  }
 0x6f6   : > { %v9538_v0 = vpop.f32.mrf.mxu0 }
 0x6f7   : > { %9955 = vmatmul.mubr.msk.bf16.vlgmr.msra.gmra.mxu0 %vm7945_vm5, %v10772_v9  ;;  %v9645_v25 = vpop.f32.mrf.mxu1  ;;  %v9539_v16 = vadd.f32 %v9538_v0, %v9537_v15  ;;  %v8045_v18 = vadd.f32 %v9484_v20, %v17320_v27  ;;  %v7430_v0 = vld [vmem:[%s16655_s7 + $0x298] sm:$0x33] }
 0x6f8   : > { %8456 = vmatmul.mubr.bf16.gmra.mxu1 %v10769_v35  ;;  %9958 = vmatprep.mubr.msk.bf16.mxu0 %vm11368_vm0, %v17309_v37  ;;  %v16456_v43 = vadd.f32 %v9645_v25, %v9644_v54  ;;  %v9540_v55 = vpop.f32.mrf.mxu0 }
 0x6f9   : > { %8463 = vmatprep.mubr.bf16.mxu1 %v10775_v45  ;;  %v9647_v42 = vpop.f32.mrf.mxu1  ;;  %v16458_v47 = vadd.f32 %v9539_v16, %v8042_v10 }
 0x6fa   : > { %v9541_v53 = vpop.f32.mrf.mxu0 }
 0x6fb   : > { %v9648_v6 = vpop.f32.mrf.mxu1  ;;  %v9542_v36 = vadd.f32 %v9541_v53, %v9540_v55  ;;  %v10781_v55 = vld [vmem:[%s16655_s7 + $0x230] ss:$52 sps:$4 sm:$0xff]   ;;  %v9380_v53 = vcombine.high %v7430_v0, %v7430_v0 }
 0x6fc   : > { %v16467_v23 = vadd.f32 %v9648_v6, %v9647_v42  ;;  %v9543_v61 = vpop.f32.mrf.mxu0 }
 0x6fd   : > { %v9650_v56 = vpop.f32.mrf.mxu1  ;;  %v16472_v59 = vadd.f32 %v9542_v36, %v8045_v18 }
 0x6fe   : > { %v9544_v1 = vpop.f32.mrf.mxu0 }
 0x6ff   : > { %9959 = vmatmul.mubr.msk.bf16.gmra.mxu0 %vm7945_vm5, %v10776_v50  ;;  %v9651_v8 = vpop.f32.mrf.mxu1  ;;  %v9545_v44 = vadd.f32 %v9544_v1, %v9543_v61 }
 0x700   : > { %8464 = vmatmul.mubr.bf16.gmra.mxu1 %v10773_v32  ;;  %9962 = vmatprep.mubr.msk.bf16.mxu0 %vm11368_vm0, %v17309_v37  ;;  %v16479_v31 = vadd.f32 %v9651_v8, %v9650_v56  ;;  %v9546_v33 = vpop.f32.mrf.mxu0 }
 0x701   : > { %8471 = vmatprep.mubr.bf16.mxu1 %v10779_v34  ;;  %v9653_v21 = vpop.f32.mrf.mxu1  ;;  %v16481_v30 = vadd.f32 %v9545_v44, %v8050_v11 }
 0x702   : > { %v9547_v4 = vpop.f32.mrf.mxu0 }
 0x703   : > { %v9654_v48 = vpop.f32.mrf.mxu1 }
 0x704   : > { %v16489_v9 = vadd.f32 %v9654_v48, %v9653_v21  ;;  %v9565_v17 = vpop.f32.mrf.mxu0 }
 0x705   : > { %v9656_v3 = vpop.f32.mrf.mxu1 }
 0x706   : > { %v9566_v57 = vpop.f32.mrf.mxu0 }
 0x707   : > { %9963 = vmatmul.mubr.msk.bf16.gmra.mxu0 %vm7945_vm5, %v10780_v12  ;;  %v9657_v35 = vpop.f32.mrf.mxu1  ;;  %v9567_v15 = vadd.f32 %v9566_v57, %v9565_v17 }
 0x708   : > { %8472 = vmatmul.mubr.bf16.gmra.mxu1 %v10777_v63  ;;  %9966 = vmatprep.mubr.msk.bf16.mxu0 %vm11368_vm0, %v17309_v37  ;;  %v16497_v45 = vadd.f32 %v9657_v35, %v9656_v3  ;;  %v9568_v54 = vpop.f32.mrf.mxu0 }
 0x709   : > { %8479 = vmatprep.mubr.bf16.mxu1 %v10783_v19  ;;  %v9659_v58 = vpop.f32.mrf.mxu1  ;;  %v8178_v10 = vadd.f32 %v9567_v15, %v16328_v5 }
 0x70a   : > { %v9569_v25 = vpop.f32.mrf.mxu0 }
 0x70b   : > { %v9660_v24 = vpop.f32.mrf.mxu1  ;;  %v16507_v20 = vadd.f32 %v16360_v62, %v8178_v10  ;;  %v9570_v16 = vadd.f32 %v9569_v25, %v9568_v54 }
 0x70c   : > { %v16512_v42 = vadd.f32 %v9660_v24, %v9659_v58  ;;  %v9571_v5 = vpop.f32.mrf.mxu0 }
 0x70d   : > { %v9662_v50 = vpop.f32.mrf.mxu1  ;;  %v8181_v6 = vadd.f32 %v9570_v16, %v16342_v2  ;;  %v10787_v2 = vld [vmem:[%s16655_s7 + $0x1d0] ss:$52 sps:$4 sm:$0xff]  }
 0x70e   : > { %v9572_v27 = vpop.f32.mrf.mxu0 }
 0x70f   : > { %9967 = vmatmul.mubr.msk.bf16.gmra.mxu0 %vm7945_vm5, %v10784_v14  ;;  %v9663_v18 = vpop.f32.mrf.mxu1  ;;  %v16517_v36 = vadd.f32 %v16374_v13, %v8181_v6  ;;  %v9573_v62 = vadd.f32 %v9572_v27, %v9571_v5  ;;  %v9379_v13 = vcombine.low %v7430_v0, %v7430_v0 }
 0x710   : > { %8480 = vmatmul.mubr.bf16.gmra.mxu1 %v10781_v55  ;;  %9970 = vmatprep.mubr.msk.bf16.mxu0 %vm11368_vm0, %v17309_v37  ;;  %v9574_v32 = vpop.f32.mrf.mxu0 }
 0x711   : > { %8487 = vmatprep.mubr.bf16.mxu1 %v9380_v53  ;;  %v8186_v61 = vadd.f32 %v9573_v62, %v16355_v7 }
 0x712   : > { %v9575_v34 = vpop.f32.mrf.mxu0 }
 0x713   : > { %v16526_v56 = vadd.f32 %v16388_v22, %v8186_v61  ;;  %v9576_v1 = vadd.f32 %v9575_v34, %v9574_v32 }
 0x714   : > { %v9577_v8 = vpop.f32.mrf.mxu0 }
 0x715   : > { %v8189_v38 = vadd.f32 %v9576_v1, %v16365_v28  ;;  %v10788_v28 = vld [vmem:[%s16655_s7 + $0x238] ss:$52 sps:$4 sm:$0xff]  }
 0x716   : > { %v9578_v11 = vpop.f32.mrf.mxu0 }
 0x717   : > { %9971 = vmatmul.mubr.msk.bf16.gmra.mxu0 %vm7945_vm5, %v10787_v2  ;;  %v16531_v44 = vadd.f32 %v16403_v40, %v8189_v38  ;;  %v9579_v7 = vadd.f32 %v9578_v11, %v9577_v8 }
 0x718   : > { %8488 = vmatmul.mubr.bf16.gmra.mxu1 %v9379_v13  ;;  %9974 = vmatprep.mubr.msk.bf16.mxu0 %vm11368_vm0, %v17309_v37  ;;  %v9580_v33 = vpop.f32.mrf.mxu0 }
 0x719   : > { %9996 = vmatprep.mubr.msk.bf16.mxu1 %vm11368_vm0, %v17309_v37  ;;  %v8194_v22 = vadd.f32 %v9579_v7, %v16379_v52 }
 0x71a   : > { %v9581_v21 = vpop.f32.mrf.mxu0 }
 0x71b   : > { %v16542_v4 = vadd.f32 %v16412_v29, %v8194_v22  ;;  %v9582_v40 = vadd.f32 %v9581_v21, %v9580_v33  ;;  %v10789_v29 = vld [vmem:[%s16655_s7 + $0x2a0] ss:$0 sps:$4 sm:$0x33]  }
 0x71c   : > { %v9583_v12 = vpop.f32.mrf.mxu0 }
 0x71d   : > { %v8197_v48 = vadd.f32 %v9582_v40, %v16396_v49 }
 0x71e   : > { %v9584_v63 = vpop.f32.mrf.mxu0 }
 0x71f   : > { %9975 = vmatmul.mubr.msk.bf16.gmra.mxu0 %vm7945_vm5, %v10788_v28  ;;  %v16547_v17 = vadd.f32 %v16427_v41, %v8197_v48  ;;  %v9585_v19 = vadd.f32 %v9584_v63, %v9583_v12 }
 0x720   : > { %9978 = vmatprep.mubr.msk.bf16.mxu0 %vm11368_vm0, %v17309_v37  ;;  %v9586_v52 = vpop.f32.mrf.mxu0 }
 0x721   : > { %v8202_v3 = vadd.f32 %v9585_v19, %v16406_v39 }
 0x722   : > { %v9587_v57 = vpop.f32.mrf.mxu0 }
 0x723   : > { %v8290_v49 = vadd.f32 %v16442_v51, %v8202_v3  ;;  %v9588_v35 = vadd.f32 %v9587_v57, %v9586_v52 }
 0x724   : > { %v9589_v15 = vpop.f32.mrf.mxu0 }
 0x725   : > { %v8205_v54 = vadd.f32 %v9588_v35, %v16418_v60 }
 0x726   : > { %v9590_v41 = vpop.f32.mrf.mxu0 }
 0x727   : > { %9979 = vmatmul.mubr.msk.bf16.gmra.mxu0 %vm7945_vm5, %v10789_v29  ;;  %v8293_v58 = vadd.f32 %v16456_v43, %v8205_v54  ;;  %v9591_v10 = vadd.f32 %v9590_v41, %v9589_v15 }
 0x728   : > { %v9592_v0 = vpop.f32.mrf.mxu0 }
 0x729   : > { %v8210_v39 = vadd.f32 %v9591_v10, %v16430_v46 }
 0x72a   : > { %v9593_v25 = vpop.f32.mrf.mxu0 }
 0x72b   : > { %v8298_v14 = vadd.f32 %v16467_v23, %v8210_v39  ;;  %v9594_v24 = vadd.f32 %v9593_v25, %v9592_v0 }
 0x72c   : > { %v9595_v16 = vpop.f32.mrf.mxu0 }
 0x72d   : > { %v8213_v51 = vadd.f32 %v9594_v24, %v16447_v26 }
 0x72e   : > { %v9596_v55 = vpop.f32.mrf.mxu0 }
 0x72f   : > { %v8301_v5 = vadd.f32 %v16479_v31, %v8213_v51  ;;  %v9597_v60 = vadd.f32 %v9596_v55, %v9595_v16 }
 0x730   : > { %v9598_v53 = vpop.f32.mrf.mxu0 }
 0x731   : > { %v8218_v50 = vadd.f32 %v9597_v60, %v16458_v47 }
 0x732   : > { %v9599_v6 = vpop.f32.mrf.mxu0 }
 0x733   : > { %v8306_v43 = vadd.f32 %v16489_v9, %v8218_v50  ;;  %v9600_v27 = vadd.f32 %v9599_v6, %v9598_v53 }
 0x734   : > { %v9601_v18 = vpop.f32.mrf.mxu0 }
 0x735   : > { %v8221_v46 = vadd.f32 %v9600_v27, %v16472_v59 }
 0x736   : > { %v9602_v62 = vpop.f32.mrf.mxu0 }
 0x737   : > { %v8309_v23 = vadd.f32 %v16497_v45, %v8221_v46  ;;  %v9603_v32 = vadd.f32 %v9602_v62, %v9601_v18 }
 0x738   : > { %v9604_v61 = vpop.f32.mrf.mxu0 }
 0x739   : > { %v8226_v26 = vadd.f32 %v9603_v32, %v16481_v30 }
 0x73a   : > { %v9605_v34 = vpop.f32.mrf.mxu0 }
 0x73b   : > { %v8314_v31 = vadd.f32 %v16512_v42, %v8226_v26 }
 0x73c   : > { %v9681_v2 = vpop.f32.mrf.mxu0 }
 0x73e   : > { %v9682_v1 = vpop.f32.mrf.mxu0 }
 0x73f   : > { %v9683_v47 = vadd.f32 %v9682_v1, %v9681_v2 }
 0x740   : > { %v9684_v13 = vpop.f32.mrf.mxu0 }
 0x741   : > { %v8354_v9 = vadd.f32 %v9683_v47, %v16507_v20 }
 0x742   : > { %v9685_v8 = vpop.f32.mrf.mxu0 }
 0x743   : > { %v9686_v38 = vadd.f32 %v9685_v8, %v9684_v13 }
 0x744   : > { %v9687_v11 = vpop.f32.mrf.mxu0 }
 0x745   : > { %v8357_v59 = vadd.f32 %v9686_v38, %v16517_v36 }
 0x746   : > { %v9688_v7 = vpop.f32.mrf.mxu0 }
 0x747   : > { %v9689_v45 = vadd.f32 %v9688_v7, %v9687_v11 }
 0x748   : > { %v9690_v33 = vpop.f32.mrf.mxu0 }
 0x749   : > { %v8362_v22 = vadd.f32 %v9689_v45, %v16526_v56 }
 0x74a   : > { %v9691_v30 = vpop.f32.mrf.mxu0 }
 0x74b   : > { %v9692_v21 = vadd.f32 %v9691_v30, %v9690_v33 }
 0x74c   : > { %v9693_v28 = vpop.f32.mrf.mxu0 }
 0x74d   : > { %v8365_v42 = vadd.f32 %v9692_v21, %v16531_v44 }
 0x74e   : > { %v9694_v40 = vpop.f32.mrf.mxu0 }
 0x74f   : > { %v9695_v12 = vadd.f32 %v9694_v40, %v9693_v28 }
 0x750   : > { %v9696_v48 = vpop.f32.mrf.mxu0 }
 0x751   : > { %v16574_v20 = vadd.f32 %v9695_v12, %v16542_v4 }
 0x752   : > { %v9697_v63 = vpop.f32.mrf.mxu0 }
 0x753   : > { %v9698_v19 = vadd.f32 %v9697_v63, %v9696_v48 }
 0x754   : > { %v9699_v52 = vpop.f32.mrf.mxu0 }
 0x755   : > { %v16577_v36 = vadd.f32 %v9698_v19, %v16547_v17 }
 0x756   : > { %v9700_v3 = vpop.f32.mrf.mxu0 }
 0x757   : > { %v9701_v57 = vadd.f32 %v9700_v3, %v9699_v52 }
 0x758   : > { %v9702_v56 = vpop.f32.mrf.mxu0 }
 0x759   : > { %v16579_v29 = vadd.f32 %v9701_v57, %v8290_v49 }
 0x75a   : > { %v9703_v35 = vpop.f32.mrf.mxu0 }
 0x75b   : > { %v9704_v15 = vadd.f32 %v9703_v35, %v9702_v56 }
 0x75c   : > { %v9705_v44 = vpop.f32.mrf.mxu0 }
 0x75d   : > { %v16581_v54 = vadd.f32 %v9704_v15, %v8293_v58 }
 0x75e   : > { %v9706_v41 = vpop.f32.mrf.mxu0 }
 0x75f   : > { %v9707_v10 = vadd.f32 %v9706_v41, %v9705_v44 }
 0x760   : > { %v9708_v4 = vpop.f32.mrf.mxu0 }
 0x761   : > { %v16583_v0 = vadd.f32 %v9707_v10, %v8298_v14 }
 0x762   : > { %v9709_v39 = vpop.f32.mrf.mxu0 }
 0x763   : > { %v9710_v25 = vadd.f32 %v9709_v39, %v9708_v4 }
 0x764   : > { %v9711_v24 = vpop.f32.mrf.mxu0 }
 0x765   : > { %v16585_v17 = vadd.f32 %v9710_v25, %v8301_v5 }
 0x766   : > { %v9712_v16 = vpop.f32.mrf.mxu0 }
 0x767   : > { %v9713_v51 = vadd.f32 %v9712_v16, %v9711_v24 }
 0x768   : > { %v9714_v55 = vpop.f32.mrf.mxu0 }
 0x769   : > { %v16587_v49 = vadd.f32 %v9713_v51, %v8306_v43 }
 0x76a   : > { %v9715_v60 = vpop.f32.mrf.mxu0 }
 0x76b   : > { %v9716_v53 = vadd.f32 %v9715_v60, %v9714_v55 }
 0x76c   : > { %v9717_v50 = vpop.f32.mrf.mxu0 }
 0x76d   : > { %v16589_v58 = vadd.f32 %v9716_v53, %v8309_v23 }
 0x76e   : > { %v9718_v6 = vpop.f32.mrf.mxu0 }
 0x76f   : > { %v9719_v27 = vadd.f32 %v9718_v6, %v9717_v50 }
 0x770   : > { %v9720_v18 = vpop.f32.mrf.mxu0 }
 0x771   : > { %v16591_v14 = vadd.f32 %v9719_v27, %v8314_v31 }
 0x772   : > { %v9721_v46 = vpop.f32.mrf.mxu0 }
 0x7a8   : > { %v9739_v62 = vpop.f32.mrf.mxu1 }
 0x7aa   : > { %v9740_v32 = vpop.f32.mrf.mxu1 }
 0x7ab   : > { %v9741_v5 = vadd.f32 %v9740_v32, %v9739_v62 }
 0x7ac   : > { %v9742_v61 = vpop.f32.mrf.mxu1 }
 0x7ad   : > { %v8442_v26 = vadd.f32 %v9741_v5, %v8354_v9 }
 0x7ae   : > { %v9743_v34 = vpop.f32.mrf.mxu1 }
 0x7af   : > { %v9744_v2 = vadd.f32 %v9743_v34, %v9742_v61 }
 0x7b0   : > { %v9745_v43 = vpop.f32.mrf.mxu1 }
 0x7b1   : > { %v8445_v1 = vadd.f32 %v9744_v2, %v8357_v59 }
 0x7b2   : > { %v9746_v47 = vpop.f32.mrf.mxu1 }
 0x7b3   : > { %v9747_v13 = vadd.f32 %v9746_v47, %v9745_v43 }
 0x7b4   : > { %v9748_v8 = vpop.f32.mrf.mxu1 }
 0x7b5   : > { %v8450_v23 = vadd.f32 %v9747_v13, %v8362_v22 }
 0x7b6   : > { %v9749_v38 = vpop.f32.mrf.mxu1 }
 0x7b7   : > { %v9750_v11 = vadd.f32 %v9749_v38, %v9748_v8  ;;  %v8529_v7 = vpop.f32.mrf.mxu0 }
 0x7b8   : > { %v8530_v45 = vadd.f32 %v8529_v7, %v8442_v26  ;;  %v9751_v31 = vpop.f32.mrf.mxu1 }
 0x7b9   : > { %v9956_v33 = vpop.f32.mrf.mxu0  ;;  %v8453_v30 = vadd.f32 %v9750_v11, %v8365_v42 }
 0x7ba   : > { %v9752_v21 = vpop.f32.mrf.mxu1  ;;  %11316 = vtanh.f32 %v8530_v45 }
 0x7bb   : > { %v8532_v28 = vpop.f32.mrf.mxu0  ;;  %v9753_v3 = vadd.f32 %v9752_v21, %v9751_v31 }
 0x7bc   : > { %v8533_v40 = vadd.f32 %v8532_v28, %v8445_v1  ;;  %v9754_v12 = vpop.f32.mrf.mxu1 }
 0x7bd   : > { %v9957_v9 = vpop.f32.mrf.mxu0  ;;  %v8458_v41 = vadd.f32 %v9753_v3, %v16574_v20 }
 0x7be   : > { %11318 = vtanh.f32 %v8533_v40  ;;  %v9755_v48 = vpop.f32.mrf.mxu1 }
 0x7bf   : > { %v8537_v59 = vpop.f32.mrf.mxu0  ;;  %v9756_v42 = vadd.f32 %v9755_v48, %v9754_v12 }
 0x7c0   : > { %v9757_v63 = vpop.f32.mrf.mxu1  ;;  %v8538_v19 = vadd.f32 %v8537_v59, %v8450_v23 }
 0x7c1   : > { %v9960_v52 = vpop.f32.mrf.mxu0  ;;  %v8461_v51 = vadd.f32 %v9756_v42, %v16577_v36 }
 0x7c2   : > { %v9758_v22 = vpop.f32.mrf.mxu1  ;;  %11320 = vtanh.f32 %v8538_v19 }
 0x7c3   : > { %v8540_v57 = vpop.f32.mrf.mxu0  ;;  %v9759_v60 = vadd.f32 %v9758_v22, %v9757_v63 }
 0x7c4   : > { %v8541_v56 = vadd.f32 %v8540_v57, %v8453_v30  ;;  %v9760_v35 = vpop.f32.mrf.mxu1 }
 0x7c5   : > { %v9961_v15 = vpop.f32.mrf.mxu0  ;;  %v8466_v62 = vadd.f32 %v9759_v60, %v16579_v29 }
 0x7c6   : > { %11322 = vtanh.f32 %v8541_v56  ;;  %v9761_v44 = vpop.f32.mrf.mxu1 }
 0x7c7   : > { %v8545_v10 = vpop.f32.mrf.mxu0  ;;  %v16594_v24 = vpop.eup %11316  ;;  %v9762_v18 = vadd.f32 %v9761_v44, %v9760_v35 }
 0x7c8   : > { %v9763_v4 = vpop.f32.mrf.mxu1  ;;  %v8546_v39 = vadd.f32 %v8545_v10, %v8458_v41 }
 0x7c9   : > { %v9964_v25 = vpop.f32.mrf.mxu0  ;;  %v8469_v2 = vadd.f32 %v9762_v18, %v16581_v54 }
 0x7ca   : > { %v9764_v16 = vpop.f32.mrf.mxu1  ;;  %11324 = vtanh.f32 %v8546_v39 }
 0x7cb   : > { %v16597_v55 = vpop.eup %11318  ;;  %v8548_v53 = vpop.f32.mrf.mxu0  ;;  %v9765_v1 = vadd.f32 %v9764_v16, %v9763_v4 }
 0x7cc   : > { %v8549_v50 = vadd.f32 %v8548_v53, %v8461_v51  ;;  %v9766_v6 = vpop.f32.mrf.mxu1  ;;  %v8596_v27 = vpack.c.bf16 %v16597_v55, %v16594_v24 }
 0x7cd   : > { %v9965_v20 = vpop.f32.mrf.mxu0  ;;  %v8474_v7 = vadd.f32 %v9765_v1, %v16583_v0 }
 0x7ce   : > { %11326 = vtanh.f32 %v8549_v50  ;;  %v9767_v46 = vpop.f32.mrf.mxu1 }
 0x7cf   : > { %v8553_v32 = vpop.f32.mrf.mxu0  ;;  %v16602_v26 = vpop.eup %11320  ;;  %v9768_v38 = vadd.f32 %v9767_v46, %v9766_v6 }
 0x7d0   : > { %v9769_v5 = vpop.f32.mrf.mxu1  ;;  %v8554_v61 = vadd.f32 %v8553_v32, %v8466_v62 }
 0x7d1   : > { %v9968_v36 = vpop.f32.mrf.mxu0  ;;  %v8477_v28 = vadd.f32 %v9768_v38, %v16585_v17 }
 0x7d2   : > { %v9770_v34 = vpop.f32.mrf.mxu1  ;;  %11328 = vtanh.f32 %v8554_v61 }
 0x7d3   : > { %v16605_v43 = vpop.eup %11322  ;;  %v8556_v47 = vpop.f32.mrf.mxu0  ;;  %v9771_v12 = vadd.f32 %v9770_v34, %v9769_v5 }
 0x7d4   : > { %v8557_v13 = vadd.f32 %v8556_v47, %v8469_v2  ;;  %v9772_v8 = vpop.f32.mrf.mxu1  ;;  %v8597_v23 = vpack.c.bf16 %v16605_v43, %v16602_v26  ;;  %v8608_v5 = vpop.permute.xlu0 %8607 }
 0x7d5   : > { %v9969_v29 = vpop.f32.mrf.mxu0  ;;  %v8482_v0 = vadd.f32 %v9771_v12, %v16587_v49 }
 0x7d6   : > { %11330 = vtanh.f32 %v8557_v13  ;;  %v9773_v11 = vpop.f32.mrf.mxu1 }
 0x7d7   : > { %v8561_v45 = vpop.f32.mrf.mxu0  ;;  %v11325_v30 = vpop.eup %11324  ;;  %v9774_v52 = vadd.f32 %v9773_v11, %v9772_v8 }
 0x7d8   : > { %v9775_v31 = vpop.f32.mrf.mxu1  ;;  %v8562_v33 = vadd.f32 %v8561_v45, %v8474_v7 }
 0x7d9   : > { %v9972_v54 = vpop.f32.mrf.mxu0  ;;  %v8485_v17 = vadd.f32 %v9774_v52, %v16589_v58 }
 0x7da   : > { %v9776_v21 = vpop.f32.mrf.mxu1  ;;  %11332 = vtanh.f32 %v8562_v33 }
 0x7db   : > { %v11327_v40 = vpop.eup %11326  ;;  %v8564_v9 = vpop.f32.mrf.mxu0  ;;  %v9777_v15 = vadd.f32 %v9776_v21, %v9775_v31 }
 0x7dc   : > { %v8565_v48 = vadd.f32 %v8564_v9, %v8477_v28  ;;  %v8598_v59 = vpack.c.bf16 %v11327_v40, %v11325_v30  ;;  %v9778_v63 = vpop.f32.mrf.mxu1 }
 0x7dd   : > { %v9973_v19 = vpop.f32.mrf.mxu0  ;;  %v8490_v39 = vadd.f32 %v9777_v15, %v16591_v14  ;;  %v8603_v14 = vld [vmem:[%s16657_s9] sm:$0xf] }
 0x7de   : > { %11334 = vtanh.f32 %v8565_v48  ;;  %v9779_v22 = vpop.f32.mrf.mxu1 }
 0x7df   : > { %v8569_v3 = vpop.f32.mrf.mxu0  ;;  %v11329_v35 = vpop.eup %11328 }
 0x7e0   : > { %v8570_v57 = vadd.f32 %v8569_v3, %v8482_v0 }
 0x7e1   : > { %v9976_v56 = vpop.f32.mrf.mxu0 }
 0x7e2   : > { %11336 = vtanh.f32 %v8570_v57 }
 0x7e3   : > { %v11331_v42 = vpop.eup %11330  ;;  %v8572_v44 = vpop.f32.mrf.mxu0 }
 0x7e4   : > { %v8573_v41 = vadd.f32 %v8572_v44, %v8485_v17  ;;  %v8599_v10 = vpack.c.bf16 %v11331_v42, %v11329_v35 }
 0x7e5   : > { %v9977_v4 = vpop.f32.mrf.mxu0 }
 0x7e6   : > { %11338 = vtanh.f32 %v8573_v41 }
 0x7e7   : > { %v8577_v25 = vpop.f32.mrf.mxu0  ;;  %v11333_v49 = vpop.eup %11332 }
 0x7e8   : > { %v8578_v16 = vadd.f32 %v8577_v25, %v8490_v39 }
 0x7e9   : > { %v9980_v51 = vpop.f32.mrf.mxu0 }
 0x7ea   : > { %11340 = vtanh.f32 %v8578_v16 }
 0x7eb   : > { %v11335_v60 = vpop.eup %11334  ;;  %v8580_v53 = vpop.f32.mrf.mxu0 }
 0x7ec   : > { %v8600_v50 = vpack.c.bf16 %v11335_v60, %v11333_v49 }
 0x7ed   : > { %v9981_v6 = vpop.f32.mrf.mxu0 }
 0x7ef   : > { %v11337_v20 = vpop.eup %11336 }
 0x7f3   : > { %v11339_v58 = vpop.eup %11338 }
 0x7f4   : > { %v8601_v18 = vpack.c.bf16 %v11339_v58, %v11337_v20 }
 0x7f7   : > { %v11341_v46 = vpop.eup %11340 }
 0x7f8   : > { %v8602_v62 = vpack.c.bf16 %v11341_v46, %v11341_v46 }
 0x7fa   : > { %v8614_v32 = vsel %vm1262_vm2, %v8602_v62, 0 }
 0x7fb   : > { %9983 = vmatpush3.bf16.msra.mxu1 %v8614_v32 }
 0x7fc   : > { %9984 = vmatprep.subr.bf16.mxu1 %v17309_v37 }
 0x7ff   : > { %9985 = vmatpush3.bf16.msra.mxu1 %v8601_v18 }
 0x800   : > { %9986 = vmatprep.subr.bf16.mxu1 %v17309_v37 }
 0x803   : > { %9987 = vmatpush3.bf16.msra.mxu1 %v8600_v50 }
 0x804   : > { %9988 = vmatprep.subr.bf16.mxu1 %v17309_v37 }
 0x807   : > { %9989 = vmatpush3.bf16.msra.mxu1 %v8599_v10 }
 0x808   : > { %9990 = vmatprep.subr.bf16.mxu1 %v17309_v37 }
 0x80b   : > { %9991 = vmatpush3.bf16.msra.mxu1 %v8598_v59 }
 0x80c   : > { %9992 = vmatprep.subr.bf16.mxu1 %v17309_v37 }
 0x80f   : > { %9993 = vmatpush3.bf16.msra.mxu1 %v8597_v23 }
 0x810   : > { %9994 = vmatprep.subr.bf16.mxu1 %v17309_v37 }
 0x813   : > { %9995 = vmatpush3.bf16.msra.mxu1 %v8596_v27 }
 0x816   : > { %9997 = vmatmul.mubr.msk.bf16.vlgmr.msra.gmra.mxu1 %vm1186_vm3, %v8603_v14 }
 0x8d6   : > { %v8650_v37 = vpop.f32.mrf.mxu1 }
 0x8d7   : > { %v8651_v61 = vadd.f32 %v8650_v37, %v8608_v5 }
 0x8d8   : > { %v9998_v24 = vpop.f32.mrf.mxu1 }
 0x8d9   : > { %8656 = vst [vmem:[%s439_s13] sm:$0xff] %v8651_v61 }
 0x8da   : > { %v8653_v55 = vpop.f32.mrf.mxu1 }
 0x8dc   : > { %v9999_v27 = vpop.f32.mrf.mxu1 }
 0x8dd PF: > { %p18_p9 = scmp.ge.s32.totalorder %s11446_s21, 4   ;;  %s17322_s17 = smov %s11360_s18 }
 0x8de   : > { %s17323_s18 = smov %s11455_s24  ;;  %s17324_s19 = smov %s11446_s21 }
 0x8df   :  { %20 = sbr.rel (!%p18_p9) target bundleno = 2 (0x2), region = 140 }

</bundles_post_ra>
